<compile_context>
chip_gen: v7x
topology: tpu7x:2x2x1
jax: 0.10.0
libtpu: 0.0.40
codegen_flags: <defaults>
</compile_context>

<pallas_src>
import functools

import jax
import jax.numpy as jnp
from jax.experimental import pallas as pl
from jax.experimental.pallas import tpu as pltpu

# ----------------------------------------------------------------------------
# Model configuration (small synthetic sizes consistent with the module)
# ----------------------------------------------------------------------------
CFG = dict(
    mask_padding=True,
    n_mel_channels=8,
    n_symbols=40,
    symbols_embedding_dim=32,
    encoder_kernel_size=5,
    encoder_n_convolutions=2,
    encoder_embedding_dim=32,
    attention_rnn_dim=32,
    attention_dim=16,
    attention_location_n_filters=8,
    attention_location_kernel_size=7,
    n_frames_per_step=1,
    decoder_rnn_dim=32,
    prenet_dim=16,
    max_decoder_steps=20,
    gate_threshold=0.5,
    p_attention_dropout=0.1,
    p_decoder_dropout=0.1,
    postnet_embedding_dim=32,
    postnet_kernel_size=5,
    postnet_n_convolutions=3,
    decoder_no_early_stopping=False,
)


def _dott(a, b):
    """a (M, K) @ b(N, K)^T -> (M, N)  (PyTorch nn.Linear layout)."""
    return jax.lax.dot_general(a, b, (((1,), (1,)), ((), ())),
                               preferred_element_type=jnp.float32)


# ----------------------------------------------------------------------------
# Fused conv stack kernel (encoder convs / postnet)
# ----------------------------------------------------------------------------
def _conv_stack_kernel(*refs, K, PAD, T, B, acts, chans):
    n_layers = len(acts)
    x_ref = refs[0]
    w_refs = [refs[1 + 2 * i] for i in range(n_layers)]
    b_refs = [refs[2 + 2 * i] for i in range(n_layers)]
    o_ref = refs[1 + 2 * n_layers]
    act_ref = refs[2 + 2 * n_layers]       # (B, Cmax, T + 2*PAD) activation + halo
    slab_ref = refs[3 + 2 * n_layers]      # (K*Cmax, B*T) im2col slab (all batches)

    # zero halo / unused channels, copy input into the padded middle region
    act_ref[...] = jnp.zeros_like(act_ref)
    c0 = chans[0]
    act_ref[:, :c0, PAD:PAD + T] = x_ref[...]

    for L in range(n_layers):
        cin = chans[L]
        cout = chans[L + 1]
        w = w_refs[L][...]                 # (cout, K*cin)
        bias = b_refs[L][...]              # (cout, 1)
        # im2col across the whole batch -> one lane-dense matmul per layer
        for bi in range(B):
            for k in range(K):
                slab_ref[k * cin:(k + 1) * cin, bi * T:(bi + 1) * T] = \
                    act_ref[bi, :cin, k:k + T]
        y = jnp.dot(w, slab_ref[:K * cin, :],
                    preferred_element_type=jnp.float32) + bias   # (cout, B*T)
        if acts[L] == "relu":
            y = jnp.maximum(y, 0.0)
        elif acts[L] == "tanh":
            y = jnp.tanh(y)
        for bi in range(B):
            if L == n_layers - 1:
                o_ref[bi] = y[:, bi * T:(bi + 1) * T]
            else:
                act_ref[bi, :cout, PAD:PAD + T] = y[:, bi * T:(bi + 1) * T]


def conv_stack(x, weights, biases, K, acts, chans):
    """x: (B, C_in, T) NCT; weights[i]: (Cout, Cin, K) torch layout."""
    B, _, T = x.shape
    PAD = (K - 1) // 2
    Cmax = max(chans)
    args = [x.astype(jnp.float32)]
    for w, b in zip(weights, biases):
        cout, cin, _ = w.shape
        w2 = jnp.transpose(w, (0, 2, 1)).reshape(cout, K * cin).astype(jnp.float32)
        args += [w2, b.reshape(cout, 1).astype(jnp.float32)]
    return pl.pallas_call(
        functools.partial(_conv_stack_kernel, K=K, PAD=PAD, T=T, B=B,
                          acts=tuple(acts), chans=tuple(chans)),
        out_shape=jax.ShapeDtypeStruct((B, chans[-1], T), jnp.float32),
        scratch_shapes=[pltpu.VMEM((B, Cmax, T + 2 * PAD), jnp.float32),
                        pltpu.VMEM((K * Cmax, B * T), jnp.float32)],
    )(*args)


# ----------------------------------------------------------------------------
# Fused encoder bidirectional LSTM kernel (time loop inside, weights resident)
# ----------------------------------------------------------------------------
def _bilstm_kernel(x_ref, v_ref, wif_ref, whf_ref, bf_ref,
                   wib_ref, whb_ref, bb_ref, of_ref, ob_ref, *, T, B, H):
    def cell(xt, h, c, wih, whh, bias):
        g = _dott(xt, wih) + _dott(h, whh) + bias
        ig = jax.nn.sigmoid(g[:, 0 * H:1 * H])
        fg = jax.nn.sigmoid(g[:, 1 * H:2 * H])
        gg = jnp.tanh(g[:, 2 * H:3 * H])
        og = jax.nn.sigmoid(g[:, 3 * H:4 * H])
        c_new = fg * c + ig * gg
        return og * jnp.tanh(c_new), c_new

    wif = wif_ref[...]; whf = whf_ref[...]; bf = bf_ref[...]
    wib = wib_ref[...]; whb = whb_ref[...]; bb = bb_ref[...]
    z = jnp.zeros((B, H), jnp.float32)

    def fwd(t, carry):
        h, c = carry
        xt = x_ref[t]
        vt = v_ref[t]
        hn, cn = cell(xt, h, c, wif, whf, bf)
        of_ref[t] = vt * hn                      # packed-sequence: zeros past length
        return (vt * hn + (1.0 - vt) * h, vt * cn + (1.0 - vt) * c)

    jax.lax.fori_loop(0, T, fwd, (z, z), unroll=True)

    def bwd(s, carry):
        h, c = carry
        t = T - 1 - s
        xt = x_ref[t]
        vt = v_ref[t]
        hn, cn = cell(xt, h, c, wib, whb, bb)
        ob_ref[t] = vt * hn
        return (vt * hn + (1.0 - vt) * h, vt * cn + (1.0 - vt) * c)

    jax.lax.fori_loop(0, T, bwd, (z, z), unroll=True)


def encoder_bilstm(x_tbe, valid_tb1, p):
    T, B, E = x_tbe.shape
    H = E // 2
    return pl.pallas_call(
        functools.partial(_bilstm_kernel, T=T, B=B, H=H),
        out_shape=(jax.ShapeDtypeStruct((T, B, H), jnp.float32),
                   jax.ShapeDtypeStruct((T, B, H), jnp.float32)),
    )(x_tbe.astype(jnp.float32), valid_tb1.astype(jnp.float32),
      p["enc_lstm_f_wih"], p["enc_lstm_f_whh"], p["enc_lstm_f_b"].reshape(1, 4 * H),
      p["enc_lstm_b_wih"], p["enc_lstm_b_whh"], p["enc_lstm_b_b"].reshape(1, 4 * H))


# ----------------------------------------------------------------------------
# Prenet kernel (two linears + hard-coded dropout, all rows at once)
# ----------------------------------------------------------------------------
def _prenet_kernel(x_ref, w1_ref, w2_ref, m1_ref, m2_ref, o_ref):
    h = jnp.maximum(_dott(x_ref[...], w1_ref[...]), 0.0) * m1_ref[...] * 2.0
    o_ref[...] = jnp.maximum(_dott(h, w2_ref[...]), 0.0) * m2_ref[...] * 2.0


# ----------------------------------------------------------------------------
# Fused decoder kernel: whole teacher-forced decode loop, grid=(T_dec,)
# ----------------------------------------------------------------------------
def _decoder_kernel(x_ref, mem_ref, mask_ref,
                    wq_ref, mloc_ref, v_ref, wm_ref,
                    wa_ref, ba_ref, wd_ref, bd_ref, wpg_ref, bpg_ref,
                    mel_ref, gate_ref, align_ref,
                    ah_ref, ac_ref, dh_ref, dc_ref, actx_ref,
                    awp_ref, pm_ref, aw_ref,
                    *, B, T, R, D, A, E, P, NM, KLOC, PAD):
    t = pl.program_id(0)

    @pl.when(t == 0)
    def _init():
        ah_ref[...] = jnp.zeros_like(ah_ref)
        ac_ref[...] = jnp.zeros_like(ac_ref)
        dh_ref[...] = jnp.zeros_like(dh_ref)
        dc_ref[...] = jnp.zeros_like(dc_ref)
        actx_ref[...] = jnp.zeros_like(actx_ref)
        awp_ref[...] = jnp.zeros_like(awp_ref)
        # processed memory (kept transposed): pm[b] = wm @ memory[b]^T  -> (A, T)
        for b in range(B):
            pm_ref[b] = jax.lax.dot_general(
                wm_ref[...], mem_ref[b], (((1,), (1,)), ((), ())),
                preferred_element_type=jnp.float32)

    # ---- attention LSTM cell: single matmul on [prenet frame | context | h] ----
    xt = x_ref[0]                       # (B, P)
    actx = actx_ref[...]                # (B, E)
    ah = ah_ref[...]
    ac = ac_ref[...]
    g = _dott(jnp.concatenate([xt, actx, ah], axis=1), wa_ref[...]) + ba_ref[...]
    ig = jax.nn.sigmoid(g[:, 0 * R:1 * R])
    fg = jax.nn.sigmoid(g[:, 1 * R:2 * R])
    gg = jnp.tanh(g[:, 2 * R:3 * R])
    og = jax.nn.sigmoid(g[:, 3 * R:4 * R])
    ac_new = fg * ac + ig * gg
    ah_new = og * jnp.tanh(ac_new)
    ah_ref[...] = ah_new
    ac_ref[...] = ac_new
    # TODO(synk): p_attention_dropout skipped (eval semantics).

    # ---- location-sensitive attention ----
    pq = jax.lax.dot_general(wq_ref[...], ah_new, (((1,), (1,)), ((), ())),
                             preferred_element_type=jnp.float32)   # (A, B)
    mask = mask_ref[...]                                            # (B, T)
    neg = jnp.float32(-1e30)
    for b in range(B):
        awp_b = awp_ref[b]                                          # (2, T + 2*PAD)
        pa = jnp.zeros((A, T), jnp.float32)
        for k in range(KLOC):
            pa = pa + jnp.dot(mloc_ref[k], awp_b[:, k:k + T],
                              preferred_element_type=jnp.float32)
        e = jnp.tanh(pq[:, b:b + 1] + pa + pm_ref[b])               # (A, T)
        en = jnp.dot(v_ref[...], e, preferred_element_type=jnp.float32)  # (1, T)
        en = jnp.where(mask[b:b + 1, :] > 0.5, neg, en)
        mx = jnp.max(en, axis=-1, keepdims=True)
        p = jnp.exp(en - mx)
        w = p / jnp.sum(p, axis=-1, keepdims=True)                  # (1, T)
        ctx = jnp.dot(w, mem_ref[b], preferred_element_type=jnp.float32)  # (1, E)
        actx_ref[b:b + 1, :] = ctx
        aw_ref[b:b + 1, :] = w
        awp_ref[b, 0:1, PAD:PAD + T] = w                            # prev weights
        awp_ref[b, 1:2, PAD:PAD + T] = awp_b[1:2, PAD:PAD + T] + w  # cumulative
    align_ref[t] = aw_ref[...]

    # ---- decoder LSTM cell: single matmul on [attention hidden | context | h] ----
    actx_new = actx_ref[...]
    dh = dh_ref[...]
    dc = dc_ref[...]
    g2 = _dott(jnp.concatenate([ah_new, actx_new, dh], axis=1), wd_ref[...]) + bd_ref[...]
    i2 = jax.nn.sigmoid(g2[:, 0 * D:1 * D])
    f2 = jax.nn.sigmoid(g2[:, 1 * D:2 * D])
    g2g = jnp.tanh(g2[:, 2 * D:3 * D])
    o2 = jax.nn.sigmoid(g2[:, 3 * D:4 * D])
    dc_new = f2 * dc + i2 * g2g
    dh_new = o2 * jnp.tanh(dc_new)
    dh_ref[...] = dh_new
    dc_ref[...] = dc_new
    # TODO(synk): p_decoder_dropout skipped (eval semantics).

    # ---- fused projection + gate (single matmul) ----
    y = _dott(jnp.concatenate([dh_new, actx_new], axis=1), wpg_ref[...]) + bpg_ref[...]
    mel_ref[t] = y[:, :NM]
    gate_ref[t] = y[:, NM:NM + 1]


def decoder_run(prenet_out, memory, attn_mask, wq, mloc, v, wm,
                wa, ba, wd, bd, wpg, bpg,
                *, R, D, A, E, P, NM, KLOC, PAD):
    T_dec, B, _ = prenet_out.shape
    T_in = memory.shape[1]
    c3 = lambda t: (0, 0, 0)
    c2 = lambda t: (0, 0)
    return pl.pallas_call(
        functools.partial(_decoder_kernel, B=B, T=T_in, R=R, D=D, A=A,
                          E=E, P=P, NM=NM, KLOC=KLOC, PAD=PAD),
        grid=(T_dec,),
        in_specs=[
            pl.BlockSpec((1, B, P), lambda t: (t, 0, 0)),   # per-step prenet frame
            pl.BlockSpec((B, T_in, E), c3),                 # memory (resident)
            pl.BlockSpec((B, T_in), c2),                    # attention mask
            pl.BlockSpec((A, R), c2),                       # query proj
            pl.BlockSpec((KLOC, A, 2), c3),                 # fused location conv+dense
            pl.BlockSpec((1, A), c2),                       # v
            pl.BlockSpec((A, E), c2),                       # memory proj
            pl.BlockSpec((4 * R, P + E + R), c2),           # attention LSTM (ih|hh)
            pl.BlockSpec((1, 4 * R), c2),
            pl.BlockSpec((4 * D, R + E + D), c2),           # decoder LSTM (ih|hh)
            pl.BlockSpec((1, 4 * D), c2),
            pl.BlockSpec((NM + 1, D + E), c2),              # fused projection+gate
            pl.BlockSpec((1, NM + 1), c2),
        ],
        out_specs=(
            pl.BlockSpec((T_dec, B, NM), c3),               # resident, written once
            pl.BlockSpec((T_dec, B, 1), c3),
            pl.BlockSpec((T_dec, B, T_in), c3),
        ),
        out_shape=(
            jax.ShapeDtypeStruct((T_dec, B, NM), jnp.float32),
            jax.ShapeDtypeStruct((T_dec, B, 1), jnp.float32),
            jax.ShapeDtypeStruct((T_dec, B, T_in), jnp.float32),
        ),
        scratch_shapes=[
            pltpu.VMEM((B, R), jnp.float32),                # attention hidden
            pltpu.VMEM((B, R), jnp.float32),                # attention cell
            pltpu.VMEM((B, D), jnp.float32),                # decoder hidden
            pltpu.VMEM((B, D), jnp.float32),                # decoder cell
            pltpu.VMEM((B, E), jnp.float32),                # attention context
            pltpu.VMEM((B, 2, T_in + 2 * PAD), jnp.float32),  # prev + cum weights (padded)
            pltpu.VMEM((B, A, T_in), jnp.float32),          # processed memory
            pltpu.VMEM((B, T_in), jnp.float32),             # current weights staging
        ],
        compiler_params=pltpu.CompilerParams(
            dimension_semantics=("arbitrary",)),
    )(prenet_out, memory, attn_mask, wq, mloc, v, wm,
      wa, ba, wd, bd, wpg, bpg)


# ----------------------------------------------------------------------------
# Parameter initialisation (deterministic, shapes from the PyTorch module)
# ----------------------------------------------------------------------------
def init_params(key, cfg):
    ki = iter(jax.random.split(key, 64))

    def nrm(shape, scale=0.08):
        return (scale * jax.random.normal(next(ki), shape)).astype(jnp.float32)

    p = {}
    E = cfg["encoder_embedding_dim"]
    nm = cfg["n_mel_channels"] * cfg["n_frames_per_step"]
    A = cfg["attention_dim"]
    R = cfg["attention_rnn_dim"]
    D = cfg["decoder_rnn_dim"]
    P = cfg["prenet_dim"]
    nf = cfg["attention_location_n_filters"]
    bn_scale = float(1.0 / jnp.sqrt(1.0 + 1e-5))           # eval-mode BN fold

    std = (2.0 / (cfg["n_symbols"] + cfg["symbols_embedding_dim"])) ** 0.5
    val = (3.0 ** 0.5) * std
    p["embedding"] = jax.random.uniform(
        next(ki), (cfg["n_symbols"], cfg["symbols_embedding_dim"]),
        jnp.float32, -val, val)

    K = cfg["encoder_kernel_size"]
    p["enc_conv_w"] = [nrm((E, E, K)) * bn_scale
                       for _ in range(cfg["encoder_n_convolutions"])]
    p["enc_conv_b"] = [nrm((E,)) * bn_scale
                       for _ in range(cfg["encoder_n_convolutions"])]

    H = E // 2
    for d in ("f", "b"):
        p[f"enc_lstm_{d}_wih"] = nrm((4 * H, E))
        p[f"enc_lstm_{d}_whh"] = nrm((4 * H, H))
        p[f"enc_lstm_{d}_b"] = nrm((4 * H,))               # b_ih + b_hh combined

    p["prenet_w1"] = nrm((P, nm))
    p["prenet_w2"] = nrm((P, P))

    p["att_rnn_wih"] = nrm((4 * R, P + E))
    p["att_rnn_whh"] = nrm((4 * R, R))
    p["att_rnn_b"] = nrm((4 * R,))

    p["att_wq"] = nrm((A, R))
    p["att_wm"] = nrm((A, E))
    p["att_v"] = nrm((1, A))
    p["att_loc_conv_w"] = nrm((nf, 2, cfg["attention_location_kernel_size"]))
    p["att_loc_dense_w"] = nrm((A, nf))

    p["dec_rnn_wih"] = nrm((4 * D, R + E))
    p["dec_rnn_whh"] = nrm((4 * D, D))
    p["dec_rnn_b"] = nrm((4 * D,))

    p["proj_w"] = nrm((nm, D + E))
    p["proj_b"] = nrm((nm,))
    p["gate_w"] = nrm((1, D + E))
    p["gate_b"] = nrm((1,))

    pe_dim = cfg["postnet_embedding_dim"]
    pk = cfg["postnet_kernel_size"]
    io = ([(cfg["n_mel_channels"], pe_dim)]
          + [(pe_dim, pe_dim)] * (cfg["postnet_n_convolutions"] - 2)
          + [(pe_dim, cfg["n_mel_channels"])])
    p["post_conv_w"] = [nrm((o, i, pk)) * bn_scale for (i, o) in io]
    p["post_conv_b"] = [nrm((o,)) * bn_scale for (i, o) in io]
    return p


# ----------------------------------------------------------------------------
# Tacotron2 forward
# ----------------------------------------------------------------------------
def tacotron2_forward(params, text, input_lengths, mels, output_lengths,
                      dropout_key):
    cfg = CFG
    B, T_in = text.shape
    n_mel = cfg["n_mel_channels"]
    nfps = cfg["n_frames_per_step"]
    nm = n_mel * nfps
    T_out = mels.shape[2]
    E = cfg["encoder_embedding_dim"]
    R = cfg["attention_rnn_dim"]
    D = cfg["decoder_rnn_dim"]
    A = cfg["attention_dim"]
    P = cfg["prenet_dim"]
    Kloc = cfg["attention_location_kernel_size"]
    loc_pad = (Kloc - 1) // 2

    # ---- embedding ----
    emb = jnp.take(params["embedding"], text, axis=0)          # (B, T_in, emb)
    x = jnp.transpose(emb, (0, 2, 1)).astype(jnp.float32)      # (B, E, T_in)

    # ---- encoder conv stack (single fused kernel) ----
    n_enc = cfg["encoder_n_convolutions"]
    x = conv_stack(x, params["enc_conv_w"], params["enc_conv_b"],
                   K=cfg["encoder_kernel_size"],
                   acts=("relu",) * n_enc,
                   chans=(E,) * (n_enc + 1))
    # TODO(synk): encoder F.dropout(0.5) train mode skipped (eval semantics).

    # ---- encoder bidirectional LSTM (single fused kernel) ----
    x_tbe = jnp.transpose(x, (2, 0, 1))                        # (T, B, E)
    valid = (jnp.arange(T_in)[:, None] < input_lengths[None, :]).astype(jnp.float32)
    out_f, out_b = encoder_bilstm(x_tbe, valid.reshape(T_in, B, 1), params)
    memory = jnp.transpose(jnp.concatenate([out_f, out_b], axis=-1), (1, 0, 2))

    # ---- teacher-forced decoder inputs + prenet ----
    T_dec = T_out // nfps
    dec_in = jnp.transpose(mels, (0, 2, 1)).reshape(B, T_dec, nm)
    dec_in = jnp.transpose(dec_in, (1, 0, 2))                  # (T_dec, B, nm)
    dec_in = jnp.concatenate([jnp.zeros((1, B, nm), jnp.float32), dec_in], axis=0)

    k1, k2 = jax.random.split(dropout_key)
    M = (T_dec + 1) * B
    m1 = jax.random.bernoulli(k1, 0.5, (M, P)).astype(jnp.float32)
    m2 = jax.random.bernoulli(k2, 0.5, (M, P)).astype(jnp.float32)
    pre = pl.pallas_call(
        _prenet_kernel,
        out_shape=jax.ShapeDtypeStruct((M, P), jnp.float32),
    )(dec_in.reshape(M, nm), params["prenet_w1"], params["prenet_w2"], m1, m2)
    prenet_out = pre.reshape(T_dec + 1, B, P)[:T_dec]

    # ---- decoder-invariant tensors / fused weights (hoisted) ----
    attn_mask = (jnp.arange(T_in)[None, :] >= input_lengths[:, None]).astype(jnp.float32)
    # concat input/recurrent weights -> one matmul per LSTM cell per step
    wa = jnp.concatenate([params["att_rnn_wih"], params["att_rnn_whh"]], axis=1)
    wd = jnp.concatenate([params["dec_rnn_wih"], params["dec_rnn_whh"]], axis=1)
    # combine location conv + location dense: (Kloc, A, 2)
    mloc = jnp.einsum("af,fck->kac", params["att_loc_dense_w"],
                      params["att_loc_conv_w"]).astype(jnp.float32)
    # fuse projection + gate into one (nm+1, D+E) matmul
    wpg = jnp.concatenate([params["proj_w"], params["gate_w"]], axis=0)
    bpg = jnp.concatenate([params["proj_b"], params["gate_b"]]).reshape(1, nm + 1)

    mels_out, gates_out, aligns = decoder_run(
        prenet_out, memory, attn_mask,
        params["att_wq"], mloc, params["att_v"], params["att_wm"],
        wa, params["att_rnn_b"].reshape(1, 4 * R),
        wd, params["dec_rnn_b"].reshape(1, 4 * D),
        wpg, bpg,
        R=R, D=D, A=A, E=E, P=P, NM=nm, KLOC=Kloc, PAD=loc_pad)

    # ---- parse decoder outputs ----
    mel_outputs = jnp.transpose(mels_out, (1, 0, 2))           # (B, T_dec, nm)
    mel_outputs = mel_outputs.reshape(B, T_dec * nfps, n_mel)
    mel_outputs = jnp.transpose(mel_outputs, (0, 2, 1))        # (B, n_mel, T_out)
    gate_outputs = jnp.transpose(gates_out[:, :, 0], (1, 0))   # (B, T_dec)
    alignments = jnp.transpose(aligns, (1, 0, 2))              # (B, T_dec, T_in)

    # ---- postnet (single fused kernel) ----
    n_post = cfg["postnet_n_convolutions"]
    pe_dim = cfg["postnet_embedding_dim"]
    y = conv_stack(mel_outputs, params["post_conv_w"], params["post_conv_b"],
                   K=cfg["postnet_kernel_size"],
                   acts=("tanh",) * (n_post - 1) + ("none",),
                   chans=(n_mel,) + (pe_dim,) * (n_post - 1) + (n_mel,))
    # TODO(synk): postnet F.dropout(0.5) train mode skipped (eval semantics).
    mel_outputs_postnet = mel_outputs + y

    # ---- parse_output masking ----
    if cfg["mask_padding"]:
        out_mask = jnp.arange(T_out)[None, :] >= output_lengths[:, None]
        m3 = out_mask[:, None, :]
        mel_outputs = jnp.where(m3, 0.0, mel_outputs)
        mel_outputs_postnet = jnp.where(m3, 0.0, mel_outputs_postnet)
        gate_outputs = jnp.where(out_mask, 1000.0, gate_outputs)
    return mel_outputs, mel_outputs_postnet, gate_outputs, alignments


# ----------------------------------------------------------------------------
# Main
# ----------------------------------------------------------------------------
if __name__ == "__main__":
    key = jax.random.PRNGKey(0)
    pkey, tkey, mkey, dkey = jax.random.split(key, 4)

    params = init_params(pkey, CFG)

    B, T_in, T_out = 2, 8, 8
    text = jax.random.randint(tkey, (B, T_in), 0, CFG["n_symbols"], dtype=jnp.int32)
    input_lengths = jnp.array([8, 6], dtype=jnp.int32)         # sorted descending
    mels = jax.random.normal(mkey, (B, CFG["n_mel_channels"], T_out), jnp.float32)
    output_lengths = jnp.array([8, 7], dtype=jnp.int32)

    fwd = jax.jit(tacotron2_forward)
    mel_out, mel_post, gate_out, align = fwd(params, text, input_lengths, mels,
                                             output_lengths, dkey)
    jax.block_until_ready((mel_out, mel_post, gate_out, align))

    assert mel_out.shape == (B, CFG["n_mel_channels"], T_out)
    assert mel_post.shape == (B, CFG["n_mel_channels"], T_out)
    assert gate_out.shape == (B, T_out)
    assert align.shape == (B, T_out, T_in)
    print("KERNEL_OK")
</pallas_src>

<mosaic_0001>
module attributes {stable_mosaic.version = 11 : i64} {
  func.func @_conv_stack_kernel(%arg0: memref<2x32x8xf32, #tpu.memory_space<vmem>>, %arg1: memref<32x160xf32, #tpu.memory_space<vmem>>, %arg2: memref<32x1xf32, #tpu.memory_space<vmem>>, %arg3: memref<32x160xf32, #tpu.memory_space<vmem>>, %arg4: memref<32x1xf32, #tpu.memory_space<vmem>>, %arg5: memref<2x32x8xf32, #tpu.memory_space<vmem>>, %arg6: memref<2x32x12xf32, #tpu.memory_space<vmem>>, %arg7: memref<160x16xf32, #tpu.memory_space<vmem>>) attributes {dimension_semantics = [], scalar_prefetch = 0 : i64, scratch_operands = 2 : i64, tpu.core_type = #tpu.core_type<tc>} {
    %cst = arith.constant 0.000000e+00 : f32
    %0 = vector.broadcast %cst : f32 to vector<2x32x12xf32>
    %c0 = arith.constant 0 : index
    %c0_0 = arith.constant 0 : index
    %c0_1 = arith.constant 0 : index
    %1 = vector.load %arg6[%c0, %c0_0, %c0_1] : memref<2x32x12xf32, #tpu.memory_space<vmem>>, vector<2x32x12xf32>
    tpu.vector_store %arg6[%c0, %c0_0, %c0_1], %0 {strides = array<i32>} : memref<2x32x12xf32, #tpu.memory_space<vmem>>, vector<2x32x12xf32>,
    %c0_2 = arith.constant 0 : index
    %c0_3 = arith.constant 0 : index
    %c0_4 = arith.constant 0 : index
    %2 = vector.load %arg0[%c0_2, %c0_3, %c0_4] : memref<2x32x8xf32, #tpu.memory_space<vmem>>, vector<2x32x8xf32>
    %c0_5 = arith.constant 0 : index
    %c0_6 = arith.constant 0 : index
    %c2 = arith.constant 2 : index
    %3 = vector.load %arg6[%c0_5, %c0_6, %c2] : memref<2x32x12xf32, #tpu.memory_space<vmem>>, vector<2x32x8xf32>
    tpu.vector_store %arg6[%c0_5, %c0_6, %c2], %2 {strides = array<i32>} : memref<2x32x12xf32, #tpu.memory_space<vmem>>, vector<2x32x8xf32>,
    %c0_7 = arith.constant 0 : index
    %c0_8 = arith.constant 0 : index
    %4 = vector.load %arg1[%c0_7, %c0_8] : memref<32x160xf32, #tpu.memory_space<vmem>>, vector<32x160xf32>
    %c0_9 = arith.constant 0 : index
    %c0_10 = arith.constant 0 : index
    %5 = vector.load %arg2[%c0_9, %c0_10] : memref<32x1xf32, #tpu.memory_space<vmem>>, vector<32x1xf32>
    %c0_11 = arith.constant 0 : index
    %c0_12 = arith.constant 0 : index
    %c0_13 = arith.constant 0 : index
    %6 = vector.load %arg6[%c0_11, %c0_12, %c0_13] : memref<2x32x12xf32, #tpu.memory_space<vmem>>, vector<1x32x8xf32>
    %7 = vector.shape_cast %6 : vector<1x32x8xf32> to vector<32x8xf32>
    %c0_14 = arith.constant 0 : index
    %c0_15 = arith.constant 0 : index
    %8 = vector.load %arg7[%c0_14, %c0_15] : memref<160x16xf32, #tpu.memory_space<vmem>>, vector<32x8xf32>
    tpu.vector_store %arg7[%c0_14, %c0_15], %7 {strides = array<i32>} : memref<160x16xf32, #tpu.memory_space<vmem>>, vector<32x8xf32>,
    %c0_16 = arith.constant 0 : index
    %c0_17 = arith.constant 0 : index
    %c1 = arith.constant 1 : index
    %9 = vector.load %arg6[%c0_16, %c0_17, %c1] : memref<2x32x12xf32, #tpu.memory_space<vmem>>, vector<1x32x8xf32>
    %10 = vector.shape_cast %9 : vector<1x32x8xf32> to vector<32x8xf32>
    %c32 = arith.constant 32 : index
    %c0_18 = arith.constant 0 : index
    %11 = vector.load %arg7[%c32, %c0_18] : memref<160x16xf32, #tpu.memory_space<vmem>>, vector<32x8xf32>
    tpu.vector_store %arg7[%c32, %c0_18], %10 {strides = array<i32>} : memref<160x16xf32, #tpu.memory_space<vmem>>, vector<32x8xf32>,
    %c0_19 = arith.constant 0 : index
    %c0_20 = arith.constant 0 : index
    %c2_21 = arith.constant 2 : index
    %12 = vector.load %arg6[%c0_19, %c0_20, %c2_21] : memref<2x32x12xf32, #tpu.memory_space<vmem>>, vector<1x32x8xf32>
    %13 = vector.shape_cast %12 : vector<1x32x8xf32> to vector<32x8xf32>
    %c64 = arith.constant 64 : index
    %c0_22 = arith.constant 0 : index
    %14 = vector.load %arg7[%c64, %c0_22] : memref<160x16xf32, #tpu.memory_space<vmem>>, vector<32x8xf32>
    tpu.vector_store %arg7[%c64, %c0_22], %13 {strides = array<i32>} : memref<160x16xf32, #tpu.memory_space<vmem>>, vector<32x8xf32>,
    %c0_23 = arith.constant 0 : index
    %c0_24 = arith.constant 0 : index
    %c3 = arith.constant 3 : index
    %15 = vector.load %arg6[%c0_23, %c0_24, %c3] : memref<2x32x12xf32, #tpu.memory_space<vmem>>, vector<1x32x8xf32>
    %16 = vector.shape_cast %15 : vector<1x32x8xf32> to vector<32x8xf32>
    %c96 = arith.constant 96 : index
    %c0_25 = arith.constant 0 : index
    %17 = vector.load %arg7[%c96, %c0_25] : memref<160x16xf32, #tpu.memory_space<vmem>>, vector<32x8xf32>
    tpu.vector_store %arg7[%c96, %c0_25], %16 {strides = array<i32>} : memref<160x16xf32, #tpu.memory_space<vmem>>, vector<32x8xf32>,
    %c0_26 = arith.constant 0 : index
    %c0_27 = arith.constant 0 : index
    %c4 = arith.constant 4 : index
    %18 = vector.load %arg6[%c0_26, %c0_27, %c4] : memref<2x32x12xf32, #tpu.memory_space<vmem>>, vector<1x32x8xf32>
    %19 = vector.shape_cast %18 : vector<1x32x8xf32> to vector<32x8xf32>
    %c128 = arith.constant 128 : index
    %c0_28 = arith.constant 0 : index
    %20 = vector.load %arg7[%c128, %c0_28] : memref<160x16xf32, #tpu.memory_space<vmem>>, vector<32x8xf32>
    tpu.vector_store %arg7[%c128, %c0_28], %19 {strides = array<i32>} : memref<160x16xf32, #tpu.memory_space<vmem>>, vector<32x8xf32>,
    %c1_29 = arith.constant 1 : index
    %c0_30 = arith.constant 0 : index
    %c0_31 = arith.constant 0 : index
    %21 = vector.load %arg6[%c1_29, %c0_30, %c0_31] : memref<2x32x12xf32, #tpu.memory_space<vmem>>, vector<1x32x8xf32>
    %22 = vector.shape_cast %21 : vector<1x32x8xf32> to vector<32x8xf32>
    %c0_32 = arith.constant 0 : index
    %c8 = arith.constant 8 : index
    %23 = vector.load %arg7[%c0_32, %c8] : memref<160x16xf32, #tpu.memory_space<vmem>>, vector<32x8xf32>
    tpu.vector_store %arg7[%c0_32, %c8], %22 {strides = array<i32>} : memref<160x16xf32, #tpu.memory_space<vmem>>, vector<32x8xf32>,
    %c1_33 = arith.constant 1 : index
    %c0_34 = arith.constant 0 : index
    %c1_35 = arith.constant 1 : index
    %24 = vector.load %arg6[%c1_33, %c0_34, %c1_35] : memref<2x32x12xf32, #tpu.memory_space<vmem>>, vector<1x32x8xf32>
    %25 = vector.shape_cast %24 : vector<1x32x8xf32> to vector<32x8xf32>
    %c32_36 = arith.constant 32 : index
    %c8_37 = arith.constant 8 : index
    %26 = vector.load %arg7[%c32_36, %c8_37] : memref<160x16xf32, #tpu.memory_space<vmem>>, vector<32x8xf32>
    tpu.vector_store %arg7[%c32_36, %c8_37], %25 {strides = array<i32>} : memref<160x16xf32, #tpu.memory_space<vmem>>, vector<32x8xf32>,
    %c1_38 = arith.constant 1 : index
    %c0_39 = arith.constant 0 : index
    %c2_40 = arith.constant 2 : index
    %27 = vector.load %arg6[%c1_38, %c0_39, %c2_40] : memref<2x32x12xf32, #tpu.memory_space<vmem>>, vector<1x32x8xf32>
    %28 = vector.shape_cast %27 : vector<1x32x8xf32> to vector<32x8xf32>
    %c64_41 = arith.constant 64 : index
    %c8_42 = arith.constant 8 : index
    %29 = vector.load %arg7[%c64_41, %c8_42] : memref<160x16xf32, #tpu.memory_space<vmem>>, vector<32x8xf32>
    tpu.vector_store %arg7[%c64_41, %c8_42], %28 {strides = array<i32>} : memref<160x16xf32, #tpu.memory_space<vmem>>, vector<32x8xf32>,
    %c1_43 = arith.constant 1 : index
    %c0_44 = arith.constant 0 : index
    %c3_45 = arith.constant 3 : index
    %30 = vector.load %arg6[%c1_43, %c0_44, %c3_45] : memref<2x32x12xf32, #tpu.memory_space<vmem>>, vector<1x32x8xf32>
    %31 = vector.shape_cast %30 : vector<1x32x8xf32> to vector<32x8xf32>
    %c96_46 = arith.constant 96 : index
    %c8_47 = arith.constant 8 : index
    %32 = vector.load %arg7[%c96_46, %c8_47] : memref<160x16xf32, #tpu.memory_space<vmem>>, vector<32x8xf32>
    tpu.vector_store %arg7[%c96_46, %c8_47], %31 {strides = array<i32>} : memref<160x16xf32, #tpu.memory_space<vmem>>, vector<32x8xf32>,
    %c1_48 = arith.constant 1 : index
    %c0_49 = arith.constant 0 : index
    %c4_50 = arith.constant 4 : index
    %33 = vector.load %arg6[%c1_48, %c0_49, %c4_50] : memref<2x32x12xf32, #tpu.memory_space<vmem>>, vector<1x32x8xf32>
    %34 = vector.shape_cast %33 : vector<1x32x8xf32> to vector<32x8xf32>
    %c128_51 = arith.constant 128 : index
    %c8_52 = arith.constant 8 : index
    %35 = vector.load %arg7[%c128_51, %c8_52] : memref<160x16xf32, #tpu.memory_space<vmem>>, vector<32x8xf32>
    tpu.vector_store %arg7[%c128_51, %c8_52], %34 {strides = array<i32>} : memref<160x16xf32, #tpu.memory_space<vmem>>, vector<32x8xf32>,
    %c0_53 = arith.constant 0 : index
    %c0_54 = arith.constant 0 : index
    %36 = vector.load %arg7[%c0_53, %c0_54] : memref<160x16xf32, #tpu.memory_space<vmem>>, vector<160x16xf32>
    %cst_55 = arith.constant dense<0.000000e+00> : vector<32x16xf32>
    %37 = tpu.matmul %4, %36, %cst_55 {dimension_numbers = #tpu.dot_dimension_numbers<[1], [0], [0], [1], [0, 0, 1, 1], [], []>} : vector<32x160xf32>, vector<160x16xf32>, vector<32x16xf32> -> vector<32x16xf32>
    %38 = vector.broadcast %5 : vector<32x1xf32> to vector<32x16xf32>
    %39 = arith.addf %37, %38 : vector<32x16xf32>
    %cst_56 = arith.constant 0.000000e+00 : f32
    %40 = vector.broadcast %cst_56 : f32 to vector<32x16xf32>
    %41 = arith.maximumf %39, %40 : vector<32x16xf32>
    %42 = vector.extract_strided_slice %41 {offsets = [0, 0], sizes = [32, 8], strides = [1, 1]} : vector<32x16xf32> to vector<32x8xf32>
    %c0_57 = arith.constant 0 : index
    %c0_58 = arith.constant 0 : index
    %c2_59 = arith.constant 2 : index
    %43 = vector.load %arg6[%c0_57, %c0_58, %c2_59] : memref<2x32x12xf32, #tpu.memory_space<vmem>>, vector<1x32x8xf32>
    %44 = vector.shape_cast %43 : vector<1x32x8xf32> to vector<32x8xf32>
    %45 = vector.shape_cast %42 : vector<32x8xf32> to vector<1x32x8xf32>
    tpu.vector_store %arg6[%c0_57, %c0_58, %c2_59], %45 {strides = array<i32>} : memref<2x32x12xf32, #tpu.memory_space<vmem>>, vector<1x32x8xf32>,
    %46 = vector.extract_strided_slice %41 {offsets = [0, 8], sizes = [32, 8], strides = [1, 1]} : vector<32x16xf32> to vector<32x8xf32>
    %c1_60 = arith.constant 1 : index
    %c0_61 = arith.constant 0 : index
    %c2_62 = arith.constant 2 : index
    %47 = vector.load %arg6[%c1_60, %c0_61, %c2_62] : memref<2x32x12xf32, #tpu.memory_space<vmem>>, vector<1x32x8xf32>
    %48 = vector.shape_cast %47 : vector<1x32x8xf32> to vector<32x8xf32>
    %49 = vector.shape_cast %46 : vector<32x8xf32> to vector<1x32x8xf32>
    tpu.vector_store %arg6[%c1_60, %c0_61, %c2_62], %49 {strides = array<i32>} : memref<2x32x12xf32, #tpu.memory_space<vmem>>, vector<1x32x8xf32>,
    %c0_63 = arith.constant 0 : index
    %c0_64 = arith.constant 0 : index
    %50 = vector.load %arg3[%c0_63, %c0_64] : memref<32x160xf32, #tpu.memory_space<vmem>>, vector<32x160xf32>
    %c0_65 = arith.constant 0 : index
    %c0_66 = arith.constant 0 : index
    %51 = vector.load %arg4[%c0_65, %c0_66] : memref<32x1xf32, #tpu.memory_space<vmem>>, vector<32x1xf32>
    %c0_67 = arith.constant 0 : index
    %c0_68 = arith.constant 0 : index
    %c0_69 = arith.constant 0 : index
    %52 = vector.load %arg6[%c0_67, %c0_68, %c0_69] : memref<2x32x12xf32, #tpu.memory_space<vmem>>, vector<1x32x8xf32>
    %53 = vector.shape_cast %52 : vector<1x32x8xf32> to vector<32x8xf32>
    %c0_70 = arith.constant 0 : index
    %c0_71 = arith.constant 0 : index
    %54 = vector.load %arg7[%c0_70, %c0_71] : memref<160x16xf32, #tpu.memory_space<vmem>>, vector<32x8xf32>
    tpu.vector_store %arg7[%c0_70, %c0_71], %53 {strides = array<i32>} : memref<160x16xf32, #tpu.memory_space<vmem>>, vector<32x8xf32>,
    %c0_72 = arith.constant 0 : index
    %c0_73 = arith.constant 0 : index
    %c1_74 = arith.constant 1 : index
    %55 = vector.load %arg6[%c0_72, %c0_73, %c1_74] : memref<2x32x12xf32, #tpu.memory_space<vmem>>, vector<1x32x8xf32>
    %56 = vector.shape_cast %55 : vector<1x32x8xf32> to vector<32x8xf32>
    %c32_75 = arith.constant 32 : index
    %c0_76 = arith.constant 0 : index
    %57 = vector.load %arg7[%c32_75, %c0_76] : memref<160x16xf32, #tpu.memory_space<vmem>>, vector<32x8xf32>
    tpu.vector_store %arg7[%c32_75, %c0_76], %56 {strides = array<i32>} : memref<160x16xf32, #tpu.memory_space<vmem>>, vector<32x8xf32>,
    %c0_77 = arith.constant 0 : index
    %c0_78 = arith.constant 0 : index
    %c2_79 = arith.constant 2 : index
    %58 = vector.load %arg6[%c0_77, %c0_78, %c2_79] : memref<2x32x12xf32, #tpu.memory_space<vmem>>, vector<1x32x8xf32>
    %59 = vector.shape_cast %58 : vector<1x32x8xf32> to vector<32x8xf32>
    %c64_80 = arith.constant 64 : index
    %c0_81 = arith.constant 0 : index
    %60 = vector.load %arg7[%c64_80, %c0_81] : memref<160x16xf32, #tpu.memory_space<vmem>>, vector<32x8xf32>
    tpu.vector_store %arg7[%c64_80, %c0_81], %59 {strides = array<i32>} : memref<160x16xf32, #tpu.memory_space<vmem>>, vector<32x8xf32>,
    %c0_82 = arith.constant 0 : index
    %c0_83 = arith.constant 0 : index
    %c3_84 = arith.constant 3 : index
    %61 = vector.load %arg6[%c0_82, %c0_83, %c3_84] : memref<2x32x12xf32, #tpu.memory_space<vmem>>, vector<1x32x8xf32>
    %62 = vector.shape_cast %61 : vector<1x32x8xf32> to vector<32x8xf32>
    %c96_85 = arith.constant 96 : index
    %c0_86 = arith.constant 0 : index
    %63 = vector.load %arg7[%c96_85, %c0_86] : memref<160x16xf32, #tpu.memory_space<vmem>>, vector<32x8xf32>
    tpu.vector_store %arg7[%c96_85, %c0_86], %62 {strides = array<i32>} : memref<160x16xf32, #tpu.memory_space<vmem>>, vector<32x8xf32>,
    %c0_87 = arith.constant 0 : index
    %c0_88 = arith.constant 0 : index
    %c4_89 = arith.constant 4 : index
    %64 = vector.load %arg6[%c0_87, %c0_88, %c4_89] : memref<2x32x12xf32, #tpu.memory_space<vmem>>, vector<1x32x8xf32>
    %65 = vector.shape_cast %64 : vector<1x32x8xf32> to vector<32x8xf32>
    %c128_90 = arith.constant 128 : index
    %c0_91 = arith.constant 0 : index
    %66 = vector.load %arg7[%c128_90, %c0_91] : memref<160x16xf32, #tpu.memory_space<vmem>>, vector<32x8xf32>
    tpu.vector_store %arg7[%c128_90, %c0_91], %65 {strides = array<i32>} : memref<160x16xf32, #tpu.memory_space<vmem>>, vector<32x8xf32>,
    %c1_92 = arith.constant 1 : index
    %c0_93 = arith.constant 0 : index
    %c0_94 = arith.constant 0 : index
    %67 = vector.load %arg6[%c1_92, %c0_93, %c0_94] : memref<2x32x12xf32, #tpu.memory_space<vmem>>, vector<1x32x8xf32>
    %68 = vector.shape_cast %67 : vector<1x32x8xf32> to vector<32x8xf32>
    %c0_95 = arith.constant 0 : index
    %c8_96 = arith.constant 8 : index
    %69 = vector.load %arg7[%c0_95, %c8_96] : memref<160x16xf32, #tpu.memory_space<vmem>>, vector<32x8xf32>
    tpu.vector_store %arg7[%c0_95, %c8_96], %68 {strides = array<i32>} : memref<160x16xf32, #tpu.memory_space<vmem>>, vector<32x8xf32>,
    %c1_97 = arith.constant 1 : index
    %c0_98 = arith.constant 0 : index
    %c1_99 = arith.constant 1 : index
    %70 = vector.load %arg6[%c1_97, %c0_98, %c1_99] : memref<2x32x12xf32, #tpu.memory_space<vmem>>, vector<1x32x8xf32>
    %71 = vector.shape_cast %70 : vector<1x32x8xf32> to vector<32x8xf32>
    %c32_100 = arith.constant 32 : index
    %c8_101 = arith.constant 8 : index
    %72 = vector.load %arg7[%c32_100, %c8_101] : memref<160x16xf32, #tpu.memory_space<vmem>>, vector<32x8xf32>
    tpu.vector_store %arg7[%c32_100, %c8_101], %71 {strides = array<i32>} : memref<160x16xf32, #tpu.memory_space<vmem>>, vector<32x8xf32>,
    %c1_102 = arith.constant 1 : index
    %c0_103 = arith.constant 0 : index
    %c2_104 = arith.constant 2 : index
    %73 = vector.load %arg6[%c1_102, %c0_103, %c2_104] : memref<2x32x12xf32, #tpu.memory_space<vmem>>, vector<1x32x8xf32>
    %74 = vector.shape_cast %73 : vector<1x32x8xf32> to vector<32x8xf32>
    %c64_105 = arith.constant 64 : index
    %c8_106 = arith.constant 8 : index
    %75 = vector.load %arg7[%c64_105, %c8_106] : memref<160x16xf32, #tpu.memory_space<vmem>>, vector<32x8xf32>
    tpu.vector_store %arg7[%c64_105, %c8_106], %74 {strides = array<i32>} : memref<160x16xf32, #tpu.memory_space<vmem>>, vector<32x8xf32>,
    %c1_107 = arith.constant 1 : index
    %c0_108 = arith.constant 0 : index
    %c3_109 = arith.constant 3 : index
    %76 = vector.load %arg6[%c1_107, %c0_108, %c3_109] : memref<2x32x12xf32, #tpu.memory_space<vmem>>, vector<1x32x8xf32>
    %77 = vector.shape_cast %76 : vector<1x32x8xf32> to vector<32x8xf32>
    %c96_110 = arith.constant 96 : index
    %c8_111 = arith.constant 8 : index
    %78 = vector.load %arg7[%c96_110, %c8_111] : memref<160x16xf32, #tpu.memory_space<vmem>>, vector<32x8xf32>
    tpu.vector_store %arg7[%c96_110, %c8_111], %77 {strides = array<i32>} : memref<160x16xf32, #tpu.memory_space<vmem>>, vector<32x8xf32>,
    %c1_112 = arith.constant 1 : index
    %c0_113 = arith.constant 0 : index
    %c4_114 = arith.constant 4 : index
    %79 = vector.load %arg6[%c1_112, %c0_113, %c4_114] : memref<2x32x12xf32, #tpu.memory_space<vmem>>, vector<1x32x8xf32>
    %80 = vector.shape_cast %79 : vector<1x32x8xf32> to vector<32x8xf32>
    %c128_115 = arith.constant 128 : index
    %c8_116 = arith.constant 8 : index
    %81 = vector.load %arg7[%c128_115, %c8_116] : memref<160x16xf32, #tpu.memory_space<vmem>>, vector<32x8xf32>
    tpu.vector_store %arg7[%c128_115, %c8_116], %80 {strides = array<i32>} : memref<160x16xf32, #tpu.memory_space<vmem>>, vector<32x8xf32>,
    %c0_117 = arith.constant 0 : index
    %c0_118 = arith.constant 0 : index
    %82 = vector.load %arg7[%c0_117, %c0_118] : memref<160x16xf32, #tpu.memory_space<vmem>>, vector<160x16xf32>
    %cst_119 = arith.constant dense<0.000000e+00> : vector<32x16xf32>
    %83 = tpu.matmul %50, %82, %cst_119 {dimension_numbers = #tpu.dot_dimension_numbers<[1], [0], [0], [1], [0, 0, 1, 1], [], []>} : vector<32x160xf32>, vector<160x16xf32>, vector<32x16xf32> -> vector<32x16xf32>
    %84 = vector.broadcast %51 : vector<32x1xf32> to vector<32x16xf32>
    %85 = arith.addf %83, %84 : vector<32x16xf32>
    %cst_120 = arith.constant 0.000000e+00 : f32
    %86 = vector.broadcast %cst_120 : f32 to vector<32x16xf32>
    %87 = arith.maximumf %85, %86 : vector<32x16xf32>
    %88 = vector.extract_strided_slice %87 {offsets = [0, 0], sizes = [32, 8], strides = [1, 1]} : vector<32x16xf32> to vector<32x8xf32>
    %c0_121 = arith.constant 0 : index
    %c0_122 = arith.constant 0 : index
    %c0_123 = arith.constant 0 : index
    %89 = vector.load %arg5[%c0_121, %c0_122, %c0_123] : memref<2x32x8xf32, #tpu.memory_space<vmem>>, vector<1x32x8xf32>
    %90 = vector.shape_cast %89 : vector<1x32x8xf32> to vector<32x8xf32>
    %91 = vector.shape_cast %88 : vector<32x8xf32> to vector<1x32x8xf32>
    tpu.vector_store %arg5[%c0_121, %c0_122, %c0_123], %91 {strides = array<i32>} : memref<2x32x8xf32, #tpu.memory_space<vmem>>, vector<1x32x8xf32>,
    %92 = vector.extract_strided_slice %87 {offsets = [0, 8], sizes = [32, 8], strides = [1, 1]} : vector<32x16xf32> to vector<32x8xf32>
    %c1_124 = arith.constant 1 : index
    %c0_125 = arith.constant 0 : index
    %c0_126 = arith.constant 0 : index
    %93 = vector.load %arg5[%c1_124, %c0_125, %c0_126] : memref<2x32x8xf32, #tpu.memory_space<vmem>>, vector<1x32x8xf32>
    %94 = vector.shape_cast %93 : vector<1x32x8xf32> to vector<32x8xf32>
    %95 = vector.shape_cast %92 : vector<32x8xf32> to vector<1x32x8xf32>
    tpu.vector_store %arg5[%c1_124, %c0_125, %c0_126], %95 {strides = array<i32>} : memref<2x32x8xf32, #tpu.memory_space<vmem>>, vector<1x32x8xf32>,
    return
  }
}

module attributes {stable_mosaic.version = 11 : i64} {
  func.func @_prenet_kernel(%arg0: memref<18x8xf32, #tpu.memory_space<vmem>>, %arg1: memref<16x8xf32, #tpu.memory_space<vmem>>, %arg2: memref<16x16xf32, #tpu.memory_space<vmem>>, %arg3: memref<18x16xf32, #tpu.memory_space<vmem>>, %arg4: memref<18x16xf32, #tpu.memory_space<vmem>>, %arg5: memref<18x16xf32, #tpu.memory_space<vmem>>) attributes {dimension_semantics = [], scalar_prefetch = 0 : i64, scratch_operands = 0 : i64, tpu.core_type = #tpu.core_type<tc>} {
    %c0 = arith.constant 0 : index
    %c0_0 = arith.constant 0 : index
    %0 = vector.load %arg0[%c0, %c0_0] : memref<18x8xf32, #tpu.memory_space<vmem>>, vector<18x8xf32>
    %c0_1 = arith.constant 0 : index
    %c0_2 = arith.constant 0 : index
    %1 = vector.load %arg1[%c0_1, %c0_2] : memref<16x8xf32, #tpu.memory_space<vmem>>, vector<16x8xf32>
    %cst = arith.constant dense<0.000000e+00> : vector<18x16xf32>
    %2 = tpu.matmul %0, %1, %cst {dimension_numbers = #tpu.dot_dimension_numbers<[1], [1], [0], [0], [0, 0, 1, 0], [], []>} : vector<18x8xf32>, vector<16x8xf32>, vector<18x16xf32> -> vector<18x16xf32>
    %cst_3 = arith.constant 0.000000e+00 : f32
    %3 = vector.broadcast %cst_3 : f32 to vector<18x16xf32>
    %4 = arith.maximumf %2, %3 : vector<18x16xf32>
    %c0_4 = arith.constant 0 : index
    %c0_5 = arith.constant 0 : index
    %5 = vector.load %arg3[%c0_4, %c0_5] : memref<18x16xf32, #tpu.memory_space<vmem>>, vector<18x16xf32>
    %6 = arith.mulf %4, %5 : vector<18x16xf32>
    %cst_6 = arith.constant 2.000000e+00 : f32
    %7 = vector.broadcast %cst_6 : f32 to vector<18x16xf32>
    %8 = arith.mulf %6, %7 : vector<18x16xf32>
    %c0_7 = arith.constant 0 : index
    %c0_8 = arith.constant 0 : index
    %9 = vector.load %arg2[%c0_7, %c0_8] : memref<16x16xf32, #tpu.memory_space<vmem>>, vector<16x16xf32>
    %cst_9 = arith.constant dense<0.000000e+00> : vector<18x16xf32>
    %10 = tpu.matmul %8, %9, %cst_9 {dimension_numbers = #tpu.dot_dimension_numbers<[1], [1], [0], [0], [0, 0, 1, 0], [], []>} : vector<18x16xf32>, vector<16x16xf32>, vector<18x16xf32> -> vector<18x16xf32>
    %cst_10 = arith.constant 0.000000e+00 : f32
    %11 = vector.broadcast %cst_10 : f32 to vector<18x16xf32>
    %12 = arith.maximumf %10, %11 : vector<18x16xf32>
    %c0_11 = arith.constant 0 : index
    %c0_12 = arith.constant 0 : index
    %13 = vector.load %arg4[%c0_11, %c0_12] : memref<18x16xf32, #tpu.memory_space<vmem>>, vector<18x16xf32>
    %14 = arith.mulf %12, %13 : vector<18x16xf32>
    %cst_13 = arith.constant 2.000000e+00 : f32
    %15 = vector.broadcast %cst_13 : f32 to vector<18x16xf32>
    %16 = arith.mulf %14, %15 : vector<18x16xf32>
    %c0_14 = arith.constant 0 : index
    %c0_15 = arith.constant 0 : index
    %17 = vector.load %arg5[%c0_14, %c0_15] : memref<18x16xf32, #tpu.memory_space<vmem>>, vector<18x16xf32>
    tpu.vector_store %arg5[%c0_14, %c0_15], %16 {strides = array<i32>} : memref<18x16xf32, #tpu.memory_space<vmem>>, vector<18x16xf32>,
    return
  }
}

module attributes {stable_mosaic.version = 11 : i64} {
  func.func @_bilstm_kernel(%arg0: memref<8x2x32xf32, #tpu.memory_space<vmem>>, %arg1: memref<8x2x1xf32, #tpu.memory_space<vmem>>, %arg2: memref<64x32xf32, #tpu.memory_space<vmem>>, %arg3: memref<64x16xf32, #tpu.memory_space<vmem>>, %arg4: memref<1x64xf32, #tpu.memory_space<vmem>>, %arg5: memref<64x32xf32, #tpu.memory_space<vmem>>, %arg6: memref<64x16xf32, #tpu.memory_space<vmem>>, %arg7: memref<1x64xf32, #tpu.memory_space<vmem>>, %arg8: memref<8x2x16xf32, #tpu.memory_space<vmem>>, %arg9: memref<8x2x16xf32, #tpu.memory_space<vmem>>) attributes {dimension_semantics = [], scalar_prefetch = 0 : i64, scratch_operands = 0 : i64, tpu.core_type = #tpu.core_type<tc>} {
    %c0 = arith.constant 0 : index
    %c0_0 = arith.constant 0 : index
    %0 = vector.load %arg2[%c0, %c0_0] : memref<64x32xf32, #tpu.memory_space<vmem>>, vector<64x32xf32>
    %c0_1 = arith.constant 0 : index
    %c0_2 = arith.constant 0 : index
    %1 = vector.load %arg3[%c0_1, %c0_2] : memref<64x16xf32, #tpu.memory_space<vmem>>, vector<64x16xf32>
    %c0_3 = arith.constant 0 : index
    %c0_4 = arith.constant 0 : index
    %2 = vector.load %arg4[%c0_3, %c0_4] : memref<1x64xf32, #tpu.memory_space<vmem>>, vector<1x64xf32>
    %c0_5 = arith.constant 0 : index
    %c0_6 = arith.constant 0 : index
    %3 = vector.load %arg5[%c0_5, %c0_6] : memref<64x32xf32, #tpu.memory_space<vmem>>, vector<64x32xf32>
    %c0_7 = arith.constant 0 : index
    %c0_8 = arith.constant 0 : index
    %4 = vector.load %arg6[%c0_7, %c0_8] : memref<64x16xf32, #tpu.memory_space<vmem>>, vector<64x16xf32>
    %c0_9 = arith.constant 0 : index
    %c0_10 = arith.constant 0 : index
    %5 = vector.load %arg7[%c0_9, %c0_10] : memref<1x64xf32, #tpu.memory_space<vmem>>, vector<1x64xf32>
    %cst = arith.constant 0.000000e+00 : f32
    %6 = vector.broadcast %cst : f32 to vector<2x16xf32>
    %c0_i32 = arith.constant 0 : i32
    %7 = arith.index_cast %c0_i32 : i32 to index
    %c0_11 = arith.constant 0 : index
    %c0_12 = arith.constant 0 : index
    %8 = vector.load %arg0[%7, %c0_11, %c0_12] : memref<8x2x32xf32, #tpu.memory_space<vmem>>, vector<1x2x32xf32>
    %9 = vector.shape_cast %8 : vector<1x2x32xf32> to vector<2x32xf32>
    %10 = arith.index_cast %c0_i32 : i32 to index
    %c0_13 = arith.constant 0 : index
    %c0_14 = arith.constant 0 : index
    %11 = vector.load %arg1[%10, %c0_13, %c0_14] : memref<8x2x1xf32, #tpu.memory_space<vmem>>, vector<1x2x1xf32>
    %12 = vector.shape_cast %11 : vector<1x2x1xf32> to vector<2x1xf32>
    %cst_15 = arith.constant dense<0.000000e+00> : vector<2x64xf32>
    %13 = tpu.matmul %9, %0, %cst_15 {dimension_numbers = #tpu.dot_dimension_numbers<[1], [1], [0], [0], [0, 0, 1, 0], [], []>} : vector<2x32xf32>, vector<64x32xf32>, vector<2x64xf32> -> vector<2x64xf32>
    %cst_16 = arith.constant dense<0.000000e+00> : vector<2x64xf32>
    %14 = tpu.matmul %6, %1, %cst_16 {dimension_numbers = #tpu.dot_dimension_numbers<[1], [1], [0], [0], [0, 0, 1, 0], [], []>} : vector<2x16xf32>, vector<64x16xf32>, vector<2x64xf32> -> vector<2x64xf32>
    %15 = arith.addf %13, %14 : vector<2x64xf32>
    %16 = vector.broadcast %2 : vector<1x64xf32> to vector<2x64xf32>
    %17 = arith.addf %15, %16 : vector<2x64xf32>
    %18 = vector.extract_strided_slice %17 {offsets = [0, 0], sizes = [2, 16], strides = [1, 1]} : vector<2x64xf32> to vector<2x16xf32>
    %19 = arith.negf %18 : vector<2x16xf32>
    %20 = math.exp %19 : vector<2x16xf32>
    %cst_17 = arith.constant 1.000000e+00 : f32
    %21 = vector.broadcast %cst_17 : f32 to vector<2x16xf32>
    %22 = arith.addf %21, %20 : vector<2x16xf32>
    %23 = arith.divf %21, %22 : vector<2x16xf32>
    %24 = vector.extract_strided_slice %17 {offsets = [0, 16], sizes = [2, 16], strides = [1, 1]} : vector<2x64xf32> to vector<2x16xf32>
    %25 = arith.negf %24 : vector<2x16xf32>
    %26 = math.exp %25 : vector<2x16xf32>
    %cst_18 = arith.constant 1.000000e+00 : f32
    %27 = vector.broadcast %cst_18 : f32 to vector<2x16xf32>
    %28 = arith.addf %27, %26 : vector<2x16xf32>
    %29 = arith.divf %27, %28 : vector<2x16xf32>
    %30 = vector.extract_strided_slice %17 {offsets = [0, 32], sizes = [2, 16], strides = [1, 1]} : vector<2x64xf32> to vector<2x16xf32>
    %31 = math.tanh %30 : vector<2x16xf32>
    %32 = vector.extract_strided_slice %17 {offsets = [0, 48], sizes = [2, 16], strides = [1, 1]} : vector<2x64xf32> to vector<2x16xf32>
    %33 = arith.negf %32 : vector<2x16xf32>
    %34 = math.exp %33 : vector<2x16xf32>
    %cst_19 = arith.constant 1.000000e+00 : f32
    %35 = vector.broadcast %cst_19 : f32 to vector<2x16xf32>
    %36 = arith.addf %35, %34 : vector<2x16xf32>
    %37 = arith.divf %35, %36 : vector<2x16xf32>
    %38 = arith.mulf %29, %6 : vector<2x16xf32>
    %39 = arith.mulf %23, %31 : vector<2x16xf32>
    %40 = arith.addf %38, %39 : vector<2x16xf32>
    %41 = math.tanh %40 : vector<2x16xf32>
    %42 = arith.mulf %37, %41 : vector<2x16xf32>
    %43 = vector.broadcast %12 : vector<2x1xf32> to vector<2x16xf32>
    %44 = arith.mulf %43, %42 : vector<2x16xf32>
    %45 = arith.index_cast %c0_i32 : i32 to index
    %c0_20 = arith.constant 0 : index
    %c0_21 = arith.constant 0 : index
    %46 = vector.load %arg8[%45, %c0_20, %c0_21] : memref<8x2x16xf32, #tpu.memory_space<vmem>>, vector<1x2x16xf32>
    %47 = vector.shape_cast %46 : vector<1x2x16xf32> to vector<2x16xf32>
    %48 = vector.shape_cast %44 : vector<2x16xf32> to vector<1x2x16xf32>
    tpu.vector_store %arg8[%45, %c0_20, %c0_21], %48 {strides = array<i32>} : memref<8x2x16xf32, #tpu.memory_space<vmem>>, vector<1x2x16xf32>,
    %49 = vector.broadcast %12 : vector<2x1xf32> to vector<2x16xf32>
    %50 = arith.mulf %49, %42 : vector<2x16xf32>
    %cst_22 = arith.constant 1.000000e+00 : f32
    %51 = vector.broadcast %cst_22 : f32 to vector<2x1xf32>
    %52 = arith.subf %51, %12 : vector<2x1xf32>
    %53 = vector.broadcast %52 : vector<2x1xf32> to vector<2x16xf32>
    %54 = arith.mulf %53, %6 : vector<2x16xf32>
    %55 = arith.addf %50, %54 : vector<2x16xf32>
    %56 = vector.broadcast %12 : vector<2x1xf32> to vector<2x16xf32>
    %57 = arith.mulf %56, %40 : vector<2x16xf32>
    %cst_23 = arith.constant 1.000000e+00 : f32
    %58 = vector.broadcast %cst_23 : f32 to vector<2x1xf32>
    %59 = arith.subf %58, %12 : vector<2x1xf32>
    %60 = vector.broadcast %59 : vector<2x1xf32> to vector<2x16xf32>
    %61 = arith.mulf %60, %6 : vector<2x16xf32>
    %62 = arith.addf %57, %61 : vector<2x16xf32>
    %c1_i32 = arith.constant 1 : i32
    %63 = arith.index_cast %c1_i32 : i32 to index
    %c0_24 = arith.constant 0 : index
    %c0_25 = arith.constant 0 : index
    %64 = vector.load %arg0[%63, %c0_24, %c0_25] : memref<8x2x32xf32, #tpu.memory_space<vmem>>, vector<1x2x32xf32>
    %65 = vector.shape_cast %64 : vector<1x2x32xf32> to vector<2x32xf32>
    %66 = arith.index_cast %c1_i32 : i32 to index
    %c0_26 = arith.constant 0 : index
    %c0_27 = arith.constant 0 : index
    %67 = vector.load %arg1[%66, %c0_26, %c0_27] : memref<8x2x1xf32, #tpu.memory_space<vmem>>, vector<1x2x1xf32>
    %68 = vector.shape_cast %67 : vector<1x2x1xf32> to vector<2x1xf32>
    %cst_28 = arith.constant dense<0.000000e+00> : vector<2x64xf32>
    %69 = tpu.matmul %65, %0, %cst_28 {dimension_numbers = #tpu.dot_dimension_numbers<[1], [1], [0], [0], [0, 0, 1, 0], [], []>} : vector<2x32xf32>, vector<64x32xf32>, vector<2x64xf32> -> vector<2x64xf32>
    %cst_29 = arith.constant dense<0.000000e+00> : vector<2x64xf32>
    %70 = tpu.matmul %55, %1, %cst_29 {dimension_numbers = #tpu.dot_dimension_numbers<[1], [1], [0], [0], [0, 0, 1, 0], [], []>} : vector<2x16xf32>, vector<64x16xf32>, vector<2x64xf32> -> vector<2x64xf32>
    %71 = arith.addf %69, %70 : vector<2x64xf32>
    %72 = vector.broadcast %2 : vector<1x64xf32> to vector<2x64xf32>
    %73 = arith.addf %71, %72 : vector<2x64xf32>
    %74 = vector.extract_strided_slice %73 {offsets = [0, 0], sizes = [2, 16], strides = [1, 1]} : vector<2x64xf32> to vector<2x16xf32>
    %75 = arith.negf %74 : vector<2x16xf32>
    %76 = math.exp %75 : vector<2x16xf32>
    %cst_30 = arith.constant 1.000000e+00 : f32
    %77 = vector.broadcast %cst_30 : f32 to vector<2x16xf32>
    %78 = arith.addf %77, %76 : vector<2x16xf32>
    %79 = arith.divf %77, %78 : vector<2x16xf32>
    %80 = vector.extract_strided_slice %73 {offsets = [0, 16], sizes = [2, 16], strides = [1, 1]} : vector<2x64xf32> to vector<2x16xf32>
    %81 = arith.negf %80 : vector<2x16xf32>
    %82 = math.exp %81 : vector<2x16xf32>
    %cst_31 = arith.constant 1.000000e+00 : f32
    %83 = vector.broadcast %cst_31 : f32 to vector<2x16xf32>
    %84 = arith.addf %83, %82 : vector<2x16xf32>
    %85 = arith.divf %83, %84 : vector<2x16xf32>
    %86 = vector.extract_strided_slice %73 {offsets = [0, 32], sizes = [2, 16], strides = [1, 1]} : vector<2x64xf32> to vector<2x16xf32>
    %87 = math.tanh %86 : vector<2x16xf32>
    %88 = vector.extract_strided_slice %73 {offsets = [0, 48], sizes = [2, 16], strides = [1, 1]} : vector<2x64xf32> to vector<2x16xf32>
    %89 = arith.negf %88 : vector<2x16xf32>
    %90 = math.exp %89 : vector<2x16xf32>
    %cst_32 = arith.constant 1.000000e+00 : f32
    %91 = vector.broadcast %cst_32 : f32 to vector<2x16xf32>
    %92 = arith.addf %91, %90 : vector<2x16xf32>
    %93 = arith.divf %91, %92 : vector<2x16xf32>
    %94 = arith.mulf %85, %62 : vector<2x16xf32>
    %95 = arith.mulf %79, %87 : vector<2x16xf32>
    %96 = arith.addf %94, %95 : vector<2x16xf32>
    %97 = math.tanh %96 : vector<2x16xf32>
    %98 = arith.mulf %93, %97 : vector<2x16xf32>
    %99 = vector.broadcast %68 : vector<2x1xf32> to vector<2x16xf32>
    %100 = arith.mulf %99, %98 : vector<2x16xf32>
    %101 = arith.index_cast %c1_i32 : i32 to index
    %c0_33 = arith.constant 0 : index
    %c0_34 = arith.constant 0 : index
    %102 = vector.load %arg8[%101, %c0_33, %c0_34] : memref<8x2x16xf32, #tpu.memory_space<vmem>>, vector<1x2x16xf32>
    %103 = vector.shape_cast %102 : vector<1x2x16xf32> to vector<2x16xf32>
    %104 = vector.shape_cast %100 : vector<2x16xf32> to vector<1x2x16xf32>
    tpu.vector_store %arg8[%101, %c0_33, %c0_34], %104 {strides = array<i32>} : memref<8x2x16xf32, #tpu.memory_space<vmem>>, vector<1x2x16xf32>,
    %105 = vector.broadcast %68 : vector<2x1xf32> to vector<2x16xf32>
    %106 = arith.mulf %105, %98 : vector<2x16xf32>
    %cst_35 = arith.constant 1.000000e+00 : f32
    %107 = vector.broadcast %cst_35 : f32 to vector<2x1xf32>
    %108 = arith.subf %107, %68 : vector<2x1xf32>
    %109 = vector.broadcast %108 : vector<2x1xf32> to vector<2x16xf32>
    %110 = arith.mulf %109, %55 : vector<2x16xf32>
    %111 = arith.addf %106, %110 : vector<2x16xf32>
    %112 = vector.broadcast %68 : vector<2x1xf32> to vector<2x16xf32>
    %113 = arith.mulf %112, %96 : vector<2x16xf32>
    %cst_36 = arith.constant 1.000000e+00 : f32
    %114 = vector.broadcast %cst_36 : f32 to vector<2x1xf32>
    %115 = arith.subf %114, %68 : vector<2x1xf32>
    %116 = vector.broadcast %115 : vector<2x1xf32> to vector<2x16xf32>
    %117 = arith.mulf %116, %62 : vector<2x16xf32>
    %118 = arith.addf %113, %117 : vector<2x16xf32>
    %c2_i32 = arith.constant 2 : i32
    %119 = arith.index_cast %c2_i32 : i32 to index
    %c0_37 = arith.constant 0 : index
    %c0_38 = arith.constant 0 : index
    %120 = vector.load %arg0[%119, %c0_37, %c0_38] : memref<8x2x32xf32, #tpu.memory_space<vmem>>, vector<1x2x32xf32>
    %121 = vector.shape_cast %120 : vector<1x2x32xf32> to vector<2x32xf32>
    %122 = arith.index_cast %c2_i32 : i32 to index
    %c0_39 = arith.constant 0 : index
    %c0_40 = arith.constant 0 : index
    %123 = vector.load %arg1[%122, %c0_39, %c0_40] : memref<8x2x1xf32, #tpu.memory_space<vmem>>, vector<1x2x1xf32>
    %124 = vector.shape_cast %123 : vector<1x2x1xf32> to vector<2x1xf32>
    %cst_41 = arith.constant dense<0.000000e+00> : vector<2x64xf32>
    %125 = tpu.matmul %121, %0, %cst_41 {dimension_numbers = #tpu.dot_dimension_numbers<[1], [1], [0], [0], [0, 0, 1, 0], [], []>} : vector<2x32xf32>, vector<64x32xf32>, vector<2x64xf32> -> vector<2x64xf32>
    %cst_42 = arith.constant dense<0.000000e+00> : vector<2x64xf32>
    %126 = tpu.matmul %111, %1, %cst_42 {dimension_numbers = #tpu.dot_dimension_numbers<[1], [1], [0], [0], [0, 0, 1, 0], [], []>} : vector<2x16xf32>, vector<64x16xf32>, vector<2x64xf32> -> vector<2x64xf32>
    %127 = arith.addf %125, %126 : vector<2x64xf32>
    %128 = vector.broadcast %2 : vector<1x64xf32> to vector<2x64xf32>
    %129 = arith.addf %127, %128 : vector<2x64xf32>
    %130 = vector.extract_strided_slice %129 {offsets = [0, 0], sizes = [2, 16], strides = [1, 1]} : vector<2x64xf32> to vector<2x16xf32>
    %131 = arith.negf %130 : vector<2x16xf32>
    %132 = math.exp %131 : vector<2x16xf32>
    %cst_43 = arith.constant 1.000000e+00 : f32
    %133 = vector.broadcast %cst_43 : f32 to vector<2x16xf32>
    %134 = arith.addf %133, %132 : vector<2x16xf32>
    %135 = arith.divf %133, %134 : vector<2x16xf32>
    %136 = vector.extract_strided_slice %129 {offsets = [0, 16], sizes = [2, 16], strides = [1, 1]} : vector<2x64xf32> to vector<2x16xf32>
    %137 = arith.negf %136 : vector<2x16xf32>
    %138 = math.exp %137 : vector<2x16xf32>
    %cst_44 = arith.constant 1.000000e+00 : f32
    %139 = vector.broadcast %cst_44 : f32 to vector<2x16xf32>
    %140 = arith.addf %139, %138 : vector<2x16xf32>
    %141 = arith.divf %139, %140 : vector<2x16xf32>
    %142 = vector.extract_strided_slice %129 {offsets = [0, 32], sizes = [2, 16], strides = [1, 1]} : vector<2x64xf32> to vector<2x16xf32>
    %143 = math.tanh %142 : vector<2x16xf32>
    %144 = vector.extract_strided_slice %129 {offsets = [0, 48], sizes = [2, 16], strides = [1, 1]} : vector<2x64xf32> to vector<2x16xf32>
    %145 = arith.negf %144 : vector<2x16xf32>
    %146 = math.exp %145 : vector<2x16xf32>
    %cst_45 = arith.constant 1.000000e+00 : f32
    %147 = vector.broadcast %cst_45 : f32 to vector<2x16xf32>
    %148 = arith.addf %147, %146 : vector<2x16xf32>
    %149 = arith.divf %147, %148 : vector<2x16xf32>
    %150 = arith.mulf %141, %118 : vector<2x16xf32>
    %151 = arith.mulf %135, %143 : vector<2x16xf32>
    %152 = arith.addf %150, %151 : vector<2x16xf32>
    %153 = math.tanh %152 : vector<2x16xf32>
    %154 = arith.mulf %149, %153 : vector<2x16xf32>
    %155 = vector.broadcast %124 : vector<2x1xf32> to vector<2x16xf32>
    %156 = arith.mulf %155, %154 : vector<2x16xf32>
    %157 = arith.index_cast %c2_i32 : i32 to index
    %c0_46 = arith.constant 0 : index
    %c0_47 = arith.constant 0 : index
    %158 = vector.load %arg8[%157, %c0_46, %c0_47] : memref<8x2x16xf32, #tpu.memory_space<vmem>>, vector<1x2x16xf32>
    %159 = vector.shape_cast %158 : vector<1x2x16xf32> to vector<2x16xf32>
    %160 = vector.shape_cast %156 : vector<2x16xf32> to vector<1x2x16xf32>
    tpu.vector_store %arg8[%157, %c0_46, %c0_47], %160 {strides = array<i32>} : memref<8x2x16xf32, #tpu.memory_space<vmem>>, vector<1x2x16xf32>,
    %161 = vector.broadcast %124 : vector<2x1xf32> to vector<2x16xf32>
    %162 = arith.mulf %161, %154 : vector<2x16xf32>
    %cst_48 = arith.constant 1.000000e+00 : f32
    %163 = vector.broadcast %cst_48 : f32 to vector<2x1xf32>
    %164 = arith.subf %163, %124 : vector<2x1xf32>
    %165 = vector.broadcast %164 : vector<2x1xf32> to vector<2x16xf32>
    %166 = arith.mulf %165, %111 : vector<2x16xf32>
    %167 = arith.addf %162, %166 : vector<2x16xf32>
    %168 = vector.broadcast %124 : vector<2x1xf32> to vector<2x16xf32>
    %169 = arith.mulf %168, %152 : vector<2x16xf32>
    %cst_49 = arith.constant 1.000000e+00 : f32
    %170 = vector.broadcast %cst_49 : f32 to vector<2x1xf32>
    %171 = arith.subf %170, %124 : vector<2x1xf32>
    %172 = vector.broadcast %171 : vector<2x1xf32> to vector<2x16xf32>
    %173 = arith.mulf %172, %118 : vector<2x16xf32>
    %174 = arith.addf %169, %173 : vector<2x16xf32>
    %c3_i32 = arith.constant 3 : i32
    %175 = arith.index_cast %c3_i32 : i32 to index
    %c0_50 = arith.constant 0 : index
    %c0_51 = arith.constant 0 : index
    %176 = vector.load %arg0[%175, %c0_50, %c0_51] : memref<8x2x32xf32, #tpu.memory_space<vmem>>, vector<1x2x32xf32>
    %177 = vector.shape_cast %176 : vector<1x2x32xf32> to vector<2x32xf32>
    %178 = arith.index_cast %c3_i32 : i32 to index
    %c0_52 = arith.constant 0 : index
    %c0_53 = arith.constant 0 : index
    %179 = vector.load %arg1[%178, %c0_52, %c0_53] : memref<8x2x1xf32, #tpu.memory_space<vmem>>, vector<1x2x1xf32>
    %180 = vector.shape_cast %179 : vector<1x2x1xf32> to vector<2x1xf32>
    %cst_54 = arith.constant dense<0.000000e+00> : vector<2x64xf32>
    %181 = tpu.matmul %177, %0, %cst_54 {dimension_numbers = #tpu.dot_dimension_numbers<[1], [1], [0], [0], [0, 0, 1, 0], [], []>} : vector<2x32xf32>, vector<64x32xf32>, vector<2x64xf32> -> vector<2x64xf32>
    %cst_55 = arith.constant dense<0.000000e+00> : vector<2x64xf32>
    %182 = tpu.matmul %167, %1, %cst_55 {dimension_numbers = #tpu.dot_dimension_numbers<[1], [1], [0], [0], [0, 0, 1, 0], [], []>} : vector<2x16xf32>, vector<64x16xf32>, vector<2x64xf32> -> vector<2x64xf32>
    %183 = arith.addf %181, %182 : vector<2x64xf32>
    %184 = vector.broadcast %2 : vector<1x64xf32> to vector<2x64xf32>
    %185 = arith.addf %183, %184 : vector<2x64xf32>
    %186 = vector.extract_strided_slice %185 {offsets = [0, 0], sizes = [2, 16], strides = [1, 1]} : vector<2x64xf32> to vector<2x16xf32>
    %187 = arith.negf %186 : vector<2x16xf32>
    %188 = math.exp %187 : vector<2x16xf32>
    %cst_56 = arith.constant 1.000000e+00 : f32
    %189 = vector.broadcast %cst_56 : f32 to vector<2x16xf32>
    %190 = arith.addf %189, %188 : vector<2x16xf32>
    %191 = arith.divf %189, %190 : vector<2x16xf32>
    %192 = vector.extract_strided_slice %185 {offsets = [0, 16], sizes = [2, 16], strides = [1, 1]} : vector<2x64xf32> to vector<2x16xf32>
    %193 = arith.negf %192 : vector<2x16xf32>
    %194 = math.exp %193 : vector<2x16xf32>
    %cst_57 = arith.constant 1.000000e+00 : f32
    %195 = vector.broadcast %cst_57 : f32 to vector<2x16xf32>
    %196 = arith.addf %195, %194 : vector<2x16xf32>
    %197 = arith.divf %195, %196 : vector<2x16xf32>
    %198 = vector.extract_strided_slice %185 {offsets = [0, 32], sizes = [2, 16], strides = [1, 1]} : vector<2x64xf32> to vector<2x16xf32>
    %199 = math.tanh %198 : vector<2x16xf32>
    %200 = vector.extract_strided_slice %185 {offsets = [0, 48], sizes = [2, 16], strides = [1, 1]} : vector<2x64xf32> to vector<2x16xf32>
    %201 = arith.negf %200 : vector<2x16xf32>
    %202 = math.exp %201 : vector<2x16xf32>
    %cst_58 = arith.constant 1.000000e+00 : f32
    %203 = vector.broadcast %cst_58 : f32 to vector<2x16xf32>
    %204 = arith.addf %203, %202 : vector<2x16xf32>
    %205 = arith.divf %203, %204 : vector<2x16xf32>
    %206 = arith.mulf %197, %174 : vector<2x16xf32>
    %207 = arith.mulf %191, %199 : vector<2x16xf32>
    %208 = arith.addf %206, %207 : vector<2x16xf32>
    %209 = math.tanh %208 : vector<2x16xf32>
    %210 = arith.mulf %205, %209 : vector<2x16xf32>
    %211 = vector.broadcast %180 : vector<2x1xf32> to vector<2x16xf32>
    %212 = arith.mulf %211, %210 : vector<2x16xf32>
    %213 = arith.index_cast %c3_i32 : i32 to index
    %c0_59 = arith.constant 0 : index
    %c0_60 = arith.constant 0 : index
    %214 = vector.load %arg8[%213, %c0_59, %c0_60] : memref<8x2x16xf32, #tpu.memory_space<vmem>>, vector<1x2x16xf32>
    %215 = vector.shape_cast %214 : vector<1x2x16xf32> to vector<2x16xf32>
    %216 = vector.shape_cast %212 : vector<2x16xf32> to vector<1x2x16xf32>
    tpu.vector_store %arg8[%213, %c0_59, %c0_60], %216 {strides = array<i32>} : memref<8x2x16xf32, #tpu.memory_space<vmem>>, vector<1x2x16xf32>,
    %217 = vector.broadcast %180 : vector<2x1xf32> to vector<2x16xf32>
    %218 = arith.mulf %217, %210 : vector<2x16xf32>
    %cst_61 = arith.constant 1.000000e+00 : f32
    %219 = vector.broadcast %cst_61 : f32 to vector<2x1xf32>
    %220 = arith.subf %219, %180 : vector<2x1xf32>
    %221 = vector.broadcast %220 : vector<2x1xf32> to vector<2x16xf32>
    %222 = arith.mulf %221, %167 : vector<2x16xf32>
    %223 = arith.addf %218, %222 : vector<2x16xf32>
    %224 = vector.broadcast %180 : vector<2x1xf32> to vector<2x16xf32>
    %225 = arith.mulf %224, %208 : vector<2x16xf32>
    %cst_62 = arith.constant 1.000000e+00 : f32
    %226 = vector.broadcast %cst_62 : f32 to vector<2x1xf32>
    %227 = arith.subf %226, %180 : vector<2x1xf32>
    %228 = vector.broadcast %227 : vector<2x1xf32> to vector<2x16xf32>
    %229 = arith.mulf %228, %174 : vector<2x16xf32>
    %230 = arith.addf %225, %229 : vector<2x16xf32>
    %c4_i32 = arith.constant 4 : i32
    %231 = arith.index_cast %c4_i32 : i32 to index
    %c0_63 = arith.constant 0 : index
    %c0_64 = arith.constant 0 : index
    %232 = vector.load %arg0[%231, %c0_63, %c0_64] : memref<8x2x32xf32, #tpu.memory_space<vmem>>, vector<1x2x32xf32>
    %233 = vector.shape_cast %232 : vector<1x2x32xf32> to vector<2x32xf32>
    %234 = arith.index_cast %c4_i32 : i32 to index
    %c0_65 = arith.constant 0 : index
    %c0_66 = arith.constant 0 : index
    %235 = vector.load %arg1[%234, %c0_65, %c0_66] : memref<8x2x1xf32, #tpu.memory_space<vmem>>, vector<1x2x1xf32>
    %236 = vector.shape_cast %235 : vector<1x2x1xf32> to vector<2x1xf32>
    %cst_67 = arith.constant dense<0.000000e+00> : vector<2x64xf32>
    %237 = tpu.matmul %233, %0, %cst_67 {dimension_numbers = #tpu.dot_dimension_numbers<[1], [1], [0], [0], [0, 0, 1, 0], [], []>} : vector<2x32xf32>, vector<64x32xf32>, vector<2x64xf32> -> vector<2x64xf32>
    %cst_68 = arith.constant dense<0.000000e+00> : vector<2x64xf32>
    %238 = tpu.matmul %223, %1, %cst_68 {dimension_numbers = #tpu.dot_dimension_numbers<[1], [1], [0], [0], [0, 0, 1, 0], [], []>} : vector<2x16xf32>, vector<64x16xf32>, vector<2x64xf32> -> vector<2x64xf32>
    %239 = arith.addf %237, %238 : vector<2x64xf32>
    %240 = vector.broadcast %2 : vector<1x64xf32> to vector<2x64xf32>
    %241 = arith.addf %239, %240 : vector<2x64xf32>
    %242 = vector.extract_strided_slice %241 {offsets = [0, 0], sizes = [2, 16], strides = [1, 1]} : vector<2x64xf32> to vector<2x16xf32>
    %243 = arith.negf %242 : vector<2x16xf32>
    %244 = math.exp %243 : vector<2x16xf32>
    %cst_69 = arith.constant 1.000000e+00 : f32
    %245 = vector.broadcast %cst_69 : f32 to vector<2x16xf32>
    %246 = arith.addf %245, %244 : vector<2x16xf32>
    %247 = arith.divf %245, %246 : vector<2x16xf32>
    %248 = vector.extract_strided_slice %241 {offsets = [0, 16], sizes = [2, 16], strides = [1, 1]} : vector<2x64xf32> to vector<2x16xf32>
    %249 = arith.negf %248 : vector<2x16xf32>
    %250 = math.exp %249 : vector<2x16xf32>
    %cst_70 = arith.constant 1.000000e+00 : f32
    %251 = vector.broadcast %cst_70 : f32 to vector<2x16xf32>
    %252 = arith.addf %251, %250 : vector<2x16xf32>
    %253 = arith.divf %251, %252 : vector<2x16xf32>
    %254 = vector.extract_strided_slice %241 {offsets = [0, 32], sizes = [2, 16], strides = [1, 1]} : vector<2x64xf32> to vector<2x16xf32>
    %255 = math.tanh %254 : vector<2x16xf32>
    %256 = vector.extract_strided_slice %241 {offsets = [0, 48], sizes = [2, 16], strides = [1, 1]} : vector<2x64xf32> to vector<2x16xf32>
    %257 = arith.negf %256 : vector<2x16xf32>
    %258 = math.exp %257 : vector<2x16xf32>
    %cst_71 = arith.constant 1.000000e+00 : f32
    %259 = vector.broadcast %cst_71 : f32 to vector<2x16xf32>
    %260 = arith.addf %259, %258 : vector<2x16xf32>
    %261 = arith.divf %259, %260 : vector<2x16xf32>
    %262 = arith.mulf %253, %230 : vector<2x16xf32>
    %263 = arith.mulf %247, %255 : vector<2x16xf32>
    %264 = arith.addf %262, %263 : vector<2x16xf32>
    %265 = math.tanh %264 : vector<2x16xf32>
    %266 = arith.mulf %261, %265 : vector<2x16xf32>
    %267 = vector.broadcast %236 : vector<2x1xf32> to vector<2x16xf32>
    %268 = arith.mulf %267, %266 : vector<2x16xf32>
    %269 = arith.index_cast %c4_i32 : i32 to index
    %c0_72 = arith.constant 0 : index
    %c0_73 = arith.constant 0 : index
    %270 = vector.load %arg8[%269, %c0_72, %c0_73] : memref<8x2x16xf32, #tpu.memory_space<vmem>>, vector<1x2x16xf32>
    %271 = vector.shape_cast %270 : vector<1x2x16xf32> to vector<2x16xf32>
    %272 = vector.shape_cast %268 : vector<2x16xf32> to vector<1x2x16xf32>
    tpu.vector_store %arg8[%269, %c0_72, %c0_73], %272 {strides = array<i32>} : memref<8x2x16xf32, #tpu.memory_space<vmem>>, vector<1x2x16xf32>,
    %273 = vector.broadcast %236 : vector<2x1xf32> to vector<2x16xf32>
    %274 = arith.mulf %273, %266 : vector<2x16xf32>
    %cst_74 = arith.constant 1.000000e+00 : f32
    %275 = vector.broadcast %cst_74 : f32 to vector<2x1xf32>
    %276 = arith.subf %275, %236 : vector<2x1xf32>
    %277 = vector.broadcast %276 : vector<2x1xf32> to vector<2x16xf32>
    %278 = arith.mulf %277, %223 : vector<2x16xf32>
    %279 = arith.addf %274, %278 : vector<2x16xf32>
    %280 = vector.broadcast %236 : vector<2x1xf32> to vector<2x16xf32>
    %281 = arith.mulf %280, %264 : vector<2x16xf32>
    %cst_75 = arith.constant 1.000000e+00 : f32
    %282 = vector.broadcast %cst_75 : f32 to vector<2x1xf32>
    %283 = arith.subf %282, %236 : vector<2x1xf32>
    %284 = vector.broadcast %283 : vector<2x1xf32> to vector<2x16xf32>
    %285 = arith.mulf %284, %230 : vector<2x16xf32>
    %286 = arith.addf %281, %285 : vector<2x16xf32>
    %c5_i32 = arith.constant 5 : i32
    %287 = arith.index_cast %c5_i32 : i32 to index
    %c0_76 = arith.constant 0 : index
    %c0_77 = arith.constant 0 : index
    %288 = vector.load %arg0[%287, %c0_76, %c0_77] : memref<8x2x32xf32, #tpu.memory_space<vmem>>, vector<1x2x32xf32>
    %289 = vector.shape_cast %288 : vector<1x2x32xf32> to vector<2x32xf32>
    %290 = arith.index_cast %c5_i32 : i32 to index
    %c0_78 = arith.constant 0 : index
    %c0_79 = arith.constant 0 : index
    %291 = vector.load %arg1[%290, %c0_78, %c0_79] : memref<8x2x1xf32, #tpu.memory_space<vmem>>, vector<1x2x1xf32>
    %292 = vector.shape_cast %291 : vector<1x2x1xf32> to vector<2x1xf32>
    %cst_80 = arith.constant dense<0.000000e+00> : vector<2x64xf32>
    %293 = tpu.matmul %289, %0, %cst_80 {dimension_numbers = #tpu.dot_dimension_numbers<[1], [1], [0], [0], [0, 0, 1, 0], [], []>} : vector<2x32xf32>, vector<64x32xf32>, vector<2x64xf32> -> vector<2x64xf32>
    %cst_81 = arith.constant dense<0.000000e+00> : vector<2x64xf32>
    %294 = tpu.matmul %279, %1, %cst_81 {dimension_numbers = #tpu.dot_dimension_numbers<[1], [1], [0], [0], [0, 0, 1, 0], [], []>} : vector<2x16xf32>, vector<64x16xf32>, vector<2x64xf32> -> vector<2x64xf32>
    %295 = arith.addf %293, %294 : vector<2x64xf32>
    %296 = vector.broadcast %2 : vector<1x64xf32> to vector<2x64xf32>
    %297 = arith.addf %295, %296 : vector<2x64xf32>
    %298 = vector.extract_strided_slice %297 {offsets = [0, 0], sizes = [2, 16], strides = [1, 1]} : vector<2x64xf32> to vector<2x16xf32>
    %299 = arith.negf %298 : vector<2x16xf32>
    %300 = math.exp %299 : vector<2x16xf32>
    %cst_82 = arith.constant 1.000000e+00 : f32
    %301 = vector.broadcast %cst_82 : f32 to vector<2x16xf32>
    %302 = arith.addf %301, %300 : vector<2x16xf32>
    %303 = arith.divf %301, %302 : vector<2x16xf32>
    %304 = vector.extract_strided_slice %297 {offsets = [0, 16], sizes = [2, 16], strides = [1, 1]} : vector<2x64xf32> to vector<2x16xf32>
    %305 = arith.negf %304 : vector<2x16xf32>
    %306 = math.exp %305 : vector<2x16xf32>
    %cst_83 = arith.constant 1.000000e+00 : f32
    %307 = vector.broadcast %cst_83 : f32 to vector<2x16xf32>
    %308 = arith.addf %307, %306 : vector<2x16xf32>
    %309 = arith.divf %307, %308 : vector<2x16xf32>
    %310 = vector.extract_strided_slice %297 {offsets = [0, 32], sizes = [2, 16], strides = [1, 1]} : vector<2x64xf32> to vector<2x16xf32>
    %311 = math.tanh %310 : vector<2x16xf32>
    %312 = vector.extract_strided_slice %297 {offsets = [0, 48], sizes = [2, 16], strides = [1, 1]} : vector<2x64xf32> to vector<2x16xf32>
    %313 = arith.negf %312 : vector<2x16xf32>
    %314 = math.exp %313 : vector<2x16xf32>
    %cst_84 = arith.constant 1.000000e+00 : f32
    %315 = vector.broadcast %cst_84 : f32 to vector<2x16xf32>
    %316 = arith.addf %315, %314 : vector<2x16xf32>
    %317 = arith.divf %315, %316 : vector<2x16xf32>
    %318 = arith.mulf %309, %286 : vector<2x16xf32>
    %319 = arith.mulf %303, %311 : vector<2x16xf32>
    %320 = arith.addf %318, %319 : vector<2x16xf32>
    %321 = math.tanh %320 : vector<2x16xf32>
    %322 = arith.mulf %317, %321 : vector<2x16xf32>
    %323 = vector.broadcast %292 : vector<2x1xf32> to vector<2x16xf32>
    %324 = arith.mulf %323, %322 : vector<2x16xf32>
    %325 = arith.index_cast %c5_i32 : i32 to index
    %c0_85 = arith.constant 0 : index
    %c0_86 = arith.constant 0 : index
    %326 = vector.load %arg8[%325, %c0_85, %c0_86] : memref<8x2x16xf32, #tpu.memory_space<vmem>>, vector<1x2x16xf32>
    %327 = vector.shape_cast %326 : vector<1x2x16xf32> to vector<2x16xf32>
    %328 = vector.shape_cast %324 : vector<2x16xf32> to vector<1x2x16xf32>
    tpu.vector_store %arg8[%325, %c0_85, %c0_86], %328 {strides = array<i32>} : memref<8x2x16xf32, #tpu.memory_space<vmem>>, vector<1x2x16xf32>,
    %329 = vector.broadcast %292 : vector<2x1xf32> to vector<2x16xf32>
    %330 = arith.mulf %329, %322 : vector<2x16xf32>
    %cst_87 = arith.constant 1.000000e+00 : f32
    %331 = vector.broadcast %cst_87 : f32 to vector<2x1xf32>
    %332 = arith.subf %331, %292 : vector<2x1xf32>
    %333 = vector.broadcast %332 : vector<2x1xf32> to vector<2x16xf32>
    %334 = arith.mulf %333, %279 : vector<2x16xf32>
    %335 = arith.addf %330, %334 : vector<2x16xf32>
    %336 = vector.broadcast %292 : vector<2x1xf32> to vector<2x16xf32>
    %337 = arith.mulf %336, %320 : vector<2x16xf32>
    %cst_88 = arith.constant 1.000000e+00 : f32
    %338 = vector.broadcast %cst_88 : f32 to vector<2x1xf32>
    %339 = arith.subf %338, %292 : vector<2x1xf32>
    %340 = vector.broadcast %339 : vector<2x1xf32> to vector<2x16xf32>
    %341 = arith.mulf %340, %286 : vector<2x16xf32>
    %342 = arith.addf %337, %341 : vector<2x16xf32>
    %c6_i32 = arith.constant 6 : i32
    %343 = arith.index_cast %c6_i32 : i32 to index
    %c0_89 = arith.constant 0 : index
    %c0_90 = arith.constant 0 : index
    %344 = vector.load %arg0[%343, %c0_89, %c0_90] : memref<8x2x32xf32, #tpu.memory_space<vmem>>, vector<1x2x32xf32>
    %345 = vector.shape_cast %344 : vector<1x2x32xf32> to vector<2x32xf32>
    %346 = arith.index_cast %c6_i32 : i32 to index
    %c0_91 = arith.constant 0 : index
    %c0_92 = arith.constant 0 : index
    %347 = vector.load %arg1[%346, %c0_91, %c0_92] : memref<8x2x1xf32, #tpu.memory_space<vmem>>, vector<1x2x1xf32>
    %348 = vector.shape_cast %347 : vector<1x2x1xf32> to vector<2x1xf32>
    %cst_93 = arith.constant dense<0.000000e+00> : vector<2x64xf32>
    %349 = tpu.matmul %345, %0, %cst_93 {dimension_numbers = #tpu.dot_dimension_numbers<[1], [1], [0], [0], [0, 0, 1, 0], [], []>} : vector<2x32xf32>, vector<64x32xf32>, vector<2x64xf32> -> vector<2x64xf32>
    %cst_94 = arith.constant dense<0.000000e+00> : vector<2x64xf32>
    %350 = tpu.matmul %335, %1, %cst_94 {dimension_numbers = #tpu.dot_dimension_numbers<[1], [1], [0], [0], [0, 0, 1, 0], [], []>} : vector<2x16xf32>, vector<64x16xf32>, vector<2x64xf32> -> vector<2x64xf32>
    %351 = arith.addf %349, %350 : vector<2x64xf32>
    %352 = vector.broadcast %2 : vector<1x64xf32> to vector<2x64xf32>
    %353 = arith.addf %351, %352 : vector<2x64xf32>
    %354 = vector.extract_strided_slice %353 {offsets = [0, 0], sizes = [2, 16], strides = [1, 1]} : vector<2x64xf32> to vector<2x16xf32>
    %355 = arith.negf %354 : vector<2x16xf32>
    %356 = math.exp %355 : vector<2x16xf32>
    %cst_95 = arith.constant 1.000000e+00 : f32
    %357 = vector.broadcast %cst_95 : f32 to vector<2x16xf32>
    %358 = arith.addf %357, %356 : vector<2x16xf32>
    %359 = arith.divf %357, %358 : vector<2x16xf32>
    %360 = vector.extract_strided_slice %353 {offsets = [0, 16], sizes = [2, 16], strides = [1, 1]} : vector<2x64xf32> to vector<2x16xf32>
    %361 = arith.negf %360 : vector<2x16xf32>
    %362 = math.exp %361 : vector<2x16xf32>
    %cst_96 = arith.constant 1.000000e+00 : f32
    %363 = vector.broadcast %cst_96 : f32 to vector<2x16xf32>
    %364 = arith.addf %363, %362 : vector<2x16xf32>
    %365 = arith.divf %363, %364 : vector<2x16xf32>
    %366 = vector.extract_strided_slice %353 {offsets = [0, 32], sizes = [2, 16], strides = [1, 1]} : vector<2x64xf32> to vector<2x16xf32>
    %367 = math.tanh %366 : vector<2x16xf32>
    %368 = vector.extract_strided_slice %353 {offsets = [0, 48], sizes = [2, 16], strides = [1, 1]} : vector<2x64xf32> to vector<2x16xf32>
    %369 = arith.negf %368 : vector<2x16xf32>
    %370 = math.exp %369 : vector<2x16xf32>
    %cst_97 = arith.constant 1.000000e+00 : f32
    %371 = vector.broadcast %cst_97 : f32 to vector<2x16xf32>
    %372 = arith.addf %371, %370 : vector<2x16xf32>
    %373 = arith.divf %371, %372 : vector<2x16xf32>
    %374 = arith.mulf %365, %342 : vector<2x16xf32>
    %375 = arith.mulf %359, %367 : vector<2x16xf32>
    %376 = arith.addf %374, %375 : vector<2x16xf32>
    %377 = math.tanh %376 : vector<2x16xf32>
    %378 = arith.mulf %373, %377 : vector<2x16xf32>
    %379 = vector.broadcast %348 : vector<2x1xf32> to vector<2x16xf32>
    %380 = arith.mulf %379, %378 : vector<2x16xf32>
    %381 = arith.index_cast %c6_i32 : i32 to index
    %c0_98 = arith.constant 0 : index
    %c0_99 = arith.constant 0 : index
    %382 = vector.load %arg8[%381, %c0_98, %c0_99] : memref<8x2x16xf32, #tpu.memory_space<vmem>>, vector<1x2x16xf32>
    %383 = vector.shape_cast %382 : vector<1x2x16xf32> to vector<2x16xf32>
    %384 = vector.shape_cast %380 : vector<2x16xf32> to vector<1x2x16xf32>
    tpu.vector_store %arg8[%381, %c0_98, %c0_99], %384 {strides = array<i32>} : memref<8x2x16xf32, #tpu.memory_space<vmem>>, vector<1x2x16xf32>,
    %385 = vector.broadcast %348 : vector<2x1xf32> to vector<2x16xf32>
    %386 = arith.mulf %385, %378 : vector<2x16xf32>
    %cst_100 = arith.constant 1.000000e+00 : f32
    %387 = vector.broadcast %cst_100 : f32 to vector<2x1xf32>
    %388 = arith.subf %387, %348 : vector<2x1xf32>
    %389 = vector.broadcast %388 : vector<2x1xf32> to vector<2x16xf32>
    %390 = arith.mulf %389, %335 : vector<2x16xf32>
    %391 = arith.addf %386, %390 : vector<2x16xf32>
    %392 = vector.broadcast %348 : vector<2x1xf32> to vector<2x16xf32>
    %393 = arith.mulf %392, %376 : vector<2x16xf32>
    %cst_101 = arith.constant 1.000000e+00 : f32
    %394 = vector.broadcast %cst_101 : f32 to vector<2x1xf32>
    %395 = arith.subf %394, %348 : vector<2x1xf32>
    %396 = vector.broadcast %395 : vector<2x1xf32> to vector<2x16xf32>
    %397 = arith.mulf %396, %342 : vector<2x16xf32>
    %398 = arith.addf %393, %397 : vector<2x16xf32>
    %c7_i32 = arith.constant 7 : i32
    %399 = arith.index_cast %c7_i32 : i32 to index
    %c0_102 = arith.constant 0 : index
    %c0_103 = arith.constant 0 : index
    %400 = vector.load %arg0[%399, %c0_102, %c0_103] : memref<8x2x32xf32, #tpu.memory_space<vmem>>, vector<1x2x32xf32>
    %401 = vector.shape_cast %400 : vector<1x2x32xf32> to vector<2x32xf32>
    %402 = arith.index_cast %c7_i32 : i32 to index
    %c0_104 = arith.constant 0 : index
    %c0_105 = arith.constant 0 : index
    %403 = vector.load %arg1[%402, %c0_104, %c0_105] : memref<8x2x1xf32, #tpu.memory_space<vmem>>, vector<1x2x1xf32>
    %404 = vector.shape_cast %403 : vector<1x2x1xf32> to vector<2x1xf32>
    %cst_106 = arith.constant dense<0.000000e+00> : vector<2x64xf32>
    %405 = tpu.matmul %401, %0, %cst_106 {dimension_numbers = #tpu.dot_dimension_numbers<[1], [1], [0], [0], [0, 0, 1, 0], [], []>} : vector<2x32xf32>, vector<64x32xf32>, vector<2x64xf32> -> vector<2x64xf32>
    %cst_107 = arith.constant dense<0.000000e+00> : vector<2x64xf32>
    %406 = tpu.matmul %391, %1, %cst_107 {dimension_numbers = #tpu.dot_dimension_numbers<[1], [1], [0], [0], [0, 0, 1, 0], [], []>} : vector<2x16xf32>, vector<64x16xf32>, vector<2x64xf32> -> vector<2x64xf32>
    %407 = arith.addf %405, %406 : vector<2x64xf32>
    %408 = vector.broadcast %2 : vector<1x64xf32> to vector<2x64xf32>
    %409 = arith.addf %407, %408 : vector<2x64xf32>
    %410 = vector.extract_strided_slice %409 {offsets = [0, 0], sizes = [2, 16], strides = [1, 1]} : vector<2x64xf32> to vector<2x16xf32>
    %411 = arith.negf %410 : vector<2x16xf32>
    %412 = math.exp %411 : vector<2x16xf32>
    %cst_108 = arith.constant 1.000000e+00 : f32
    %413 = vector.broadcast %cst_108 : f32 to vector<2x16xf32>
    %414 = arith.addf %413, %412 : vector<2x16xf32>
    %415 = arith.divf %413, %414 : vector<2x16xf32>
    %416 = vector.extract_strided_slice %409 {offsets = [0, 16], sizes = [2, 16], strides = [1, 1]} : vector<2x64xf32> to vector<2x16xf32>
    %417 = arith.negf %416 : vector<2x16xf32>
    %418 = math.exp %417 : vector<2x16xf32>
    %cst_109 = arith.constant 1.000000e+00 : f32
    %419 = vector.broadcast %cst_109 : f32 to vector<2x16xf32>
    %420 = arith.addf %419, %418 : vector<2x16xf32>
    %421 = arith.divf %419, %420 : vector<2x16xf32>
    %422 = vector.extract_strided_slice %409 {offsets = [0, 32], sizes = [2, 16], strides = [1, 1]} : vector<2x64xf32> to vector<2x16xf32>
    %423 = math.tanh %422 : vector<2x16xf32>
    %424 = vector.extract_strided_slice %409 {offsets = [0, 48], sizes = [2, 16], strides = [1, 1]} : vector<2x64xf32> to vector<2x16xf32>
    %425 = arith.negf %424 : vector<2x16xf32>
    %426 = math.exp %425 : vector<2x16xf32>
    %cst_110 = arith.constant 1.000000e+00 : f32
    %427 = vector.broadcast %cst_110 : f32 to vector<2x16xf32>
    %428 = arith.addf %427, %426 : vector<2x16xf32>
    %429 = arith.divf %427, %428 : vector<2x16xf32>
    %430 = arith.mulf %421, %398 : vector<2x16xf32>
    %431 = arith.mulf %415, %423 : vector<2x16xf32>
    %432 = arith.addf %430, %431 : vector<2x16xf32>
    %433 = math.tanh %432 : vector<2x16xf32>
    %434 = arith.mulf %429, %433 : vector<2x16xf32>
    %435 = vector.broadcast %404 : vector<2x1xf32> to vector<2x16xf32>
    %436 = arith.mulf %435, %434 : vector<2x16xf32>
    %437 = arith.index_cast %c7_i32 : i32 to index
    %c0_111 = arith.constant 0 : index
    %c0_112 = arith.constant 0 : index
    %438 = vector.load %arg8[%437, %c0_111, %c0_112] : memref<8x2x16xf32, #tpu.memory_space<vmem>>, vector<1x2x16xf32>
    %439 = vector.shape_cast %438 : vector<1x2x16xf32> to vector<2x16xf32>
    %440 = vector.shape_cast %436 : vector<2x16xf32> to vector<1x2x16xf32>
    tpu.vector_store %arg8[%437, %c0_111, %c0_112], %440 {strides = array<i32>} : memref<8x2x16xf32, #tpu.memory_space<vmem>>, vector<1x2x16xf32>,
    %441 = vector.broadcast %404 : vector<2x1xf32> to vector<2x16xf32>
    %442 = arith.mulf %441, %434 : vector<2x16xf32>
    %cst_113 = arith.constant 1.000000e+00 : f32
    %443 = vector.broadcast %cst_113 : f32 to vector<2x1xf32>
    %444 = arith.subf %443, %404 : vector<2x1xf32>
    %445 = vector.broadcast %444 : vector<2x1xf32> to vector<2x16xf32>
    %446 = arith.mulf %445, %391 : vector<2x16xf32>
    %447 = arith.addf %442, %446 : vector<2x16xf32>
    %448 = vector.broadcast %404 : vector<2x1xf32> to vector<2x16xf32>
    %449 = arith.mulf %448, %432 : vector<2x16xf32>
    %cst_114 = arith.constant 1.000000e+00 : f32
    %450 = vector.broadcast %cst_114 : f32 to vector<2x1xf32>
    %451 = arith.subf %450, %404 : vector<2x1xf32>
    %452 = vector.broadcast %451 : vector<2x1xf32> to vector<2x16xf32>
    %453 = arith.mulf %452, %398 : vector<2x16xf32>
    %454 = arith.addf %449, %453 : vector<2x16xf32>
    %c8_i32 = arith.constant 8 : i32
    %c0_i32_115 = arith.constant 0 : i32
    %c7_i32_116 = arith.constant 7 : i32
    %455 = arith.subi %c7_i32_116, %c0_i32_115 : i32
    %456 = arith.index_cast %455 : i32 to index
    %c0_117 = arith.constant 0 : index
    %c0_118 = arith.constant 0 : index
    %457 = vector.load %arg0[%456, %c0_117, %c0_118] : memref<8x2x32xf32, #tpu.memory_space<vmem>>, vector<1x2x32xf32>
    %458 = vector.shape_cast %457 : vector<1x2x32xf32> to vector<2x32xf32>
    %459 = arith.index_cast %455 : i32 to index
    %c0_119 = arith.constant 0 : index
    %c0_120 = arith.constant 0 : index
    %460 = vector.load %arg1[%459, %c0_119, %c0_120] : memref<8x2x1xf32, #tpu.memory_space<vmem>>, vector<1x2x1xf32>
    %461 = vector.shape_cast %460 : vector<1x2x1xf32> to vector<2x1xf32>
    %cst_121 = arith.constant dense<0.000000e+00> : vector<2x64xf32>
    %462 = tpu.matmul %458, %3, %cst_121 {dimension_numbers = #tpu.dot_dimension_numbers<[1], [1], [0], [0], [0, 0, 1, 0], [], []>} : vector<2x32xf32>, vector<64x32xf32>, vector<2x64xf32> -> vector<2x64xf32>
    %cst_122 = arith.constant dense<0.000000e+00> : vector<2x64xf32>
    %463 = tpu.matmul %6, %4, %cst_122 {dimension_numbers = #tpu.dot_dimension_numbers<[1], [1], [0], [0], [0, 0, 1, 0], [], []>} : vector<2x16xf32>, vector<64x16xf32>, vector<2x64xf32> -> vector<2x64xf32>
    %464 = arith.addf %462, %463 : vector<2x64xf32>
    %465 = vector.broadcast %5 : vector<1x64xf32> to vector<2x64xf32>
    %466 = arith.addf %464, %465 : vector<2x64xf32>
    %467 = vector.extract_strided_slice %466 {offsets = [0, 0], sizes = [2, 16], strides = [1, 1]} : vector<2x64xf32> to vector<2x16xf32>
    %468 = arith.negf %467 : vector<2x16xf32>
    %469 = math.exp %468 : vector<2x16xf32>
    %cst_123 = arith.constant 1.000000e+00 : f32
    %470 = vector.broadcast %cst_123 : f32 to vector<2x16xf32>
    %471 = arith.addf %470, %469 : vector<2x16xf32>
    %472 = arith.divf %470, %471 : vector<2x16xf32>
    %473 = vector.extract_strided_slice %466 {offsets = [0, 16], sizes = [2, 16], strides = [1, 1]} : vector<2x64xf32> to vector<2x16xf32>
    %474 = arith.negf %473 : vector<2x16xf32>
    %475 = math.exp %474 : vector<2x16xf32>
    %cst_124 = arith.constant 1.000000e+00 : f32
    %476 = vector.broadcast %cst_124 : f32 to vector<2x16xf32>
    %477 = arith.addf %476, %475 : vector<2x16xf32>
    %478 = arith.divf %476, %477 : vector<2x16xf32>
    %479 = vector.extract_strided_slice %466 {offsets = [0, 32], sizes = [2, 16], strides = [1, 1]} : vector<2x64xf32> to vector<2x16xf32>
    %480 = math.tanh %479 : vector<2x16xf32>
    %481 = vector.extract_strided_slice %466 {offsets = [0, 48], sizes = [2, 16], strides = [1, 1]} : vector<2x64xf32> to vector<2x16xf32>
    %482 = arith.negf %481 : vector<2x16xf32>
    %483 = math.exp %482 : vector<2x16xf32>
    %cst_125 = arith.constant 1.000000e+00 : f32
    %484 = vector.broadcast %cst_125 : f32 to vector<2x16xf32>
    %485 = arith.addf %484, %483 : vector<2x16xf32>
    %486 = arith.divf %484, %485 : vector<2x16xf32>
    %487 = arith.mulf %478, %6 : vector<2x16xf32>
    %488 = arith.mulf %472, %480 : vector<2x16xf32>
    %489 = arith.addf %487, %488 : vector<2x16xf32>
    %490 = math.tanh %489 : vector<2x16xf32>
    %491 = arith.mulf %486, %490 : vector<2x16xf32>
    %492 = vector.broadcast %461 : vector<2x1xf32> to vector<2x16xf32>
    %493 = arith.mulf %492, %491 : vector<2x16xf32>
    %494 = arith.index_cast %455 : i32 to index
    %c0_126 = arith.constant 0 : index
    %c0_127 = arith.constant 0 : index
    %495 = vector.load %arg9[%494, %c0_126, %c0_127] : memref<8x2x16xf32, #tpu.memory_space<vmem>>, vector<1x2x16xf32>
    %496 = vector.shape_cast %495 : vector<1x2x16xf32> to vector<2x16xf32>
    %497 = vector.shape_cast %493 : vector<2x16xf32> to vector<1x2x16xf32>
    tpu.vector_store %arg9[%494, %c0_126, %c0_127], %497 {strides = array<i32>} : memref<8x2x16xf32, #tpu.memory_space<vmem>>, vector<1x2x16xf32>,
    %498 = vector.broadcast %461 : vector<2x1xf32> to vector<2x16xf32>
    %499 = arith.mulf %498, %491 : vector<2x16xf32>
    %cst_128 = arith.constant 1.000000e+00 : f32
    %500 = vector.broadcast %cst_128 : f32 to vector<2x1xf32>
    %501 = arith.subf %500, %461 : vector<2x1xf32>
    %502 = vector.broadcast %501 : vector<2x1xf32> to vector<2x16xf32>
    %503 = arith.mulf %502, %6 : vector<2x16xf32>
    %504 = arith.addf %499, %503 : vector<2x16xf32>
    %505 = vector.broadcast %461 : vector<2x1xf32> to vector<2x16xf32>
    %506 = arith.mulf %505, %489 : vector<2x16xf32>
    %cst_129 = arith.constant 1.000000e+00 : f32
    %507 = vector.broadcast %cst_129 : f32 to vector<2x1xf32>
    %508 = arith.subf %507, %461 : vector<2x1xf32>
    %509 = vector.broadcast %508 : vector<2x1xf32> to vector<2x16xf32>
    %510 = arith.mulf %509, %6 : vector<2x16xf32>
    %511 = arith.addf %506, %510 : vector<2x16xf32>
    %c1_i32_130 = arith.constant 1 : i32
    %c7_i32_131 = arith.constant 7 : i32
    %512 = arith.subi %c7_i32_131, %c1_i32_130 : i32
    %513 = arith.index_cast %512 : i32 to index
    %c0_132 = arith.constant 0 : index
    %c0_133 = arith.constant 0 : index
    %514 = vector.load %arg0[%513, %c0_132, %c0_133] : memref<8x2x32xf32, #tpu.memory_space<vmem>>, vector<1x2x32xf32>
    %515 = vector.shape_cast %514 : vector<1x2x32xf32> to vector<2x32xf32>
    %516 = arith.index_cast %512 : i32 to index
    %c0_134 = arith.constant 0 : index
    %c0_135 = arith.constant 0 : index
    %517 = vector.load %arg1[%516, %c0_134, %c0_135] : memref<8x2x1xf32, #tpu.memory_space<vmem>>, vector<1x2x1xf32>
    %518 = vector.shape_cast %517 : vector<1x2x1xf32> to vector<2x1xf32>
    %cst_136 = arith.constant dense<0.000000e+00> : vector<2x64xf32>
    %519 = tpu.matmul %515, %3, %cst_136 {dimension_numbers = #tpu.dot_dimension_numbers<[1], [1], [0], [0], [0, 0, 1, 0], [], []>} : vector<2x32xf32>, vector<64x32xf32>, vector<2x64xf32> -> vector<2x64xf32>
    %cst_137 = arith.constant dense<0.000000e+00> : vector<2x64xf32>
    %520 = tpu.matmul %504, %4, %cst_137 {dimension_numbers = #tpu.dot_dimension_numbers<[1], [1], [0], [0], [0, 0, 1, 0], [], []>} : vector<2x16xf32>, vector<64x16xf32>, vector<2x64xf32> -> vector<2x64xf32>
    %521 = arith.addf %519, %520 : vector<2x64xf32>
    %522 = vector.broadcast %5 : vector<1x64xf32> to vector<2x64xf32>
    %523 = arith.addf %521, %522 : vector<2x64xf32>
    %524 = vector.extract_strided_slice %523 {offsets = [0, 0], sizes = [2, 16], strides = [1, 1]} : vector<2x64xf32> to vector<2x16xf32>
    %525 = arith.negf %524 : vector<2x16xf32>
    %526 = math.exp %525 : vector<2x16xf32>
    %cst_138 = arith.constant 1.000000e+00 : f32
    %527 = vector.broadcast %cst_138 : f32 to vector<2x16xf32>
    %528 = arith.addf %527, %526 : vector<2x16xf32>
    %529 = arith.divf %527, %528 : vector<2x16xf32>
    %530 = vector.extract_strided_slice %523 {offsets = [0, 16], sizes = [2, 16], strides = [1, 1]} : vector<2x64xf32> to vector<2x16xf32>
    %531 = arith.negf %530 : vector<2x16xf32>
    %532 = math.exp %531 : vector<2x16xf32>
    %cst_139 = arith.constant 1.000000e+00 : f32
    %533 = vector.broadcast %cst_139 : f32 to vector<2x16xf32>
    %534 = arith.addf %533, %532 : vector<2x16xf32>
    %535 = arith.divf %533, %534 : vector<2x16xf32>
    %536 = vector.extract_strided_slice %523 {offsets = [0, 32], sizes = [2, 16], strides = [1, 1]} : vector<2x64xf32> to vector<2x16xf32>
    %537 = math.tanh %536 : vector<2x16xf32>
    %538 = vector.extract_strided_slice %523 {offsets = [0, 48], sizes = [2, 16], strides = [1, 1]} : vector<2x64xf32> to vector<2x16xf32>
    %539 = arith.negf %538 : vector<2x16xf32>
    %540 = math.exp %539 : vector<2x16xf32>
    %cst_140 = arith.constant 1.000000e+00 : f32
    %541 = vector.broadcast %cst_140 : f32 to vector<2x16xf32>
    %542 = arith.addf %541, %540 : vector<2x16xf32>
    %543 = arith.divf %541, %542 : vector<2x16xf32>
    %544 = arith.mulf %535, %511 : vector<2x16xf32>
    %545 = arith.mulf %529, %537 : vector<2x16xf32>
    %546 = arith.addf %544, %545 : vector<2x16xf32>
    %547 = math.tanh %546 : vector<2x16xf32>
    %548 = arith.mulf %543, %547 : vector<2x16xf32>
    %549 = vector.broadcast %518 : vector<2x1xf32> to vector<2x16xf32>
    %550 = arith.mulf %549, %548 : vector<2x16xf32>
    %551 = arith.index_cast %512 : i32 to index
    %c0_141 = arith.constant 0 : index
    %c0_142 = arith.constant 0 : index
    %552 = vector.load %arg9[%551, %c0_141, %c0_142] : memref<8x2x16xf32, #tpu.memory_space<vmem>>, vector<1x2x16xf32>
    %553 = vector.shape_cast %552 : vector<1x2x16xf32> to vector<2x16xf32>
    %554 = vector.shape_cast %550 : vector<2x16xf32> to vector<1x2x16xf32>
    tpu.vector_store %arg9[%551, %c0_141, %c0_142], %554 {strides = array<i32>} : memref<8x2x16xf32, #tpu.memory_space<vmem>>, vector<1x2x16xf32>,
    %555 = vector.broadcast %518 : vector<2x1xf32> to vector<2x16xf32>
    %556 = arith.mulf %555, %548 : vector<2x16xf32>
    %cst_143 = arith.constant 1.000000e+00 : f32
    %557 = vector.broadcast %cst_143 : f32 to vector<2x1xf32>
    %558 = arith.subf %557, %518 : vector<2x1xf32>
    %559 = vector.broadcast %558 : vector<2x1xf32> to vector<2x16xf32>
    %560 = arith.mulf %559, %504 : vector<2x16xf32>
    %561 = arith.addf %556, %560 : vector<2x16xf32>
    %562 = vector.broadcast %518 : vector<2x1xf32> to vector<2x16xf32>
    %563 = arith.mulf %562, %546 : vector<2x16xf32>
    %cst_144 = arith.constant 1.000000e+00 : f32
    %564 = vector.broadcast %cst_144 : f32 to vector<2x1xf32>
    %565 = arith.subf %564, %518 : vector<2x1xf32>
    %566 = vector.broadcast %565 : vector<2x1xf32> to vector<2x16xf32>
    %567 = arith.mulf %566, %511 : vector<2x16xf32>
    %568 = arith.addf %563, %567 : vector<2x16xf32>
    %c2_i32_145 = arith.constant 2 : i32
    %c7_i32_146 = arith.constant 7 : i32
    %569 = arith.subi %c7_i32_146, %c2_i32_145 : i32
    %570 = arith.index_cast %569 : i32 to index
    %c0_147 = arith.constant 0 : index
    %c0_148 = arith.constant 0 : index
    %571 = vector.load %arg0[%570, %c0_147, %c0_148] : memref<8x2x32xf32, #tpu.memory_space<vmem>>, vector<1x2x32xf32>
    %572 = vector.shape_cast %571 : vector<1x2x32xf32> to vector<2x32xf32>
    %573 = arith.index_cast %569 : i32 to index
    %c0_149 = arith.constant 0 : index
    %c0_150 = arith.constant 0 : index
    %574 = vector.load %arg1[%573, %c0_149, %c0_150] : memref<8x2x1xf32, #tpu.memory_space<vmem>>, vector<1x2x1xf32>
    %575 = vector.shape_cast %574 : vector<1x2x1xf32> to vector<2x1xf32>
    %cst_151 = arith.constant dense<0.000000e+00> : vector<2x64xf32>
    %576 = tpu.matmul %572, %3, %cst_151 {dimension_numbers = #tpu.dot_dimension_numbers<[1], [1], [0], [0], [0, 0, 1, 0], [], []>} : vector<2x32xf32>, vector<64x32xf32>, vector<2x64xf32> -> vector<2x64xf32>
    %cst_152 = arith.constant dense<0.000000e+00> : vector<2x64xf32>
    %577 = tpu.matmul %561, %4, %cst_152 {dimension_numbers = #tpu.dot_dimension_numbers<[1], [1], [0], [0], [0, 0, 1, 0], [], []>} : vector<2x16xf32>, vector<64x16xf32>, vector<2x64xf32> -> vector<2x64xf32>
    %578 = arith.addf %576, %577 : vector<2x64xf32>
    %579 = vector.broadcast %5 : vector<1x64xf32> to vector<2x64xf32>
    %580 = arith.addf %578, %579 : vector<2x64xf32>
    %581 = vector.extract_strided_slice %580 {offsets = [0, 0], sizes = [2, 16], strides = [1, 1]} : vector<2x64xf32> to vector<2x16xf32>
    %582 = arith.negf %581 : vector<2x16xf32>
    %583 = math.exp %582 : vector<2x16xf32>
    %cst_153 = arith.constant 1.000000e+00 : f32
    %584 = vector.broadcast %cst_153 : f32 to vector<2x16xf32>
    %585 = arith.addf %584, %583 : vector<2x16xf32>
    %586 = arith.divf %584, %585 : vector<2x16xf32>
    %587 = vector.extract_strided_slice %580 {offsets = [0, 16], sizes = [2, 16], strides = [1, 1]} : vector<2x64xf32> to vector<2x16xf32>
    %588 = arith.negf %587 : vector<2x16xf32>
    %589 = math.exp %588 : vector<2x16xf32>
    %cst_154 = arith.constant 1.000000e+00 : f32
    %590 = vector.broadcast %cst_154 : f32 to vector<2x16xf32>
    %591 = arith.addf %590, %589 : vector<2x16xf32>
    %592 = arith.divf %590, %591 : vector<2x16xf32>
    %593 = vector.extract_strided_slice %580 {offsets = [0, 32], sizes = [2, 16], strides = [1, 1]} : vector<2x64xf32> to vector<2x16xf32>
    %594 = math.tanh %593 : vector<2x16xf32>
    %595 = vector.extract_strided_slice %580 {offsets = [0, 48], sizes = [2, 16], strides = [1, 1]} : vector<2x64xf32> to vector<2x16xf32>
    %596 = arith.negf %595 : vector<2x16xf32>
    %597 = math.exp %596 : vector<2x16xf32>
    %cst_155 = arith.constant 1.000000e+00 : f32
    %598 = vector.broadcast %cst_155 : f32 to vector<2x16xf32>
    %599 = arith.addf %598, %597 : vector<2x16xf32>
    %600 = arith.divf %598, %599 : vector<2x16xf32>
    %601 = arith.mulf %592, %568 : vector<2x16xf32>
    %602 = arith.mulf %586, %594 : vector<2x16xf32>
    %603 = arith.addf %601, %602 : vector<2x16xf32>
    %604 = math.tanh %603 : vector<2x16xf32>
    %605 = arith.mulf %600, %604 : vector<2x16xf32>
    %606 = vector.broadcast %575 : vector<2x1xf32> to vector<2x16xf32>
    %607 = arith.mulf %606, %605 : vector<2x16xf32>
    %608 = arith.index_cast %569 : i32 to index
    %c0_156 = arith.constant 0 : index
    %c0_157 = arith.constant 0 : index
    %609 = vector.load %arg9[%608, %c0_156, %c0_157] : memref<8x2x16xf32, #tpu.memory_space<vmem>>, vector<1x2x16xf32>
    %610 = vector.shape_cast %609 : vector<1x2x16xf32> to vector<2x16xf32>
    %611 = vector.shape_cast %607 : vector<2x16xf32> to vector<1x2x16xf32>
    tpu.vector_store %arg9[%608, %c0_156, %c0_157], %611 {strides = array<i32>} : memref<8x2x16xf32, #tpu.memory_space<vmem>>, vector<1x2x16xf32>,
    %612 = vector.broadcast %575 : vector<2x1xf32> to vector<2x16xf32>
    %613 = arith.mulf %612, %605 : vector<2x16xf32>
    %cst_158 = arith.constant 1.000000e+00 : f32
    %614 = vector.broadcast %cst_158 : f32 to vector<2x1xf32>
    %615 = arith.subf %614, %575 : vector<2x1xf32>
    %616 = vector.broadcast %615 : vector<2x1xf32> to vector<2x16xf32>
    %617 = arith.mulf %616, %561 : vector<2x16xf32>
    %618 = arith.addf %613, %617 : vector<2x16xf32>
    %619 = vector.broadcast %575 : vector<2x1xf32> to vector<2x16xf32>
    %620 = arith.mulf %619, %603 : vector<2x16xf32>
    %cst_159 = arith.constant 1.000000e+00 : f32
    %621 = vector.broadcast %cst_159 : f32 to vector<2x1xf32>
    %622 = arith.subf %621, %575 : vector<2x1xf32>
    %623 = vector.broadcast %622 : vector<2x1xf32> to vector<2x16xf32>
    %624 = arith.mulf %623, %568 : vector<2x16xf32>
    %625 = arith.addf %620, %624 : vector<2x16xf32>
    %c3_i32_160 = arith.constant 3 : i32
    %c7_i32_161 = arith.constant 7 : i32
    %626 = arith.subi %c7_i32_161, %c3_i32_160 : i32
    %627 = arith.index_cast %626 : i32 to index
    %c0_162 = arith.constant 0 : index
    %c0_163 = arith.constant 0 : index
    %628 = vector.load %arg0[%627, %c0_162, %c0_163] : memref<8x2x32xf32, #tpu.memory_space<vmem>>, vector<1x2x32xf32>
    %629 = vector.shape_cast %628 : vector<1x2x32xf32> to vector<2x32xf32>
    %630 = arith.index_cast %626 : i32 to index
    %c0_164 = arith.constant 0 : index
    %c0_165 = arith.constant 0 : index
    %631 = vector.load %arg1[%630, %c0_164, %c0_165] : memref<8x2x1xf32, #tpu.memory_space<vmem>>, vector<1x2x1xf32>
    %632 = vector.shape_cast %631 : vector<1x2x1xf32> to vector<2x1xf32>
    %cst_166 = arith.constant dense<0.000000e+00> : vector<2x64xf32>
    %633 = tpu.matmul %629, %3, %cst_166 {dimension_numbers = #tpu.dot_dimension_numbers<[1], [1], [0], [0], [0, 0, 1, 0], [], []>} : vector<2x32xf32>, vector<64x32xf32>, vector<2x64xf32> -> vector<2x64xf32>
    %cst_167 = arith.constant dense<0.000000e+00> : vector<2x64xf32>
    %634 = tpu.matmul %618, %4, %cst_167 {dimension_numbers = #tpu.dot_dimension_numbers<[1], [1], [0], [0], [0, 0, 1, 0], [], []>} : vector<2x16xf32>, vector<64x16xf32>, vector<2x64xf32> -> vector<2x64xf32>
    %635 = arith.addf %633, %634 : vector<2x64xf32>
    %636 = vector.broadcast %5 : vector<1x64xf32> to vector<2x64xf32>
    %637 = arith.addf %635, %636 : vector<2x64xf32>
    %638 = vector.extract_strided_slice %637 {offsets = [0, 0], sizes = [2, 16], strides = [1, 1]} : vector<2x64xf32> to vector<2x16xf32>
    %639 = arith.negf %638 : vector<2x16xf32>
    %640 = math.exp %639 : vector<2x16xf32>
    %cst_168 = arith.constant 1.000000e+00 : f32
    %641 = vector.broadcast %cst_168 : f32 to vector<2x16xf32>
    %642 = arith.addf %641, %640 : vector<2x16xf32>
    %643 = arith.divf %641, %642 : vector<2x16xf32>
    %644 = vector.extract_strided_slice %637 {offsets = [0, 16], sizes = [2, 16], strides = [1, 1]} : vector<2x64xf32> to vector<2x16xf32>
    %645 = arith.negf %644 : vector<2x16xf32>
    %646 = math.exp %645 : vector<2x16xf32>
    %cst_169 = arith.constant 1.000000e+00 : f32
    %647 = vector.broadcast %cst_169 : f32 to vector<2x16xf32>
    %648 = arith.addf %647, %646 : vector<2x16xf32>
    %649 = arith.divf %647, %648 : vector<2x16xf32>
    %650 = vector.extract_strided_slice %637 {offsets = [0, 32], sizes = [2, 16], strides = [1, 1]} : vector<2x64xf32> to vector<2x16xf32>
    %651 = math.tanh %650 : vector<2x16xf32>
    %652 = vector.extract_strided_slice %637 {offsets = [0, 48], sizes = [2, 16], strides = [1, 1]} : vector<2x64xf32> to vector<2x16xf32>
    %653 = arith.negf %652 : vector<2x16xf32>
    %654 = math.exp %653 : vector<2x16xf32>
    %cst_170 = arith.constant 1.000000e+00 : f32
    %655 = vector.broadcast %cst_170 : f32 to vector<2x16xf32>
    %656 = arith.addf %655, %654 : vector<2x16xf32>
    %657 = arith.divf %655, %656 : vector<2x16xf32>
    %658 = arith.mulf %649, %625 : vector<2x16xf32>
    %659 = arith.mulf %643, %651 : vector<2x16xf32>
    %660 = arith.addf %658, %659 : vector<2x16xf32>
    %661 = math.tanh %660 : vector<2x16xf32>
    %662 = arith.mulf %657, %661 : vector<2x16xf32>
    %663 = vector.broadcast %632 : vector<2x1xf32> to vector<2x16xf32>
    %664 = arith.mulf %663, %662 : vector<2x16xf32>
    %665 = arith.index_cast %626 : i32 to index
    %c0_171 = arith.constant 0 : index
    %c0_172 = arith.constant 0 : index
    %666 = vector.load %arg9[%665, %c0_171, %c0_172] : memref<8x2x16xf32, #tpu.memory_space<vmem>>, vector<1x2x16xf32>
    %667 = vector.shape_cast %666 : vector<1x2x16xf32> to vector<2x16xf32>
    %668 = vector.shape_cast %664 : vector<2x16xf32> to vector<1x2x16xf32>
    tpu.vector_store %arg9[%665, %c0_171, %c0_172], %668 {strides = array<i32>} : memref<8x2x16xf32, #tpu.memory_space<vmem>>, vector<1x2x16xf32>,
    %669 = vector.broadcast %632 : vector<2x1xf32> to vector<2x16xf32>
    %670 = arith.mulf %669, %662 : vector<2x16xf32>
    %cst_173 = arith.constant 1.000000e+00 : f32
    %671 = vector.broadcast %cst_173 : f32 to vector<2x1xf32>
    %672 = arith.subf %671, %632 : vector<2x1xf32>
    %673 = vector.broadcast %672 : vector<2x1xf32> to vector<2x16xf32>
    %674 = arith.mulf %673, %618 : vector<2x16xf32>
    %675 = arith.addf %670, %674 : vector<2x16xf32>
    %676 = vector.broadcast %632 : vector<2x1xf32> to vector<2x16xf32>
    %677 = arith.mulf %676, %660 : vector<2x16xf32>
    %cst_174 = arith.constant 1.000000e+00 : f32
    %678 = vector.broadcast %cst_174 : f32 to vector<2x1xf32>
    %679 = arith.subf %678, %632 : vector<2x1xf32>
    %680 = vector.broadcast %679 : vector<2x1xf32> to vector<2x16xf32>
    %681 = arith.mulf %680, %625 : vector<2x16xf32>
    %682 = arith.addf %677, %681 : vector<2x16xf32>
    %c4_i32_175 = arith.constant 4 : i32
    %c7_i32_176 = arith.constant 7 : i32
    %683 = arith.subi %c7_i32_176, %c4_i32_175 : i32
    %684 = arith.index_cast %683 : i32 to index
    %c0_177 = arith.constant 0 : index
    %c0_178 = arith.constant 0 : index
    %685 = vector.load %arg0[%684, %c0_177, %c0_178] : memref<8x2x32xf32, #tpu.memory_space<vmem>>, vector<1x2x32xf32>
    %686 = vector.shape_cast %685 : vector<1x2x32xf32> to vector<2x32xf32>
    %687 = arith.index_cast %683 : i32 to index
    %c0_179 = arith.constant 0 : index
    %c0_180 = arith.constant 0 : index
    %688 = vector.load %arg1[%687, %c0_179, %c0_180] : memref<8x2x1xf32, #tpu.memory_space<vmem>>, vector<1x2x1xf32>
    %689 = vector.shape_cast %688 : vector<1x2x1xf32> to vector<2x1xf32>
    %cst_181 = arith.constant dense<0.000000e+00> : vector<2x64xf32>
    %690 = tpu.matmul %686, %3, %cst_181 {dimension_numbers = #tpu.dot_dimension_numbers<[1], [1], [0], [0], [0, 0, 1, 0], [], []>} : vector<2x32xf32>, vector<64x32xf32>, vector<2x64xf32> -> vector<2x64xf32>
    %cst_182 = arith.constant dense<0.000000e+00> : vector<2x64xf32>
    %691 = tpu.matmul %675, %4, %cst_182 {dimension_numbers = #tpu.dot_dimension_numbers<[1], [1], [0], [0], [0, 0, 1, 0], [], []>} : vector<2x16xf32>, vector<64x16xf32>, vector<2x64xf32> -> vector<2x64xf32>
    %692 = arith.addf %690, %691 : vector<2x64xf32>
    %693 = vector.broadcast %5 : vector<1x64xf32> to vector<2x64xf32>
    %694 = arith.addf %692, %693 : vector<2x64xf32>
    %695 = vector.extract_strided_slice %694 {offsets = [0, 0], sizes = [2, 16], strides = [1, 1]} : vector<2x64xf32> to vector<2x16xf32>
    %696 = arith.negf %695 : vector<2x16xf32>
    %697 = math.exp %696 : vector<2x16xf32>
    %cst_183 = arith.constant 1.000000e+00 : f32
    %698 = vector.broadcast %cst_183 : f32 to vector<2x16xf32>
    %699 = arith.addf %698, %697 : vector<2x16xf32>
    %700 = arith.divf %698, %699 : vector<2x16xf32>
    %701 = vector.extract_strided_slice %694 {offsets = [0, 16], sizes = [2, 16], strides = [1, 1]} : vector<2x64xf32> to vector<2x16xf32>
    %702 = arith.negf %701 : vector<2x16xf32>
    %703 = math.exp %702 : vector<2x16xf32>
    %cst_184 = arith.constant 1.000000e+00 : f32
    %704 = vector.broadcast %cst_184 : f32 to vector<2x16xf32>
    %705 = arith.addf %704, %703 : vector<2x16xf32>
    %706 = arith.divf %704, %705 : vector<2x16xf32>
    %707 = vector.extract_strided_slice %694 {offsets = [0, 32], sizes = [2, 16], strides = [1, 1]} : vector<2x64xf32> to vector<2x16xf32>
    %708 = math.tanh %707 : vector<2x16xf32>
    %709 = vector.extract_strided_slice %694 {offsets = [0, 48], sizes = [2, 16], strides = [1, 1]} : vector<2x64xf32> to vector<2x16xf32>
    %710 = arith.negf %709 : vector<2x16xf32>
    %711 = math.exp %710 : vector<2x16xf32>
    %cst_185 = arith.constant 1.000000e+00 : f32
    %712 = vector.broadcast %cst_185 : f32 to vector<2x16xf32>
    %713 = arith.addf %712, %711 : vector<2x16xf32>
    %714 = arith.divf %712, %713 : vector<2x16xf32>
    %715 = arith.mulf %706, %682 : vector<2x16xf32>
    %716 = arith.mulf %700, %708 : vector<2x16xf32>
    %717 = arith.addf %715, %716 : vector<2x16xf32>
    %718 = math.tanh %717 : vector<2x16xf32>
    %719 = arith.mulf %714, %718 : vector<2x16xf32>
    %720 = vector.broadcast %689 : vector<2x1xf32> to vector<2x16xf32>
    %721 = arith.mulf %720, %719 : vector<2x16xf32>
    %722 = arith.index_cast %683 : i32 to index
    %c0_186 = arith.constant 0 : index
    %c0_187 = arith.constant 0 : index
    %723 = vector.load %arg9[%722, %c0_186, %c0_187] : memref<8x2x16xf32, #tpu.memory_space<vmem>>, vector<1x2x16xf32>
    %724 = vector.shape_cast %723 : vector<1x2x16xf32> to vector<2x16xf32>
    %725 = vector.shape_cast %721 : vector<2x16xf32> to vector<1x2x16xf32>
    tpu.vector_store %arg9[%722, %c0_186, %c0_187], %725 {strides = array<i32>} : memref<8x2x16xf32, #tpu.memory_space<vmem>>, vector<1x2x16xf32>,
    %726 = vector.broadcast %689 : vector<2x1xf32> to vector<2x16xf32>
    %727 = arith.mulf %726, %719 : vector<2x16xf32>
    %cst_188 = arith.constant 1.000000e+00 : f32
    %728 = vector.broadcast %cst_188 : f32 to vector<2x1xf32>
    %729 = arith.subf %728, %689 : vector<2x1xf32>
    %730 = vector.broadcast %729 : vector<2x1xf32> to vector<2x16xf32>
    %731 = arith.mulf %730, %675 : vector<2x16xf32>
    %732 = arith.addf %727, %731 : vector<2x16xf32>
    %733 = vector.broadcast %689 : vector<2x1xf32> to vector<2x16xf32>
    %734 = arith.mulf %733, %717 : vector<2x16xf32>
    %cst_189 = arith.constant 1.000000e+00 : f32
    %735 = vector.broadcast %cst_189 : f32 to vector<2x1xf32>
    %736 = arith.subf %735, %689 : vector<2x1xf32>
    %737 = vector.broadcast %736 : vector<2x1xf32> to vector<2x16xf32>
    %738 = arith.mulf %737, %682 : vector<2x16xf32>
    %739 = arith.addf %734, %738 : vector<2x16xf32>
    %c5_i32_190 = arith.constant 5 : i32
    %c7_i32_191 = arith.constant 7 : i32
    %740 = arith.subi %c7_i32_191, %c5_i32_190 : i32
    %741 = arith.index_cast %740 : i32 to index
    %c0_192 = arith.constant 0 : index
    %c0_193 = arith.constant 0 : index
    %742 = vector.load %arg0[%741, %c0_192, %c0_193] : memref<8x2x32xf32, #tpu.memory_space<vmem>>, vector<1x2x32xf32>
    %743 = vector.shape_cast %742 : vector<1x2x32xf32> to vector<2x32xf32>
    %744 = arith.index_cast %740 : i32 to index
    %c0_194 = arith.constant 0 : index
    %c0_195 = arith.constant 0 : index
    %745 = vector.load %arg1[%744, %c0_194, %c0_195] : memref<8x2x1xf32, #tpu.memory_space<vmem>>, vector<1x2x1xf32>
    %746 = vector.shape_cast %745 : vector<1x2x1xf32> to vector<2x1xf32>
    %cst_196 = arith.constant dense<0.000000e+00> : vector<2x64xf32>
    %747 = tpu.matmul %743, %3, %cst_196 {dimension_numbers = #tpu.dot_dimension_numbers<[1], [1], [0], [0], [0, 0, 1, 0], [], []>} : vector<2x32xf32>, vector<64x32xf32>, vector<2x64xf32> -> vector<2x64xf32>
    %cst_197 = arith.constant dense<0.000000e+00> : vector<2x64xf32>
    %748 = tpu.matmul %732, %4, %cst_197 {dimension_numbers = #tpu.dot_dimension_numbers<[1], [1], [0], [0], [0, 0, 1, 0], [], []>} : vector<2x16xf32>, vector<64x16xf32>, vector<2x64xf32> -> vector<2x64xf32>
    %749 = arith.addf %747, %748 : vector<2x64xf32>
    %750 = vector.broadcast %5 : vector<1x64xf32> to vector<2x64xf32>
    %751 = arith.addf %749, %750 : vector<2x64xf32>
    %752 = vector.extract_strided_slice %751 {offsets = [0, 0], sizes = [2, 16], strides = [1, 1]} : vector<2x64xf32> to vector<2x16xf32>
    %753 = arith.negf %752 : vector<2x16xf32>
    %754 = math.exp %753 : vector<2x16xf32>
    %cst_198 = arith.constant 1.000000e+00 : f32
    %755 = vector.broadcast %cst_198 : f32 to vector<2x16xf32>
    %756 = arith.addf %755, %754 : vector<2x16xf32>
    %757 = arith.divf %755, %756 : vector<2x16xf32>
    %758 = vector.extract_strided_slice %751 {offsets = [0, 16], sizes = [2, 16], strides = [1, 1]} : vector<2x64xf32> to vector<2x16xf32>
    %759 = arith.negf %758 : vector<2x16xf32>
    %760 = math.exp %759 : vector<2x16xf32>
    %cst_199 = arith.constant 1.000000e+00 : f32
    %761 = vector.broadcast %cst_199 : f32 to vector<2x16xf32>
    %762 = arith.addf %761, %760 : vector<2x16xf32>
    %763 = arith.divf %761, %762 : vector<2x16xf32>
    %764 = vector.extract_strided_slice %751 {offsets = [0, 32], sizes = [2, 16], strides = [1, 1]} : vector<2x64xf32> to vector<2x16xf32>
    %765 = math.tanh %764 : vector<2x16xf32>
    %766 = vector.extract_strided_slice %751 {offsets = [0, 48], sizes = [2, 16], strides = [1, 1]} : vector<2x64xf32> to vector<2x16xf32>
    %767 = arith.negf %766 : vector<2x16xf32>
    %768 = math.exp %767 : vector<2x16xf32>
    %cst_200 = arith.constant 1.000000e+00 : f32
    %769 = vector.broadcast %cst_200 : f32 to vector<2x16xf32>
    %770 = arith.addf %769, %768 : vector<2x16xf32>
    %771 = arith.divf %769, %770 : vector<2x16xf32>
    %772 = arith.mulf %763, %739 : vector<2x16xf32>
    %773 = arith.mulf %757, %765 : vector<2x16xf32>
    %774 = arith.addf %772, %773 : vector<2x16xf32>
    %775 = math.tanh %774 : vector<2x16xf32>
    %776 = arith.mulf %771, %775 : vector<2x16xf32>
    %777 = vector.broadcast %746 : vector<2x1xf32> to vector<2x16xf32>
    %778 = arith.mulf %777, %776 : vector<2x16xf32>
    %779 = arith.index_cast %740 : i32 to index
    %c0_201 = arith.constant 0 : index
    %c0_202 = arith.constant 0 : index
    %780 = vector.load %arg9[%779, %c0_201, %c0_202] : memref<8x2x16xf32, #tpu.memory_space<vmem>>, vector<1x2x16xf32>
    %781 = vector.shape_cast %780 : vector<1x2x16xf32> to vector<2x16xf32>
    %782 = vector.shape_cast %778 : vector<2x16xf32> to vector<1x2x16xf32>
    tpu.vector_store %arg9[%779, %c0_201, %c0_202], %782 {strides = array<i32>} : memref<8x2x16xf32, #tpu.memory_space<vmem>>, vector<1x2x16xf32>,
    %783 = vector.broadcast %746 : vector<2x1xf32> to vector<2x16xf32>
    %784 = arith.mulf %783, %776 : vector<2x16xf32>
    %cst_203 = arith.constant 1.000000e+00 : f32
    %785 = vector.broadcast %cst_203 : f32 to vector<2x1xf32>
    %786 = arith.subf %785, %746 : vector<2x1xf32>
    %787 = vector.broadcast %786 : vector<2x1xf32> to vector<2x16xf32>
    %788 = arith.mulf %787, %732 : vector<2x16xf32>
    %789 = arith.addf %784, %788 : vector<2x16xf32>
    %790 = vector.broadcast %746 : vector<2x1xf32> to vector<2x16xf32>
    %791 = arith.mulf %790, %774 : vector<2x16xf32>
    %cst_204 = arith.constant 1.000000e+00 : f32
    %792 = vector.broadcast %cst_204 : f32 to vector<2x1xf32>
    %793 = arith.subf %792, %746 : vector<2x1xf32>
    %794 = vector.broadcast %793 : vector<2x1xf32> to vector<2x16xf32>
    %795 = arith.mulf %794, %739 : vector<2x16xf32>
    %796 = arith.addf %791, %795 : vector<2x16xf32>
    %c6_i32_205 = arith.constant 6 : i32
    %c7_i32_206 = arith.constant 7 : i32
    %797 = arith.subi %c7_i32_206, %c6_i32_205 : i32
    %798 = arith.index_cast %797 : i32 to index
    %c0_207 = arith.constant 0 : index
    %c0_208 = arith.constant 0 : index
    %799 = vector.load %arg0[%798, %c0_207, %c0_208] : memref<8x2x32xf32, #tpu.memory_space<vmem>>, vector<1x2x32xf32>
    %800 = vector.shape_cast %799 : vector<1x2x32xf32> to vector<2x32xf32>
    %801 = arith.index_cast %797 : i32 to index
    %c0_209 = arith.constant 0 : index
    %c0_210 = arith.constant 0 : index
    %802 = vector.load %arg1[%801, %c0_209, %c0_210] : memref<8x2x1xf32, #tpu.memory_space<vmem>>, vector<1x2x1xf32>
    %803 = vector.shape_cast %802 : vector<1x2x1xf32> to vector<2x1xf32>
    %cst_211 = arith.constant dense<0.000000e+00> : vector<2x64xf32>
    %804 = tpu.matmul %800, %3, %cst_211 {dimension_numbers = #tpu.dot_dimension_numbers<[1], [1], [0], [0], [0, 0, 1, 0], [], []>} : vector<2x32xf32>, vector<64x32xf32>, vector<2x64xf32> -> vector<2x64xf32>
    %cst_212 = arith.constant dense<0.000000e+00> : vector<2x64xf32>
    %805 = tpu.matmul %789, %4, %cst_212 {dimension_numbers = #tpu.dot_dimension_numbers<[1], [1], [0], [0], [0, 0, 1, 0], [], []>} : vector<2x16xf32>, vector<64x16xf32>, vector<2x64xf32> -> vector<2x64xf32>
    %806 = arith.addf %804, %805 : vector<2x64xf32>
    %807 = vector.broadcast %5 : vector<1x64xf32> to vector<2x64xf32>
    %808 = arith.addf %806, %807 : vector<2x64xf32>
    %809 = vector.extract_strided_slice %808 {offsets = [0, 0], sizes = [2, 16], strides = [1, 1]} : vector<2x64xf32> to vector<2x16xf32>
    %810 = arith.negf %809 : vector<2x16xf32>
    %811 = math.exp %810 : vector<2x16xf32>
    %cst_213 = arith.constant 1.000000e+00 : f32
    %812 = vector.broadcast %cst_213 : f32 to vector<2x16xf32>
    %813 = arith.addf %812, %811 : vector<2x16xf32>
    %814 = arith.divf %812, %813 : vector<2x16xf32>
    %815 = vector.extract_strided_slice %808 {offsets = [0, 16], sizes = [2, 16], strides = [1, 1]} : vector<2x64xf32> to vector<2x16xf32>
    %816 = arith.negf %815 : vector<2x16xf32>
    %817 = math.exp %816 : vector<2x16xf32>
    %cst_214 = arith.constant 1.000000e+00 : f32
    %818 = vector.broadcast %cst_214 : f32 to vector<2x16xf32>
    %819 = arith.addf %818, %817 : vector<2x16xf32>
    %820 = arith.divf %818, %819 : vector<2x16xf32>
    %821 = vector.extract_strided_slice %808 {offsets = [0, 32], sizes = [2, 16], strides = [1, 1]} : vector<2x64xf32> to vector<2x16xf32>
    %822 = math.tanh %821 : vector<2x16xf32>
    %823 = vector.extract_strided_slice %808 {offsets = [0, 48], sizes = [2, 16], strides = [1, 1]} : vector<2x64xf32> to vector<2x16xf32>
    %824 = arith.negf %823 : vector<2x16xf32>
    %825 = math.exp %824 : vector<2x16xf32>
    %cst_215 = arith.constant 1.000000e+00 : f32
    %826 = vector.broadcast %cst_215 : f32 to vector<2x16xf32>
    %827 = arith.addf %826, %825 : vector<2x16xf32>
    %828 = arith.divf %826, %827 : vector<2x16xf32>
    %829 = arith.mulf %820, %796 : vector<2x16xf32>
    %830 = arith.mulf %814, %822 : vector<2x16xf32>
    %831 = arith.addf %829, %830 : vector<2x16xf32>
    %832 = math.tanh %831 : vector<2x16xf32>
    %833 = arith.mulf %828, %832 : vector<2x16xf32>
    %834 = vector.broadcast %803 : vector<2x1xf32> to vector<2x16xf32>
    %835 = arith.mulf %834, %833 : vector<2x16xf32>
    %836 = arith.index_cast %797 : i32 to index
    %c0_216 = arith.constant 0 : index
    %c0_217 = arith.constant 0 : index
    %837 = vector.load %arg9[%836, %c0_216, %c0_217] : memref<8x2x16xf32, #tpu.memory_space<vmem>>, vector<1x2x16xf32>
    %838 = vector.shape_cast %837 : vector<1x2x16xf32> to vector<2x16xf32>
    %839 = vector.shape_cast %835 : vector<2x16xf32> to vector<1x2x16xf32>
    tpu.vector_store %arg9[%836, %c0_216, %c0_217], %839 {strides = array<i32>} : memref<8x2x16xf32, #tpu.memory_space<vmem>>, vector<1x2x16xf32>,
    %840 = vector.broadcast %803 : vector<2x1xf32> to vector<2x16xf32>
    %841 = arith.mulf %840, %833 : vector<2x16xf32>
    %cst_218 = arith.constant 1.000000e+00 : f32
    %842 = vector.broadcast %cst_218 : f32 to vector<2x1xf32>
    %843 = arith.subf %842, %803 : vector<2x1xf32>
    %844 = vector.broadcast %843 : vector<2x1xf32> to vector<2x16xf32>
    %845 = arith.mulf %844, %789 : vector<2x16xf32>
    %846 = arith.addf %841, %845 : vector<2x16xf32>
    %847 = vector.broadcast %803 : vector<2x1xf32> to vector<2x16xf32>
    %848 = arith.mulf %847, %831 : vector<2x16xf32>
    %cst_219 = arith.constant 1.000000e+00 : f32
    %849 = vector.broadcast %cst_219 : f32 to vector<2x1xf32>
    %850 = arith.subf %849, %803 : vector<2x1xf32>
    %851 = vector.broadcast %850 : vector<2x1xf32> to vector<2x16xf32>
    %852 = arith.mulf %851, %796 : vector<2x16xf32>
    %853 = arith.addf %848, %852 : vector<2x16xf32>
    %c7_i32_220 = arith.constant 7 : i32
    %c7_i32_221 = arith.constant 7 : i32
    %854 = arith.subi %c7_i32_221, %c7_i32_220 : i32
    %855 = arith.index_cast %854 : i32 to index
    %c0_222 = arith.constant 0 : index
    %c0_223 = arith.constant 0 : index
    %856 = vector.load %arg0[%855, %c0_222, %c0_223] : memref<8x2x32xf32, #tpu.memory_space<vmem>>, vector<1x2x32xf32>
    %857 = vector.shape_cast %856 : vector<1x2x32xf32> to vector<2x32xf32>
    %858 = arith.index_cast %854 : i32 to index
    %c0_224 = arith.constant 0 : index
    %c0_225 = arith.constant 0 : index
    %859 = vector.load %arg1[%858, %c0_224, %c0_225] : memref<8x2x1xf32, #tpu.memory_space<vmem>>, vector<1x2x1xf32>
    %860 = vector.shape_cast %859 : vector<1x2x1xf32> to vector<2x1xf32>
    %cst_226 = arith.constant dense<0.000000e+00> : vector<2x64xf32>
    %861 = tpu.matmul %857, %3, %cst_226 {dimension_numbers = #tpu.dot_dimension_numbers<[1], [1], [0], [0], [0, 0, 1, 0], [], []>} : vector<2x32xf32>, vector<64x32xf32>, vector<2x64xf32> -> vector<2x64xf32>
    %cst_227 = arith.constant dense<0.000000e+00> : vector<2x64xf32>
    %862 = tpu.matmul %846, %4, %cst_227 {dimension_numbers = #tpu.dot_dimension_numbers<[1], [1], [0], [0], [0, 0, 1, 0], [], []>} : vector<2x16xf32>, vector<64x16xf32>, vector<2x64xf32> -> vector<2x64xf32>
    %863 = arith.addf %861, %862 : vector<2x64xf32>
    %864 = vector.broadcast %5 : vector<1x64xf32> to vector<2x64xf32>
    %865 = arith.addf %863, %864 : vector<2x64xf32>
    %866 = vector.extract_strided_slice %865 {offsets = [0, 0], sizes = [2, 16], strides = [1, 1]} : vector<2x64xf32> to vector<2x16xf32>
    %867 = arith.negf %866 : vector<2x16xf32>
    %868 = math.exp %867 : vector<2x16xf32>
    %cst_228 = arith.constant 1.000000e+00 : f32
    %869 = vector.broadcast %cst_228 : f32 to vector<2x16xf32>
    %870 = arith.addf %869, %868 : vector<2x16xf32>
    %871 = arith.divf %869, %870 : vector<2x16xf32>
    %872 = vector.extract_strided_slice %865 {offsets = [0, 16], sizes = [2, 16], strides = [1, 1]} : vector<2x64xf32> to vector<2x16xf32>
    %873 = arith.negf %872 : vector<2x16xf32>
    %874 = math.exp %873 : vector<2x16xf32>
    %cst_229 = arith.constant 1.000000e+00 : f32
    %875 = vector.broadcast %cst_229 : f32 to vector<2x16xf32>
    %876 = arith.addf %875, %874 : vector<2x16xf32>
    %877 = arith.divf %875, %876 : vector<2x16xf32>
    %878 = vector.extract_strided_slice %865 {offsets = [0, 32], sizes = [2, 16], strides = [1, 1]} : vector<2x64xf32> to vector<2x16xf32>
    %879 = math.tanh %878 : vector<2x16xf32>
    %880 = vector.extract_strided_slice %865 {offsets = [0, 48], sizes = [2, 16], strides = [1, 1]} : vector<2x64xf32> to vector<2x16xf32>
    %881 = arith.negf %880 : vector<2x16xf32>
    %882 = math.exp %881 : vector<2x16xf32>
    %cst_230 = arith.constant 1.000000e+00 : f32
    %883 = vector.broadcast %cst_230 : f32 to vector<2x16xf32>
    %884 = arith.addf %883, %882 : vector<2x16xf32>
    %885 = arith.divf %883, %884 : vector<2x16xf32>
    %886 = arith.mulf %877, %853 : vector<2x16xf32>
    %887 = arith.mulf %871, %879 : vector<2x16xf32>
    %888 = arith.addf %886, %887 : vector<2x16xf32>
    %889 = math.tanh %888 : vector<2x16xf32>
    %890 = arith.mulf %885, %889 : vector<2x16xf32>
    %891 = vector.broadcast %860 : vector<2x1xf32> to vector<2x16xf32>
    %892 = arith.mulf %891, %890 : vector<2x16xf32>
    %893 = arith.index_cast %854 : i32 to index
    %c0_231 = arith.constant 0 : index
    %c0_232 = arith.constant 0 : index
    %894 = vector.load %arg9[%893, %c0_231, %c0_232] : memref<8x2x16xf32, #tpu.memory_space<vmem>>, vector<1x2x16xf32>
    %895 = vector.shape_cast %894 : vector<1x2x16xf32> to vector<2x16xf32>
    %896 = vector.shape_cast %892 : vector<2x16xf32> to vector<1x2x16xf32>
    tpu.vector_store %arg9[%893, %c0_231, %c0_232], %896 {strides = array<i32>} : memref<8x2x16xf32, #tpu.memory_space<vmem>>, vector<1x2x16xf32>,
    %897 = vector.broadcast %860 : vector<2x1xf32> to vector<2x16xf32>
    %898 = arith.mulf %897, %890 : vector<2x16xf32>
    %cst_233 = arith.constant 1.000000e+00 : f32
    %899 = vector.broadcast %cst_233 : f32 to vector<2x1xf32>
    %900 = arith.subf %899, %860 : vector<2x1xf32>
    %901 = vector.broadcast %900 : vector<2x1xf32> to vector<2x16xf32>
    %902 = arith.mulf %901, %846 : vector<2x16xf32>
    %903 = arith.addf %898, %902 : vector<2x16xf32>
    %904 = vector.broadcast %860 : vector<2x1xf32> to vector<2x16xf32>
    %905 = arith.mulf %904, %888 : vector<2x16xf32>
    %cst_234 = arith.constant 1.000000e+00 : f32
    %906 = vector.broadcast %cst_234 : f32 to vector<2x1xf32>
    %907 = arith.subf %906, %860 : vector<2x1xf32>
    %908 = vector.broadcast %907 : vector<2x1xf32> to vector<2x16xf32>
    %909 = arith.mulf %908, %853 : vector<2x16xf32>
    %910 = arith.addf %905, %909 : vector<2x16xf32>
    %c8_i32_235 = arith.constant 8 : i32
    return
  }
}

module attributes {stable_mosaic.version = 11 : i64} {
  func.func @_decoder_kernel(%arg0: i32, %arg1: memref<1x2x16xf32, #tpu.memory_space<vmem>>, %arg2: memref<2x8x32xf32, #tpu.memory_space<vmem>>, %arg3: memref<2x8xf32, #tpu.memory_space<vmem>>, %arg4: memref<16x32xf32, #tpu.memory_space<vmem>>, %arg5: memref<7x16x2xf32, #tpu.memory_space<vmem>>, %arg6: memref<1x16xf32, #tpu.memory_space<vmem>>, %arg7: memref<16x32xf32, #tpu.memory_space<vmem>>, %arg8: memref<128x80xf32, #tpu.memory_space<vmem>>, %arg9: memref<1x128xf32, #tpu.memory_space<vmem>>, %arg10: memref<128x96xf32, #tpu.memory_space<vmem>>, %arg11: memref<1x128xf32, #tpu.memory_space<vmem>>, %arg12: memref<9x64xf32, #tpu.memory_space<vmem>>, %arg13: memref<1x9xf32, #tpu.memory_space<vmem>>, %arg14: memref<8x2x8xf32, #tpu.memory_space<vmem>>, %arg15: memref<8x2x1xf32, #tpu.memory_space<vmem>>, %arg16: memref<8x2x8xf32, #tpu.memory_space<vmem>>, %arg17: memref<2x32xf32, #tpu.memory_space<vmem>>, %arg18: memref<2x32xf32, #tpu.memory_space<vmem>>, %arg19: memref<2x32xf32, #tpu.memory_space<vmem>>, %arg20: memref<2x32xf32, #tpu.memory_space<vmem>>, %arg21: memref<2x32xf32, #tpu.memory_space<vmem>>, %arg22: memref<2x2x14xf32, #tpu.memory_space<vmem>>, %arg23: memref<2x16x8xf32, #tpu.memory_space<vmem>>, %arg24: memref<2x8xf32, #tpu.memory_space<vmem>>) attributes {dimension_semantics = [#tpu.dimension_semantics<arbitrary>], iteration_bounds = array<i64: 8>, scalar_prefetch = 0 : i64, scratch_operands = 8 : i64, tpu.core_type = #tpu.core_type<tc>, window_params = [{transform_indices = @transform_0, window_bounds = array<i64: 1, 2, 16>}, {pipeline_mode = #tpu.pipeline_mode<synchronous>, transform_indices = @transform_1, window_bounds = array<i64: 2, 8, 32>}, {pipeline_mode = #tpu.pipeline_mode<synchronous>, transform_indices = @transform_2, window_bounds = array<i64: 2, 8>}, {pipeline_mode = #tpu.pipeline_mode<synchronous>, transform_indices = @transform_3, window_bounds = array<i64: 16, 32>}, {pipeline_mode = #tpu.pipeline_mode<synchronous>, transform_indices = @transform_4, window_bounds = array<i64: 7, 16, 2>}, {pipeline_mode = #tpu.pipeline_mode<synchronous>, transform_indices = @transform_5, window_bounds = array<i64: 1, 16>}, {pipeline_mode = #tpu.pipeline_mode<synchronous>, transform_indices = @transform_6, window_bounds = array<i64: 16, 32>}, {pipeline_mode = #tpu.pipeline_mode<synchronous>, transform_indices = @transform_7, window_bounds = array<i64: 128, 80>}, {pipeline_mode = #tpu.pipeline_mode<synchronous>, transform_indices = @transform_8, window_bounds = array<i64: 1, 128>}, {pipeline_mode = #tpu.pipeline_mode<synchronous>, transform_indices = @transform_9, window_bounds = array<i64: 128, 96>}, {pipeline_mode = #tpu.pipeline_mode<synchronous>, transform_indices = @transform_10, window_bounds = array<i64: 1, 128>}, {pipeline_mode = #tpu.pipeline_mode<synchronous>, transform_indices = @transform_11, window_bounds = array<i64: 9, 64>}, {pipeline_mode = #tpu.pipeline_mode<synchronous>, transform_indices = @transform_12, window_bounds = array<i64: 1, 9>}, {pipeline_mode = #tpu.pipeline_mode<synchronous>, transform_indices = @transform_13, window_bounds = array<i64: 8, 2, 8>}, {pipeline_mode = #tpu.pipeline_mode<synchronous>, transform_indices = @transform_14, window_bounds = array<i64: 8, 2, 1>}, {pipeline_mode = #tpu.pipeline_mode<synchronous>, transform_indices = @transform_15, window_bounds = array<i64: 8, 2, 8>}]} {
    %c0_i32 = arith.constant 0 : i32
    %0 = arith.cmpi eq, %arg0, %c0_i32 : i32
    %1 = arith.extui %0 : i1 to i32
    %c0_i32_0 = arith.constant 0 : i32
    %2 = arith.cmpi ne, %1, %c0_i32_0 : i32
    scf.if %2 {
      %cst_162 = arith.constant 0.000000e+00 : f32
      %249 = vector.broadcast %cst_162 : f32 to vector<2x32xf32>
      %c0_163 = arith.constant 0 : index
      %c0_164 = arith.constant 0 : index
      %250 = vector.load %arg17[%c0_163, %c0_164] : memref<2x32xf32, #tpu.memory_space<vmem>>, vector<2x32xf32>
      tpu.vector_store %arg17[%c0_163, %c0_164], %249 {strides = array<i32>} : memref<2x32xf32, #tpu.memory_space<vmem>>, vector<2x32xf32>,
      %cst_165 = arith.constant 0.000000e+00 : f32
      %251 = vector.broadcast %cst_165 : f32 to vector<2x32xf32>
      %c0_166 = arith.constant 0 : index
      %c0_167 = arith.constant 0 : index
      %252 = vector.load %arg18[%c0_166, %c0_167] : memref<2x32xf32, #tpu.memory_space<vmem>>, vector<2x32xf32>
      tpu.vector_store %arg18[%c0_166, %c0_167], %251 {strides = array<i32>} : memref<2x32xf32, #tpu.memory_space<vmem>>, vector<2x32xf32>,
      %cst_168 = arith.constant 0.000000e+00 : f32
      %253 = vector.broadcast %cst_168 : f32 to vector<2x32xf32>
      %c0_169 = arith.constant 0 : index
      %c0_170 = arith.constant 0 : index
      %254 = vector.load %arg19[%c0_169, %c0_170] : memref<2x32xf32, #tpu.memory_space<vmem>>, vector<2x32xf32>
      tpu.vector_store %arg19[%c0_169, %c0_170], %253 {strides = array<i32>} : memref<2x32xf32, #tpu.memory_space<vmem>>, vector<2x32xf32>,
      %cst_171 = arith.constant 0.000000e+00 : f32
      %255 = vector.broadcast %cst_171 : f32 to vector<2x32xf32>
      %c0_172 = arith.constant 0 : index
      %c0_173 = arith.constant 0 : index
      %256 = vector.load %arg20[%c0_172, %c0_173] : memref<2x32xf32, #tpu.memory_space<vmem>>, vector<2x32xf32>
      tpu.vector_store %arg20[%c0_172, %c0_173], %255 {strides = array<i32>} : memref<2x32xf32, #tpu.memory_space<vmem>>, vector<2x32xf32>,
      %cst_174 = arith.constant 0.000000e+00 : f32
      %257 = vector.broadcast %cst_174 : f32 to vector<2x32xf32>
      %c0_175 = arith.constant 0 : index
      %c0_176 = arith.constant 0 : index
      %258 = vector.load %arg21[%c0_175, %c0_176] : memref<2x32xf32, #tpu.memory_space<vmem>>, vector<2x32xf32>
      tpu.vector_store %arg21[%c0_175, %c0_176], %257 {strides = array<i32>} : memref<2x32xf32, #tpu.memory_space<vmem>>, vector<2x32xf32>,
      %cst_177 = arith.constant 0.000000e+00 : f32
      %259 = vector.broadcast %cst_177 : f32 to vector<2x2x14xf32>
      %c0_178 = arith.constant 0 : index
      %c0_179 = arith.constant 0 : index
      %c0_180 = arith.constant 0 : index
      %260 = vector.load %arg22[%c0_178, %c0_179, %c0_180] : memref<2x2x14xf32, #tpu.memory_space<vmem>>, vector<2x2x14xf32>
      tpu.vector_store %arg22[%c0_178, %c0_179, %c0_180], %259 {strides = array<i32>} : memref<2x2x14xf32, #tpu.memory_space<vmem>>, vector<2x2x14xf32>,
      %c0_181 = arith.constant 0 : index
      %c0_182 = arith.constant 0 : index
      %261 = vector.load %arg7[%c0_181, %c0_182] : memref<16x32xf32, #tpu.memory_space<vmem>>, vector<16x32xf32>
      %c0_183 = arith.constant 0 : index
      %c0_184 = arith.constant 0 : index
      %c0_185 = arith.constant 0 : index
      %262 = vector.load %arg2[%c0_183, %c0_184, %c0_185] : memref<2x8x32xf32, #tpu.memory_space<vmem>>, vector<1x8x32xf32>
      %263 = vector.shape_cast %262 : vector<1x8x32xf32> to vector<8x32xf32>
      %cst_186 = arith.constant dense<0.000000e+00> : vector<16x8xf32>
      %264 = tpu.matmul %261, %263, %cst_186 {dimension_numbers = #tpu.dot_dimension_numbers<[1], [1], [0], [0], [0, 0, 1, 0], [], []>} : vector<16x32xf32>, vector<8x32xf32>, vector<16x8xf32> -> vector<16x8xf32>
      %c0_187 = arith.constant 0 : index
      %c0_188 = arith.constant 0 : index
      %c0_189 = arith.constant 0 : index
      %265 = vector.load %arg23[%c0_187, %c0_188, %c0_189] : memref<2x16x8xf32, #tpu.memory_space<vmem>>, vector<1x16x8xf32>
      %266 = vector.shape_cast %265 : vector<1x16x8xf32> to vector<16x8xf32>
      %267 = vector.shape_cast %264 : vector<16x8xf32> to vector<1x16x8xf32>
      tpu.vector_store %arg23[%c0_187, %c0_188, %c0_189], %267 {strides = array<i32>} : memref<2x16x8xf32, #tpu.memory_space<vmem>>, vector<1x16x8xf32>,
      %c0_190 = arith.constant 0 : index
      %c0_191 = arith.constant 0 : index
      %268 = vector.load %arg7[%c0_190, %c0_191] : memref<16x32xf32, #tpu.memory_space<vmem>>, vector<16x32xf32>
      %c1_192 = arith.constant 1 : index
      %c0_193 = arith.constant 0 : index
      %c0_194 = arith.constant 0 : index
      %269 = vector.load %arg2[%c1_192, %c0_193, %c0_194] : memref<2x8x32xf32, #tpu.memory_space<vmem>>, vector<1x8x32xf32>
      %270 = vector.shape_cast %269 : vector<1x8x32xf32> to vector<8x32xf32>
      %cst_195 = arith.constant dense<0.000000e+00> : vector<16x8xf32>
      %271 = tpu.matmul %268, %270, %cst_195 {dimension_numbers = #tpu.dot_dimension_numbers<[1], [1], [0], [0], [0, 0, 1, 0], [], []>} : vector<16x32xf32>, vector<8x32xf32>, vector<16x8xf32> -> vector<16x8xf32>
      %c1_196 = arith.constant 1 : index
      %c0_197 = arith.constant 0 : index
      %c0_198 = arith.constant 0 : index
      %272 = vector.load %arg23[%c1_196, %c0_197, %c0_198] : memref<2x16x8xf32, #tpu.memory_space<vmem>>, vector<1x16x8xf32>
      %273 = vector.shape_cast %272 : vector<1x16x8xf32> to vector<16x8xf32>
      %274 = vector.shape_cast %271 : vector<16x8xf32> to vector<1x16x8xf32>
      tpu.vector_store %arg23[%c1_196, %c0_197, %c0_198], %274 {strides = array<i32>} : memref<2x16x8xf32, #tpu.memory_space<vmem>>, vector<1x16x8xf32>,
    } else {
    }
    %c0 = arith.constant 0 : index
    %c0_1 = arith.constant 0 : index
    %c0_2 = arith.constant 0 : index
    %3 = vector.load %arg1[%c0, %c0_1, %c0_2] : memref<1x2x16xf32, #tpu.memory_space<vmem>>, vector<1x2x16xf32>
    %4 = vector.shape_cast %3 : vector<1x2x16xf32> to vector<2x16xf32>
    %c0_3 = arith.constant 0 : index
    %c0_4 = arith.constant 0 : index
    %5 = vector.load %arg21[%c0_3, %c0_4] : memref<2x32xf32, #tpu.memory_space<vmem>>, vector<2x32xf32>
    %c0_5 = arith.constant 0 : index
    %c0_6 = arith.constant 0 : index
    %6 = vector.load %arg17[%c0_5, %c0_6] : memref<2x32xf32, #tpu.memory_space<vmem>>, vector<2x32xf32>
    %c0_7 = arith.constant 0 : index
    %c0_8 = arith.constant 0 : index
    %7 = vector.load %arg18[%c0_7, %c0_8] : memref<2x32xf32, #tpu.memory_space<vmem>>, vector<2x32xf32>
    %8 = tpu.concatenate %4, %5, %6 in 1 : vector<2x16xf32>, vector<2x32xf32>, vector<2x32xf32> -> vector<2x80xf32>
    %c0_9 = arith.constant 0 : index
    %c0_10 = arith.constant 0 : index
    %9 = vector.load %arg8[%c0_9, %c0_10] : memref<128x80xf32, #tpu.memory_space<vmem>>, vector<128x80xf32>
    %cst = arith.constant dense<0.000000e+00> : vector<2x128xf32>
    %10 = tpu.matmul %8, %9, %cst {dimension_numbers = #tpu.dot_dimension_numbers<[1], [1], [0], [0], [0, 0, 1, 0], [], []>} : vector<2x80xf32>, vector<128x80xf32>, vector<2x128xf32> -> vector<2x128xf32>
    %c0_11 = arith.constant 0 : index
    %c0_12 = arith.constant 0 : index
    %11 = vector.load %arg9[%c0_11, %c0_12] : memref<1x128xf32, #tpu.memory_space<vmem>>, vector<1x128xf32>
    %12 = vector.broadcast %11 : vector<1x128xf32> to vector<2x128xf32>
    %13 = arith.addf %10, %12 : vector<2x128xf32>
    %14 = vector.extract_strided_slice %13 {offsets = [0, 0], sizes = [2, 32], strides = [1, 1]} : vector<2x128xf32> to vector<2x32xf32>
    %15 = arith.negf %14 : vector<2x32xf32>
    %16 = math.exp %15 : vector<2x32xf32>
    %cst_13 = arith.constant 1.000000e+00 : f32
    %17 = vector.broadcast %cst_13 : f32 to vector<2x32xf32>
    %18 = arith.addf %17, %16 : vector<2x32xf32>
    %19 = arith.divf %17, %18 : vector<2x32xf32>
    %20 = vector.extract_strided_slice %13 {offsets = [0, 32], sizes = [2, 32], strides = [1, 1]} : vector<2x128xf32> to vector<2x32xf32>
    %21 = arith.negf %20 : vector<2x32xf32>
    %22 = math.exp %21 : vector<2x32xf32>
    %cst_14 = arith.constant 1.000000e+00 : f32
    %23 = vector.broadcast %cst_14 : f32 to vector<2x32xf32>
    %24 = arith.addf %23, %22 : vector<2x32xf32>
    %25 = arith.divf %23, %24 : vector<2x32xf32>
    %26 = vector.extract_strided_slice %13 {offsets = [0, 64], sizes = [2, 32], strides = [1, 1]} : vector<2x128xf32> to vector<2x32xf32>
    %27 = math.tanh %26 : vector<2x32xf32>
    %28 = vector.extract_strided_slice %13 {offsets = [0, 96], sizes = [2, 32], strides = [1, 1]} : vector<2x128xf32> to vector<2x32xf32>
    %29 = arith.negf %28 : vector<2x32xf32>
    %30 = math.exp %29 : vector<2x32xf32>
    %cst_15 = arith.constant 1.000000e+00 : f32
    %31 = vector.broadcast %cst_15 : f32 to vector<2x32xf32>
    %32 = arith.addf %31, %30 : vector<2x32xf32>
    %33 = arith.divf %31, %32 : vector<2x32xf32>
    %34 = arith.mulf %25, %7 : vector<2x32xf32>
    %35 = arith.mulf %19, %27 : vector<2x32xf32>
    %36 = arith.addf %34, %35 : vector<2x32xf32>
    %37 = math.tanh %36 : vector<2x32xf32>
    %38 = arith.mulf %33, %37 : vector<2x32xf32>
    %c0_16 = arith.constant 0 : index
    %c0_17 = arith.constant 0 : index
    %39 = vector.load %arg17[%c0_16, %c0_17] : memref<2x32xf32, #tpu.memory_space<vmem>>, vector<2x32xf32>
    tpu.vector_store %arg17[%c0_16, %c0_17], %38 {strides = array<i32>} : memref<2x32xf32, #tpu.memory_space<vmem>>, vector<2x32xf32>,
    %c0_18 = arith.constant 0 : index
    %c0_19 = arith.constant 0 : index
    %40 = vector.load %arg18[%c0_18, %c0_19] : memref<2x32xf32, #tpu.memory_space<vmem>>, vector<2x32xf32>
    tpu.vector_store %arg18[%c0_18, %c0_19], %36 {strides = array<i32>} : memref<2x32xf32, #tpu.memory_space<vmem>>, vector<2x32xf32>,
    %c0_20 = arith.constant 0 : index
    %c0_21 = arith.constant 0 : index
    %41 = vector.load %arg4[%c0_20, %c0_21] : memref<16x32xf32, #tpu.memory_space<vmem>>, vector<16x32xf32>
    %cst_22 = arith.constant dense<0.000000e+00> : vector<16x2xf32>
    %42 = tpu.matmul %41, %38, %cst_22 {dimension_numbers = #tpu.dot_dimension_numbers<[1], [1], [0], [0], [0, 0, 1, 0], [], []>} : vector<16x32xf32>, vector<2x32xf32>, vector<16x2xf32> -> vector<16x2xf32>
    %c0_23 = arith.constant 0 : index
    %c0_24 = arith.constant 0 : index
    %43 = vector.load %arg3[%c0_23, %c0_24] : memref<2x8xf32, #tpu.memory_space<vmem>>, vector<2x8xf32>
    %c0_25 = arith.constant 0 : index
    %c0_26 = arith.constant 0 : index
    %c0_27 = arith.constant 0 : index
    %44 = vector.load %arg22[%c0_25, %c0_26, %c0_27] : memref<2x2x14xf32, #tpu.memory_space<vmem>>, vector<1x2x14xf32>
    %45 = vector.shape_cast %44 : vector<1x2x14xf32> to vector<2x14xf32>
    %cst_28 = arith.constant 0.000000e+00 : f32
    %46 = vector.broadcast %cst_28 : f32 to vector<16x8xf32>
    %c0_29 = arith.constant 0 : index
    %c0_30 = arith.constant 0 : index
    %c0_31 = arith.constant 0 : index
    %47 = vector.load %arg5[%c0_29, %c0_30, %c0_31] : memref<7x16x2xf32, #tpu.memory_space<vmem>>, vector<1x16x2xf32>
    %48 = vector.shape_cast %47 : vector<1x16x2xf32> to vector<16x2xf32>
    %49 = vector.extract_strided_slice %45 {offsets = [0, 0], sizes = [2, 8], strides = [1, 1]} : vector<2x14xf32> to vector<2x8xf32>
    %cst_32 = arith.constant dense<0.000000e+00> : vector<16x8xf32>
    %50 = tpu.matmul %48, %49, %cst_32 {dimension_numbers = #tpu.dot_dimension_numbers<[1], [0], [0], [1], [0, 0, 1, 1], [], []>} : vector<16x2xf32>, vector<2x8xf32>, vector<16x8xf32> -> vector<16x8xf32>
    %51 = arith.addf %46, %50 : vector<16x8xf32>
    %c1 = arith.constant 1 : index
    %c0_33 = arith.constant 0 : index
    %c0_34 = arith.constant 0 : index
    %52 = vector.load %arg5[%c1, %c0_33, %c0_34] : memref<7x16x2xf32, #tpu.memory_space<vmem>>, vector<1x16x2xf32>
    %53 = vector.shape_cast %52 : vector<1x16x2xf32> to vector<16x2xf32>
    %54 = vector.extract_strided_slice %45 {offsets = [0, 1], sizes = [2, 8], strides = [1, 1]} : vector<2x14xf32> to vector<2x8xf32>
    %cst_35 = arith.constant dense<0.000000e+00> : vector<16x8xf32>
    %55 = tpu.matmul %53, %54, %cst_35 {dimension_numbers = #tpu.dot_dimension_numbers<[1], [0], [0], [1], [0, 0, 1, 1], [], []>} : vector<16x2xf32>, vector<2x8xf32>, vector<16x8xf32> -> vector<16x8xf32>
    %56 = arith.addf %51, %55 : vector<16x8xf32>
    %c2 = arith.constant 2 : index
    %c0_36 = arith.constant 0 : index
    %c0_37 = arith.constant 0 : index
    %57 = vector.load %arg5[%c2, %c0_36, %c0_37] : memref<7x16x2xf32, #tpu.memory_space<vmem>>, vector<1x16x2xf32>
    %58 = vector.shape_cast %57 : vector<1x16x2xf32> to vector<16x2xf32>
    %59 = vector.extract_strided_slice %45 {offsets = [0, 2], sizes = [2, 8], strides = [1, 1]} : vector<2x14xf32> to vector<2x8xf32>
    %cst_38 = arith.constant dense<0.000000e+00> : vector<16x8xf32>
    %60 = tpu.matmul %58, %59, %cst_38 {dimension_numbers = #tpu.dot_dimension_numbers<[1], [0], [0], [1], [0, 0, 1, 1], [], []>} : vector<16x2xf32>, vector<2x8xf32>, vector<16x8xf32> -> vector<16x8xf32>
    %61 = arith.addf %56, %60 : vector<16x8xf32>
    %c3 = arith.constant 3 : index
    %c0_39 = arith.constant 0 : index
    %c0_40 = arith.constant 0 : index
    %62 = vector.load %arg5[%c3, %c0_39, %c0_40] : memref<7x16x2xf32, #tpu.memory_space<vmem>>, vector<1x16x2xf32>
    %63 = vector.shape_cast %62 : vector<1x16x2xf32> to vector<16x2xf32>
    %64 = vector.extract_strided_slice %45 {offsets = [0, 3], sizes = [2, 8], strides = [1, 1]} : vector<2x14xf32> to vector<2x8xf32>
    %cst_41 = arith.constant dense<0.000000e+00> : vector<16x8xf32>
    %65 = tpu.matmul %63, %64, %cst_41 {dimension_numbers = #tpu.dot_dimension_numbers<[1], [0], [0], [1], [0, 0, 1, 1], [], []>} : vector<16x2xf32>, vector<2x8xf32>, vector<16x8xf32> -> vector<16x8xf32>
    %66 = arith.addf %61, %65 : vector<16x8xf32>
    %c4 = arith.constant 4 : index
    %c0_42 = arith.constant 0 : index
    %c0_43 = arith.constant 0 : index
    %67 = vector.load %arg5[%c4, %c0_42, %c0_43] : memref<7x16x2xf32, #tpu.memory_space<vmem>>, vector<1x16x2xf32>
    %68 = vector.shape_cast %67 : vector<1x16x2xf32> to vector<16x2xf32>
    %69 = vector.extract_strided_slice %45 {offsets = [0, 4], sizes = [2, 8], strides = [1, 1]} : vector<2x14xf32> to vector<2x8xf32>
    %cst_44 = arith.constant dense<0.000000e+00> : vector<16x8xf32>
    %70 = tpu.matmul %68, %69, %cst_44 {dimension_numbers = #tpu.dot_dimension_numbers<[1], [0], [0], [1], [0, 0, 1, 1], [], []>} : vector<16x2xf32>, vector<2x8xf32>, vector<16x8xf32> -> vector<16x8xf32>
    %71 = arith.addf %66, %70 : vector<16x8xf32>
    %c5 = arith.constant 5 : index
    %c0_45 = arith.constant 0 : index
    %c0_46 = arith.constant 0 : index
    %72 = vector.load %arg5[%c5, %c0_45, %c0_46] : memref<7x16x2xf32, #tpu.memory_space<vmem>>, vector<1x16x2xf32>
    %73 = vector.shape_cast %72 : vector<1x16x2xf32> to vector<16x2xf32>
    %74 = vector.extract_strided_slice %45 {offsets = [0, 5], sizes = [2, 8], strides = [1, 1]} : vector<2x14xf32> to vector<2x8xf32>
    %cst_47 = arith.constant dense<0.000000e+00> : vector<16x8xf32>
    %75 = tpu.matmul %73, %74, %cst_47 {dimension_numbers = #tpu.dot_dimension_numbers<[1], [0], [0], [1], [0, 0, 1, 1], [], []>} : vector<16x2xf32>, vector<2x8xf32>, vector<16x8xf32> -> vector<16x8xf32>
    %76 = arith.addf %71, %75 : vector<16x8xf32>
    %c6 = arith.constant 6 : index
    %c0_48 = arith.constant 0 : index
    %c0_49 = arith.constant 0 : index
    %77 = vector.load %arg5[%c6, %c0_48, %c0_49] : memref<7x16x2xf32, #tpu.memory_space<vmem>>, vector<1x16x2xf32>
    %78 = vector.shape_cast %77 : vector<1x16x2xf32> to vector<16x2xf32>
    %79 = vector.extract_strided_slice %45 {offsets = [0, 6], sizes = [2, 8], strides = [1, 1]} : vector<2x14xf32> to vector<2x8xf32>
    %cst_50 = arith.constant dense<0.000000e+00> : vector<16x8xf32>
    %80 = tpu.matmul %78, %79, %cst_50 {dimension_numbers = #tpu.dot_dimension_numbers<[1], [0], [0], [1], [0, 0, 1, 1], [], []>} : vector<16x2xf32>, vector<2x8xf32>, vector<16x8xf32> -> vector<16x8xf32>
    %81 = arith.addf %76, %80 : vector<16x8xf32>
    %82 = vector.extract_strided_slice %42 {offsets = [0, 0], sizes = [16, 1], strides = [1, 1]} : vector<16x2xf32> to vector<16x1xf32>
    %83 = vector.broadcast %82 : vector<16x1xf32> to vector<16x8xf32>
    %84 = arith.addf %83, %81 : vector<16x8xf32>
    %c0_51 = arith.constant 0 : index
    %c0_52 = arith.constant 0 : index
    %c0_53 = arith.constant 0 : index
    %85 = vector.load %arg23[%c0_51, %c0_52, %c0_53] : memref<2x16x8xf32, #tpu.memory_space<vmem>>, vector<1x16x8xf32>
    %86 = vector.shape_cast %85 : vector<1x16x8xf32> to vector<16x8xf32>
    %87 = arith.addf %84, %86 : vector<16x8xf32>
    %88 = math.tanh %87 : vector<16x8xf32>
    %c0_54 = arith.constant 0 : index
    %c0_55 = arith.constant 0 : index
    %89 = vector.load %arg6[%c0_54, %c0_55] : memref<1x16xf32, #tpu.memory_space<vmem>>, vector<1x16xf32>
    %cst_56 = arith.constant dense<0.000000e+00> : vector<1x8xf32>
    %90 = tpu.matmul %89, %88, %cst_56 {dimension_numbers = #tpu.dot_dimension_numbers<[1], [0], [0], [1], [0, 0, 1, 1], [], []>} : vector<1x16xf32>, vector<16x8xf32>, vector<1x8xf32> -> vector<1x8xf32>
    %91 = vector.extract_strided_slice %43 {offsets = [0, 0], sizes = [1, 8], strides = [1, 1]} : vector<2x8xf32> to vector<1x8xf32>
    %cst_57 = arith.constant 5.000000e-01 : f32
    %92 = vector.broadcast %cst_57 : f32 to vector<1x8xf32>
    %93 = arith.cmpf ogt, %91, %92 : vector<1x8xf32>
    %cst_58 = arith.constant -1.000000e+30 : f32
    %94 = vector.broadcast %cst_58 : f32 to vector<1x8xf32>
    %95 = arith.select %93, %94, %90 : vector<1x8xi1>, vector<1x8xf32>
    %cst_59 = arith.constant dense<0xFF800000> : vector<1xf32>
    %96 = vector.multi_reduction <maximumf>, %95, %cst_59 [1] : vector<1x8xf32> to vector<1xf32>
    %97 = vector.shape_cast %96 : vector<1xf32> to vector<1x1xf32>
    %98 = vector.broadcast %97 : vector<1x1xf32> to vector<1x8xf32>
    %99 = arith.subf %95, %98 : vector<1x8xf32>
    %100 = math.exp %99 : vector<1x8xf32>
    %cst_60 = arith.constant dense<0.000000e+00> : vector<1xf32>
    %101 = vector.multi_reduction <add>, %100, %cst_60 [1] : vector<1x8xf32> to vector<1xf32>
    %102 = vector.shape_cast %101 : vector<1xf32> to vector<1x1xf32>
    %103 = vector.broadcast %102 : vector<1x1xf32> to vector<1x8xf32>
    %104 = arith.divf %100, %103 : vector<1x8xf32>
    %c0_61 = arith.constant 0 : index
    %c0_62 = arith.constant 0 : index
    %c0_63 = arith.constant 0 : index
    %105 = vector.load %arg2[%c0_61, %c0_62, %c0_63] : memref<2x8x32xf32, #tpu.memory_space<vmem>>, vector<1x8x32xf32>
    %106 = vector.shape_cast %105 : vector<1x8x32xf32> to vector<8x32xf32>
    %cst_64 = arith.constant dense<0.000000e+00> : vector<1x32xf32>
    %107 = tpu.matmul %104, %106, %cst_64 {dimension_numbers = #tpu.dot_dimension_numbers<[1], [0], [0], [1], [0, 0, 1, 1], [], []>} : vector<1x8xf32>, vector<8x32xf32>, vector<1x32xf32> -> vector<1x32xf32>
    %c0_65 = arith.constant 0 : index
    %c0_66 = arith.constant 0 : index
    %108 = vector.load %arg21[%c0_65, %c0_66] : memref<2x32xf32, #tpu.memory_space<vmem>>, vector<1x32xf32>
    tpu.vector_store %arg21[%c0_65, %c0_66], %107 {strides = array<i32>} : memref<2x32xf32, #tpu.memory_space<vmem>>, vector<1x32xf32>,
    %c0_67 = arith.constant 0 : index
    %c0_68 = arith.constant 0 : index
    %109 = vector.load %arg24[%c0_67, %c0_68] : memref<2x8xf32, #tpu.memory_space<vmem>>, vector<1x8xf32>
    tpu.vector_store %arg24[%c0_67, %c0_68], %104 {strides = array<i32>} : memref<2x8xf32, #tpu.memory_space<vmem>>, vector<1x8xf32>,
    %c0_69 = arith.constant 0 : index
    %c0_70 = arith.constant 0 : index
    %c3_71 = arith.constant 3 : index
    %110 = vector.load %arg22[%c0_69, %c0_70, %c3_71] : memref<2x2x14xf32, #tpu.memory_space<vmem>>, vector<1x1x8xf32>
    %111 = vector.shape_cast %110 : vector<1x1x8xf32> to vector<1x8xf32>
    %112 = vector.shape_cast %104 : vector<1x8xf32> to vector<1x1x8xf32>
    tpu.vector_store %arg22[%c0_69, %c0_70, %c3_71], %112 {strides = array<i32>} : memref<2x2x14xf32, #tpu.memory_space<vmem>>, vector<1x1x8xf32>,
    %113 = vector.extract_strided_slice %45 {offsets = [1, 3], sizes = [1, 8], strides = [1, 1]} : vector<2x14xf32> to vector<1x8xf32>
    %114 = arith.addf %113, %104 : vector<1x8xf32>
    %c0_72 = arith.constant 0 : index
    %c1_73 = arith.constant 1 : index
    %c3_74 = arith.constant 3 : index
    %115 = vector.load %arg22[%c0_72, %c1_73, %c3_74] : memref<2x2x14xf32, #tpu.memory_space<vmem>>, vector<1x1x8xf32>
    %116 = vector.shape_cast %115 : vector<1x1x8xf32> to vector<1x8xf32>
    %117 = vector.shape_cast %114 : vector<1x8xf32> to vector<1x1x8xf32>
    tpu.vector_store %arg22[%c0_72, %c1_73, %c3_74], %117 {strides = array<i32>} : memref<2x2x14xf32, #tpu.memory_space<vmem>>, vector<1x1x8xf32>,
    %c1_75 = arith.constant 1 : index
    %c0_76 = arith.constant 0 : index
    %c0_77 = arith.constant 0 : index
    %118 = vector.load %arg22[%c1_75, %c0_76, %c0_77] : memref<2x2x14xf32, #tpu.memory_space<vmem>>, vector<1x2x14xf32>
    %119 = vector.shape_cast %118 : vector<1x2x14xf32> to vector<2x14xf32>
    %cst_78 = arith.constant 0.000000e+00 : f32
    %120 = vector.broadcast %cst_78 : f32 to vector<16x8xf32>
    %c0_79 = arith.constant 0 : index
    %c0_80 = arith.constant 0 : index
    %c0_81 = arith.constant 0 : index
    %121 = vector.load %arg5[%c0_79, %c0_80, %c0_81] : memref<7x16x2xf32, #tpu.memory_space<vmem>>, vector<1x16x2xf32>
    %122 = vector.shape_cast %121 : vector<1x16x2xf32> to vector<16x2xf32>
    %123 = vector.extract_strided_slice %119 {offsets = [0, 0], sizes = [2, 8], strides = [1, 1]} : vector<2x14xf32> to vector<2x8xf32>
    %cst_82 = arith.constant dense<0.000000e+00> : vector<16x8xf32>
    %124 = tpu.matmul %122, %123, %cst_82 {dimension_numbers = #tpu.dot_dimension_numbers<[1], [0], [0], [1], [0, 0, 1, 1], [], []>} : vector<16x2xf32>, vector<2x8xf32>, vector<16x8xf32> -> vector<16x8xf32>
    %125 = arith.addf %120, %124 : vector<16x8xf32>
    %c1_83 = arith.constant 1 : index
    %c0_84 = arith.constant 0 : index
    %c0_85 = arith.constant 0 : index
    %126 = vector.load %arg5[%c1_83, %c0_84, %c0_85] : memref<7x16x2xf32, #tpu.memory_space<vmem>>, vector<1x16x2xf32>
    %127 = vector.shape_cast %126 : vector<1x16x2xf32> to vector<16x2xf32>
    %128 = vector.extract_strided_slice %119 {offsets = [0, 1], sizes = [2, 8], strides = [1, 1]} : vector<2x14xf32> to vector<2x8xf32>
    %cst_86 = arith.constant dense<0.000000e+00> : vector<16x8xf32>
    %129 = tpu.matmul %127, %128, %cst_86 {dimension_numbers = #tpu.dot_dimension_numbers<[1], [0], [0], [1], [0, 0, 1, 1], [], []>} : vector<16x2xf32>, vector<2x8xf32>, vector<16x8xf32> -> vector<16x8xf32>
    %130 = arith.addf %125, %129 : vector<16x8xf32>
    %c2_87 = arith.constant 2 : index
    %c0_88 = arith.constant 0 : index
    %c0_89 = arith.constant 0 : index
    %131 = vector.load %arg5[%c2_87, %c0_88, %c0_89] : memref<7x16x2xf32, #tpu.memory_space<vmem>>, vector<1x16x2xf32>
    %132 = vector.shape_cast %131 : vector<1x16x2xf32> to vector<16x2xf32>
    %133 = vector.extract_strided_slice %119 {offsets = [0, 2], sizes = [2, 8], strides = [1, 1]} : vector<2x14xf32> to vector<2x8xf32>
    %cst_90 = arith.constant dense<0.000000e+00> : vector<16x8xf32>
    %134 = tpu.matmul %132, %133, %cst_90 {dimension_numbers = #tpu.dot_dimension_numbers<[1], [0], [0], [1], [0, 0, 1, 1], [], []>} : vector<16x2xf32>, vector<2x8xf32>, vector<16x8xf32> -> vector<16x8xf32>
    %135 = arith.addf %130, %134 : vector<16x8xf32>
    %c3_91 = arith.constant 3 : index
    %c0_92 = arith.constant 0 : index
    %c0_93 = arith.constant 0 : index
    %136 = vector.load %arg5[%c3_91, %c0_92, %c0_93] : memref<7x16x2xf32, #tpu.memory_space<vmem>>, vector<1x16x2xf32>
    %137 = vector.shape_cast %136 : vector<1x16x2xf32> to vector<16x2xf32>
    %138 = vector.extract_strided_slice %119 {offsets = [0, 3], sizes = [2, 8], strides = [1, 1]} : vector<2x14xf32> to vector<2x8xf32>
    %cst_94 = arith.constant dense<0.000000e+00> : vector<16x8xf32>
    %139 = tpu.matmul %137, %138, %cst_94 {dimension_numbers = #tpu.dot_dimension_numbers<[1], [0], [0], [1], [0, 0, 1, 1], [], []>} : vector<16x2xf32>, vector<2x8xf32>, vector<16x8xf32> -> vector<16x8xf32>
    %140 = arith.addf %135, %139 : vector<16x8xf32>
    %c4_95 = arith.constant 4 : index
    %c0_96 = arith.constant 0 : index
    %c0_97 = arith.constant 0 : index
    %141 = vector.load %arg5[%c4_95, %c0_96, %c0_97] : memref<7x16x2xf32, #tpu.memory_space<vmem>>, vector<1x16x2xf32>
    %142 = vector.shape_cast %141 : vector<1x16x2xf32> to vector<16x2xf32>
    %143 = vector.extract_strided_slice %119 {offsets = [0, 4], sizes = [2, 8], strides = [1, 1]} : vector<2x14xf32> to vector<2x8xf32>
    %cst_98 = arith.constant dense<0.000000e+00> : vector<16x8xf32>
    %144 = tpu.matmul %142, %143, %cst_98 {dimension_numbers = #tpu.dot_dimension_numbers<[1], [0], [0], [1], [0, 0, 1, 1], [], []>} : vector<16x2xf32>, vector<2x8xf32>, vector<16x8xf32> -> vector<16x8xf32>
    %145 = arith.addf %140, %144 : vector<16x8xf32>
    %c5_99 = arith.constant 5 : index
    %c0_100 = arith.constant 0 : index
    %c0_101 = arith.constant 0 : index
    %146 = vector.load %arg5[%c5_99, %c0_100, %c0_101] : memref<7x16x2xf32, #tpu.memory_space<vmem>>, vector<1x16x2xf32>
    %147 = vector.shape_cast %146 : vector<1x16x2xf32> to vector<16x2xf32>
    %148 = vector.extract_strided_slice %119 {offsets = [0, 5], sizes = [2, 8], strides = [1, 1]} : vector<2x14xf32> to vector<2x8xf32>
    %cst_102 = arith.constant dense<0.000000e+00> : vector<16x8xf32>
    %149 = tpu.matmul %147, %148, %cst_102 {dimension_numbers = #tpu.dot_dimension_numbers<[1], [0], [0], [1], [0, 0, 1, 1], [], []>} : vector<16x2xf32>, vector<2x8xf32>, vector<16x8xf32> -> vector<16x8xf32>
    %150 = arith.addf %145, %149 : vector<16x8xf32>
    %c6_103 = arith.constant 6 : index
    %c0_104 = arith.constant 0 : index
    %c0_105 = arith.constant 0 : index
    %151 = vector.load %arg5[%c6_103, %c0_104, %c0_105] : memref<7x16x2xf32, #tpu.memory_space<vmem>>, vector<1x16x2xf32>
    %152 = vector.shape_cast %151 : vector<1x16x2xf32> to vector<16x2xf32>
    %153 = vector.extract_strided_slice %119 {offsets = [0, 6], sizes = [2, 8], strides = [1, 1]} : vector<2x14xf32> to vector<2x8xf32>
    %cst_106 = arith.constant dense<0.000000e+00> : vector<16x8xf32>
    %154 = tpu.matmul %152, %153, %cst_106 {dimension_numbers = #tpu.dot_dimension_numbers<[1], [0], [0], [1], [0, 0, 1, 1], [], []>} : vector<16x2xf32>, vector<2x8xf32>, vector<16x8xf32> -> vector<16x8xf32>
    %155 = arith.addf %150, %154 : vector<16x8xf32>
    %156 = vector.extract_strided_slice %42 {offsets = [0, 1], sizes = [16, 1], strides = [1, 1]} : vector<16x2xf32> to vector<16x1xf32>
    %157 = vector.broadcast %156 : vector<16x1xf32> to vector<16x8xf32>
    %158 = arith.addf %157, %155 : vector<16x8xf32>
    %c1_107 = arith.constant 1 : index
    %c0_108 = arith.constant 0 : index
    %c0_109 = arith.constant 0 : index
    %159 = vector.load %arg23[%c1_107, %c0_108, %c0_109] : memref<2x16x8xf32, #tpu.memory_space<vmem>>, vector<1x16x8xf32>
    %160 = vector.shape_cast %159 : vector<1x16x8xf32> to vector<16x8xf32>
    %161 = arith.addf %158, %160 : vector<16x8xf32>
    %162 = math.tanh %161 : vector<16x8xf32>
    %c0_110 = arith.constant 0 : index
    %c0_111 = arith.constant 0 : index
    %163 = vector.load %arg6[%c0_110, %c0_111] : memref<1x16xf32, #tpu.memory_space<vmem>>, vector<1x16xf32>
    %cst_112 = arith.constant dense<0.000000e+00> : vector<1x8xf32>
    %164 = tpu.matmul %163, %162, %cst_112 {dimension_numbers = #tpu.dot_dimension_numbers<[1], [0], [0], [1], [0, 0, 1, 1], [], []>} : vector<1x16xf32>, vector<16x8xf32>, vector<1x8xf32> -> vector<1x8xf32>
    %165 = vector.extract_strided_slice %43 {offsets = [1, 0], sizes = [1, 8], strides = [1, 1]} : vector<2x8xf32> to vector<1x8xf32>
    %cst_113 = arith.constant 5.000000e-01 : f32
    %166 = vector.broadcast %cst_113 : f32 to vector<1x8xf32>
    %167 = arith.cmpf ogt, %165, %166 : vector<1x8xf32>
    %cst_114 = arith.constant -1.000000e+30 : f32
    %168 = vector.broadcast %cst_114 : f32 to vector<1x8xf32>
    %169 = arith.select %167, %168, %164 : vector<1x8xi1>, vector<1x8xf32>
    %cst_115 = arith.constant dense<0xFF800000> : vector<1xf32>
    %170 = vector.multi_reduction <maximumf>, %169, %cst_115 [1] : vector<1x8xf32> to vector<1xf32>
    %171 = vector.shape_cast %170 : vector<1xf32> to vector<1x1xf32>
    %172 = vector.broadcast %171 : vector<1x1xf32> to vector<1x8xf32>
    %173 = arith.subf %169, %172 : vector<1x8xf32>
    %174 = math.exp %173 : vector<1x8xf32>
    %cst_116 = arith.constant dense<0.000000e+00> : vector<1xf32>
    %175 = vector.multi_reduction <add>, %174, %cst_116 [1] : vector<1x8xf32> to vector<1xf32>
    %176 = vector.shape_cast %175 : vector<1xf32> to vector<1x1xf32>
    %177 = vector.broadcast %176 : vector<1x1xf32> to vector<1x8xf32>
    %178 = arith.divf %174, %177 : vector<1x8xf32>
    %c1_117 = arith.constant 1 : index
    %c0_118 = arith.constant 0 : index
    %c0_119 = arith.constant 0 : index
    %179 = vector.load %arg2[%c1_117, %c0_118, %c0_119] : memref<2x8x32xf32, #tpu.memory_space<vmem>>, vector<1x8x32xf32>
    %180 = vector.shape_cast %179 : vector<1x8x32xf32> to vector<8x32xf32>
    %cst_120 = arith.constant dense<0.000000e+00> : vector<1x32xf32>
    %181 = tpu.matmul %178, %180, %cst_120 {dimension_numbers = #tpu.dot_dimension_numbers<[1], [0], [0], [1], [0, 0, 1, 1], [], []>} : vector<1x8xf32>, vector<8x32xf32>, vector<1x32xf32> -> vector<1x32xf32>
    %c1_121 = arith.constant 1 : index
    %c0_122 = arith.constant 0 : index
    %182 = vector.load %arg21[%c1_121, %c0_122] : memref<2x32xf32, #tpu.memory_space<vmem>>, vector<1x32xf32>
    tpu.vector_store %arg21[%c1_121, %c0_122], %181 {strides = array<i32>} : memref<2x32xf32, #tpu.memory_space<vmem>>, vector<1x32xf32>,
    %c1_123 = arith.constant 1 : index
    %c0_124 = arith.constant 0 : index
    %183 = vector.load %arg24[%c1_123, %c0_124] : memref<2x8xf32, #tpu.memory_space<vmem>>, vector<1x8xf32>
    tpu.vector_store %arg24[%c1_123, %c0_124], %178 {strides = array<i32>} : memref<2x8xf32, #tpu.memory_space<vmem>>, vector<1x8xf32>,
    %c1_125 = arith.constant 1 : index
    %c0_126 = arith.constant 0 : index
    %c3_127 = arith.constant 3 : index
    %184 = vector.load %arg22[%c1_125, %c0_126, %c3_127] : memref<2x2x14xf32, #tpu.memory_space<vmem>>, vector<1x1x8xf32>
    %185 = vector.shape_cast %184 : vector<1x1x8xf32> to vector<1x8xf32>
    %186 = vector.shape_cast %178 : vector<1x8xf32> to vector<1x1x8xf32>
    tpu.vector_store %arg22[%c1_125, %c0_126, %c3_127], %186 {strides = array<i32>} : memref<2x2x14xf32, #tpu.memory_space<vmem>>, vector<1x1x8xf32>,
    %187 = vector.extract_strided_slice %119 {offsets = [1, 3], sizes = [1, 8], strides = [1, 1]} : vector<2x14xf32> to vector<1x8xf32>
    %188 = arith.addf %187, %178 : vector<1x8xf32>
    %c1_128 = arith.constant 1 : index
    %c1_129 = arith.constant 1 : index
    %c3_130 = arith.constant 3 : index
    %189 = vector.load %arg22[%c1_128, %c1_129, %c3_130] : memref<2x2x14xf32, #tpu.memory_space<vmem>>, vector<1x1x8xf32>
    %190 = vector.shape_cast %189 : vector<1x1x8xf32> to vector<1x8xf32>
    %191 = vector.shape_cast %188 : vector<1x8xf32> to vector<1x1x8xf32>
    tpu.vector_store %arg22[%c1_128, %c1_129, %c3_130], %191 {strides = array<i32>} : memref<2x2x14xf32, #tpu.memory_space<vmem>>, vector<1x1x8xf32>,
    %c0_131 = arith.constant 0 : index
    %c0_132 = arith.constant 0 : index
    %192 = vector.load %arg24[%c0_131, %c0_132] : memref<2x8xf32, #tpu.memory_space<vmem>>, vector<2x8xf32>
    %193 = arith.index_cast %arg0 : i32 to index
    %c0_133 = arith.constant 0 : index
    %c0_134 = arith.constant 0 : index
    %194 = vector.load %arg16[%193, %c0_133, %c0_134] : memref<8x2x8xf32, #tpu.memory_space<vmem>>, vector<1x2x8xf32>
    %195 = vector.shape_cast %194 : vector<1x2x8xf32> to vector<2x8xf32>
    %196 = vector.shape_cast %192 : vector<2x8xf32> to vector<1x2x8xf32>
    tpu.vector_store %arg16[%193, %c0_133, %c0_134], %196 {strides = array<i32>} : memref<8x2x8xf32, #tpu.memory_space<vmem>>, vector<1x2x8xf32>,
    %c0_135 = arith.constant 0 : index
    %c0_136 = arith.constant 0 : index
    %197 = vector.load %arg21[%c0_135, %c0_136] : memref<2x32xf32, #tpu.memory_space<vmem>>, vector<2x32xf32>
    %c0_137 = arith.constant 0 : index
    %c0_138 = arith.constant 0 : index
    %198 = vector.load %arg19[%c0_137, %c0_138] : memref<2x32xf32, #tpu.memory_space<vmem>>, vector<2x32xf32>
    %c0_139 = arith.constant 0 : index
    %c0_140 = arith.constant 0 : index
    %199 = vector.load %arg20[%c0_139, %c0_140] : memref<2x32xf32, #tpu.memory_space<vmem>>, vector<2x32xf32>
    %200 = tpu.concatenate %38, %197, %198 in 1 : vector<2x32xf32>, vector<2x32xf32>, vector<2x32xf32> -> vector<2x96xf32>
    %c0_141 = arith.constant 0 : index
    %c0_142 = arith.constant 0 : index
    %201 = vector.load %arg10[%c0_141, %c0_142] : memref<128x96xf32, #tpu.memory_space<vmem>>, vector<128x96xf32>
    %cst_143 = arith.constant dense<0.000000e+00> : vector<2x128xf32>
    %202 = tpu.matmul %200, %201, %cst_143 {dimension_numbers = #tpu.dot_dimension_numbers<[1], [1], [0], [0], [0, 0, 1, 0], [], []>} : vector<2x96xf32>, vector<128x96xf32>, vector<2x128xf32> -> vector<2x128xf32>
    %c0_144 = arith.constant 0 : index
    %c0_145 = arith.constant 0 : index
    %203 = vector.load %arg11[%c0_144, %c0_145] : memref<1x128xf32, #tpu.memory_space<vmem>>, vector<1x128xf32>
    %204 = vector.broadcast %203 : vector<1x128xf32> to vector<2x128xf32>
    %205 = arith.addf %202, %204 : vector<2x128xf32>
    %206 = vector.extract_strided_slice %205 {offsets = [0, 0], sizes = [2, 32], strides = [1, 1]} : vector<2x128xf32> to vector<2x32xf32>
    %207 = arith.negf %206 : vector<2x32xf32>
    %208 = math.exp %207 : vector<2x32xf32>
    %cst_146 = arith.constant 1.000000e+00 : f32
    %209 = vector.broadcast %cst_146 : f32 to vector<2x32xf32>
    %210 = arith.addf %209, %208 : vector<2x32xf32>
    %211 = arith.divf %209, %210 : vector<2x32xf32>
    %212 = vector.extract_strided_slice %205 {offsets = [0, 32], sizes = [2, 32], strides = [1, 1]} : vector<2x128xf32> to vector<2x32xf32>
    %213 = arith.negf %212 : vector<2x32xf32>
    %214 = math.exp %213 : vector<2x32xf32>
    %cst_147 = arith.constant 1.000000e+00 : f32
    %215 = vector.broadcast %cst_147 : f32 to vector<2x32xf32>
    %216 = arith.addf %215, %214 : vector<2x32xf32>
    %217 = arith.divf %215, %216 : vector<2x32xf32>
    %218 = vector.extract_strided_slice %205 {offsets = [0, 64], sizes = [2, 32], strides = [1, 1]} : vector<2x128xf32> to vector<2x32xf32>
    %219 = math.tanh %218 : vector<2x32xf32>
    %220 = vector.extract_strided_slice %205 {offsets = [0, 96], sizes = [2, 32], strides = [1, 1]} : vector<2x128xf32> to vector<2x32xf32>
    %221 = arith.negf %220 : vector<2x32xf32>
    %222 = math.exp %221 : vector<2x32xf32>
    %cst_148 = arith.constant 1.000000e+00 : f32
    %223 = vector.broadcast %cst_148 : f32 to vector<2x32xf32>
    %224 = arith.addf %223, %222 : vector<2x32xf32>
    %225 = arith.divf %223, %224 : vector<2x32xf32>
    %226 = arith.mulf %217, %199 : vector<2x32xf32>
    %227 = arith.mulf %211, %219 : vector<2x32xf32>
    %228 = arith.addf %226, %227 : vector<2x32xf32>
    %229 = math.tanh %228 : vector<2x32xf32>
    %230 = arith.mulf %225, %229 : vector<2x32xf32>
    %c0_149 = arith.constant 0 : index
    %c0_150 = arith.constant 0 : index
    %231 = vector.load %arg19[%c0_149, %c0_150] : memref<2x32xf32, #tpu.memory_space<vmem>>, vector<2x32xf32>
    tpu.vector_store %arg19[%c0_149, %c0_150], %230 {strides = array<i32>} : memref<2x32xf32, #tpu.memory_space<vmem>>, vector<2x32xf32>,
    %c0_151 = arith.constant 0 : index
    %c0_152 = arith.constant 0 : index
    %232 = vector.load %arg20[%c0_151, %c0_152] : memref<2x32xf32, #tpu.memory_space<vmem>>, vector<2x32xf32>
    tpu.vector_store %arg20[%c0_151, %c0_152], %228 {strides = array<i32>} : memref<2x32xf32, #tpu.memory_space<vmem>>, vector<2x32xf32>,
    %233 = tpu.concatenate %230, %197 in 1 : vector<2x32xf32>, vector<2x32xf32> -> vector<2x64xf32>
    %c0_153 = arith.constant 0 : index
    %c0_154 = arith.constant 0 : index
    %234 = vector.load %arg12[%c0_153, %c0_154] : memref<9x64xf32, #tpu.memory_space<vmem>>, vector<9x64xf32>
    %cst_155 = arith.constant dense<0.000000e+00> : vector<2x9xf32>
    %235 = tpu.matmul %233, %234, %cst_155 {dimension_numbers = #tpu.dot_dimension_numbers<[1], [1], [0], [0], [0, 0, 1, 0], [], []>} : vector<2x64xf32>, vector<9x64xf32>, vector<2x9xf32> -> vector<2x9xf32>
    %c0_156 = arith.constant 0 : index
    %c0_157 = arith.constant 0 : index
    %236 = vector.load %arg13[%c0_156, %c0_157] : memref<1x9xf32, #tpu.memory_space<vmem>>, vector<1x9xf32>
    %237 = vector.broadcast %236 : vector<1x9xf32> to vector<2x9xf32>
    %238 = arith.addf %235, %237 : vector<2x9xf32>
    %239 = vector.extract_strided_slice %238 {offsets = [0, 0], sizes = [2, 8], strides = [1, 1]} : vector<2x9xf32> to vector<2x8xf32>
    %240 = arith.index_cast %arg0 : i32 to index
    %c0_158 = arith.constant 0 : index
    %c0_159 = arith.constant 0 : index
    %241 = vector.load %arg14[%240, %c0_158, %c0_159] : memref<8x2x8xf32, #tpu.memory_space<vmem>>, vector<1x2x8xf32>
    %242 = vector.shape_cast %241 : vector<1x2x8xf32> to vector<2x8xf32>
    %243 = vector.shape_cast %239 : vector<2x8xf32> to vector<1x2x8xf32>
    tpu.vector_store %arg14[%240, %c0_158, %c0_159], %243 {strides = array<i32>} : memref<8x2x8xf32, #tpu.memory_space<vmem>>, vector<1x2x8xf32>,
    %244 = vector.extract_strided_slice %238 {offsets = [0, 8], sizes = [2, 1], strides = [1, 1]} : vector<2x9xf32> to vector<2x1xf32>
    %245 = arith.index_cast %arg0 : i32 to index
    %c0_160 = arith.constant 0 : index
    %c0_161 = arith.constant 0 : index
    %246 = vector.load %arg15[%245, %c0_160, %c0_161] : memref<8x2x1xf32, #tpu.memory_space<vmem>>, vector<1x2x1xf32>
    %247 = vector.shape_cast %246 : vector<1x2x1xf32> to vector<2x1xf32>
    %248 = vector.shape_cast %244 : vector<2x1xf32> to vector<1x2x1xf32>
    tpu.vector_store %arg15[%245, %c0_160, %c0_161], %248 {strides = array<i32>} : memref<8x2x1xf32, #tpu.memory_space<vmem>>, vector<1x2x1xf32>,
    return
  }
  func.func @transform_0(%arg0: i32) -> (i32, i32, i32) {
    %c0_i32 = arith.constant 0 : i32
    %c0_i32_0 = arith.constant 0 : i32
    %c0_i32_1 = arith.constant 0 : i32
    return %arg0, %c0_i32, %c0_i32_0 : i32, i32, i32
  }
  func.func @transform_1(%arg0: i32) -> (i32, i32, i32) {
    %c0_i32 = arith.constant 0 : i32
    %c0_i32_0 = arith.constant 0 : i32
    %c0_i32_1 = arith.constant 0 : i32
    %c0_i32_2 = arith.constant 0 : i32
    return %c0_i32, %c0_i32_0, %c0_i32_1 : i32, i32, i32
  }
  func.func @transform_2(%arg0: i32) -> (i32, i32) {
    %c0_i32 = arith.constant 0 : i32
    %c0_i32_0 = arith.constant 0 : i32
    %c0_i32_1 = arith.constant 0 : i32
    return %c0_i32, %c0_i32_0 : i32, i32
  }
  func.func @transform_3(%arg0: i32) -> (i32, i32) {
    %c0_i32 = arith.constant 0 : i32
    %c0_i32_0 = arith.constant 0 : i32
    %c0_i32_1 = arith.constant 0 : i32
    return %c0_i32, %c0_i32_0 : i32, i32
  }
  func.func @transform_4(%arg0: i32) -> (i32, i32, i32) {
    %c0_i32 = arith.constant 0 : i32
    %c0_i32_0 = arith.constant 0 : i32
    %c0_i32_1 = arith.constant 0 : i32
    %c0_i32_2 = arith.constant 0 : i32
    return %c0_i32, %c0_i32_0, %c0_i32_1 : i32, i32, i32
  }
  func.func @transform_5(%arg0: i32) -> (i32, i32) {
    %c0_i32 = arith.constant 0 : i32
    %c0_i32_0 = arith.constant 0 : i32
    %c0_i32_1 = arith.constant 0 : i32
    return %c0_i32, %c0_i32_0 : i32, i32
  }
  func.func @transform_6(%arg0: i32) -> (i32, i32) {
    %c0_i32 = arith.constant 0 : i32
    %c0_i32_0 = arith.constant 0 : i32
    %c0_i32_1 = arith.constant 0 : i32
    return %c0_i32, %c0_i32_0 : i32, i32
  }
  func.func @transform_7(%arg0: i32) -> (i32, i32) {
    %c0_i32 = arith.constant 0 : i32
    %c0_i32_0 = arith.constant 0 : i32
    %c0_i32_1 = arith.constant 0 : i32
    return %c0_i32, %c0_i32_0 : i32, i32
  }
  func.func @transform_8(%arg0: i32) -> (i32, i32) {
    %c0_i32 = arith.constant 0 : i32
    %c0_i32_0 = arith.constant 0 : i32
    %c0_i32_1 = arith.constant 0 : i32
    return %c0_i32, %c0_i32_0 : i32, i32
  }
  func.func @transform_9(%arg0: i32) -> (i32, i32) {
    %c0_i32 = arith.constant 0 : i32
    %c0_i32_0 = arith.constant 0 : i32
    %c0_i32_1 = arith.constant 0 : i32
    return %c0_i32, %c0_i32_0 : i32, i32
  }
  func.func @transform_10(%arg0: i32) -> (i32, i32) {
    %c0_i32 = arith.constant 0 : i32
    %c0_i32_0 = arith.constant 0 : i32
    %c0_i32_1 = arith.constant 0 : i32
    return %c0_i32, %c0_i32_0 : i32, i32
  }
  func.func @transform_11(%arg0: i32) -> (i32, i32) {
    %c0_i32 = arith.constant 0 : i32
    %c0_i32_0 = arith.constant 0 : i32
    %c0_i32_1 = arith.constant 0 : i32
    return %c0_i32, %c0_i32_0 : i32, i32
  }
  func.func @transform_12(%arg0: i32) -> (i32, i32) {
    %c0_i32 = arith.constant 0 : i32
    %c0_i32_0 = arith.constant 0 : i32
    %c0_i32_1 = arith.constant 0 : i32
    return %c0_i32, %c0_i32_0 : i32, i32
  }
  func.func @transform_13(%arg0: i32) -> (i32, i32, i32) {
    %c0_i32 = arith.constant 0 : i32
    %c0_i32_0 = arith.constant 0 : i32
    %c0_i32_1 = arith.constant 0 : i32
    %c0_i32_2 = arith.constant 0 : i32
    return %c0_i32, %c0_i32_0, %c0_i32_1 : i32, i32, i32
  }
  func.func @transform_14(%arg0: i32) -> (i32, i32, i32) {
    %c0_i32 = arith.constant 0 : i32
    %c0_i32_0 = arith.constant 0 : i32
    %c0_i32_1 = arith.constant 0 : i32
    %c0_i32_2 = arith.constant 0 : i32
    return %c0_i32, %c0_i32_0, %c0_i32_1 : i32, i32, i32
  }
  func.func @transform_15(%arg0: i32) -> (i32, i32, i32) {
    %c0_i32 = arith.constant 0 : i32
    %c0_i32_0 = arith.constant 0 : i32
    %c0_i32_1 = arith.constant 0 : i32
    %c0_i32_2 = arith.constant 0 : i32
    return %c0_i32, %c0_i32_0, %c0_i32_1 : i32, i32, i32
  }
}

module attributes {stable_mosaic.version = 11 : i64} {
  func.func @_conv_stack_kernel(%arg0: memref<2x8x8xf32, #tpu.memory_space<vmem>>, %arg1: memref<32x40xf32, #tpu.memory_space<vmem>>, %arg2: memref<32x1xf32, #tpu.memory_space<vmem>>, %arg3: memref<32x160xf32, #tpu.memory_space<vmem>>, %arg4: memref<32x1xf32, #tpu.memory_space<vmem>>, %arg5: memref<8x160xf32, #tpu.memory_space<vmem>>, %arg6: memref<8x1xf32, #tpu.memory_space<vmem>>, %arg7: memref<2x8x8xf32, #tpu.memory_space<vmem>>, %arg8: memref<2x32x12xf32, #tpu.memory_space<vmem>>, %arg9: memref<160x16xf32, #tpu.memory_space<vmem>>) attributes {dimension_semantics = [], scalar_prefetch = 0 : i64, scratch_operands = 2 : i64, tpu.core_type = #tpu.core_type<tc>} {
    %cst = arith.constant 0.000000e+00 : f32
    %0 = vector.broadcast %cst : f32 to vector<2x32x12xf32>
    %c0 = arith.constant 0 : index
    %c0_0 = arith.constant 0 : index
    %c0_1 = arith.constant 0 : index
    %1 = vector.load %arg8[%c0, %c0_0, %c0_1] : memref<2x32x12xf32, #tpu.memory_space<vmem>>, vector<2x32x12xf32>
    tpu.vector_store %arg8[%c0, %c0_0, %c0_1], %0 {strides = array<i32>} : memref<2x32x12xf32, #tpu.memory_space<vmem>>, vector<2x32x12xf32>,
    %c0_2 = arith.constant 0 : index
    %c0_3 = arith.constant 0 : index
    %c0_4 = arith.constant 0 : index
    %2 = vector.load %arg0[%c0_2, %c0_3, %c0_4] : memref<2x8x8xf32, #tpu.memory_space<vmem>>, vector<2x8x8xf32>
    %c0_5 = arith.constant 0 : index
    %c0_6 = arith.constant 0 : index
    %c2 = arith.constant 2 : index
    %3 = vector.load %arg8[%c0_5, %c0_6, %c2] : memref<2x32x12xf32, #tpu.memory_space<vmem>>, vector<2x8x8xf32>
    tpu.vector_store %arg8[%c0_5, %c0_6, %c2], %2 {strides = array<i32>} : memref<2x32x12xf32, #tpu.memory_space<vmem>>, vector<2x8x8xf32>,
    %c0_7 = arith.constant 0 : index
    %c0_8 = arith.constant 0 : index
    %4 = vector.load %arg1[%c0_7, %c0_8] : memref<32x40xf32, #tpu.memory_space<vmem>>, vector<32x40xf32>
    %c0_9 = arith.constant 0 : index
    %c0_10 = arith.constant 0 : index
    %5 = vector.load %arg2[%c0_9, %c0_10] : memref<32x1xf32, #tpu.memory_space<vmem>>, vector<32x1xf32>
    %c0_11 = arith.constant 0 : index
    %c0_12 = arith.constant 0 : index
    %c0_13 = arith.constant 0 : index
    %6 = vector.load %arg8[%c0_11, %c0_12, %c0_13] : memref<2x32x12xf32, #tpu.memory_space<vmem>>, vector<1x8x8xf32>
    %7 = vector.shape_cast %6 : vector<1x8x8xf32> to vector<8x8xf32>
    %c0_14 = arith.constant 0 : index
    %c0_15 = arith.constant 0 : index
    %8 = vector.load %arg9[%c0_14, %c0_15] : memref<160x16xf32, #tpu.memory_space<vmem>>, vector<8x8xf32>
    tpu.vector_store %arg9[%c0_14, %c0_15], %7 {strides = array<i32>} : memref<160x16xf32, #tpu.memory_space<vmem>>, vector<8x8xf32>,
    %c0_16 = arith.constant 0 : index
    %c0_17 = arith.constant 0 : index
    %c1 = arith.constant 1 : index
    %9 = vector.load %arg8[%c0_16, %c0_17, %c1] : memref<2x32x12xf32, #tpu.memory_space<vmem>>, vector<1x8x8xf32>
    %10 = vector.shape_cast %9 : vector<1x8x8xf32> to vector<8x8xf32>
    %c8 = arith.constant 8 : index
    %c0_18 = arith.constant 0 : index
    %11 = vector.load %arg9[%c8, %c0_18] : memref<160x16xf32, #tpu.memory_space<vmem>>, vector<8x8xf32>
    tpu.vector_store %arg9[%c8, %c0_18], %10 {strides = array<i32>} : memref<160x16xf32, #tpu.memory_space<vmem>>, vector<8x8xf32>,
    %c0_19 = arith.constant 0 : index
    %c0_20 = arith.constant 0 : index
    %c2_21 = arith.constant 2 : index
    %12 = vector.load %arg8[%c0_19, %c0_20, %c2_21] : memref<2x32x12xf32, #tpu.memory_space<vmem>>, vector<1x8x8xf32>
    %13 = vector.shape_cast %12 : vector<1x8x8xf32> to vector<8x8xf32>
    %c16 = arith.constant 16 : index
    %c0_22 = arith.constant 0 : index
    %14 = vector.load %arg9[%c16, %c0_22] : memref<160x16xf32, #tpu.memory_space<vmem>>, vector<8x8xf32>
    tpu.vector_store %arg9[%c16, %c0_22], %13 {strides = array<i32>} : memref<160x16xf32, #tpu.memory_space<vmem>>, vector<8x8xf32>,
    %c0_23 = arith.constant 0 : index
    %c0_24 = arith.constant 0 : index
    %c3 = arith.constant 3 : index
    %15 = vector.load %arg8[%c0_23, %c0_24, %c3] : memref<2x32x12xf32, #tpu.memory_space<vmem>>, vector<1x8x8xf32>
    %16 = vector.shape_cast %15 : vector<1x8x8xf32> to vector<8x8xf32>
    %c24 = arith.constant 24 : index
    %c0_25 = arith.constant 0 : index
    %17 = vector.load %arg9[%c24, %c0_25] : memref<160x16xf32, #tpu.memory_space<vmem>>, vector<8x8xf32>
    tpu.vector_store %arg9[%c24, %c0_25], %16 {strides = array<i32>} : memref<160x16xf32, #tpu.memory_space<vmem>>, vector<8x8xf32>,
    %c0_26 = arith.constant 0 : index
    %c0_27 = arith.constant 0 : index
    %c4 = arith.constant 4 : index
    %18 = vector.load %arg8[%c0_26, %c0_27, %c4] : memref<2x32x12xf32, #tpu.memory_space<vmem>>, vector<1x8x8xf32>
    %19 = vector.shape_cast %18 : vector<1x8x8xf32> to vector<8x8xf32>
    %c32 = arith.constant 32 : index
    %c0_28 = arith.constant 0 : index
    %20 = vector.load %arg9[%c32, %c0_28] : memref<160x16xf32, #tpu.memory_space<vmem>>, vector<8x8xf32>
    tpu.vector_store %arg9[%c32, %c0_28], %19 {strides = array<i32>} : memref<160x16xf32, #tpu.memory_space<vmem>>, vector<8x8xf32>,
    %c1_29 = arith.constant 1 : index
    %c0_30 = arith.constant 0 : index
    %c0_31 = arith.constant 0 : index
    %21 = vector.load %arg8[%c1_29, %c0_30, %c0_31] : memref<2x32x12xf32, #tpu.memory_space<vmem>>, vector<1x8x8xf32>
    %22 = vector.shape_cast %21 : vector<1x8x8xf32> to vector<8x8xf32>
    %c0_32 = arith.constant 0 : index
    %c8_33 = arith.constant 8 : index
    %23 = vector.load %arg9[%c0_32, %c8_33] : memref<160x16xf32, #tpu.memory_space<vmem>>, vector<8x8xf32>
    tpu.vector_store %arg9[%c0_32, %c8_33], %22 {strides = array<i32>} : memref<160x16xf32, #tpu.memory_space<vmem>>, vector<8x8xf32>,
    %c1_34 = arith.constant 1 : index
    %c0_35 = arith.constant 0 : index
    %c1_36 = arith.constant 1 : index
    %24 = vector.load %arg8[%c1_34, %c0_35, %c1_36] : memref<2x32x12xf32, #tpu.memory_space<vmem>>, vector<1x8x8xf32>
    %25 = vector.shape_cast %24 : vector<1x8x8xf32> to vector<8x8xf32>
    %c8_37 = arith.constant 8 : index
    %c8_38 = arith.constant 8 : index
    %26 = vector.load %arg9[%c8_37, %c8_38] : memref<160x16xf32, #tpu.memory_space<vmem>>, vector<8x8xf32>
    tpu.vector_store %arg9[%c8_37, %c8_38], %25 {strides = array<i32>} : memref<160x16xf32, #tpu.memory_space<vmem>>, vector<8x8xf32>,
    %c1_39 = arith.constant 1 : index
    %c0_40 = arith.constant 0 : index
    %c2_41 = arith.constant 2 : index
    %27 = vector.load %arg8[%c1_39, %c0_40, %c2_41] : memref<2x32x12xf32, #tpu.memory_space<vmem>>, vector<1x8x8xf32>
    %28 = vector.shape_cast %27 : vector<1x8x8xf32> to vector<8x8xf32>
    %c16_42 = arith.constant 16 : index
    %c8_43 = arith.constant 8 : index
    %29 = vector.load %arg9[%c16_42, %c8_43] : memref<160x16xf32, #tpu.memory_space<vmem>>, vector<8x8xf32>
    tpu.vector_store %arg9[%c16_42, %c8_43], %28 {strides = array<i32>} : memref<160x16xf32, #tpu.memory_space<vmem>>, vector<8x8xf32>,
    %c1_44 = arith.constant 1 : index
    %c0_45 = arith.constant 0 : index
    %c3_46 = arith.constant 3 : index
    %30 = vector.load %arg8[%c1_44, %c0_45, %c3_46] : memref<2x32x12xf32, #tpu.memory_space<vmem>>, vector<1x8x8xf32>
    %31 = vector.shape_cast %30 : vector<1x8x8xf32> to vector<8x8xf32>
    %c24_47 = arith.constant 24 : index
    %c8_48 = arith.constant 8 : index
    %32 = vector.load %arg9[%c24_47, %c8_48] : memref<160x16xf32, #tpu.memory_space<vmem>>, vector<8x8xf32>
    tpu.vector_store %arg9[%c24_47, %c8_48], %31 {strides = array<i32>} : memref<160x16xf32, #tpu.memory_space<vmem>>, vector<8x8xf32>,
    %c1_49 = arith.constant 1 : index
    %c0_50 = arith.constant 0 : index
    %c4_51 = arith.constant 4 : index
    %33 = vector.load %arg8[%c1_49, %c0_50, %c4_51] : memref<2x32x12xf32, #tpu.memory_space<vmem>>, vector<1x8x8xf32>
    %34 = vector.shape_cast %33 : vector<1x8x8xf32> to vector<8x8xf32>
    %c32_52 = arith.constant 32 : index
    %c8_53 = arith.constant 8 : index
    %35 = vector.load %arg9[%c32_52, %c8_53] : memref<160x16xf32, #tpu.memory_space<vmem>>, vector<8x8xf32>
    tpu.vector_store %arg9[%c32_52, %c8_53], %34 {strides = array<i32>} : memref<160x16xf32, #tpu.memory_space<vmem>>, vector<8x8xf32>,
    %c0_54 = arith.constant 0 : index
    %c0_55 = arith.constant 0 : index
    %36 = vector.load %arg9[%c0_54, %c0_55] : memref<160x16xf32, #tpu.memory_space<vmem>>, vector<40x16xf32>
    %cst_56 = arith.constant dense<0.000000e+00> : vector<32x16xf32>
    %37 = tpu.matmul %4, %36, %cst_56 {dimension_numbers = #tpu.dot_dimension_numbers<[1], [0], [0], [1], [0, 0, 1, 1], [], []>} : vector<32x40xf32>, vector<40x16xf32>, vector<32x16xf32> -> vector<32x16xf32>
    %38 = vector.broadcast %5 : vector<32x1xf32> to vector<32x16xf32>
    %39 = arith.addf %37, %38 : vector<32x16xf32>
    %40 = math.tanh %39 : vector<32x16xf32>
    %41 = vector.extract_strided_slice %40 {offsets = [0, 0], sizes = [32, 8], strides = [1, 1]} : vector<32x16xf32> to vector<32x8xf32>
    %c0_57 = arith.constant 0 : index
    %c0_58 = arith.constant 0 : index
    %c2_59 = arith.constant 2 : index
    %42 = vector.load %arg8[%c0_57, %c0_58, %c2_59] : memref<2x32x12xf32, #tpu.memory_space<vmem>>, vector<1x32x8xf32>
    %43 = vector.shape_cast %42 : vector<1x32x8xf32> to vector<32x8xf32>
    %44 = vector.shape_cast %41 : vector<32x8xf32> to vector<1x32x8xf32>
    tpu.vector_store %arg8[%c0_57, %c0_58, %c2_59], %44 {strides = array<i32>} : memref<2x32x12xf32, #tpu.memory_space<vmem>>, vector<1x32x8xf32>,
    %45 = vector.extract_strided_slice %40 {offsets = [0, 8], sizes = [32, 8], strides = [1, 1]} : vector<32x16xf32> to vector<32x8xf32>
    %c1_60 = arith.constant 1 : index
    %c0_61 = arith.constant 0 : index
    %c2_62 = arith.constant 2 : index
    %46 = vector.load %arg8[%c1_60, %c0_61, %c2_62] : memref<2x32x12xf32, #tpu.memory_space<vmem>>, vector<1x32x8xf32>
    %47 = vector.shape_cast %46 : vector<1x32x8xf32> to vector<32x8xf32>
    %48 = vector.shape_cast %45 : vector<32x8xf32> to vector<1x32x8xf32>
    tpu.vector_store %arg8[%c1_60, %c0_61, %c2_62], %48 {strides = array<i32>} : memref<2x32x12xf32, #tpu.memory_space<vmem>>, vector<1x32x8xf32>,
    %c0_63 = arith.constant 0 : index
    %c0_64 = arith.constant 0 : index
    %49 = vector.load %arg3[%c0_63, %c0_64] : memref<32x160xf32, #tpu.memory_space<vmem>>, vector<32x160xf32>
    %c0_65 = arith.constant 0 : index
    %c0_66 = arith.constant 0 : index
    %50 = vector.load %arg4[%c0_65, %c0_66] : memref<32x1xf32, #tpu.memory_space<vmem>>, vector<32x1xf32>
    %c0_67 = arith.constant 0 : index
    %c0_68 = arith.constant 0 : index
    %c0_69 = arith.constant 0 : index
    %51 = vector.load %arg8[%c0_67, %c0_68, %c0_69] : memref<2x32x12xf32, #tpu.memory_space<vmem>>, vector<1x32x8xf32>
    %52 = vector.shape_cast %51 : vector<1x32x8xf32> to vector<32x8xf32>
    %c0_70 = arith.constant 0 : index
    %c0_71 = arith.constant 0 : index
    %53 = vector.load %arg9[%c0_70, %c0_71] : memref<160x16xf32, #tpu.memory_space<vmem>>, vector<32x8xf32>
    tpu.vector_store %arg9[%c0_70, %c0_71], %52 {strides = array<i32>} : memref<160x16xf32, #tpu.memory_space<vmem>>, vector<32x8xf32>,
    %c0_72 = arith.constant 0 : index
    %c0_73 = arith.constant 0 : index
    %c1_74 = arith.constant 1 : index
    %54 = vector.load %arg8[%c0_72, %c0_73, %c1_74] : memref<2x32x12xf32, #tpu.memory_space<vmem>>, vector<1x32x8xf32>
    %55 = vector.shape_cast %54 : vector<1x32x8xf32> to vector<32x8xf32>
    %c32_75 = arith.constant 32 : index
    %c0_76 = arith.constant 0 : index
    %56 = vector.load %arg9[%c32_75, %c0_76] : memref<160x16xf32, #tpu.memory_space<vmem>>, vector<32x8xf32>
    tpu.vector_store %arg9[%c32_75, %c0_76], %55 {strides = array<i32>} : memref<160x16xf32, #tpu.memory_space<vmem>>, vector<32x8xf32>,
    %c0_77 = arith.constant 0 : index
    %c0_78 = arith.constant 0 : index
    %c2_79 = arith.constant 2 : index
    %57 = vector.load %arg8[%c0_77, %c0_78, %c2_79] : memref<2x32x12xf32, #tpu.memory_space<vmem>>, vector<1x32x8xf32>
    %58 = vector.shape_cast %57 : vector<1x32x8xf32> to vector<32x8xf32>
    %c64 = arith.constant 64 : index
    %c0_80 = arith.constant 0 : index
    %59 = vector.load %arg9[%c64, %c0_80] : memref<160x16xf32, #tpu.memory_space<vmem>>, vector<32x8xf32>
    tpu.vector_store %arg9[%c64, %c0_80], %58 {strides = array<i32>} : memref<160x16xf32, #tpu.memory_space<vmem>>, vector<32x8xf32>,
    %c0_81 = arith.constant 0 : index
    %c0_82 = arith.constant 0 : index
    %c3_83 = arith.constant 3 : index
    %60 = vector.load %arg8[%c0_81, %c0_82, %c3_83] : memref<2x32x12xf32, #tpu.memory_space<vmem>>, vector<1x32x8xf32>
    %61 = vector.shape_cast %60 : vector<1x32x8xf32> to vector<32x8xf32>
    %c96 = arith.constant 96 : index
    %c0_84 = arith.constant 0 : index
    %62 = vector.load %arg9[%c96, %c0_84] : memref<160x16xf32, #tpu.memory_space<vmem>>, vector<32x8xf32>
    tpu.vector_store %arg9[%c96, %c0_84], %61 {strides = array<i32>} : memref<160x16xf32, #tpu.memory_space<vmem>>, vector<32x8xf32>,
    %c0_85 = arith.constant 0 : index
    %c0_86 = arith.constant 0 : index
    %c4_87 = arith.constant 4 : index
    %63 = vector.load %arg8[%c0_85, %c0_86, %c4_87] : memref<2x32x12xf32, #tpu.memory_space<vmem>>, vector<1x32x8xf32>
    %64 = vector.shape_cast %63 : vector<1x32x8xf32> to vector<32x8xf32>
    %c128 = arith.constant 128 : index
    %c0_88 = arith.constant 0 : index
    %65 = vector.load %arg9[%c128, %c0_88] : memref<160x16xf32, #tpu.memory_space<vmem>>, vector<32x8xf32>
    tpu.vector_store %arg9[%c128, %c0_88], %64 {strides = array<i32>} : memref<160x16xf32, #tpu.memory_space<vmem>>, vector<32x8xf32>,
    %c1_89 = arith.constant 1 : index
    %c0_90 = arith.constant 0 : index
    %c0_91 = arith.constant 0 : index
    %66 = vector.load %arg8[%c1_89, %c0_90, %c0_91] : memref<2x32x12xf32, #tpu.memory_space<vmem>>, vector<1x32x8xf32>
    %67 = vector.shape_cast %66 : vector<1x32x8xf32> to vector<32x8xf32>
    %c0_92 = arith.constant 0 : index
    %c8_93 = arith.constant 8 : index
    %68 = vector.load %arg9[%c0_92, %c8_93] : memref<160x16xf32, #tpu.memory_space<vmem>>, vector<32x8xf32>
    tpu.vector_store %arg9[%c0_92, %c8_93], %67 {strides = array<i32>} : memref<160x16xf32, #tpu.memory_space<vmem>>, vector<32x8xf32>,
    %c1_94 = arith.constant 1 : index
    %c0_95 = arith.constant 0 : index
    %c1_96 = arith.constant 1 : index
    %69 = vector.load %arg8[%c1_94, %c0_95, %c1_96] : memref<2x32x12xf32, #tpu.memory_space<vmem>>, vector<1x32x8xf32>
    %70 = vector.shape_cast %69 : vector<1x32x8xf32> to vector<32x8xf32>
    %c32_97 = arith.constant 32 : index
    %c8_98 = arith.constant 8 : index
    %71 = vector.load %arg9[%c32_97, %c8_98] : memref<160x16xf32, #tpu.memory_space<vmem>>, vector<32x8xf32>
    tpu.vector_store %arg9[%c32_97, %c8_98], %70 {strides = array<i32>} : memref<160x16xf32, #tpu.memory_space<vmem>>, vector<32x8xf32>,
    %c1_99 = arith.constant 1 : index
    %c0_100 = arith.constant 0 : index
    %c2_101 = arith.constant 2 : index
    %72 = vector.load %arg8[%c1_99, %c0_100, %c2_101] : memref<2x32x12xf32, #tpu.memory_space<vmem>>, vector<1x32x8xf32>
    %73 = vector.shape_cast %72 : vector<1x32x8xf32> to vector<32x8xf32>
    %c64_102 = arith.constant 64 : index
    %c8_103 = arith.constant 8 : index
    %74 = vector.load %arg9[%c64_102, %c8_103] : memref<160x16xf32, #tpu.memory_space<vmem>>, vector<32x8xf32>
    tpu.vector_store %arg9[%c64_102, %c8_103], %73 {strides = array<i32>} : memref<160x16xf32, #tpu.memory_space<vmem>>, vector<32x8xf32>,
    %c1_104 = arith.constant 1 : index
    %c0_105 = arith.constant 0 : index
    %c3_106 = arith.constant 3 : index
    %75 = vector.load %arg8[%c1_104, %c0_105, %c3_106] : memref<2x32x12xf32, #tpu.memory_space<vmem>>, vector<1x32x8xf32>
    %76 = vector.shape_cast %75 : vector<1x32x8xf32> to vector<32x8xf32>
    %c96_107 = arith.constant 96 : index
    %c8_108 = arith.constant 8 : index
    %77 = vector.load %arg9[%c96_107, %c8_108] : memref<160x16xf32, #tpu.memory_space<vmem>>, vector<32x8xf32>
    tpu.vector_store %arg9[%c96_107, %c8_108], %76 {strides = array<i32>} : memref<160x16xf32, #tpu.memory_space<vmem>>, vector<32x8xf32>,
    %c1_109 = arith.constant 1 : index
    %c0_110 = arith.constant 0 : index
    %c4_111 = arith.constant 4 : index
    %78 = vector.load %arg8[%c1_109, %c0_110, %c4_111] : memref<2x32x12xf32, #tpu.memory_space<vmem>>, vector<1x32x8xf32>
    %79 = vector.shape_cast %78 : vector<1x32x8xf32> to vector<32x8xf32>
    %c128_112 = arith.constant 128 : index
    %c8_113 = arith.constant 8 : index
    %80 = vector.load %arg9[%c128_112, %c8_113] : memref<160x16xf32, #tpu.memory_space<vmem>>, vector<32x8xf32>
    tpu.vector_store %arg9[%c128_112, %c8_113], %79 {strides = array<i32>} : memref<160x16xf32, #tpu.memory_space<vmem>>, vector<32x8xf32>,
    %c0_114 = arith.constant 0 : index
    %c0_115 = arith.constant 0 : index
    %81 = vector.load %arg9[%c0_114, %c0_115] : memref<160x16xf32, #tpu.memory_space<vmem>>, vector<160x16xf32>
    %cst_116 = arith.constant dense<0.000000e+00> : vector<32x16xf32>
    %82 = tpu.matmul %49, %81, %cst_116 {dimension_numbers = #tpu.dot_dimension_numbers<[1], [0], [0], [1], [0, 0, 1, 1], [], []>} : vector<32x160xf32>, vector<160x16xf32>, vector<32x16xf32> -> vector<32x16xf32>
    %83 = vector.broadcast %50 : vector<32x1xf32> to vector<32x16xf32>
    %84 = arith.addf %82, %83 : vector<32x16xf32>
    %85 = math.tanh %84 : vector<32x16xf32>
    %86 = vector.extract_strided_slice %85 {offsets = [0, 0], sizes = [32, 8], strides = [1, 1]} : vector<32x16xf32> to vector<32x8xf32>
    %c0_117 = arith.constant 0 : index
    %c0_118 = arith.constant 0 : index
    %c2_119 = arith.constant 2 : index
    %87 = vector.load %arg8[%c0_117, %c0_118, %c2_119] : memref<2x32x12xf32, #tpu.memory_space<vmem>>, vector<1x32x8xf32>
    %88 = vector.shape_cast %87 : vector<1x32x8xf32> to vector<32x8xf32>
    %89 = vector.shape_cast %86 : vector<32x8xf32> to vector<1x32x8xf32>
    tpu.vector_store %arg8[%c0_117, %c0_118, %c2_119], %89 {strides = array<i32>} : memref<2x32x12xf32, #tpu.memory_space<vmem>>, vector<1x32x8xf32>,
    %90 = vector.extract_strided_slice %85 {offsets = [0, 8], sizes = [32, 8], strides = [1, 1]} : vector<32x16xf32> to vector<32x8xf32>
    %c1_120 = arith.constant 1 : index
    %c0_121 = arith.constant 0 : index
    %c2_122 = arith.constant 2 : index
    %91 = vector.load %arg8[%c1_120, %c0_121, %c2_122] : memref<2x32x12xf32, #tpu.memory_space<vmem>>, vector<1x32x8xf32>
    %92 = vector.shape_cast %91 : vector<1x32x8xf32> to vector<32x8xf32>
    %93 = vector.shape_cast %90 : vector<32x8xf32> to vector<1x32x8xf32>
    tpu.vector_store %arg8[%c1_120, %c0_121, %c2_122], %93 {strides = array<i32>} : memref<2x32x12xf32, #tpu.memory_space<vmem>>, vector<1x32x8xf32>,
    %c0_123 = arith.constant 0 : index
    %c0_124 = arith.constant 0 : index
    %94 = vector.load %arg5[%c0_123, %c0_124] : memref<8x160xf32, #tpu.memory_space<vmem>>, vector<8x160xf32>
    %c0_125 = arith.constant 0 : index
    %c0_126 = arith.constant 0 : index
    %95 = vector.load %arg6[%c0_125, %c0_126] : memref<8x1xf32, #tpu.memory_space<vmem>>, vector<8x1xf32>
    %c0_127 = arith.constant 0 : index
    %c0_128 = arith.constant 0 : index
    %c0_129 = arith.constant 0 : index
    %96 = vector.load %arg8[%c0_127, %c0_128, %c0_129] : memref<2x32x12xf32, #tpu.memory_space<vmem>>, vector<1x32x8xf32>
    %97 = vector.shape_cast %96 : vector<1x32x8xf32> to vector<32x8xf32>
    %c0_130 = arith.constant 0 : index
    %c0_131 = arith.constant 0 : index
    %98 = vector.load %arg9[%c0_130, %c0_131] : memref<160x16xf32, #tpu.memory_space<vmem>>, vector<32x8xf32>
    tpu.vector_store %arg9[%c0_130, %c0_131], %97 {strides = array<i32>} : memref<160x16xf32, #tpu.memory_space<vmem>>, vector<32x8xf32>,
    %c0_132 = arith.constant 0 : index
    %c0_133 = arith.constant 0 : index
    %c1_134 = arith.constant 1 : index
    %99 = vector.load %arg8[%c0_132, %c0_133, %c1_134] : memref<2x32x12xf32, #tpu.memory_space<vmem>>, vector<1x32x8xf32>
    %100 = vector.shape_cast %99 : vector<1x32x8xf32> to vector<32x8xf32>
    %c32_135 = arith.constant 32 : index
    %c0_136 = arith.constant 0 : index
    %101 = vector.load %arg9[%c32_135, %c0_136] : memref<160x16xf32, #tpu.memory_space<vmem>>, vector<32x8xf32>
    tpu.vector_store %arg9[%c32_135, %c0_136], %100 {strides = array<i32>} : memref<160x16xf32, #tpu.memory_space<vmem>>, vector<32x8xf32>,
    %c0_137 = arith.constant 0 : index
    %c0_138 = arith.constant 0 : index
    %c2_139 = arith.constant 2 : index
    %102 = vector.load %arg8[%c0_137, %c0_138, %c2_139] : memref<2x32x12xf32, #tpu.memory_space<vmem>>, vector<1x32x8xf32>
    %103 = vector.shape_cast %102 : vector<1x32x8xf32> to vector<32x8xf32>
    %c64_140 = arith.constant 64 : index
    %c0_141 = arith.constant 0 : index
    %104 = vector.load %arg9[%c64_140, %c0_141] : memref<160x16xf32, #tpu.memory_space<vmem>>, vector<32x8xf32>
    tpu.vector_store %arg9[%c64_140, %c0_141], %103 {strides = array<i32>} : memref<160x16xf32, #tpu.memory_space<vmem>>, vector<32x8xf32>,
    %c0_142 = arith.constant 0 : index
    %c0_143 = arith.constant 0 : index
    %c3_144 = arith.constant 3 : index
    %105 = vector.load %arg8[%c0_142, %c0_143, %c3_144] : memref<2x32x12xf32, #tpu.memory_space<vmem>>, vector<1x32x8xf32>
    %106 = vector.shape_cast %105 : vector<1x32x8xf32> to vector<32x8xf32>
    %c96_145 = arith.constant 96 : index
    %c0_146 = arith.constant 0 : index
    %107 = vector.load %arg9[%c96_145, %c0_146] : memref<160x16xf32, #tpu.memory_space<vmem>>, vector<32x8xf32>
    tpu.vector_store %arg9[%c96_145, %c0_146], %106 {strides = array<i32>} : memref<160x16xf32, #tpu.memory_space<vmem>>, vector<32x8xf32>,
    %c0_147 = arith.constant 0 : index
    %c0_148 = arith.constant 0 : index
    %c4_149 = arith.constant 4 : index
    %108 = vector.load %arg8[%c0_147, %c0_148, %c4_149] : memref<2x32x12xf32, #tpu.memory_space<vmem>>, vector<1x32x8xf32>
    %109 = vector.shape_cast %108 : vector<1x32x8xf32> to vector<32x8xf32>
    %c128_150 = arith.constant 128 : index
    %c0_151 = arith.constant 0 : index
    %110 = vector.load %arg9[%c128_150, %c0_151] : memref<160x16xf32, #tpu.memory_space<vmem>>, vector<32x8xf32>
    tpu.vector_store %arg9[%c128_150, %c0_151], %109 {strides = array<i32>} : memref<160x16xf32, #tpu.memory_space<vmem>>, vector<32x8xf32>,
    %c1_152 = arith.constant 1 : index
    %c0_153 = arith.constant 0 : index
    %c0_154 = arith.constant 0 : index
    %111 = vector.load %arg8[%c1_152, %c0_153, %c0_154] : memref<2x32x12xf32, #tpu.memory_space<vmem>>, vector<1x32x8xf32>
    %112 = vector.shape_cast %111 : vector<1x32x8xf32> to vector<32x8xf32>
    %c0_155 = arith.constant 0 : index
    %c8_156 = arith.constant 8 : index
    %113 = vector.load %arg9[%c0_155, %c8_156] : memref<160x16xf32, #tpu.memory_space<vmem>>, vector<32x8xf32>
    tpu.vector_store %arg9[%c0_155, %c8_156], %112 {strides = array<i32>} : memref<160x16xf32, #tpu.memory_space<vmem>>, vector<32x8xf32>,
    %c1_157 = arith.constant 1 : index
    %c0_158 = arith.constant 0 : index
    %c1_159 = arith.constant 1 : index
    %114 = vector.load %arg8[%c1_157, %c0_158, %c1_159] : memref<2x32x12xf32, #tpu.memory_space<vmem>>, vector<1x32x8xf32>
    %115 = vector.shape_cast %114 : vector<1x32x8xf32> to vector<32x8xf32>
    %c32_160 = arith.constant 32 : index
    %c8_161 = arith.constant 8 : index
    %116 = vector.load %arg9[%c32_160, %c8_161] : memref<160x16xf32, #tpu.memory_space<vmem>>, vector<32x8xf32>
    tpu.vector_store %arg9[%c32_160, %c8_161], %115 {strides = array<i32>} : memref<160x16xf32, #tpu.memory_space<vmem>>, vector<32x8xf32>,
    %c1_162 = arith.constant 1 : index
    %c0_163 = arith.constant 0 : index
    %c2_164 = arith.constant 2 : index
    %117 = vector.load %arg8[%c1_162, %c0_163, %c2_164] : memref<2x32x12xf32, #tpu.memory_space<vmem>>, vector<1x32x8xf32>
    %118 = vector.shape_cast %117 : vector<1x32x8xf32> to vector<32x8xf32>
    %c64_165 = arith.constant 64 : index
    %c8_166 = arith.constant 8 : index
    %119 = vector.load %arg9[%c64_165, %c8_166] : memref<160x16xf32, #tpu.memory_space<vmem>>, vector<32x8xf32>
    tpu.vector_store %arg9[%c64_165, %c8_166], %118 {strides = array<i32>} : memref<160x16xf32, #tpu.memory_space<vmem>>, vector<32x8xf32>,
    %c1_167 = arith.constant 1 : index
    %c0_168 = arith.constant 0 : index
    %c3_169 = arith.constant 3 : index
    %120 = vector.load %arg8[%c1_167, %c0_168, %c3_169] : memref<2x32x12xf32, #tpu.memory_space<vmem>>, vector<1x32x8xf32>
    %121 = vector.shape_cast %120 : vector<1x32x8xf32> to vector<32x8xf32>
    %c96_170 = arith.constant 96 : index
    %c8_171 = arith.constant 8 : index
    %122 = vector.load %arg9[%c96_170, %c8_171] : memref<160x16xf32, #tpu.memory_space<vmem>>, vector<32x8xf32>
    tpu.vector_store %arg9[%c96_170, %c8_171], %121 {strides = array<i32>} : memref<160x16xf32, #tpu.memory_space<vmem>>, vector<32x8xf32>,
    %c1_172 = arith.constant 1 : index
    %c0_173 = arith.constant 0 : index
    %c4_174 = arith.constant 4 : index
    %123 = vector.load %arg8[%c1_172, %c0_173, %c4_174] : memref<2x32x12xf32, #tpu.memory_space<vmem>>, vector<1x32x8xf32>
    %124 = vector.shape_cast %123 : vector<1x32x8xf32> to vector<32x8xf32>
    %c128_175 = arith.constant 128 : index
    %c8_176 = arith.constant 8 : index
    %125 = vector.load %arg9[%c128_175, %c8_176] : memref<160x16xf32, #tpu.memory_space<vmem>>, vector<32x8xf32>
    tpu.vector_store %arg9[%c128_175, %c8_176], %124 {strides = array<i32>} : memref<160x16xf32, #tpu.memory_space<vmem>>, vector<32x8xf32>,
    %c0_177 = arith.constant 0 : index
    %c0_178 = arith.constant 0 : index
    %126 = vector.load %arg9[%c0_177, %c0_178] : memref<160x16xf32, #tpu.memory_space<vmem>>, vector<160x16xf32>
    %cst_179 = arith.constant dense<0.000000e+00> : vector<8x16xf32>
    %127 = tpu.matmul %94, %126, %cst_179 {dimension_numbers = #tpu.dot_dimension_numbers<[1], [0], [0], [1], [0, 0, 1, 1], [], []>} : vector<8x160xf32>, vector<160x16xf32>, vector<8x16xf32> -> vector<8x16xf32>
    %128 = vector.broadcast %95 : vector<8x1xf32> to vector<8x16xf32>
    %129 = arith.addf %127, %128 : vector<8x16xf32>
    %130 = vector.extract_strided_slice %129 {offsets = [0, 0], sizes = [8, 8], strides = [1, 1]} : vector<8x16xf32> to vector<8x8xf32>
    %c0_180 = arith.constant 0 : index
    %c0_181 = arith.constant 0 : index
    %c0_182 = arith.constant 0 : index
    %131 = vector.load %arg7[%c0_180, %c0_181, %c0_182] : memref<2x8x8xf32, #tpu.memory_space<vmem>>, vector<1x8x8xf32>
    %132 = vector.shape_cast %131 : vector<1x8x8xf32> to vector<8x8xf32>
    %133 = vector.shape_cast %130 : vector<8x8xf32> to vector<1x8x8xf32>
    tpu.vector_store %arg7[%c0_180, %c0_181, %c0_182], %133 {strides = array<i32>} : memref<2x8x8xf32, #tpu.memory_space<vmem>>, vector<1x8x8xf32>,
    %134 = vector.extract_strided_slice %129 {offsets = [0, 8], sizes = [8, 8], strides = [1, 1]} : vector<8x16xf32> to vector<8x8xf32>
    %c1_183 = arith.constant 1 : index
    %c0_184 = arith.constant 0 : index
    %c0_185 = arith.constant 0 : index
    %135 = vector.load %arg7[%c1_183, %c0_184, %c0_185] : memref<2x8x8xf32, #tpu.memory_space<vmem>>, vector<1x8x8xf32>
    %136 = vector.shape_cast %135 : vector<1x8x8xf32> to vector<8x8xf32>
    %137 = vector.shape_cast %134 : vector<8x8xf32> to vector<1x8x8xf32>
    tpu.vector_store %arg7[%c1_183, %c0_184, %c0_185], %137 {strides = array<i32>} : memref<2x8x8xf32, #tpu.memory_space<vmem>>, vector<1x8x8xf32>,
    return
  }
}

</mosaic_0001>

<bundles_post_ra>
// kernel: tacotron2_forward.5
= control target key start
LH: loop header
LB: loop body
LE: loop exit
PB: predicated region body
PF: predicated region fallthrough
CT: control target
= control target key end

     0   :  { %vm25_vm0 = vcmask 64512   ;;  %v308_v0 = vmov 0.0|0.0   ;;  %vm309_vm2 = vmmov 0   ;;  %v310_v3 = vmov 0.0   ;;  %s407_s1 = inlined_call_operand.vmem [shape: f32[16,8], index: 1, kind: input, shape index: {}]   ;;  %s408_s0 = inlined_call_operand.vmem [shape: f32[18,8], index: 0, kind: input, shape index: {}]   ;;  %s409_s2 = inlined_call_operand.vmem [shape: f32[16,16], index: 2, kind: input, shape index: {}]   ;;  %s410_s3 = inlined_call_operand.vmem [shape: f32[18,16], index: 3, kind: input, shape index: {}]   ;;  %s411_s4 = inlined_call_operand.vmem [shape: f32[18,16], index: 4, kind: input, shape index: {}]   ;;  %s412_s5 = inlined_call_operand.vmem [shape: f32[18,16], index: 5, kind: output, shape index: {}]  }
   0x1   :  { %297 = vmatprep.subr.bf16.mxu0 %v308_v0  ;;  %v23_v1 = vld [vmem:[%s407_s1] sm:$0xff]  ;;  %v24_v2 = vld [vmem:[%s407_s1 + $0x8] sm:$0xff]  ;;  %vm299_vm1 = vmpackc.low %vm25_vm0, %vm25_vm0  ;;  %275 = vmatprep.mubr.msk.f32.mxu0 %vm309_vm2, %v310_v3  ;;  %vm135_vm3 = vcmask 130048   ;;  %vm245_vm5 = vcmask 123904  }
   0x2   :  { %v298_v4 = vpack.c.bf16 %v24_v2, %v23_v1  ;;  %301 = vmatprep.subr.bf16.mxu1 %v308_v0  ;;  %288 = vmatprep.mubr.msk.f32.mxu1 %vm309_vm2, %v310_v3  ;;  %v20_v5 = vld [vmem:[%s408_s0] sm:$0xff]  ;;  %v21_v6 = vld [vmem:[%s408_s0 + $0x8] sm:$0xff]  ;;  %v22_v7 = vld [vmem:[%s408_s0 + $0x10] sm:$0x3] }
   0x3   :  { %v133_v8 = vld [vmem:[%s409_s2] sm:$0xff]  ;;  %v134_v9 = vld [vmem:[%s409_s2 + $0x8] sm:$0xff]  ;;  %vm303_vm4 = vmpackc.low %vm135_vm3, %vm135_vm3 }
   0x4   :  { %300 = vmatpush3.bf16.xpose.msk.msra.mxu0 %vm299_vm1, %v298_v4  ;;  %v302_v10 = vpack.c.bf16 %v134_v9, %v133_v8  ;;  %v124_v12 = vld [vmem:[%s410_s3] sm:$0xff]  ;;  %v125_v17 = vld [vmem:[%s410_s3 + $0x8] sm:$0xff]  ;;  %v126_v23 = vld [vmem:[%s410_s3 + $0x10] sm:$0x3] }
   0x5   :  { %v234_v30 = vld [vmem:[%s411_s4] sm:$0xff]  ;;  %v235_v35 = vld [vmem:[%s411_s4 + $0x8] sm:$0xff]  ;;  %v236_v41 = vld [vmem:[%s411_s4 + $0x10] sm:$0x3] }
   0x6   :  { %304 = vmatpush3.bf16.xpose.msk.msra.mxu1 %vm303_vm4, %v302_v10 }
   0xb   :  { %276 = vmatmul.mubr.msk.f32.vlgmr.msra.gmra.mrb[0].mxu0 %vm25_vm0, %v20_v5 }
   0xc   :  { %278 = vmatprep.mubr.msk.f32.mxu0 %vm309_vm2, %v310_v3 }
   0xf   :  { %279 = vmatmul.mubr.msk.f32.gmra.mrb[2].mxu0 %vm25_vm0, %v21_v6 }
  0x10   :  { %281 = vmatprep.mubr.msk.f32.mxu0 %vm309_vm2, %v310_v3 }
  0x13   :  { %282 = vmatmul.mubr.msk.f32.gmra.mrb[4].mxu0 %vm25_vm0, %v22_v7 }
  0xde   :  { %v107_v11 = vpop.f32.mrb[0].mxu0 }
  0xdf   :  { %v121_v13 = vmax.f32 %v107_v11, 0.0  ;;  %v277_v14 = vpop.f32.mrb[1].mxu0 }
  0xe1   :  { %v127_v15 = vmul.f32 %v124_v12, %v121_v13 }
  0xe2   :  { %v112_v16 = vpop.f32.mrb[2].mxu0 }
  0xe3   :  { %v130_v18 = vmul.f32 2.0, %v127_v15  ;;  %v122_v19 = vmax.f32 %v112_v16, 0.0  ;;  %v280_v20 = vpop.f32.mrb[3].mxu0 }
  0xe5   :  { %v128_v21 = vmul.f32 %v125_v17, %v122_v19  ;;  %289 = vmatmul.mubr.msk.f32.vlgmr.msra.gmra.mrb[0].mxu1 %vm135_vm3, %v130_v18 }
  0xe6   :  { %v117_v22 = vpop.f32.mrb[4].mxu0  ;;  %291 = vmatprep.mubr.msk.f32.mxu1 %vm309_vm2, %v310_v3 }
  0xe7   :  { %v131_v24 = vmul.f32 2.0, %v128_v21  ;;  %v123_v25 = vmax.f32 %v117_v22, 0.0  ;;  %v283_v26 = vpop.f32.mrb[5].mxu0 }
  0xe9   :  { %v129_v27 = vmul.f32 %v126_v23, %v123_v25  ;;  %292 = vmatmul.mubr.msk.f32.gmra.mrb[2].mxu1 %vm135_vm3, %v131_v24 }
  0xea   :  { %294 = vmatprep.mubr.msk.f32.mxu1 %vm309_vm2, %v310_v3 }
  0xeb   :  { %v132_v28 = vmul.f32 2.0, %v129_v27 }
  0xed   :  { %295 = vmatmul.mubr.msk.f32.gmra.mrb[4].mxu1 %vm135_vm3, %v132_v28 }
 0x1b8   :  { %v217_v29 = vpop.f32.mrb[0].mxu1 }
 0x1b9   :  { %v231_v31 = vmax.f32 %v217_v29, 0.0  ;;  %v290_v32 = vpop.f32.mrb[1].mxu1 }
 0x1bb   :  { %v237_v33 = vmul.f32 %v234_v30, %v231_v31 }
 0x1bc   :  { %v222_v34 = vpop.f32.mrb[2].mxu1 }
 0x1bd   :  { %v240_v36 = vmul.f32 2.0, %v237_v33  ;;  %v232_v37 = vmax.f32 %v222_v34, 0.0  ;;  %v293_v38 = vpop.f32.mrb[3].mxu1 }
 0x1bf   :  { %243 = vst.msk [vmem:[%s412_s5] sm:$0xff] %vm135_vm3, %v240_v36  ;;  %v238_v39 = vmul.f32 %v235_v35, %v232_v37 }
 0x1c0   :  { %v227_v40 = vpop.f32.mrb[4].mxu1 }
 0x1c1   :  { %v241_v42 = vmul.f32 2.0, %v238_v39  ;;  %v233_v43 = vmax.f32 %v227_v40, 0.0  ;;  %v296_v44 = vpop.f32.mrb[5].mxu1 }
 0x1c3   :  { %244 = vst.msk [vmem:[%s412_s5 + $0x8] sm:$0xff] %vm135_vm3, %v241_v42  ;;  %v239_v45 = vmul.f32 %v236_v41, %v233_v43 }
 0x1c5   :  { %v242_v46 = vmul.f32 2.0, %v239_v45 }
 0x1c7   :  { %246 = vst.msk [vmem:[%s412_s5 + $0x10] sm:$0x3] %vm245_vm5, %v242_v46 }

// kernel: tacotron2_forward.6
= control target key start
LH: loop header
LB: loop body
LE: loop exit
PB: predicated region body
PF: predicated region fallthrough
CT: control target
= control target key end

     0   :  { %vm20_vm0 = vcmask 97280   ;;  %v990_v2 = vmov 0.0   ;;  %s991_s22 = smov 2   ;;  %vm69_vm1 = vcmask 80912   ;;  %v993_v16 = vmov 0.0|0.0   ;;  %s994_s10 = smov 127   ;;  %s1371_s0 = inlined_call_operand.vmem [shape: f32[2,32,8], index: 0, kind: input, shape index: {}]   ;;  %s1372_s1 = inlined_call_operand.vmem [shape: f32[32,160], index: 1, kind: input, shape index: {}]   ;;  %s1373_s2 = inlined_call_operand.vmem [shape: f32[32,1], index: 2, kind: input, shape index: {}]   ;;  %s1374_s4 = inlined_call_operand.vmem [shape: f32[32,1], index: 4, kind: input, shape index: {}]   ;;  %s1375_s3 = inlined_call_operand.vmem [shape: f32[32,160], index: 3, kind: input, shape index: {}]   ;;  %s1376_s5 = inlined_call_operand.vmem [shape: f32[2,32,8], index: 5, kind: output, shape index: {}]  }
   0x1   :  { %v33_v0 = vld [vmem:[%s1371_s0 + $0x20] sm:$0xff]  ;;  %v35_v1 = vld [vmem:[%s1371_s0 + $0x30] sm:$0xff]  ;;  %25 = vst.msk [vmem:[#allocation2 + $0x20] sm:$0xff] %vm20_vm0, %v990_v2  ;;  %21 = vst.msk [vmem:[#allocation2] sm:$0xff] %vm20_vm0, %v990_v2  ;;  %913 = vmatprep.subr.bf16.mxu0 %v993_v16  ;;  %943 = vmatprep.subr.bf16.mxu1 %v993_v16  ;;  %vm94_vm2 = vcmask 64512   ;;  %s995_s11 = smov 7  }
   0x2   :  { %22 = vst.msk [vmem:[#allocation2 + $0x8] sm:$0xff] %vm20_vm0, %v990_v2  ;;  %23 = vst.msk [vmem:[#allocation2 + $0x10] sm:$0xff] %vm20_vm0, %v990_v2  ;;  %53 = vrot.lane.b32.xlu0 %v33_v0, %s991_s22  ;;  %57 = vrot.lane.b32.xlu1 %v35_v1, %s991_s22  ;;  %v34_v3 = vld [vmem:[%s1371_s0 + $0x28] sm:$0xff]  ;;  %v36_v4 = vld [vmem:[%s1371_s0 + $0x38] sm:$0xff]  ;;  %s996_s12 = smov 126   ;;  %s997_s13 = smov 6  }
   0x3   :  { %24 = vst.msk [vmem:[#allocation2 + $0x18] sm:$0xff] %vm20_vm0, %v990_v2  ;;  %26 = vst.msk [vmem:[#allocation2 + $0x28] sm:$0xff] %vm20_vm0, %v990_v2  ;;  %v29_v5 = vld [vmem:[%s1371_s0] sm:$0xff]  ;;  %v30_v6 = vld [vmem:[%s1371_s0 + $0x8] sm:$0xff]  ;;  %s998_s14 = smov 125   ;;  %s999_s15 = smov 5  }
   0x4   :  { %27 = vst.msk [vmem:[#allocation2 + $0x30] sm:$0xff] %vm20_vm0, %v990_v2  ;;  %28 = vst.msk [vmem:[#allocation2 + $0x38] sm:$0xff] %vm20_vm0, %v990_v2  ;;  %v31_v7 = vld [vmem:[%s1371_s0 + $0x10] sm:$0xff]  ;;  %v32_v8 = vld [vmem:[%s1371_s0 + $0x18] sm:$0xff]  ;;  %s992_s0 = smov 8   ;;  %s1000_s16 = smov 124  }
   0x5   :  { %s1001_s17 = smov 4   ;;  %vm357_vm3 = vcmask 261120   ;;  %v79_v26 = vld [vmem:[%s1372_s1 + $0x8] sm:$0xff]  ;;  %v1002_v27 = vmov 0   ;;  %v86_v28 = vld [vmem:[%s1373_s2] sm:$0xff]  ;;  %v88_v30 = vld [vmem:[%s1373_s2 + $0x10] sm:$0xff] }
   0x6   :  { %55 = vrot.lane.b32.xlu0 %v34_v3, %s991_s22  ;;  %59 = vrot.lane.b32.xlu1 %v36_v4, %s991_s22  ;;  %v87_v29 = vld [vmem:[%s1373_s2 + $0x8] sm:$0xff]  ;;  %v89_v31 = vld [vmem:[%s1373_s2 + $0x18] sm:$0xff]  ;;  %vm216_vm4 = vcmask 130112   ;;  %s1003_s26 = smov 122   ;;  %s1004_s24 = smov 120  }
   0x7   :  { %901 = vmatprep.mubr.msk.f32.mxu0 %vm357_vm3, %v79_v26  ;;  %988 = vset.pattern.permute.xlu0 %v1002_v27 }
   0x8   :  { %989 = vset.pattern.permute.xlu1 %v1002_v27 }
   0xa   :  { %45 = vrot.lane.b32.xlu0 %v29_v5, %s991_s22  ;;  %47 = vrot.lane.b32.xlu1 %v30_v6, %s991_s22 }
   0xe   :  { %49 = vrot.lane.b32.xlu0 %v31_v7, %s991_s22  ;;  %51 = vrot.lane.b32.xlu1 %v32_v8, %s991_s22 }
  0x74   :  { %v54_v9 = vpop.permute.xlu0 %53  ;;  %v58_v10 = vpop.permute.xlu1 %57 }
  0x75   :  { %74 = vst.msk [vmem:[#allocation2 + $0x20] sm:$0xff] %vm69_vm1, %v54_v9  ;;  %76 = vst.msk [vmem:[#allocation2 + $0x30] sm:$0xff] %vm69_vm1, %v58_v10 }
  0x78   :  { %v56_v11 = vpop.permute.xlu0 %55  ;;  %v60_v12 = vpop.permute.xlu1 %59 }
  0x79   :  { %75 = vst.msk [vmem:[#allocation2 + $0x28] sm:$0xff] %vm69_vm1, %v56_v11  ;;  %77 = vst.msk [vmem:[#allocation2 + $0x38] sm:$0xff] %vm69_vm1, %v60_v12 }
  0x7c   :  { %v46_v13 = vpop.permute.xlu0 %45  ;;  %v196_v14 = vld [vmem:[#allocation2 + $0x20] sm:$0xff]  ;;  %v48_v15 = vpop.permute.xlu1 %47  ;;  %v198_v17 = vld [vmem:[#allocation2 + $0x30] sm:$0xff] }
  0x7d   :  { %70 = vst.msk [vmem:[#allocation2] sm:$0xff] %vm69_vm1, %v46_v13  ;;  %204 = vrot.lane.b32.xlu0 %v196_v14, %s992_s0  ;;  %71 = vst.msk [vmem:[#allocation2 + $0x8] sm:$0xff] %vm69_vm1, %v48_v15 }
  0x80   :  { %v197_v18 = vld [vmem:[#allocation2 + $0x28] sm:$0xff]  ;;  %v50_v19 = vpop.permute.xlu0 %49  ;;  %v52_v20 = vpop.permute.xlu1 %51  ;;  %v199_v21 = vld [vmem:[#allocation2 + $0x38] sm:$0xff] }
  0x81   :  { %206 = vrot.lane.b32.xlu1 %v197_v18, %s992_s0  ;;  %208 = vrot.lane.b32.xlu0 %v198_v17, %s992_s0  ;;  %72 = vst.msk [vmem:[#allocation2 + $0x10] sm:$0xff] %vm69_vm1, %v50_v19  ;;  %73 = vst.msk [vmem:[#allocation2 + $0x18] sm:$0xff] %vm69_vm1, %v52_v20 }
  0x84   :  { %v99_v22 = vld [vmem:[#allocation2] sm:$0xff]  ;;  %v100_v23 = vld [vmem:[#allocation2 + $0x8] sm:$0xff] }
  0x85   :  { %210 = vrot.lane.b32.xlu1 %v199_v21, %s992_s0  ;;  %107 = vrot.lane.b32.xlu0 %v99_v22, %s994_s10  ;;  %95 = vst.msk [vmem:[#allocation3] sm:$0xff] %vm94_vm2, %v99_v22  ;;  %96 = vst.msk [vmem:[#allocation3 + $0x8] sm:$0xff] %vm94_vm2, %v100_v23 }
  0x88   :  { %v101_v24 = vld [vmem:[#allocation2 + $0x10] sm:$0xff]  ;;  %v102_v25 = vld [vmem:[#allocation2 + $0x18] sm:$0xff] }
  0x89   :  { %109 = vrot.lane.b32.xlu1 %v100_v23, %s994_s10  ;;  %229 = vrot.lane.b32.xlu0 %v196_v14, %s995_s11  ;;  %97 = vst.msk [vmem:[#allocation3 + $0x10] sm:$0xff] %vm94_vm2, %v101_v24  ;;  %98 = vst.msk [vmem:[#allocation3 + $0x18] sm:$0xff] %vm94_vm2, %v102_v25 }
  0x8d   :  { %231 = vrot.lane.b32.xlu1 %v197_v18, %s995_s11  ;;  %111 = vrot.lane.b32.xlu0 %v101_v24, %s994_s10 }
  0x91   :  { %113 = vrot.lane.b32.xlu1 %v102_v25, %s994_s10  ;;  %233 = vrot.lane.b32.xlu0 %v198_v17, %s995_s11 }
  0x95   :  { %235 = vrot.lane.b32.xlu1 %v199_v21, %s995_s11  ;;  %131 = vrot.lane.b32.xlu0 %v99_v22, %s996_s12 }
  0x99   :  { %133 = vrot.lane.b32.xlu1 %v100_v23, %s996_s12  ;;  %253 = vrot.lane.b32.xlu0 %v196_v14, %s997_s13 }
  0x9d   :  { %255 = vrot.lane.b32.xlu1 %v197_v18, %s997_s13  ;;  %135 = vrot.lane.b32.xlu0 %v101_v24, %s996_s12 }
  0xa1   :  { %137 = vrot.lane.b32.xlu1 %v102_v25, %s996_s12  ;;  %257 = vrot.lane.b32.xlu0 %v198_v17, %s997_s13 }
  0xa5   :  { %259 = vrot.lane.b32.xlu1 %v199_v21, %s997_s13  ;;  %155 = vrot.lane.b32.xlu0 %v99_v22, %s998_s14 }
  0xa9   :  { %157 = vrot.lane.b32.xlu1 %v100_v23, %s998_s14  ;;  %277 = vrot.lane.b32.xlu0 %v196_v14, %s999_s15 }
  0xad   :  { %279 = vrot.lane.b32.xlu1 %v197_v18, %s999_s15  ;;  %159 = vrot.lane.b32.xlu0 %v101_v24, %s998_s14 }
  0xb1   :  { %161 = vrot.lane.b32.xlu1 %v102_v25, %s998_s14  ;;  %281 = vrot.lane.b32.xlu0 %v198_v17, %s999_s15 }
  0xb5   :  { %283 = vrot.lane.b32.xlu1 %v199_v21, %s999_s15  ;;  %179 = vrot.lane.b32.xlu0 %v99_v22, %s1000_s16 }
  0xb9   :  { %181 = vrot.lane.b32.xlu1 %v100_v23, %s1000_s16  ;;  %301 = vrot.lane.b32.xlu0 %v196_v14, %s1001_s17 }
  0xbd   :  { %303 = vrot.lane.b32.xlu1 %v197_v18, %s1001_s17  ;;  %183 = vrot.lane.b32.xlu0 %v101_v24, %s1000_s16 }
  0xc1   :  { %185 = vrot.lane.b32.xlu1 %v102_v25, %s1000_s16  ;;  %305 = vrot.lane.b32.xlu0 %v198_v17, %s1001_s17 }
  0xc5   :  { %307 = vrot.lane.b32.xlu1 %v199_v21, %s1001_s17  ;;  %339 = vperm.xlu0 %988, %v86_v28  }
  0xc9   :  { %344 = vperm.xlu1 %989, %v87_v29   ;;  %354 = vperm.xlu0 %988, %v89_v31  }
  0xcd   :  { %349 = vperm.xlu1 %989, %v88_v30  }
  0xef   :  { %v205_v32 = vpop.permute.xlu0 %204 }
  0xf0   :  { %217 = vst.msk [vmem:[#allocation3] sm:$0xff] %vm216_vm4, %v205_v32 }
  0xf3   :  { %v207_v33 = vpop.permute.xlu1 %206  ;;  %v209_v34 = vpop.permute.xlu0 %208 }
  0xf4   :  { %218 = vst.msk [vmem:[#allocation3 + $0x8] sm:$0xff] %vm216_vm4, %v207_v33  ;;  %219 = vst.msk [vmem:[#allocation3 + $0x10] sm:$0xff] %vm216_vm4, %v209_v34 }
  0xf7   :  { %v211_v35 = vpop.permute.xlu1 %210  ;;  %v108_v36 = vpop.permute.xlu0 %107  ;;  %v317_v39 = vld [vmem:[#allocation3] sm:$0xff] }
  0xf8   :  { %220 = vst.msk [vmem:[#allocation3 + $0x18] sm:$0xff] %vm216_vm4, %v211_v35  ;;  %v78_v35 = vld [vmem:[%s1372_s1] sm:$0xff] }
  0xf9   :  { %119 = vst.msk [vmem:[#allocation3 + $0x20] sm:$0xff] %vm94_vm2, %v108_v36  ;;  %v81_v36 = vld [vmem:[%s1372_s1 + $0x18] sm:$0xff] }
  0xfb   :  { %v110_v37 = vpop.permute.xlu1 %109  ;;  %v230_v38 = vpop.permute.xlu0 %229  ;;  %v318_v40 = vld [vmem:[#allocation3 + $0x8] sm:$0xff]  ;;  %v319_v44 = vld [vmem:[#allocation3 + $0x10] sm:$0xff] }
  0xfc   :  { %120 = vst.msk [vmem:[#allocation3 + $0x28] sm:$0xff] %vm94_vm2, %v110_v37  ;;  %v914_v41 = vpack.c.bf16 %v318_v40, %v317_v39  ;;  %v80_v37 = vld [vmem:[%s1372_s1 + $0x10] sm:$0xff]  ;;  %v82_v39 = vld [vmem:[%s1372_s1 + $0x20] sm:$0xff]  ;;  %v85_v40 = vld [vmem:[%s1372_s1 + $0x38] sm:$0xff] }
  0xfd   :  { %241 = vst.msk [vmem:[#allocation3 + $0x20] sm:$0xff] %vm216_vm4, %v230_v38  ;;  %v83_v38 = vld [vmem:[%s1372_s1 + $0x28] sm:$0xff] }
  0xfe   :  { %915 = vmatpush1.bf16.msra.mxu0 %v914_v41  ;;  %v84_v41 = vld [vmem:[%s1372_s1 + $0x30] sm:$0xff] }
  0xff   :  { %v232_v42 = vpop.permute.xlu1 %231  ;;  %v112_v43 = vpop.permute.xlu0 %111  ;;  %916 = vmatprep.subr.bf16.mxu0 %v993_v16  ;;  %v320_v45 = vld [vmem:[#allocation3 + $0x18] sm:$0xff] }
 0x100   :  { %242 = vst.msk [vmem:[#allocation3 + $0x28] sm:$0xff] %vm216_vm4, %v232_v42  ;;  %v917_v46 = vpack.c.bf16 %v320_v45, %v319_v44 }
 0x101   :  { %121 = vst.msk [vmem:[#allocation3 + $0x30] sm:$0xff] %vm94_vm2, %v112_v43 }
 0x102   :  { %918 = vmatpush1.bf16.msra.mxu0 %v917_v46 }
 0x103   :  { %v114_v47 = vpop.permute.xlu1 %113  ;;  %v234_v48 = vpop.permute.xlu0 %233  ;;  %919 = vmatprep.subr.bf16.mxu0 %v993_v16 }
 0x104   :  { %122 = vst.msk [vmem:[#allocation3 + $0x38] sm:$0xff] %vm94_vm2, %v114_v47  ;;  %v321_v51 = vld [vmem:[#allocation3 + $0x20] sm:$0xff] }
 0x105   :  { %243 = vst.msk [vmem:[#allocation3 + $0x30] sm:$0xff] %vm216_vm4, %v234_v48 }
 0x107   :  { %v236_v49 = vpop.permute.xlu1 %235  ;;  %v132_v50 = vpop.permute.xlu0 %131  ;;  %v322_v52 = vld [vmem:[#allocation3 + $0x28] sm:$0xff] }
 0x108   :  { %244 = vst.msk [vmem:[#allocation3 + $0x38] sm:$0xff] %vm216_vm4, %v236_v49  ;;  %v920_v53 = vpack.c.bf16 %v322_v52, %v321_v51 }
 0x109   :  { %143 = vst.msk [vmem:[#allocation3 + $0x40] sm:$0xff] %vm94_vm2, %v132_v50 }
 0x10a   :  { %921 = vmatpush1.bf16.msra.mxu0 %v920_v53 }
 0x10b   :  { %v134_v54 = vpop.permute.xlu1 %133  ;;  %v254_v55 = vpop.permute.xlu0 %253  ;;  %922 = vmatprep.subr.bf16.mxu0 %v993_v16 }
 0x10c   :  { %144 = vst.msk [vmem:[#allocation3 + $0x48] sm:$0xff] %vm94_vm2, %v134_v54  ;;  %v323_v58 = vld [vmem:[#allocation3 + $0x30] sm:$0xff] }
 0x10d   :  { %265 = vst.msk [vmem:[#allocation3 + $0x40] sm:$0xff] %vm216_vm4, %v254_v55 }
 0x10f   :  { %v256_v56 = vpop.permute.xlu1 %255  ;;  %v136_v57 = vpop.permute.xlu0 %135  ;;  %v324_v59 = vld [vmem:[#allocation3 + $0x38] sm:$0xff] }
 0x110   :  { %266 = vst.msk [vmem:[#allocation3 + $0x48] sm:$0xff] %vm216_vm4, %v256_v56  ;;  %v923_v60 = vpack.c.bf16 %v324_v59, %v323_v58 }
 0x111   :  { %145 = vst.msk [vmem:[#allocation3 + $0x50] sm:$0xff] %vm94_vm2, %v136_v57 }
 0x112   :  { %924 = vmatpush1.bf16.msra.mxu0 %v923_v60 }
 0x113   :  { %v138_v61 = vpop.permute.xlu1 %137  ;;  %v258_v62 = vpop.permute.xlu0 %257  ;;  %925 = vmatprep.subr.bf16.mxu0 %v993_v16 }
 0x114   :  { %146 = vst.msk [vmem:[#allocation3 + $0x58] sm:$0xff] %vm94_vm2, %v138_v61  ;;  %v325_v1 = vld [vmem:[#allocation3 + $0x40] sm:$0xff] }
 0x115   :  { %267 = vst.msk [vmem:[#allocation3 + $0x50] sm:$0xff] %vm216_vm4, %v258_v62 }
 0x117   :  { %v260_v63 = vpop.permute.xlu1 %259  ;;  %v156_v0 = vpop.permute.xlu0 %155  ;;  %v326_v2 = vld [vmem:[#allocation3 + $0x48] sm:$0xff] }
 0x118   :  { %268 = vst.msk [vmem:[#allocation3 + $0x58] sm:$0xff] %vm216_vm4, %v260_v63  ;;  %v926_v3 = vpack.c.bf16 %v326_v2, %v325_v1 }
 0x119   :  { %167 = vst.msk [vmem:[#allocation3 + $0x60] sm:$0xff] %vm94_vm2, %v156_v0 }
 0x11a   :  { %927 = vmatpush1.bf16.msra.mxu0 %v926_v3 }
 0x11b   :  { %v158_v4 = vpop.permute.xlu1 %157  ;;  %v278_v5 = vpop.permute.xlu0 %277  ;;  %928 = vmatprep.subr.bf16.mxu0 %v993_v16 }
 0x11c   :  { %168 = vst.msk [vmem:[#allocation3 + $0x68] sm:$0xff] %vm94_vm2, %v158_v4  ;;  %v327_v8 = vld [vmem:[#allocation3 + $0x50] sm:$0xff] }
 0x11d   :  { %289 = vst.msk [vmem:[#allocation3 + $0x60] sm:$0xff] %vm216_vm4, %v278_v5 }
 0x11f   :  { %v280_v6 = vpop.permute.xlu1 %279  ;;  %v160_v7 = vpop.permute.xlu0 %159  ;;  %v328_v9 = vld [vmem:[#allocation3 + $0x58] sm:$0xff] }
 0x120   :  { %290 = vst.msk [vmem:[#allocation3 + $0x68] sm:$0xff] %vm216_vm4, %v280_v6  ;;  %v929_v10 = vpack.c.bf16 %v328_v9, %v327_v8 }
 0x121   :  { %169 = vst.msk [vmem:[#allocation3 + $0x70] sm:$0xff] %vm94_vm2, %v160_v7 }
 0x122   :  { %930 = vmatpush1.bf16.msra.mxu0 %v929_v10 }
 0x123   :  { %v162_v11 = vpop.permute.xlu1 %161  ;;  %v282_v12 = vpop.permute.xlu0 %281  ;;  %931 = vmatprep.subr.bf16.mxu0 %v993_v16 }
 0x124   :  { %170 = vst.msk [vmem:[#allocation3 + $0x78] sm:$0xff] %vm94_vm2, %v162_v11  ;;  %v329_v15 = vld [vmem:[#allocation3 + $0x60] sm:$0xff] }
 0x125   :  { %291 = vst.msk [vmem:[#allocation3 + $0x70] sm:$0xff] %vm216_vm4, %v282_v12 }
 0x127   :  { %v284_v13 = vpop.permute.xlu1 %283  ;;  %v180_v14 = vpop.permute.xlu0 %179  ;;  %v330_v17 = vld [vmem:[#allocation3 + $0x68] sm:$0xff] }
 0x128   :  { %292 = vst.msk [vmem:[#allocation3 + $0x78] sm:$0xff] %vm216_vm4, %v284_v13  ;;  %v932_v18 = vpack.c.bf16 %v330_v17, %v329_v15  ;;  %v496_v15 = vld [vmem:[%s1375_s3 + $0x8] sm:$0xff]  ;;  %v505_v17 = vld [vmem:[%s1374_s4 + $0x10] sm:$0xff] }
 0x129   :  { %191 = vst.msk [vmem:[#allocation3 + $0x80] sm:$0xff] %vm94_vm2, %v180_v14  ;;  %v503_v14 = vld [vmem:[%s1374_s4] sm:$0xff]  ;;  %905 = vmatprep.mubr.msk.f32.mxu1 %vm357_vm3, %v496_v15 }
 0x12a   :  { %933 = vmatpush1.bf16.msra.mxu0 %v932_v18  ;;  %v504_v18 = vld [vmem:[%s1374_s4 + $0x8] sm:$0xff] }
 0x12b   :  { %v182_v19 = vpop.permute.xlu1 %181  ;;  %v302_v20 = vpop.permute.xlu0 %301  ;;  %934 = vmatprep.subr.bf16.mxu0 %v993_v16 }
 0x12c   :  { %192 = vst.msk [vmem:[#allocation3 + $0x88] sm:$0xff] %vm94_vm2, %v182_v19  ;;  %v331_v23 = vld [vmem:[#allocation3 + $0x70] sm:$0xff]  ;;  %v506_v19 = vld [vmem:[%s1374_s4 + $0x18] sm:$0xff] }
 0x12d   :  { %313 = vst.msk [vmem:[#allocation3 + $0x80] sm:$0xff] %vm216_vm4, %v302_v20 }
 0x12f   :  { %v304_v21 = vpop.permute.xlu1 %303  ;;  %v184_v22 = vpop.permute.xlu0 %183  ;;  %v332_v24 = vld [vmem:[#allocation3 + $0x78] sm:$0xff] }
 0x130   :  { %314 = vst.msk [vmem:[#allocation3 + $0x88] sm:$0xff] %vm216_vm4, %v304_v21  ;;  %v935_v25 = vpack.c.bf16 %v332_v24, %v331_v23 }
 0x131   :  { %193 = vst.msk [vmem:[#allocation3 + $0x90] sm:$0xff] %vm94_vm2, %v184_v22 }
 0x132   :  { %936 = vmatpush1.bf16.msra.mxu0 %v935_v25 }
 0x133   :  { %v186_v26 = vpop.permute.xlu1 %185  ;;  %v306_v27 = vpop.permute.xlu0 %305  ;;  %937 = vmatprep.subr.bf16.mxu0 %v993_v16 }
 0x134   :  { %194 = vst.msk [vmem:[#allocation3 + $0x98] sm:$0xff] %vm94_vm2, %v186_v26  ;;  %v333_v29 = vld [vmem:[#allocation3 + $0x80] sm:$0xff] }
 0x135   :  { %315 = vst.msk [vmem:[#allocation3 + $0x90] sm:$0xff] %vm216_vm4, %v306_v27 }
 0x137   :  { %v308_v28 = vpop.permute.xlu1 %307  ;;  %v334_v30 = vld [vmem:[#allocation3 + $0x88] sm:$0xff] }
 0x138   :  { %316 = vst.msk [vmem:[#allocation3 + $0x98] sm:$0xff] %vm216_vm4, %v308_v28  ;;  %v938_v31 = vpack.c.bf16 %v334_v30, %v333_v29 }
 0x13a   :  { %939 = vmatpush1.bf16.msra.mxu0 %v938_v31 }
 0x13b   :  { %940 = vmatprep.subr.bf16.mxu0 %v993_v16 }
 0x13c   :  { %v335_v32 = vld [vmem:[#allocation3 + $0x90] sm:$0xff] }
 0x13f   :  { %v336_v33 = vld [vmem:[#allocation3 + $0x98] sm:$0xff] }
 0x140   :  { %v941_v34 = vpack.c.bf16 %v336_v33, %v335_v32 }
 0x142   :  { %942 = vmatpush1.bf16.msra.mxu0 %v941_v34 }
 0x144   :  { %v340_v42 = vpop.permute.xlu0 %339 }
 0x145   :  { %435 = vmatmul.mubr.f32.vlgmr.msra.gmra.mrb[0].mxu0 %v78_v35 }
 0x146   :  { %902 = vmatprep.mubr.msk.f32.mxu0 %vm357_vm3, %v81_v36 }
 0x148   :  { %v345_v44 = vpop.permute.xlu1 %344  ;;  %v355_v57 = vpop.permute.xlu0 %354 }
 0x149   :  { %440 = vmatmul.mubr.f32.gmra.mrb[2].mxu0 %v80_v37 }
 0x14a   :  { %903 = vmatprep.mubr.msk.f32.mxu0 %vm357_vm3, %v83_v38 }
 0x14c   :  { %v350_v51 = vpop.permute.xlu1 %349 }
 0x14d   :  { %445 = vmatmul.mubr.f32.gmra.mrb[4].mxu0 %v82_v39 }
 0x14e   :  { %904 = vmatprep.mubr.msk.f32.mxu0 %vm357_vm3, %v85_v40 }
 0x151   :  { %450 = vmatmul.mubr.f32.gmra.mrb[6].mxu0 %v84_v41 }
 0x218   :  { %v436_v43 = vpop.f32.mrb[0].mxu0 }
 0x219   :  { %v437_v45 = vadd.f32 %v436_v43, %v340_v42  ;;  %v438_v46 = vpop.f32.mrb[1].mxu0 }
 0x21b   :  { %v455_v47 = vmax.f32 %v437_v45, 0.0 }
 0x21c   :  { %v441_v48 = vpop.f32.mrb[2].mxu0 }
 0x21d   :  { %v442_v49 = vadd.f32 %v441_v48, %v345_v44  ;;  %v443_v50 = vpop.f32.mrb[3].mxu0  ;;  %479 = vrot.lane.b32.xlu1 %v455_v47, %s1003_s26 }
 0x21f   :  { %v456_v52 = vmax.f32 %v442_v49, 0.0 }
 0x220   :  { %v446_v53 = vpop.f32.mrb[4].mxu0 }
 0x221   :  { %v447_v54 = vadd.f32 %v446_v53, %v350_v51  ;;  %v448_v55 = vpop.f32.mrb[5].mxu0  ;;  %481 = vrot.lane.b32.xlu0 %v456_v52, %s1003_s26 }
 0x223   :  { %v457_v56 = vmax.f32 %v447_v54, 0.0 }
 0x224   :  { %v451_v58 = vpop.f32.mrb[6].mxu0 }
 0x225   :  { %v452_v59 = vadd.f32 %v451_v58, %v355_v57  ;;  %v453_v60 = vpop.f32.mrb[7].mxu0  ;;  %483 = vrot.lane.b32.xlu1 %v457_v56, %s1003_s26 }
 0x227   :  { %v458_v61 = vmax.f32 %v452_v59, 0.0 }
 0x229   :  { %463 = vrot.lane.b32.xlu1 %v455_v47, %s991_s22  ;;  %485 = vrot.lane.b32.xlu0 %v458_v61, %s1003_s26 }
 0x22d   :  { %467 = vrot.lane.b32.xlu1 %v457_v56, %s991_s22  ;;  %465 = vrot.lane.b32.xlu0 %v456_v52, %s991_s22 }
 0x231   :  { %469 = vrot.lane.b32.xlu0 %v458_v61, %s991_s22 }
 0x28f   :  { %v480_v62 = vpop.permute.xlu1 %479 }
 0x290   :  { %491 = vst.msk [vmem:[#allocation2 + $0x20] sm:$0xff] %vm69_vm1, %v480_v62 }
 0x293   :  { %v482_v63 = vpop.permute.xlu0 %481 }
 0x294   :  { %492 = vst.msk [vmem:[#allocation2 + $0x28] sm:$0xff] %vm69_vm1, %v482_v63 }
 0x297   :  { %v484_v0 = vpop.permute.xlu1 %483  ;;  %v611_v1 = vld [vmem:[#allocation2 + $0x20] sm:$0xff] }
 0x298   :  { %493 = vst.msk [vmem:[#allocation2 + $0x30] sm:$0xff] %vm69_vm1, %v484_v0  ;;  %619 = vrot.lane.b32.xlu1 %v611_v1, %s992_s0 }
 0x29b   :  { %v464_v2 = vpop.permute.xlu1 %463  ;;  %v486_v3 = vpop.permute.xlu0 %485  ;;  %v612_v4 = vld [vmem:[#allocation2 + $0x28] sm:$0xff] }
 0x29c   :  { %475 = vst.msk [vmem:[#allocation2] sm:$0xff] %vm69_vm1, %v464_v2  ;;  %494 = vst.msk [vmem:[#allocation2 + $0x38] sm:$0xff] %vm69_vm1, %v486_v3  ;;  %621 = vrot.lane.b32.xlu0 %v612_v4, %s992_s0 }
 0x29f   :  { %v468_v5 = vpop.permute.xlu1 %467  ;;  %v466_v6 = vpop.permute.xlu0 %465  ;;  %v613_v12 = vld [vmem:[#allocation2 + $0x30] sm:$0xff] }
 0x2a0   :  { %477 = vst.msk [vmem:[#allocation2 + $0x10] sm:$0xff] %vm69_vm1, %v468_v5  ;;  %476 = vst.msk [vmem:[#allocation2 + $0x8] sm:$0xff] %vm69_vm1, %v466_v6 }
 0x2a3   :  { %v470_v7 = vpop.permute.xlu0 %469  ;;  %v515_v8 = vld [vmem:[#allocation2] sm:$0xff]  ;;  %v614_v13 = vld [vmem:[#allocation2 + $0x38] sm:$0xff] }
 0x2a4   :  { %478 = vst.msk [vmem:[#allocation2 + $0x18] sm:$0xff] %vm69_vm1, %v470_v7  ;;  %523 = vrot.lane.b32.xlu1 %v515_v8, %s994_s10 }
 0x2a5   :  { %511 = vst.msk [vmem:[#allocation3] sm:$0xff] %vm94_vm2, %v515_v8 }
 0x2a7   :  { %v516_v9 = vld [vmem:[#allocation2 + $0x8] sm:$0xff]  ;;  %v517_v10 = vld [vmem:[#allocation2 + $0x10] sm:$0xff] }
 0x2a8   :  { %643 = vrot.lane.b32.xlu1 %v611_v1, %s995_s11  ;;  %525 = vrot.lane.b32.xlu0 %v516_v9, %s994_s10  ;;  %512 = vst.msk [vmem:[#allocation3 + $0x8] sm:$0xff] %vm94_vm2, %v516_v9  ;;  %513 = vst.msk [vmem:[#allocation3 + $0x10] sm:$0xff] %vm94_vm2, %v517_v10 }
 0x2ab   :  { %v518_v11 = vld [vmem:[#allocation2 + $0x18] sm:$0xff] }
 0x2ac   :  { %547 = vrot.lane.b32.xlu1 %v515_v8, %s996_s12  ;;  %645 = vrot.lane.b32.xlu0 %v612_v4, %s995_s11  ;;  %514 = vst.msk [vmem:[#allocation3 + $0x18] sm:$0xff] %vm94_vm2, %v518_v11 }
 0x2b0   :  { %667 = vrot.lane.b32.xlu1 %v611_v1, %s997_s13  ;;  %549 = vrot.lane.b32.xlu0 %v516_v9, %s996_s12 }
 0x2b4   :  { %571 = vrot.lane.b32.xlu1 %v515_v8, %s998_s14  ;;  %669 = vrot.lane.b32.xlu0 %v612_v4, %s997_s13 }
 0x2b8   :  { %691 = vrot.lane.b32.xlu1 %v611_v1, %s999_s15  ;;  %573 = vrot.lane.b32.xlu0 %v516_v9, %s998_s14 }
 0x2bc   :  { %595 = vrot.lane.b32.xlu1 %v515_v8, %s1000_s16  ;;  %693 = vrot.lane.b32.xlu0 %v612_v4, %s999_s15 }
 0x2c0   :  { %715 = vrot.lane.b32.xlu1 %v611_v1, %s1001_s17  ;;  %597 = vrot.lane.b32.xlu0 %v516_v9, %s1000_s16 }
 0x2c4   :  { %623 = vrot.lane.b32.xlu1 %v613_v12, %s992_s0  ;;  %717 = vrot.lane.b32.xlu0 %v612_v4, %s1001_s17 }
 0x2c8   :  { %527 = vrot.lane.b32.xlu1 %v517_v10, %s994_s10  ;;  %625 = vrot.lane.b32.xlu0 %v614_v13, %s992_s0 }
 0x2cc   :  { %647 = vrot.lane.b32.xlu1 %v613_v12, %s995_s11  ;;  %529 = vrot.lane.b32.xlu0 %v518_v11, %s994_s10 }
 0x2d0   :  { %551 = vrot.lane.b32.xlu1 %v517_v10, %s996_s12  ;;  %649 = vrot.lane.b32.xlu0 %v614_v13, %s995_s11 }
 0x2d4   :  { %671 = vrot.lane.b32.xlu1 %v613_v12, %s997_s13  ;;  %553 = vrot.lane.b32.xlu0 %v518_v11, %s996_s12 }
 0x2d8   :  { %575 = vrot.lane.b32.xlu1 %v517_v10, %s998_s14  ;;  %673 = vrot.lane.b32.xlu0 %v614_v13, %s997_s13 }
 0x2dc   :  { %695 = vrot.lane.b32.xlu1 %v613_v12, %s999_s15  ;;  %577 = vrot.lane.b32.xlu0 %v518_v11, %s998_s14 }
 0x2e0   :  { %599 = vrot.lane.b32.xlu1 %v517_v10, %s1000_s16  ;;  %697 = vrot.lane.b32.xlu0 %v614_v13, %s999_s15 }
 0x2e4   :  { %719 = vrot.lane.b32.xlu1 %v613_v12, %s1001_s17  ;;  %601 = vrot.lane.b32.xlu0 %v518_v11, %s1000_s16 }
 0x2e8   :  { %753 = vperm.xlu1 %989, %v503_v14   ;;  %721 = vrot.lane.b32.xlu0 %v614_v13, %s1001_s17 }
 0x2ec   :  { %763 = vperm.xlu1 %989, %v505_v17   ;;  %758 = vperm.xlu0 %988, %v504_v18  }
 0x2f0   :  { %768 = vperm.xlu0 %988, %v506_v19  }
 0x30a   :  { %v620_v20 = vpop.permute.xlu1 %619 }
 0x30b   :  { %631 = vst.msk [vmem:[#allocation3] sm:$0xff] %vm216_vm4, %v620_v20 }
 0x30e   :  { %v622_v21 = vpop.permute.xlu0 %621 }
 0x30f   :  { %632 = vst.msk [vmem:[#allocation3 + $0x8] sm:$0xff] %vm216_vm4, %v622_v21 }
 0x312   :  { %v731_v23 = vld [vmem:[#allocation3] sm:$0xff] }
 0x316   :  { %v524_v22 = vpop.permute.xlu1 %523  ;;  %v732_v24 = vld [vmem:[#allocation3 + $0x8] sm:$0xff] }
 0x317   :  { %535 = vst.msk [vmem:[#allocation3 + $0x20] sm:$0xff] %vm94_vm2, %v524_v22  ;;  %v944_v25 = vpack.c.bf16 %v732_v24, %v731_v23  ;;  %v495_v23 = vld [vmem:[%s1375_s3] sm:$0xff]  ;;  %v498_v24 = vld [vmem:[%s1375_s3 + $0x18] sm:$0xff] }
 0x319   :  { %945 = vmatpush1.bf16.msra.mxu1 %v944_v25  ;;  %v497_v25 = vld [vmem:[%s1375_s3 + $0x10] sm:$0xff] }
 0x31a   :  { %v644_v26 = vpop.permute.xlu1 %643  ;;  %v526_v27 = vpop.permute.xlu0 %525  ;;  %946 = vmatprep.subr.bf16.mxu1 %v993_v16 }
 0x31b   :  { %655 = vst.msk [vmem:[#allocation3 + $0x20] sm:$0xff] %vm216_vm4, %v644_v26  ;;  %v499_v26 = vld [vmem:[%s1375_s3 + $0x20] sm:$0xff] }
 0x31c   :  { %536 = vst.msk [vmem:[#allocation3 + $0x28] sm:$0xff] %vm94_vm2, %v526_v27  ;;  %v502_v27 = vld [vmem:[%s1375_s3 + $0x38] sm:$0xff] }
 0x31e   :  { %v548_v28 = vpop.permute.xlu1 %547  ;;  %v646_v29 = vpop.permute.xlu0 %645 }
 0x31f   :  { %559 = vst.msk [vmem:[#allocation3 + $0x40] sm:$0xff] %vm94_vm2, %v548_v28  ;;  %v501_v28 = vld [vmem:[%s1375_s3 + $0x30] sm:$0xff] }
 0x320   :  { %656 = vst.msk [vmem:[#allocation3 + $0x28] sm:$0xff] %vm216_vm4, %v646_v29 }
 0x322   :  { %v668_v30 = vpop.permute.xlu1 %667  ;;  %v550_v31 = vpop.permute.xlu0 %549  ;;  %v735_v54 = vld [vmem:[#allocation3 + $0x20] sm:$0xff] }
 0x323   :  { %679 = vst.msk [vmem:[#allocation3 + $0x40] sm:$0xff] %vm216_vm4, %v668_v30 }
 0x324   :  { %560 = vst.msk [vmem:[#allocation3 + $0x48] sm:$0xff] %vm94_vm2, %v550_v31 }
 0x326   :  { %v572_v32 = vpop.permute.xlu1 %571  ;;  %v670_v33 = vpop.permute.xlu0 %669 }
 0x327   :  { %583 = vst.msk [vmem:[#allocation3 + $0x60] sm:$0xff] %vm94_vm2, %v572_v32  ;;  %v736_v51 = vld [vmem:[#allocation3 + $0x28] sm:$0xff] }
 0x328   :  { %680 = vst.msk [vmem:[#allocation3 + $0x48] sm:$0xff] %vm216_vm4, %v670_v33  ;;  %v950_v55 = vpack.c.bf16 %v736_v51, %v735_v54 }
 0x32a   :  { %v692_v34 = vpop.permute.xlu1 %691  ;;  %v574_v35 = vpop.permute.xlu0 %573  ;;  %v739_v0 = vld [vmem:[#allocation3 + $0x40] sm:$0xff] }
 0x32b   :  { %703 = vst.msk [vmem:[#allocation3 + $0x60] sm:$0xff] %vm216_vm4, %v692_v34 }
 0x32c   :  { %584 = vst.msk [vmem:[#allocation3 + $0x68] sm:$0xff] %vm94_vm2, %v574_v35 }
 0x32e   :  { %v596_v36 = vpop.permute.xlu1 %595  ;;  %v694_v37 = vpop.permute.xlu0 %693 }
 0x32f   :  { %607 = vst.msk [vmem:[#allocation3 + $0x80] sm:$0xff] %vm94_vm2, %v596_v36  ;;  %v740_v61 = vld [vmem:[#allocation3 + $0x48] sm:$0xff] }
 0x330   :  { %704 = vst.msk [vmem:[#allocation3 + $0x68] sm:$0xff] %vm216_vm4, %v694_v37  ;;  %v956_v1 = vpack.c.bf16 %v740_v61, %v739_v0 }
 0x332   :  { %v716_v38 = vpop.permute.xlu1 %715  ;;  %v598_v39 = vpop.permute.xlu0 %597  ;;  %v743_v10 = vld [vmem:[#allocation3 + $0x60] sm:$0xff] }
 0x333   :  { %727 = vst.msk [vmem:[#allocation3 + $0x80] sm:$0xff] %vm216_vm4, %v716_v38 }
 0x334   :  { %608 = vst.msk [vmem:[#allocation3 + $0x88] sm:$0xff] %vm94_vm2, %v598_v39 }
 0x336   :  { %v624_v40 = vpop.permute.xlu1 %623  ;;  %v718_v41 = vpop.permute.xlu0 %717 }
 0x337   :  { %633 = vst.msk [vmem:[#allocation3 + $0x10] sm:$0xff] %vm216_vm4, %v624_v40  ;;  %728 = vst.msk [vmem:[#allocation3 + $0x88] sm:$0xff] %vm216_vm4, %v718_v41  ;;  %v744_v7 = vld [vmem:[#allocation3 + $0x68] sm:$0xff] }
 0x338   :  { %v962_v11 = vpack.c.bf16 %v744_v7, %v743_v10 }
 0x33a   :  { %v528_v42 = vpop.permute.xlu1 %527  ;;  %v626_v43 = vpop.permute.xlu0 %625  ;;  %v747_v18 = vld [vmem:[#allocation3 + $0x80] sm:$0xff] }
 0x33b   :  { %537 = vst.msk [vmem:[#allocation3 + $0x30] sm:$0xff] %vm94_vm2, %v528_v42 }
 0x33c   :  { %634 = vst.msk [vmem:[#allocation3 + $0x18] sm:$0xff] %vm216_vm4, %v626_v43 }
 0x33e   :  { %v648_v44 = vpop.permute.xlu1 %647  ;;  %v530_v45 = vpop.permute.xlu0 %529  ;;  %v733_v48 = vld [vmem:[#allocation3 + $0x10] sm:$0xff]  ;;  %v748_v17 = vld [vmem:[#allocation3 + $0x88] sm:$0xff] }
 0x33f   :  { %657 = vst.msk [vmem:[#allocation3 + $0x30] sm:$0xff] %vm216_vm4, %v648_v44  ;;  %v968_v19 = vpack.c.bf16 %v748_v17, %v747_v18 }
 0x340   :  { %538 = vst.msk [vmem:[#allocation3 + $0x38] sm:$0xff] %vm94_vm2, %v530_v45 }
 0x342   :  { %v552_v46 = vpop.permute.xlu1 %551  ;;  %v650_v47 = vpop.permute.xlu0 %649 }
 0x343   :  { %v734_v49 = vld [vmem:[#allocation3 + $0x18] sm:$0xff]  ;;  %561 = vst.msk [vmem:[#allocation3 + $0x50] sm:$0xff] %vm94_vm2, %v552_v46 }
 0x344   :  { %658 = vst.msk [vmem:[#allocation3 + $0x38] sm:$0xff] %vm216_vm4, %v650_v47  ;;  %v947_v50 = vpack.c.bf16 %v734_v49, %v733_v48 }
 0x346   :  { %948 = vmatpush1.bf16.msra.mxu1 %v947_v50  ;;  %v672_v52 = vpop.permute.xlu1 %671  ;;  %v554_v53 = vpop.permute.xlu0 %553  ;;  %v737_v58 = vld [vmem:[#allocation3 + $0x30] sm:$0xff] }
 0x347   :  { %949 = vmatprep.subr.bf16.mxu1 %v993_v16  ;;  %681 = vst.msk [vmem:[#allocation3 + $0x50] sm:$0xff] %vm216_vm4, %v672_v52 }
 0x348   :  { %562 = vst.msk [vmem:[#allocation3 + $0x58] sm:$0xff] %vm94_vm2, %v554_v53 }
 0x34a   :  { %951 = vmatpush1.bf16.msra.mxu1 %v950_v55  ;;  %v576_v56 = vpop.permute.xlu1 %575  ;;  %v674_v57 = vpop.permute.xlu0 %673 }
 0x34b   :  { %952 = vmatprep.subr.bf16.mxu1 %v993_v16  ;;  %v738_v59 = vld [vmem:[#allocation3 + $0x38] sm:$0xff]  ;;  %585 = vst.msk [vmem:[#allocation3 + $0x70] sm:$0xff] %vm94_vm2, %v576_v56 }
 0x34c   :  { %682 = vst.msk [vmem:[#allocation3 + $0x58] sm:$0xff] %vm216_vm4, %v674_v57  ;;  %v953_v60 = vpack.c.bf16 %v738_v59, %v737_v58 }
 0x34e   :  { %954 = vmatpush1.bf16.msra.mxu1 %v953_v60  ;;  %v696_v62 = vpop.permute.xlu1 %695  ;;  %v578_v63 = vpop.permute.xlu0 %577  ;;  %v741_v4 = vld [vmem:[#allocation3 + $0x50] sm:$0xff] }
 0x34f   :  { %955 = vmatprep.subr.bf16.mxu1 %v993_v16  ;;  %705 = vst.msk [vmem:[#allocation3 + $0x70] sm:$0xff] %vm216_vm4, %v696_v62 }
 0x350   :  { %586 = vst.msk [vmem:[#allocation3 + $0x78] sm:$0xff] %vm94_vm2, %v578_v63 }
 0x352   :  { %957 = vmatpush1.bf16.msra.mxu1 %v956_v1  ;;  %v600_v2 = vpop.permute.xlu1 %599  ;;  %v698_v3 = vpop.permute.xlu0 %697 }
 0x353   :  { %958 = vmatprep.subr.bf16.mxu1 %v993_v16  ;;  %v742_v5 = vld [vmem:[#allocation3 + $0x58] sm:$0xff]  ;;  %609 = vst.msk [vmem:[#allocation3 + $0x90] sm:$0xff] %vm94_vm2, %v600_v2 }
 0x354   :  { %706 = vst.msk [vmem:[#allocation3 + $0x78] sm:$0xff] %vm216_vm4, %v698_v3  ;;  %v959_v6 = vpack.c.bf16 %v742_v5, %v741_v4 }
 0x356   :  { %960 = vmatpush1.bf16.msra.mxu1 %v959_v6  ;;  %v720_v8 = vpop.permute.xlu1 %719  ;;  %v602_v9 = vpop.permute.xlu0 %601  ;;  %v745_v13 = vld [vmem:[#allocation3 + $0x70] sm:$0xff] }
 0x357   :  { %961 = vmatprep.subr.bf16.mxu1 %v993_v16  ;;  %729 = vst.msk [vmem:[#allocation3 + $0x90] sm:$0xff] %vm216_vm4, %v720_v8 }
 0x358   :  { %610 = vst.msk [vmem:[#allocation3 + $0x98] sm:$0xff] %vm94_vm2, %v602_v9 }
 0x35a   :  { %963 = vmatpush1.bf16.msra.mxu1 %v962_v11  ;;  %v722_v12 = vpop.permute.xlu0 %721 }
 0x35b   :  { %964 = vmatprep.subr.bf16.mxu1 %v993_v16  ;;  %v746_v14 = vld [vmem:[#allocation3 + $0x78] sm:$0xff]  ;;  %730 = vst.msk [vmem:[#allocation3 + $0x98] sm:$0xff] %vm216_vm4, %v722_v12 }
 0x35c   :  { %v965_v15 = vpack.c.bf16 %v746_v14, %v745_v13 }
 0x35e   :  { %966 = vmatpush1.bf16.msra.mxu1 %v965_v15  ;;  %v749_v20 = vld [vmem:[#allocation3 + $0x90] sm:$0xff] }
 0x35f   :  { %967 = vmatprep.subr.bf16.mxu1 %v993_v16 }
 0x362   :  { %969 = vmatpush1.bf16.msra.mxu1 %v968_v19  ;;  %v750_v21 = vld [vmem:[#allocation3 + $0x98] sm:$0xff] }
 0x363   :  { %970 = vmatprep.subr.bf16.mxu1 %v993_v16  ;;  %v971_v22 = vpack.c.bf16 %v750_v21, %v749_v20  ;;  %v500_v16 = vld [vmem:[%s1375_s3 + $0x28] sm:$0xff] }
 0x366   :  { %972 = vmatpush1.bf16.msra.mxu1 %v971_v22 }
 0x367   :  { %v754_v29 = vpop.permute.xlu1 %753 }
 0x369   :  { %848 = vmatmul.mubr.f32.vlgmr.msra.gmra.mrb[0].mxu1 %v495_v23 }
 0x36a   :  { %906 = vmatprep.mubr.msk.f32.mxu1 %vm357_vm3, %v498_v24 }
 0x36b   :  { %v759_v34 = vpop.permute.xlu0 %758  ;;  %v764_v39 = vpop.permute.xlu1 %763 }
 0x36d   :  { %853 = vmatmul.mubr.f32.gmra.mrb[2].mxu1 %v497_v25 }
 0x36e   :  { %907 = vmatprep.mubr.msk.f32.mxu1 %vm357_vm3, %v500_v16 }
 0x36f   :  { %v769_v44 = vpop.permute.xlu0 %768 }
 0x371   :  { %858 = vmatmul.mubr.f32.gmra.mrb[4].mxu1 %v499_v26 }
 0x372   :  { %908 = vmatprep.mubr.msk.f32.mxu1 %vm357_vm3, %v502_v27 }
 0x375   :  { %863 = vmatmul.mubr.f32.gmra.mrb[6].mxu1 %v501_v28 }
 0x43c   :  { %v849_v30 = vpop.f32.mrb[0].mxu1 }
 0x43d   :  { %v850_v31 = vadd.f32 %v849_v30, %v754_v29  ;;  %v851_v32 = vpop.f32.mrb[1].mxu1 }
 0x43f   :  { %v868_v33 = vmax.f32 %v850_v31, 0.0 }
 0x440   :  { %v854_v35 = vpop.f32.mrb[2].mxu1 }
 0x441   :  { %872 = vst.msk [vmem:[%s1376_s5] sm:$0xff] %vm94_vm2, %v868_v33  ;;  %v855_v36 = vadd.f32 %v854_v35, %v759_v34  ;;  %v856_v37 = vpop.f32.mrb[3].mxu1  ;;  %880 = vrot.lane.b32.xlu1 %v868_v33, %s1004_s24 }
 0x443   :  { %v869_v38 = vmax.f32 %v855_v36, 0.0 }
 0x444   :  { %v859_v40 = vpop.f32.mrb[4].mxu1 }
 0x445   :  { %873 = vst.msk [vmem:[%s1376_s5 + $0x8] sm:$0xff] %vm94_vm2, %v869_v38  ;;  %v860_v41 = vadd.f32 %v859_v40, %v764_v39  ;;  %v861_v42 = vpop.f32.mrb[5].mxu1  ;;  %882 = vrot.lane.b32.xlu0 %v869_v38, %s1004_s24 }
 0x447   :  { %v870_v43 = vmax.f32 %v860_v41, 0.0 }
 0x448   :  { %v864_v45 = vpop.f32.mrb[6].mxu1 }
 0x449   :  { %874 = vst.msk [vmem:[%s1376_s5 + $0x10] sm:$0xff] %vm94_vm2, %v870_v43  ;;  %v865_v46 = vadd.f32 %v864_v45, %v769_v44  ;;  %v866_v47 = vpop.f32.mrb[7].mxu1  ;;  %884 = vrot.lane.b32.xlu1 %v870_v43, %s1004_s24 }
 0x44b   :  { %v871_v48 = vmax.f32 %v865_v46, 0.0 }
 0x44d   :  { %875 = vst.msk [vmem:[%s1376_s5 + $0x18] sm:$0xff] %vm94_vm2, %v871_v48  ;;  %886 = vrot.lane.b32.xlu0 %v871_v48, %s1004_s24 }
 0x4b3   :  { %v881_v49 = vpop.permute.xlu1 %880 }
 0x4b4   :  { %909 = vst.msk [vmem:[%s1376_s5 + $0x20] sm:$0xff] %vm94_vm2, %v881_v49 }
 0x4b7   :  { %v883_v50 = vpop.permute.xlu0 %882 }
 0x4b8   :  { %910 = vst.msk [vmem:[%s1376_s5 + $0x28] sm:$0xff] %vm94_vm2, %v883_v50 }
 0x4bb   :  { %v885_v51 = vpop.permute.xlu1 %884 }
 0x4bc   :  { %911 = vst.msk [vmem:[%s1376_s5 + $0x30] sm:$0xff] %vm94_vm2, %v885_v51 }
 0x4bf   :  { %v887_v52 = vpop.permute.xlu0 %886 }
 0x4c0   :  { %912 = vst.msk [vmem:[%s1376_s5 + $0x38] sm:$0xff] %vm94_vm2, %v887_v52 }

// kernel: tacotron2_forward.9
= control target key start
LH: loop header
LB: loop body
LE: loop exit
PB: predicated region body
PF: predicated region fallthrough
CT: control target
= control target key end

     0   :  { %vm26_vm0 = vcmask 97280   ;;  %v1164_v1 = vmov 0.0   ;;  %s1165_s26 = smov 2   ;;  %vm45_vm1 = vcmask 80912   ;;  %vm57_vm2 = vcmask 64512   ;;  %s1166_s29 = smov 127   ;;  %s1538_s0 = inlined_call_operand.vmem [shape: f32[2,8,8], index: 0, kind: input, shape index: {}]   ;;  %s1539_s1 = inlined_call_operand.vmem [shape: f32[32,40], index: 1, kind: input, shape index: {}]   ;;  %s1540_s2 = inlined_call_operand.vmem [shape: f32[32,1], index: 2, kind: input, shape index: {}]   ;;  %s1541_s4 = inlined_call_operand.vmem [shape: f32[32,1], index: 4, kind: input, shape index: {}]   ;;  %s1542_s3 = inlined_call_operand.vmem [shape: f32[32,160], index: 3, kind: input, shape index: {}]   ;;  %s1543_s6 = inlined_call_operand.vmem [shape: f32[8,1], index: 6, kind: input, shape index: {}]   ;;  %s1544_s5 = inlined_call_operand.vmem [shape: f32[8,160], index: 5, kind: input, shape index: {}]   ;;  %s1545_s7 = inlined_call_operand.vmem [shape: f32[2,8,8], index: 7, kind: output, shape index: {}]  }
   0x1   :  { %v35_v0 = vld [vmem:[%s1538_s0] sm:$0xff]  ;;  %27 = vst.msk [vmem:[#allocation2] sm:$0xff] %vm26_vm0, %v1164_v1  ;;  %28 = vst.msk [vmem:[#allocation2 + $0x8] sm:$0xff] %vm26_vm0, %v1164_v1  ;;  %v36_v2 = vld [vmem:[%s1538_s0 + $0x8] sm:$0xff]  ;;  %s1167_s30 = smov 7   ;;  %s1168_s0 = smov 8  }
   0x2   :  { %29 = vst.msk [vmem:[#allocation2 + $0x10] sm:$0xff] %vm26_vm0, %v1164_v1  ;;  %30 = vst.msk [vmem:[#allocation2 + $0x18] sm:$0xff] %vm26_vm0, %v1164_v1  ;;  %39 = vrot.lane.b32.xlu0 %v35_v0, %s1165_s26  ;;  %s1169_s8 = smov 125   ;;  %s1170_s9 = smov 126   ;;  %v48_v7 = vld [vmem:[%s1539_s1] sm:$0xff]  ;;  %vm140_vm3 = vcmask 326656  }
   0x3   :  { %31 = vst.msk [vmem:[#allocation2 + $0x20] sm:$0xff] %vm26_vm0, %v1164_v1  ;;  %32 = vst.msk [vmem:[#allocation2 + $0x28] sm:$0xff] %vm26_vm0, %v1164_v1  ;;  %s1171_s10 = smov 5   ;;  %s1172_s11 = smov 6   ;;  %1057 = vmatprep.mubr.msk.f32.mxu0 %vm140_vm3, %v48_v7  ;;  %v1175_v8 = vmov 0   ;;  %v52_v9 = vld [vmem:[%s1540_s2] sm:$0xff] }
   0x4   :  { %33 = vst.msk [vmem:[#allocation2 + $0x30] sm:$0xff] %vm26_vm0, %v1164_v1  ;;  %34 = vst.msk [vmem:[#allocation2 + $0x38] sm:$0xff] %vm26_vm0, %v1164_v1  ;;  %s1173_s14 = smov 4   ;;  %s1174_s15 = smov 124   ;;  %1146 = vset.pattern.permute.xlu1 %v1175_v8  ;;  %1147 = vset.pattern.permute.xlu0 %v1175_v8  ;;  %v53_v10 = vld [vmem:[%s1540_s2 + $0x8] sm:$0xff]  ;;  %v54_v11 = vld [vmem:[%s1540_s2 + $0x10] sm:$0xff] }
   0x5   :  { %v55_v12 = vld [vmem:[%s1540_s2 + $0x18] sm:$0xff]  ;;  %vm89_vm4 = vcmask 130112   ;;  %v49_v29 = vld [vmem:[%s1539_s1 + $0x8] sm:$0xff]  ;;  %v50_v30 = vld [vmem:[%s1539_s1 + $0x10] sm:$0xff]  ;;  %v1177_v52 = vmov 0.0|0.0   ;;  %vm554_vm5 = vcmask 261120  }
   0x6   :  { %41 = vrot.lane.b32.xlu0 %v36_v2, %s1165_s26  ;;  %v51_v31 = vld [vmem:[%s1539_s1 + $0x18] sm:$0xff]  ;;  %s1176_s1 = smov 122   ;;  %1071 = vmatprep.subr.bf16.mxu1 %v1177_v52  ;;  %v279_v1 = vld [vmem:[%s1542_s3 + $0x8] sm:$0xff] }
   0x7   :  { %1032 = vmatprep.mubr.msk.f32.mxu1 %vm554_vm5, %v279_v1  ;;  %v287_v2 = vld [vmem:[%s1541_s4 + $0x8] sm:$0xff] }
  0x74   :  { %v40_v3 = vpop.permute.xlu0 %39 }
  0x75   :  { %46 = vst.msk [vmem:[#allocation2] sm:$0xff] %vm45_vm1, %v40_v3  ;;  %v286_v3 = vld [vmem:[%s1541_s4] sm:$0xff] }
  0x78   :  { %v42_v4 = vpop.permute.xlu0 %41 }
  0x79   :  { %47 = vst.msk [vmem:[#allocation2 + $0x20] sm:$0xff] %vm45_vm1, %v42_v4  ;;  %v289_v4 = vld [vmem:[%s1541_s4 + $0x18] sm:$0xff] }
  0x7c   :  { %v59_v5 = vld [vmem:[#allocation2] sm:$0xff] }
  0x7d   :  { %61 = vrot.lane.b32.xlu1 %v59_v5, %s1166_s29  ;;  %58 = vst.msk [vmem:[#allocation3] sm:$0xff] %vm57_vm2, %v59_v5 }
  0x80   :  { %v91_v6 = vld [vmem:[#allocation2 + $0x20] sm:$0xff] }
  0x81   :  { %93 = vrot.lane.b32.xlu0 %v91_v6, %s1167_s30  ;;  %86 = vrot.lane.b32.xlu1 %v91_v6, %s1168_s0 }
  0x85   :  { %73 = vrot.lane.b32.xlu0 %v59_v5, %s1169_s8  ;;  %67 = vrot.lane.b32.xlu1 %v59_v5, %s1170_s9 }
  0x89   :  { %105 = vrot.lane.b32.xlu0 %v91_v6, %s1171_s10  ;;  %99 = vrot.lane.b32.xlu1 %v91_v6, %s1172_s11 }
  0x8d   :  { %111 = vrot.lane.b32.xlu0 %v91_v6, %s1173_s14  ;;  %79 = vrot.lane.b32.xlu1 %v59_v5, %s1174_s15  ;;  %v288_v5 = vld [vmem:[%s1541_s4 + $0x10] sm:$0xff] }
  0x91   :  { %122 = vperm.xlu1 %1146, %v52_v9   ;;  %127 = vperm.xlu0 %1147, %v53_v10  }
  0x95   :  { %132 = vperm.xlu1 %1146, %v54_v11  }
  0x99   :  { %137 = vperm.xlu1 %1146, %v55_v12  }
  0xef   :  { %v62_v13 = vpop.permute.xlu1 %61 }
  0xf0   :  { %64 = vst.msk [vmem:[#allocation3 + $0x8] sm:$0xff] %vm57_vm2, %v62_v13 }
  0xf3   :  { %v94_v14 = vpop.permute.xlu0 %93  ;;  %v87_v15 = vpop.permute.xlu1 %86 }
  0xf4   :  { %96 = vst.msk [vmem:[#allocation3 + $0x8] sm:$0xff] %vm89_vm4, %v94_v14  ;;  %90 = vst.msk [vmem:[#allocation3] sm:$0xff] %vm89_vm4, %v87_v15 }
  0xf7   :  { %v74_v16 = vpop.permute.xlu0 %73  ;;  %v68_v17 = vpop.permute.xlu1 %67 }
  0xf8   :  { %76 = vst.msk [vmem:[#allocation3 + $0x18] sm:$0xff] %vm57_vm2, %v74_v16  ;;  %70 = vst.msk [vmem:[#allocation3 + $0x10] sm:$0xff] %vm57_vm2, %v68_v17 }
  0xfb   :  { %v106_v18 = vpop.permute.xlu0 %105  ;;  %v100_v19 = vpop.permute.xlu1 %99  ;;  %v115_v20 = vld [vmem:[#allocation3] sm:$0xff]  ;;  %v116_v21 = vld [vmem:[#allocation3 + $0x8] sm:$0xff] }
  0xfc   :  { %108 = vst.msk [vmem:[#allocation3 + $0x18] sm:$0xff] %vm89_vm4, %v106_v18  ;;  %102 = vst.msk [vmem:[#allocation3 + $0x10] sm:$0xff] %vm89_vm4, %v100_v19  ;;  %v1063_v22 = vpack.c.bf16 %v116_v21, %v115_v20 }
  0xfe   :  { %1064 = vmatprep.subr.bf16.mxu0 %v1063_v22 }
  0xff   :  { %v112_v23 = vpop.permute.xlu0 %111  ;;  %1066 = vmatpush3.bf16.msra.mxu0 %v1063_v22  ;;  %v80_v24 = vpop.permute.xlu1 %79 }
 0x100   :  { %82 = vst.msk [vmem:[#allocation3 + $0x20] sm:$0xff] %vm57_vm2, %v80_v24 }
 0x101   :  { %114 = vst.msk [vmem:[#allocation3 + $0x20] sm:$0xff] %vm89_vm4, %v112_v23 }
 0x103   :  { %v117_v25 = vld [vmem:[#allocation3 + $0x10] sm:$0xff]  ;;  %v118_v26 = vld [vmem:[#allocation3 + $0x18] sm:$0xff] }
 0x104   :  { %v1067_v27 = vpack.c.bf16 %v118_v26, %v117_v25 }
 0x106   :  { %1068 = vmatprep.subr.bf16.mxu0 %v1067_v27 }
 0x107   :  { %1070 = vmatpush3.bf16.msra.mxu0 %v1067_v27 }
 0x108   :  { %v119_v28 = vld [vmem:[#allocation3 + $0x20] sm:$0xff] }
 0x109   :  { %1055 = vmatprep.subr.mxu0 %v119_v28 }
 0x10b   :  { %1056 = vmatpush3.msra.mxu0 %v119_v28 }
 0x10c   :  { %1058 = vmatmul.mubr.msk.f32.vlgmr.msra.gmra.mrb[0].mxu0 %vm140_vm3, %v49_v29  ;;  %1101 = vmatprep.subr.bf16.mxu0 %v1177_v52 }
 0x10d   :  { %1060 = vmatprep.mubr.msk.f32.mxu0 %vm140_vm3, %v50_v30 }
 0x110   :  { %1061 = vmatmul.mubr.msk.f32.gmra.mrb[2].mxu0 %vm140_vm3, %v51_v31  ;;  %v123_v32 = vpop.permute.xlu1 %122  ;;  %v128_v34 = vpop.permute.xlu0 %127 }
 0x114   :  { %v133_v33 = vpop.permute.xlu1 %132 }
 0x118   :  { %v138_v39 = vpop.permute.xlu1 %137 }
 0x1df   :  { %v1059_v35 = vpop.f32.mrb[0].mxu0 }
 0x1e0   :  { %v225_v36 = vadd.f32 %v1059_v35, %v128_v34  ;;  %v219_v37 = vpop.f32.mrb[1].mxu0 }
 0x1e1   :  { %v220_v38 = vadd.f32 %v219_v37, %v123_v32 }
 0x1e2   :  { %1148 = vtanh.f32 %v225_v36 }
 0x1e3   :  { %1150 = vtanh.f32 %v220_v38  ;;  %v1062_v40 = vpop.f32.mrb[2].mxu0 }
 0x1e4   :  { %v235_v41 = vadd.f32 %v1062_v40, %v138_v39  ;;  %v229_v42 = vpop.f32.mrb[3].mxu0 }
 0x1e5   :  { %v230_v43 = vadd.f32 %v229_v42, %v133_v33 }
 0x1e6   :  { %1152 = vtanh.f32 %v235_v41 }
 0x1e7   :  { %1154 = vtanh.f32 %v230_v43 }
 0x1ec   :  { %v1149_v44 = vpop.eup %1148 }
 0x1ed   :  { %v1151_v45 = vpop.eup %1150  ;;  %264 = vrot.lane.b32.xlu1 %v1149_v44, %s1176_s1 }
 0x1ee   :  { %262 = vrot.lane.b32.xlu0 %v1151_v45, %s1176_s1 }
 0x1f0   :  { %v1153_v46 = vpop.eup %1152 }
 0x1f1   :  { %v1155_v47 = vpop.eup %1154  ;;  %268 = vrot.lane.b32.xlu1 %v1153_v46, %s1176_s1 }
 0x1f2   :  { %266 = vrot.lane.b32.xlu0 %v1155_v47, %s1176_s1 }
 0x1f5   :  { %248 = vrot.lane.b32.xlu1 %v1149_v44, %s1165_s26 }
 0x1f6   :  { %246 = vrot.lane.b32.xlu0 %v1151_v45, %s1165_s26 }
 0x1f9   :  { %252 = vrot.lane.b32.xlu1 %v1153_v46, %s1165_s26 }
 0x1fa   :  { %250 = vrot.lane.b32.xlu0 %v1155_v47, %s1165_s26 }
 0x25f   :  { %v265_v48 = vpop.permute.xlu1 %264 }
 0x260   :  { %275 = vst.msk [vmem:[#allocation2 + $0x28] sm:$0xff] %vm45_vm1, %v265_v48  ;;  %v263_v49 = vpop.permute.xlu0 %262 }
 0x261   :  { %274 = vst.msk [vmem:[#allocation2 + $0x20] sm:$0xff] %vm45_vm1, %v263_v49 }
 0x263   :  { %v269_v50 = vpop.permute.xlu1 %268 }
 0x264   :  { %277 = vst.msk [vmem:[#allocation2 + $0x38] sm:$0xff] %vm45_vm1, %v269_v50  ;;  %v267_v51 = vpop.permute.xlu0 %266 }
 0x265   :  { %276 = vst.msk [vmem:[#allocation2 + $0x30] sm:$0xff] %vm45_vm1, %v267_v51 }
 0x267   :  { %v249_v53 = vpop.permute.xlu1 %248  ;;  %v395_v54 = vld [vmem:[#allocation2 + $0x28] sm:$0xff] }
 0x268   :  { %259 = vst.msk [vmem:[#allocation2 + $0x8] sm:$0xff] %vm45_vm1, %v249_v53  ;;  %v247_v55 = vpop.permute.xlu0 %246  ;;  %404 = vrot.lane.b32.xlu1 %v395_v54, %s1168_s0  ;;  %v394_v56 = vld [vmem:[#allocation2 + $0x20] sm:$0xff] }
 0x269   :  { %258 = vst.msk [vmem:[#allocation2] sm:$0xff] %vm45_vm1, %v247_v55  ;;  %402 = vrot.lane.b32.xlu0 %v394_v56, %s1168_s0 }
 0x26b   :  { %v253_v57 = vpop.permute.xlu1 %252  ;;  %v397_v63 = vld [vmem:[#allocation2 + $0x38] sm:$0xff] }
 0x26c   :  { %261 = vst.msk [vmem:[#allocation2 + $0x18] sm:$0xff] %vm45_vm1, %v253_v57  ;;  %v251_v58 = vpop.permute.xlu0 %250  ;;  %v396_v0 = vld [vmem:[#allocation2 + $0x30] sm:$0xff] }
 0x26d   :  { %260 = vst.msk [vmem:[#allocation2 + $0x10] sm:$0xff] %vm45_vm1, %v251_v58 }
 0x26f   :  { %v299_v59 = vld [vmem:[#allocation2 + $0x8] sm:$0xff] }
 0x270   :  { %308 = vrot.lane.b32.xlu1 %v299_v59, %s1166_s29  ;;  %v298_v60 = vld [vmem:[#allocation2] sm:$0xff]  ;;  %295 = vst.msk [vmem:[#allocation3 + $0x8] sm:$0xff] %vm57_vm2, %v299_v59 }
 0x271   :  { %306 = vrot.lane.b32.xlu0 %v298_v60, %s1166_s29  ;;  %294 = vst.msk [vmem:[#allocation3] sm:$0xff] %vm57_vm2, %v298_v60 }
 0x273   :  { %v301_v61 = vld [vmem:[#allocation2 + $0x18] sm:$0xff] }
 0x274   :  { %428 = vrot.lane.b32.xlu1 %v395_v54, %s1167_s30  ;;  %v300_v62 = vld [vmem:[#allocation2 + $0x10] sm:$0xff]  ;;  %297 = vst.msk [vmem:[#allocation3 + $0x18] sm:$0xff] %vm57_vm2, %v301_v61 }
 0x275   :  { %426 = vrot.lane.b32.xlu0 %v394_v56, %s1167_s30  ;;  %296 = vst.msk [vmem:[#allocation3 + $0x10] sm:$0xff] %vm57_vm2, %v300_v62 }
 0x278   :  { %332 = vrot.lane.b32.xlu1 %v299_v59, %s1170_s9 }
 0x279   :  { %330 = vrot.lane.b32.xlu0 %v298_v60, %s1170_s9 }
 0x27c   :  { %452 = vrot.lane.b32.xlu1 %v395_v54, %s1172_s11 }
 0x27d   :  { %450 = vrot.lane.b32.xlu0 %v394_v56, %s1172_s11 }
 0x280   :  { %356 = vrot.lane.b32.xlu1 %v299_v59, %s1169_s8 }
 0x281   :  { %354 = vrot.lane.b32.xlu0 %v298_v60, %s1169_s8 }
 0x284   :  { %476 = vrot.lane.b32.xlu1 %v395_v54, %s1171_s10 }
 0x285   :  { %474 = vrot.lane.b32.xlu0 %v394_v56, %s1171_s10 }
 0x288   :  { %380 = vrot.lane.b32.xlu1 %v299_v59, %s1174_s15 }
 0x289   :  { %378 = vrot.lane.b32.xlu0 %v298_v60, %s1174_s15 }
 0x28c   :  { %500 = vrot.lane.b32.xlu1 %v395_v54, %s1173_s14 }
 0x28d   :  { %498 = vrot.lane.b32.xlu0 %v394_v56, %s1173_s14 }
 0x290   :  { %408 = vrot.lane.b32.xlu1 %v397_v63, %s1168_s0 }
 0x291   :  { %406 = vrot.lane.b32.xlu0 %v396_v0, %s1168_s0 }
 0x294   :  { %312 = vrot.lane.b32.xlu1 %v301_v61, %s1166_s29 }
 0x295   :  { %310 = vrot.lane.b32.xlu0 %v300_v62, %s1166_s29 }
 0x298   :  { %432 = vrot.lane.b32.xlu1 %v397_v63, %s1167_s30 }
 0x299   :  { %430 = vrot.lane.b32.xlu0 %v396_v0, %s1167_s30 }
 0x29c   :  { %336 = vrot.lane.b32.xlu1 %v301_v61, %s1170_s9 }
 0x29d   :  { %334 = vrot.lane.b32.xlu0 %v300_v62, %s1170_s9 }
 0x2a0   :  { %456 = vrot.lane.b32.xlu1 %v397_v63, %s1172_s11 }
 0x2a1   :  { %454 = vrot.lane.b32.xlu0 %v396_v0, %s1172_s11 }
 0x2a4   :  { %360 = vrot.lane.b32.xlu1 %v301_v61, %s1169_s8 }
 0x2a5   :  { %358 = vrot.lane.b32.xlu0 %v300_v62, %s1169_s8 }
 0x2a8   :  { %480 = vrot.lane.b32.xlu1 %v397_v63, %s1171_s10 }
 0x2a9   :  { %478 = vrot.lane.b32.xlu0 %v396_v0, %s1171_s10 }
 0x2ac   :  { %384 = vrot.lane.b32.xlu1 %v301_v61, %s1174_s15 }
 0x2ad   :  { %382 = vrot.lane.b32.xlu0 %v300_v62, %s1174_s15 }
 0x2b0   :  { %504 = vrot.lane.b32.xlu1 %v397_v63, %s1173_s14 }
 0x2b1   :  { %502 = vrot.lane.b32.xlu0 %v396_v0, %s1173_s14 }
 0x2b4   :  { %541 = vperm.xlu1 %1146, %v287_v2  }
 0x2b5   :  { %536 = vperm.xlu0 %1147, %v286_v3  }
 0x2b8   :  { %551 = vperm.xlu1 %1146, %v289_v4  }
 0x2b9   :  { %546 = vperm.xlu0 %1147, %v288_v5  }
 0x2da   :  { %v405_v6 = vpop.permute.xlu1 %404 }
 0x2db   :  { %415 = vst.msk [vmem:[#allocation3 + $0x8] sm:$0xff] %vm89_vm4, %v405_v6  ;;  %v403_v7 = vpop.permute.xlu0 %402 }
 0x2dc   :  { %414 = vst.msk [vmem:[#allocation3] sm:$0xff] %vm89_vm4, %v403_v7 }
 0x2e2   :  { %v309_v8 = vpop.permute.xlu1 %308  ;;  %v515_v9 = vld [vmem:[#allocation3 + $0x8] sm:$0xff] }
 0x2e3   :  { %319 = vst.msk [vmem:[#allocation3 + $0x28] sm:$0xff] %vm57_vm2, %v309_v8  ;;  %v307_v10 = vpop.permute.xlu0 %306  ;;  %v514_v11 = vld [vmem:[#allocation3] sm:$0xff] }
 0x2e4   :  { %318 = vst.msk [vmem:[#allocation3 + $0x20] sm:$0xff] %vm57_vm2, %v307_v10  ;;  %v1072_v12 = vpack.c.bf16 %v515_v9, %v514_v11  ;;  %v278_v9 = vld [vmem:[%s1542_s3] sm:$0xff]  ;;  %v281_v10 = vld [vmem:[%s1542_s3 + $0x18] sm:$0xff]  ;;  %v280_v11 = vld [vmem:[%s1542_s3 + $0x10] sm:$0xff] }
 0x2e6   :  { %1073 = vmatpush1.bf16.msra.mxu1 %v1072_v12  ;;  %v429_v13 = vpop.permute.xlu1 %428  ;;  %v283_v12 = vld [vmem:[%s1542_s3 + $0x28] sm:$0xff] }
 0x2e7   :  { %439 = vst.msk [vmem:[#allocation3 + $0x28] sm:$0xff] %vm89_vm4, %v429_v13  ;;  %v427_v14 = vpop.permute.xlu0 %426  ;;  %1074 = vmatprep.subr.bf16.mxu1 %v1177_v52  ;;  %v282_v13 = vld [vmem:[%s1542_s3 + $0x20] sm:$0xff] }
 0x2e8   :  { %438 = vst.msk [vmem:[#allocation3 + $0x20] sm:$0xff] %vm89_vm4, %v427_v14  ;;  %v285_v14 = vld [vmem:[%s1542_s3 + $0x38] sm:$0xff] }
 0x2ea   :  { %v333_v15 = vpop.permute.xlu1 %332 }
 0x2eb   :  { %343 = vst.msk [vmem:[#allocation3 + $0x48] sm:$0xff] %vm57_vm2, %v333_v15  ;;  %v331_v16 = vpop.permute.xlu0 %330  ;;  %v284_v15 = vld [vmem:[%s1542_s3 + $0x30] sm:$0xff] }
 0x2ec   :  { %342 = vst.msk [vmem:[#allocation3 + $0x40] sm:$0xff] %vm57_vm2, %v331_v16 }
 0x2ee   :  { %v453_v17 = vpop.permute.xlu1 %452  ;;  %v519_v37 = vld [vmem:[#allocation3 + $0x28] sm:$0xff] }
 0x2ef   :  { %463 = vst.msk [vmem:[#allocation3 + $0x48] sm:$0xff] %vm89_vm4, %v453_v17  ;;  %v451_v18 = vpop.permute.xlu0 %450  ;;  %v518_v36 = vld [vmem:[#allocation3 + $0x20] sm:$0xff] }
 0x2f0   :  { %462 = vst.msk [vmem:[#allocation3 + $0x40] sm:$0xff] %vm89_vm4, %v451_v18  ;;  %v1078_v40 = vpack.c.bf16 %v519_v37, %v518_v36 }
 0x2f2   :  { %v357_v19 = vpop.permute.xlu1 %356 }
 0x2f3   :  { %367 = vst.msk [vmem:[#allocation3 + $0x68] sm:$0xff] %vm57_vm2, %v357_v19  ;;  %v355_v20 = vpop.permute.xlu0 %354 }
 0x2f4   :  { %366 = vst.msk [vmem:[#allocation3 + $0x60] sm:$0xff] %vm57_vm2, %v355_v20 }
 0x2f6   :  { %v477_v21 = vpop.permute.xlu1 %476  ;;  %v523_v47 = vld [vmem:[#allocation3 + $0x48] sm:$0xff] }
 0x2f7   :  { %487 = vst.msk [vmem:[#allocation3 + $0x68] sm:$0xff] %vm89_vm4, %v477_v21  ;;  %v475_v22 = vpop.permute.xlu0 %474  ;;  %v522_v46 = vld [vmem:[#allocation3 + $0x40] sm:$0xff] }
 0x2f8   :  { %486 = vst.msk [vmem:[#allocation3 + $0x60] sm:$0xff] %vm89_vm4, %v475_v22  ;;  %v1084_v50 = vpack.c.bf16 %v523_v47, %v522_v46 }
 0x2fa   :  { %v381_v23 = vpop.permute.xlu1 %380 }
 0x2fb   :  { %391 = vst.msk [vmem:[#allocation3 + $0x88] sm:$0xff] %vm57_vm2, %v381_v23  ;;  %v379_v24 = vpop.permute.xlu0 %378 }
 0x2fc   :  { %390 = vst.msk [vmem:[#allocation3 + $0x80] sm:$0xff] %vm57_vm2, %v379_v24 }
 0x2fe   :  { %v501_v25 = vpop.permute.xlu1 %500  ;;  %v527_v58 = vld [vmem:[#allocation3 + $0x68] sm:$0xff] }
 0x2ff   :  { %511 = vst.msk [vmem:[#allocation3 + $0x88] sm:$0xff] %vm89_vm4, %v501_v25  ;;  %v499_v26 = vpop.permute.xlu0 %498  ;;  %v526_v57 = vld [vmem:[#allocation3 + $0x60] sm:$0xff] }
 0x300   :  { %510 = vst.msk [vmem:[#allocation3 + $0x80] sm:$0xff] %vm89_vm4, %v499_v26  ;;  %v1090_v61 = vpack.c.bf16 %v527_v58, %v526_v57 }
 0x302   :  { %v409_v27 = vpop.permute.xlu1 %408 }
 0x303   :  { %417 = vst.msk [vmem:[#allocation3 + $0x18] sm:$0xff] %vm89_vm4, %v409_v27  ;;  %v407_v28 = vpop.permute.xlu0 %406 }
 0x304   :  { %416 = vst.msk [vmem:[#allocation3 + $0x10] sm:$0xff] %vm89_vm4, %v407_v28 }
 0x306   :  { %v313_v29 = vpop.permute.xlu1 %312  ;;  %v531_v4 = vld [vmem:[#allocation3 + $0x88] sm:$0xff] }
 0x307   :  { %321 = vst.msk [vmem:[#allocation3 + $0x38] sm:$0xff] %vm57_vm2, %v313_v29  ;;  %v311_v30 = vpop.permute.xlu0 %310  ;;  %v530_v3 = vld [vmem:[#allocation3 + $0x80] sm:$0xff] }
 0x308   :  { %320 = vst.msk [vmem:[#allocation3 + $0x30] sm:$0xff] %vm57_vm2, %v311_v30  ;;  %v1096_v5 = vpack.c.bf16 %v531_v4, %v530_v3 }
 0x30a   :  { %v433_v31 = vpop.permute.xlu1 %432  ;;  %v517_v32 = vld [vmem:[#allocation3 + $0x18] sm:$0xff] }
 0x30b   :  { %441 = vst.msk [vmem:[#allocation3 + $0x38] sm:$0xff] %vm89_vm4, %v433_v31  ;;  %v431_v33 = vpop.permute.xlu0 %430  ;;  %v516_v34 = vld [vmem:[#allocation3 + $0x10] sm:$0xff] }
 0x30c   :  { %440 = vst.msk [vmem:[#allocation3 + $0x30] sm:$0xff] %vm89_vm4, %v431_v33  ;;  %v1075_v35 = vpack.c.bf16 %v517_v32, %v516_v34 }
 0x30e   :  { %1076 = vmatpush1.bf16.msra.mxu1 %v1075_v35  ;;  %v337_v38 = vpop.permute.xlu1 %336 }
 0x30f   :  { %345 = vst.msk [vmem:[#allocation3 + $0x58] sm:$0xff] %vm57_vm2, %v337_v38  ;;  %v335_v39 = vpop.permute.xlu0 %334  ;;  %1077 = vmatprep.subr.bf16.mxu1 %v1177_v52 }
 0x310   :  { %344 = vst.msk [vmem:[#allocation3 + $0x50] sm:$0xff] %vm57_vm2, %v335_v39 }
 0x312   :  { %1079 = vmatpush1.bf16.msra.mxu1 %v1078_v40  ;;  %v457_v41 = vpop.permute.xlu1 %456  ;;  %v521_v42 = vld [vmem:[#allocation3 + $0x38] sm:$0xff] }
 0x313   :  { %465 = vst.msk [vmem:[#allocation3 + $0x58] sm:$0xff] %vm89_vm4, %v457_v41  ;;  %v455_v43 = vpop.permute.xlu0 %454  ;;  %1080 = vmatprep.subr.bf16.mxu1 %v1177_v52  ;;  %v520_v44 = vld [vmem:[#allocation3 + $0x30] sm:$0xff] }
 0x314   :  { %464 = vst.msk [vmem:[#allocation3 + $0x50] sm:$0xff] %vm89_vm4, %v455_v43  ;;  %v1081_v45 = vpack.c.bf16 %v521_v42, %v520_v44 }
 0x316   :  { %1082 = vmatpush1.bf16.msra.mxu1 %v1081_v45  ;;  %v361_v48 = vpop.permute.xlu1 %360 }
 0x317   :  { %369 = vst.msk [vmem:[#allocation3 + $0x78] sm:$0xff] %vm57_vm2, %v361_v48  ;;  %v359_v49 = vpop.permute.xlu0 %358  ;;  %1083 = vmatprep.subr.bf16.mxu1 %v1177_v52 }
 0x318   :  { %368 = vst.msk [vmem:[#allocation3 + $0x70] sm:$0xff] %vm57_vm2, %v359_v49 }
 0x31a   :  { %1085 = vmatpush1.bf16.msra.mxu1 %v1084_v50  ;;  %v481_v51 = vpop.permute.xlu1 %480  ;;  %v525_v53 = vld [vmem:[#allocation3 + $0x58] sm:$0xff] }
 0x31b   :  { %489 = vst.msk [vmem:[#allocation3 + $0x78] sm:$0xff] %vm89_vm4, %v481_v51  ;;  %v479_v54 = vpop.permute.xlu0 %478  ;;  %1086 = vmatprep.subr.bf16.mxu1 %v1177_v52  ;;  %v524_v55 = vld [vmem:[#allocation3 + $0x50] sm:$0xff] }
 0x31c   :  { %488 = vst.msk [vmem:[#allocation3 + $0x70] sm:$0xff] %vm89_vm4, %v479_v54  ;;  %v1087_v56 = vpack.c.bf16 %v525_v53, %v524_v55  ;;  %v694_v53 = vld [vmem:[%s1543_s6] sm:$0xff]  ;;  %v693_v54 = vld [vmem:[%s1544_s5 + $0x8] sm:$0xff] }
 0x31d   :  { %1036 = vmatprep.mubr.msk.f32.mxu0 %vm554_vm5, %v693_v54 }
 0x31e   :  { %1088 = vmatpush1.bf16.msra.mxu1 %v1087_v56  ;;  %v385_v59 = vpop.permute.xlu1 %384 }
 0x31f   :  { %393 = vst.msk [vmem:[#allocation3 + $0x98] sm:$0xff] %vm57_vm2, %v385_v59  ;;  %v383_v60 = vpop.permute.xlu0 %382  ;;  %1089 = vmatprep.subr.bf16.mxu1 %v1177_v52 }
 0x320   :  { %392 = vst.msk [vmem:[#allocation3 + $0x90] sm:$0xff] %vm57_vm2, %v383_v60 }
 0x322   :  { %1091 = vmatpush1.bf16.msra.mxu1 %v1090_v61  ;;  %v505_v62 = vpop.permute.xlu1 %504  ;;  %v529_v63 = vld [vmem:[#allocation3 + $0x78] sm:$0xff] }
 0x323   :  { %513 = vst.msk [vmem:[#allocation3 + $0x98] sm:$0xff] %vm89_vm4, %v505_v62  ;;  %v503_v0 = vpop.permute.xlu0 %502  ;;  %1092 = vmatprep.subr.bf16.mxu1 %v1177_v52  ;;  %v528_v1 = vld [vmem:[#allocation3 + $0x70] sm:$0xff] }
 0x324   :  { %512 = vst.msk [vmem:[#allocation3 + $0x90] sm:$0xff] %vm89_vm4, %v503_v0  ;;  %v1093_v2 = vpack.c.bf16 %v529_v63, %v528_v1 }
 0x326   :  { %1094 = vmatpush1.bf16.msra.mxu1 %v1093_v2 }
 0x327   :  { %1095 = vmatprep.subr.bf16.mxu1 %v1177_v52 }
 0x32a   :  { %1097 = vmatpush1.bf16.msra.mxu1 %v1096_v5  ;;  %v533_v6 = vld [vmem:[#allocation3 + $0x98] sm:$0xff] }
 0x32b   :  { %1098 = vmatprep.subr.bf16.mxu1 %v1177_v52  ;;  %v532_v7 = vld [vmem:[#allocation3 + $0x90] sm:$0xff] }
 0x32c   :  { %v1099_v8 = vpack.c.bf16 %v533_v6, %v532_v7 }
 0x32e   :  { %1100 = vmatpush1.bf16.msra.mxu1 %v1099_v8 }
 0x331   :  { %632 = vmatmul.mubr.f32.vlgmr.msra.gmra.mrb[0].mxu1 %v278_v9 }
 0x332   :  { %1033 = vmatprep.mubr.msk.f32.mxu1 %vm554_vm5, %v281_v10 }
 0x333   :  { %v542_v20 = vpop.permute.xlu1 %541 }
 0x334   :  { %v537_v16 = vpop.permute.xlu0 %536 }
 0x335   :  { %637 = vmatmul.mubr.f32.gmra.mrb[2].mxu1 %v280_v11 }
 0x336   :  { %1034 = vmatprep.mubr.msk.f32.mxu1 %vm554_vm5, %v283_v12 }
 0x337   :  { %v552_v28 = vpop.permute.xlu1 %551 }
 0x338   :  { %v547_v24 = vpop.permute.xlu0 %546 }
 0x339   :  { %642 = vmatmul.mubr.f32.gmra.mrb[4].mxu1 %v282_v13 }
 0x33a   :  { %1035 = vmatprep.mubr.msk.f32.mxu1 %vm554_vm5, %v285_v14 }
 0x33d   :  { %647 = vmatmul.mubr.f32.gmra.mrb[6].mxu1 %v284_v15 }
 0x404   :  { %v633_v17 = vpop.f32.mrb[0].mxu1 }
 0x405   :  { %v634_v18 = vadd.f32 %v633_v17, %v537_v16  ;;  %v635_v19 = vpop.f32.mrb[1].mxu1 }
 0x407   :  { %1156 = vtanh.f32 %v634_v18 }
 0x408   :  { %v638_v21 = vpop.f32.mrb[2].mxu1 }
 0x409   :  { %v639_v22 = vadd.f32 %v638_v21, %v542_v20  ;;  %v640_v23 = vpop.f32.mrb[3].mxu1 }
 0x40b   :  { %1158 = vtanh.f32 %v639_v22 }
 0x40c   :  { %v643_v25 = vpop.f32.mrb[4].mxu1 }
 0x40d   :  { %v644_v26 = vadd.f32 %v643_v25, %v547_v24  ;;  %v645_v27 = vpop.f32.mrb[5].mxu1 }
 0x40f   :  { %1160 = vtanh.f32 %v644_v26 }
 0x410   :  { %v648_v29 = vpop.f32.mrb[6].mxu1 }
 0x411   :  { %v1157_v30 = vpop.eup %1156  ;;  %v649_v31 = vadd.f32 %v648_v29, %v552_v28  ;;  %v650_v32 = vpop.f32.mrb[7].mxu1 }
 0x412   :  { %676 = vrot.lane.b32.xlu0 %v1157_v30, %s1176_s1 }
 0x413   :  { %1162 = vtanh.f32 %v649_v31 }
 0x415   :  { %v1159_v33 = vpop.eup %1158 }
 0x416   :  { %678 = vrot.lane.b32.xlu1 %v1159_v33, %s1176_s1 }
 0x419   :  { %v1161_v34 = vpop.eup %1160 }
 0x41a   :  { %680 = vrot.lane.b32.xlu0 %v1161_v34, %s1176_s1 }
 0x41d   :  { %v1163_v35 = vpop.eup %1162 }
 0x41e   :  { %660 = vrot.lane.b32.xlu0 %v1157_v30, %s1165_s26  ;;  %682 = vrot.lane.b32.xlu1 %v1163_v35, %s1176_s1 }
 0x422   :  { %664 = vrot.lane.b32.xlu0 %v1161_v34, %s1165_s26  ;;  %662 = vrot.lane.b32.xlu1 %v1159_v33, %s1165_s26 }
 0x426   :  { %666 = vrot.lane.b32.xlu1 %v1163_v35, %s1165_s26 }
 0x484   :  { %v677_v36 = vpop.permute.xlu0 %676 }
 0x485   :  { %688 = vst.msk [vmem:[#allocation2 + $0x20] sm:$0xff] %vm45_vm1, %v677_v36 }
 0x488   :  { %v679_v37 = vpop.permute.xlu1 %678 }
 0x489   :  { %689 = vst.msk [vmem:[#allocation2 + $0x28] sm:$0xff] %vm45_vm1, %v679_v37 }
 0x48c   :  { %v681_v38 = vpop.permute.xlu0 %680  ;;  %v799_v39 = vld [vmem:[#allocation2 + $0x20] sm:$0xff] }
 0x48d   :  { %690 = vst.msk [vmem:[#allocation2 + $0x30] sm:$0xff] %vm45_vm1, %v681_v38  ;;  %807 = vrot.lane.b32.xlu0 %v799_v39, %s1168_s0 }
 0x490   :  { %v661_v40 = vpop.permute.xlu0 %660  ;;  %v683_v41 = vpop.permute.xlu1 %682  ;;  %v800_v42 = vld [vmem:[#allocation2 + $0x28] sm:$0xff] }
 0x491   :  { %672 = vst.msk [vmem:[#allocation2] sm:$0xff] %vm45_vm1, %v661_v40  ;;  %691 = vst.msk [vmem:[#allocation2 + $0x38] sm:$0xff] %vm45_vm1, %v683_v41  ;;  %809 = vrot.lane.b32.xlu1 %v800_v42, %s1168_s0 }
 0x494   :  { %v665_v43 = vpop.permute.xlu0 %664  ;;  %v663_v44 = vpop.permute.xlu1 %662  ;;  %v801_v50 = vld [vmem:[#allocation2 + $0x30] sm:$0xff] }
 0x495   :  { %674 = vst.msk [vmem:[#allocation2 + $0x10] sm:$0xff] %vm45_vm1, %v665_v43  ;;  %673 = vst.msk [vmem:[#allocation2 + $0x8] sm:$0xff] %vm45_vm1, %v663_v44 }
 0x498   :  { %v667_v45 = vpop.permute.xlu1 %666  ;;  %v703_v46 = vld [vmem:[#allocation2] sm:$0xff]  ;;  %v802_v51 = vld [vmem:[#allocation2 + $0x38] sm:$0xff] }
 0x499   :  { %675 = vst.msk [vmem:[#allocation2 + $0x18] sm:$0xff] %vm45_vm1, %v667_v45  ;;  %711 = vrot.lane.b32.xlu0 %v703_v46, %s1166_s29 }
 0x49a   :  { %699 = vst.msk [vmem:[#allocation3] sm:$0xff] %vm57_vm2, %v703_v46 }
 0x49c   :  { %v704_v47 = vld [vmem:[#allocation2 + $0x8] sm:$0xff]  ;;  %v705_v48 = vld [vmem:[#allocation2 + $0x10] sm:$0xff] }
 0x49d   :  { %831 = vrot.lane.b32.xlu0 %v799_v39, %s1167_s30  ;;  %713 = vrot.lane.b32.xlu1 %v704_v47, %s1166_s29  ;;  %700 = vst.msk [vmem:[#allocation3 + $0x8] sm:$0xff] %vm57_vm2, %v704_v47  ;;  %701 = vst.msk [vmem:[#allocation3 + $0x10] sm:$0xff] %vm57_vm2, %v705_v48 }
 0x4a0   :  { %v706_v49 = vld [vmem:[#allocation2 + $0x18] sm:$0xff] }
 0x4a1   :  { %735 = vrot.lane.b32.xlu0 %v703_v46, %s1170_s9  ;;  %833 = vrot.lane.b32.xlu1 %v800_v42, %s1167_s30  ;;  %702 = vst.msk [vmem:[#allocation3 + $0x18] sm:$0xff] %vm57_vm2, %v706_v49 }
 0x4a5   :  { %855 = vrot.lane.b32.xlu0 %v799_v39, %s1172_s11  ;;  %737 = vrot.lane.b32.xlu1 %v704_v47, %s1170_s9 }
 0x4a9   :  { %759 = vrot.lane.b32.xlu0 %v703_v46, %s1169_s8  ;;  %857 = vrot.lane.b32.xlu1 %v800_v42, %s1172_s11 }
 0x4ad   :  { %879 = vrot.lane.b32.xlu0 %v799_v39, %s1171_s10  ;;  %761 = vrot.lane.b32.xlu1 %v704_v47, %s1169_s8 }
 0x4b1   :  { %783 = vrot.lane.b32.xlu0 %v703_v46, %s1174_s15  ;;  %881 = vrot.lane.b32.xlu1 %v800_v42, %s1171_s10 }
 0x4b5   :  { %903 = vrot.lane.b32.xlu0 %v799_v39, %s1173_s14  ;;  %785 = vrot.lane.b32.xlu1 %v704_v47, %s1174_s15 }
 0x4b9   :  { %811 = vrot.lane.b32.xlu0 %v801_v50, %s1168_s0  ;;  %905 = vrot.lane.b32.xlu1 %v800_v42, %s1173_s14 }
 0x4bd   :  { %715 = vrot.lane.b32.xlu0 %v705_v48, %s1166_s29  ;;  %813 = vrot.lane.b32.xlu1 %v802_v51, %s1168_s0 }
 0x4c1   :  { %835 = vrot.lane.b32.xlu0 %v801_v50, %s1167_s30  ;;  %717 = vrot.lane.b32.xlu1 %v706_v49, %s1166_s29 }
 0x4c5   :  { %739 = vrot.lane.b32.xlu0 %v705_v48, %s1170_s9  ;;  %837 = vrot.lane.b32.xlu1 %v802_v51, %s1167_s30 }
 0x4c9   :  { %859 = vrot.lane.b32.xlu0 %v801_v50, %s1172_s11  ;;  %741 = vrot.lane.b32.xlu1 %v706_v49, %s1170_s9 }
 0x4cd   :  { %763 = vrot.lane.b32.xlu0 %v705_v48, %s1169_s8  ;;  %861 = vrot.lane.b32.xlu1 %v802_v51, %s1172_s11 }
 0x4d1   :  { %883 = vrot.lane.b32.xlu0 %v801_v50, %s1171_s10  ;;  %765 = vrot.lane.b32.xlu1 %v706_v49, %s1169_s8  ;;  %s1178_s8 = smov 120  }
 0x4d5   :  { %787 = vrot.lane.b32.xlu0 %v705_v48, %s1174_s15  ;;  %885 = vrot.lane.b32.xlu1 %v802_v51, %s1171_s10 }
 0x4d9   :  { %907 = vrot.lane.b32.xlu0 %v801_v50, %s1173_s14  ;;  %789 = vrot.lane.b32.xlu1 %v706_v49, %s1174_s15 }
 0x4dd   :  { %941 = vperm.xlu0 %1147, %v694_v53   ;;  %909 = vrot.lane.b32.xlu1 %v802_v51, %s1173_s14 }
 0x4ff   :  { %v808_v55 = vpop.permute.xlu0 %807 }
 0x500   :  { %819 = vst.msk [vmem:[#allocation3] sm:$0xff] %vm89_vm4, %v808_v55 }
 0x503   :  { %v810_v56 = vpop.permute.xlu1 %809 }
 0x504   :  { %820 = vst.msk [vmem:[#allocation3 + $0x8] sm:$0xff] %vm89_vm4, %v810_v56 }
 0x507   :  { %v919_v58 = vld [vmem:[#allocation3] sm:$0xff] }
 0x50b   :  { %v712_v57 = vpop.permute.xlu0 %711  ;;  %v920_v59 = vld [vmem:[#allocation3 + $0x8] sm:$0xff] }
 0x50c   :  { %723 = vst.msk [vmem:[#allocation3 + $0x20] sm:$0xff] %vm57_vm2, %v712_v57  ;;  %v1102_v60 = vpack.c.bf16 %v920_v59, %v919_v58  ;;  %v692_v58 = vld [vmem:[%s1544_s5] sm:$0xff] }
 0x50e   :  { %1103 = vmatpush1.bf16.msra.mxu0 %v1102_v60 }
 0x50f   :  { %v832_v61 = vpop.permute.xlu0 %831  ;;  %v714_v62 = vpop.permute.xlu1 %713  ;;  %1104 = vmatprep.subr.bf16.mxu0 %v1177_v52 }
 0x510   :  { %843 = vst.msk [vmem:[#allocation3 + $0x20] sm:$0xff] %vm89_vm4, %v832_v61 }
 0x511   :  { %724 = vst.msk [vmem:[#allocation3 + $0x28] sm:$0xff] %vm57_vm2, %v714_v62 }
 0x513   :  { %v736_v63 = vpop.permute.xlu0 %735  ;;  %v834_v0 = vpop.permute.xlu1 %833 }
 0x514   :  { %747 = vst.msk [vmem:[#allocation3 + $0x40] sm:$0xff] %vm57_vm2, %v736_v63 }
 0x515   :  { %844 = vst.msk [vmem:[#allocation3 + $0x28] sm:$0xff] %vm89_vm4, %v834_v0 }
 0x517   :  { %v856_v1 = vpop.permute.xlu0 %855  ;;  %v738_v2 = vpop.permute.xlu1 %737  ;;  %v923_v25 = vld [vmem:[#allocation3 + $0x20] sm:$0xff] }
 0x518   :  { %867 = vst.msk [vmem:[#allocation3 + $0x40] sm:$0xff] %vm89_vm4, %v856_v1 }
 0x519   :  { %748 = vst.msk [vmem:[#allocation3 + $0x48] sm:$0xff] %vm57_vm2, %v738_v2 }
 0x51b   :  { %v760_v3 = vpop.permute.xlu0 %759  ;;  %v858_v4 = vpop.permute.xlu1 %857 }
 0x51c   :  { %771 = vst.msk [vmem:[#allocation3 + $0x60] sm:$0xff] %vm57_vm2, %v760_v3  ;;  %v924_v22 = vld [vmem:[#allocation3 + $0x28] sm:$0xff] }
 0x51d   :  { %868 = vst.msk [vmem:[#allocation3 + $0x48] sm:$0xff] %vm89_vm4, %v858_v4  ;;  %v1108_v26 = vpack.c.bf16 %v924_v22, %v923_v25 }
 0x51f   :  { %v880_v5 = vpop.permute.xlu0 %879  ;;  %v762_v6 = vpop.permute.xlu1 %761  ;;  %v927_v35 = vld [vmem:[#allocation3 + $0x40] sm:$0xff] }
 0x520   :  { %891 = vst.msk [vmem:[#allocation3 + $0x60] sm:$0xff] %vm89_vm4, %v880_v5 }
 0x521   :  { %772 = vst.msk [vmem:[#allocation3 + $0x68] sm:$0xff] %vm57_vm2, %v762_v6 }
 0x523   :  { %v784_v7 = vpop.permute.xlu0 %783  ;;  %v882_v8 = vpop.permute.xlu1 %881 }
 0x524   :  { %795 = vst.msk [vmem:[#allocation3 + $0x80] sm:$0xff] %vm57_vm2, %v784_v7  ;;  %v928_v32 = vld [vmem:[#allocation3 + $0x48] sm:$0xff] }
 0x525   :  { %892 = vst.msk [vmem:[#allocation3 + $0x68] sm:$0xff] %vm89_vm4, %v882_v8  ;;  %v1114_v36 = vpack.c.bf16 %v928_v32, %v927_v35 }
 0x527   :  { %v904_v9 = vpop.permute.xlu0 %903  ;;  %v786_v10 = vpop.permute.xlu1 %785  ;;  %v931_v45 = vld [vmem:[#allocation3 + $0x60] sm:$0xff] }
 0x528   :  { %915 = vst.msk [vmem:[#allocation3 + $0x80] sm:$0xff] %vm89_vm4, %v904_v9 }
 0x529   :  { %796 = vst.msk [vmem:[#allocation3 + $0x88] sm:$0xff] %vm57_vm2, %v786_v10 }
 0x52b   :  { %v812_v11 = vpop.permute.xlu0 %811  ;;  %v906_v12 = vpop.permute.xlu1 %905 }
 0x52c   :  { %821 = vst.msk [vmem:[#allocation3 + $0x10] sm:$0xff] %vm89_vm4, %v812_v11  ;;  %916 = vst.msk [vmem:[#allocation3 + $0x88] sm:$0xff] %vm89_vm4, %v906_v12  ;;  %v932_v42 = vld [vmem:[#allocation3 + $0x68] sm:$0xff] }
 0x52d   :  { %v1120_v46 = vpack.c.bf16 %v932_v42, %v931_v45 }
 0x52f   :  { %v716_v13 = vpop.permute.xlu0 %715  ;;  %v814_v14 = vpop.permute.xlu1 %813  ;;  %v935_v53 = vld [vmem:[#allocation3 + $0x80] sm:$0xff] }
 0x530   :  { %725 = vst.msk [vmem:[#allocation3 + $0x30] sm:$0xff] %vm57_vm2, %v716_v13 }
 0x531   :  { %822 = vst.msk [vmem:[#allocation3 + $0x18] sm:$0xff] %vm89_vm4, %v814_v14 }
 0x533   :  { %v836_v15 = vpop.permute.xlu0 %835  ;;  %v718_v16 = vpop.permute.xlu1 %717  ;;  %v921_v19 = vld [vmem:[#allocation3 + $0x10] sm:$0xff]  ;;  %v936_v51 = vld [vmem:[#allocation3 + $0x88] sm:$0xff] }
 0x534   :  { %845 = vst.msk [vmem:[#allocation3 + $0x30] sm:$0xff] %vm89_vm4, %v836_v15  ;;  %v1126_v54 = vpack.c.bf16 %v936_v51, %v935_v53 }
 0x535   :  { %726 = vst.msk [vmem:[#allocation3 + $0x38] sm:$0xff] %vm57_vm2, %v718_v16 }
 0x537   :  { %v740_v17 = vpop.permute.xlu0 %739  ;;  %v838_v18 = vpop.permute.xlu1 %837 }
 0x538   :  { %v922_v20 = vld [vmem:[#allocation3 + $0x18] sm:$0xff]  ;;  %749 = vst.msk [vmem:[#allocation3 + $0x50] sm:$0xff] %vm57_vm2, %v740_v17 }
 0x539   :  { %846 = vst.msk [vmem:[#allocation3 + $0x38] sm:$0xff] %vm89_vm4, %v838_v18  ;;  %v1105_v21 = vpack.c.bf16 %v922_v20, %v921_v19 }
 0x53b   :  { %1106 = vmatpush1.bf16.msra.mxu0 %v1105_v21  ;;  %v860_v23 = vpop.permute.xlu0 %859  ;;  %v742_v24 = vpop.permute.xlu1 %741  ;;  %v925_v29 = vld [vmem:[#allocation3 + $0x30] sm:$0xff] }
 0x53c   :  { %1107 = vmatprep.subr.bf16.mxu0 %v1177_v52  ;;  %869 = vst.msk [vmem:[#allocation3 + $0x50] sm:$0xff] %vm89_vm4, %v860_v23 }
 0x53d   :  { %750 = vst.msk [vmem:[#allocation3 + $0x58] sm:$0xff] %vm57_vm2, %v742_v24 }
 0x53f   :  { %1109 = vmatpush1.bf16.msra.mxu0 %v1108_v26  ;;  %v764_v27 = vpop.permute.xlu0 %763  ;;  %v862_v28 = vpop.permute.xlu1 %861 }
 0x540   :  { %1110 = vmatprep.subr.bf16.mxu0 %v1177_v52  ;;  %v926_v30 = vld [vmem:[#allocation3 + $0x38] sm:$0xff]  ;;  %773 = vst.msk [vmem:[#allocation3 + $0x70] sm:$0xff] %vm57_vm2, %v764_v27 }
 0x541   :  { %870 = vst.msk [vmem:[#allocation3 + $0x58] sm:$0xff] %vm89_vm4, %v862_v28  ;;  %v1111_v31 = vpack.c.bf16 %v926_v30, %v925_v29 }
 0x543   :  { %1112 = vmatpush1.bf16.msra.mxu0 %v1111_v31  ;;  %v884_v33 = vpop.permute.xlu0 %883  ;;  %v766_v34 = vpop.permute.xlu1 %765  ;;  %v929_v39 = vld [vmem:[#allocation3 + $0x50] sm:$0xff] }
 0x544   :  { %1113 = vmatprep.subr.bf16.mxu0 %v1177_v52  ;;  %893 = vst.msk [vmem:[#allocation3 + $0x70] sm:$0xff] %vm89_vm4, %v884_v33 }
 0x545   :  { %774 = vst.msk [vmem:[#allocation3 + $0x78] sm:$0xff] %vm57_vm2, %v766_v34 }
 0x547   :  { %1115 = vmatpush1.bf16.msra.mxu0 %v1114_v36  ;;  %v788_v37 = vpop.permute.xlu0 %787  ;;  %v886_v38 = vpop.permute.xlu1 %885 }
 0x548   :  { %1116 = vmatprep.subr.bf16.mxu0 %v1177_v52  ;;  %v930_v40 = vld [vmem:[#allocation3 + $0x58] sm:$0xff]  ;;  %797 = vst.msk [vmem:[#allocation3 + $0x90] sm:$0xff] %vm57_vm2, %v788_v37 }
 0x549   :  { %894 = vst.msk [vmem:[#allocation3 + $0x78] sm:$0xff] %vm89_vm4, %v886_v38  ;;  %v1117_v41 = vpack.c.bf16 %v930_v40, %v929_v39 }
 0x54b   :  { %1118 = vmatpush1.bf16.msra.mxu0 %v1117_v41  ;;  %v908_v43 = vpop.permute.xlu0 %907  ;;  %v790_v44 = vpop.permute.xlu1 %789  ;;  %v933_v48 = vld [vmem:[#allocation3 + $0x70] sm:$0xff] }
 0x54c   :  { %1119 = vmatprep.subr.bf16.mxu0 %v1177_v52  ;;  %917 = vst.msk [vmem:[#allocation3 + $0x90] sm:$0xff] %vm89_vm4, %v908_v43 }
 0x54d   :  { %798 = vst.msk [vmem:[#allocation3 + $0x98] sm:$0xff] %vm57_vm2, %v790_v44 }
 0x54f   :  { %1121 = vmatpush1.bf16.msra.mxu0 %v1120_v46  ;;  %v910_v47 = vpop.permute.xlu1 %909 }
 0x550   :  { %1122 = vmatprep.subr.bf16.mxu0 %v1177_v52  ;;  %v934_v49 = vld [vmem:[#allocation3 + $0x78] sm:$0xff]  ;;  %918 = vst.msk [vmem:[#allocation3 + $0x98] sm:$0xff] %vm89_vm4, %v910_v47 }
 0x551   :  { %v1123_v50 = vpack.c.bf16 %v934_v49, %v933_v48 }
 0x553   :  { %1124 = vmatpush1.bf16.msra.mxu0 %v1123_v50  ;;  %v937_v55 = vld [vmem:[#allocation3 + $0x90] sm:$0xff] }
 0x554   :  { %1125 = vmatprep.subr.bf16.mxu0 %v1177_v52 }
 0x557   :  { %1127 = vmatpush1.bf16.msra.mxu0 %v1126_v54  ;;  %v938_v56 = vld [vmem:[#allocation3 + $0x98] sm:$0xff] }
 0x558   :  { %1128 = vmatprep.subr.bf16.mxu0 %v1177_v52  ;;  %v1129_v57 = vpack.c.bf16 %v938_v56, %v937_v55 }
 0x55b   :  { %1130 = vmatpush1.bf16.msra.mxu0 %v1129_v57 }
 0x55c   :  { %v942_v59 = vpop.permute.xlu0 %941 }
 0x55e   :  { %1012 = vmatmul.mubr.f32.vlgmr.msra.gmra.mrb[4].mxu0 %v692_v58 }
 0x631   :  { %v1013_v60 = vpop.f32.mrb[4].mxu0 }
 0x632   :  { %v1014_v61 = vadd.f32 %v1013_v60, %v942_v59  ;;  %v1015_v62 = vpop.f32.mrb[5].mxu0 }
 0x634   :  { %1019 = vrot.lane.b32.xlu1 %v1014_v61, %s1178_s8  ;;  %1017 = vst.msk [vmem:[%s1545_s7] sm:$0xff] %vm57_vm2, %v1014_v61 }
 0x6a6   :  { %v1020_v52 = vpop.permute.xlu1 %1019 }
 0x6a7   :  { %1037 = vst.msk [vmem:[%s1545_s7 + $0x8] sm:$0xff] %vm57_vm2, %v1020_v52 }

// kernel: tacotron2_forward.7
= control target key start
LH: loop header
LB: loop body
LE: loop exit
PB: predicated region body
PF: predicated region fallthrough
CT: control target
= control target key end

     0   :  { %vm67_vm0 = vcmask 130048   ;;  %vm165_vm1 = vcmask 261120   ;;  %v5226_v0 = vmov 0.0|0.0   ;;  %vm5227_vm4 = vmmov 0   ;;  %s5230_s24 = smov 96   ;;  %s5231_s25 = smov 16   ;;  %s6385_s3 = inlined_call_operand.vmem [shape: f32[64,16], index: 3, kind: input, shape index: {}]   ;;  %s6386_s2 = inlined_call_operand.vmem [shape: f32[64,32], index: 2, kind: input, shape index: {}]   ;;  %s6387_s0 = inlined_call_operand.vmem [shape: f32[8,2,32], index: 0, kind: input, shape index: {}]   ;;  %s6388_s1 = inlined_call_operand.vmem [shape: f32[8,2,1], index: 1, kind: input, shape index: {}]   ;;  %s6389_s4 = inlined_call_operand.vmem [shape: f32[1,64], index: 4, kind: input, shape index: {}]   ;;  %s6390_s5 = inlined_call_operand.vmem [shape: f32[64,32], index: 5, kind: input, shape index: {}]   ;;  %s6391_s6 = inlined_call_operand.vmem [shape: f32[64,16], index: 6, kind: input, shape index: {}]   ;;  %s6392_s7 = inlined_call_operand.vmem [shape: f32[1,64], index: 7, kind: input, shape index: {}]   ;;  %s6393_s8 = inlined_call_operand.vmem [shape: f32[8,2,16], index: 8, kind: output, shape index: {0}]   ;;  %s6394_s9 = inlined_call_operand.vmem [shape: f32[8,2,16], index: 9, kind: output, shape index: {1}]  }
   0x1   :  { %4575 = vmatprep.subr.bf16.mxu0 %v5226_v0  ;;  %4591 = vmatprep.subr.bf16.mxu1 %v5226_v0  ;;  %v39_v1 = vld [vmem:[%s6385_s3] sm:$0xff]  ;;  %v40_v2 = vld [vmem:[%s6385_s3 + $0x8] sm:$0xff]  ;;  %vm5294_vm2 = vmpackc.low %vm67_vm0, %vm67_vm0  ;;  %v5228_v8 = vmov 0.0   ;;  %v5229_v29 = vmov 0   ;;  %s5232_s28 = smov 32   ;;  %s5233_s29 = smov 80  }
   0x2   :  { %v5298_v4 = vpack.c.bf16 %v40_v2, %v39_v1  ;;  %v31_v5 = vld [vmem:[%s6386_s2] sm:$0xff]  ;;  %v32_v6 = vld [vmem:[%s6386_s2 + $0x8] sm:$0xff]  ;;  %vm5308_vm3 = vmpackc.low %vm165_vm1, %vm165_vm1  ;;  %3983 = vmatprep.mubr.msk.f32.mxu0 %vm5227_vm4, %v5228_v8  ;;  %4002 = vmatprep.mubr.msk.f32.mxu1 %vm5227_vm4, %v5228_v8  ;;  %vm304_vm5 = vcmask 123904  }
   0x3   :  { %v5316_v9 = vpack.c.bf16 %v32_v6, %v31_v5  ;;  %v41_v10 = vld [vmem:[%s6385_s3 + $0x10] sm:$0xff]  ;;  %v42_v11 = vld [vmem:[%s6385_s3 + $0x18] sm:$0xff]  ;;  %v43_v16 = vld [vmem:[%s6385_s3 + $0x20] sm:$0xff]  ;;  %5095 = vset.pattern.permute.xlu1 %v5229_v29  ;;  %5096 = vset.pattern.permute.xlu0 %v5229_v29 }
   0x4   :  { %4578 = vmatpush3.bf16.xpose.msk.msra.mxu0 %vm5294_vm2, %v5298_v4  ;;  %v33_v12 = vld [vmem:[%s6386_s2 + $0x10] sm:$0xff]  ;;  %v34_v13 = vld [vmem:[%s6386_s2 + $0x18] sm:$0xff]  ;;  %v5338_v14 = vpack.c.bf16 %v42_v11, %v41_v10  ;;  %v44_v17 = vld [vmem:[%s6385_s3 + $0x28] sm:$0xff] }
   0x5   :  { %4594 = vmatpush3.bf16.xpose.msk.msra.mxu1 %vm5308_vm3, %v5316_v9  ;;  %4579 = vmatprep.subr.bf16.mxu0 %v5226_v0  ;;  %v5340_v15 = vpack.c.bf16 %v34_v13, %v33_v12  ;;  %v35_v18 = vld [vmem:[%s6386_s2 + $0x20] sm:$0xff]  ;;  %v36_v19 = vld [vmem:[%s6386_s2 + $0x28] sm:$0xff]  ;;  %v5362_v20 = vpack.c.bf16 %v44_v17, %v43_v16  ;;  %v45_v22 = vld [vmem:[%s6385_s3 + $0x30] sm:$0xff] }
   0x6   :  { %4595 = vmatprep.subr.bf16.mxu1 %v5226_v0  ;;  %v5364_v21 = vpack.c.bf16 %v36_v19, %v35_v18  ;;  %v46_v23 = vld [vmem:[%s6385_s3 + $0x38] sm:$0xff]  ;;  %v37_v24 = vld [vmem:[%s6386_s2 + $0x30] sm:$0xff]  ;;  %v65_v28 = vld [vmem:[%s6387_s0] sm:$0x3] }
   0x7   :  { %v38_v25 = vld [vmem:[%s6386_s2 + $0x38] sm:$0xff]  ;;  %v5386_v26 = vpack.c.bf16 %v46_v23, %v45_v22  ;;  %v66_v30 = vld [vmem:[%s6388_s1] sm:$0x3]  ;;  %v3352_v49 = vld [vmem:[%s6387_s0 + $0x2] sm:$0x3] }
   0x8   :  { %v5388_v27 = vpack.c.bf16 %v38_v25, %v37_v24  ;;  %296 = vperm.xlu1 %5095, %v66_v30   ;;  %v306_v31 = vsub.f32 1.0, %v66_v30  ;;  %v5445_v33 = vld [vmem:[%s6389_s4] ss:$0 sm:$0xff]  ;;  %v3353_v5 = vld [vmem:[%s6388_s1 + $0x2] sm:$0x3] }
   0x9   :  { %v505_v17 = vsub.f32 1.0, %v3353_v5  ;;  %v3374_v25 = vld [vmem:[%s6387_s0 + $0x4] sm:$0x3] }
   0xc   :  { %4582 = vmatpush3.bf16.xpose.msk.msra.mxu0 %vm5294_vm2, %v5338_v14  ;;  %309 = vperm.xlu1 %5095, %v306_v31  }
   0xd   :  { %4598 = vmatpush3.bf16.xpose.msk.msra.mxu1 %vm5308_vm3, %v5340_v15  ;;  %4583 = vmatprep.subr.bf16.mxu0 %v5226_v0 }
   0xe   :  { %4599 = vmatprep.subr.bf16.mxu1 %v5226_v0 }
  0x14   :  { %4586 = vmatpush3.bf16.xpose.msk.msra.mxu0 %vm5294_vm2, %v5362_v20 }
  0x15   :  { %4602 = vmatpush3.bf16.xpose.msk.msra.mxu1 %vm5308_vm3, %v5364_v21  ;;  %4587 = vmatprep.subr.bf16.mxu0 %v5226_v0 }
  0x16   :  { %4603 = vmatprep.subr.bf16.mxu1 %v5226_v0 }
  0x1c   :  { %4590 = vmatpush3.bf16.xpose.msk.msra.mxu0 %vm5294_vm2, %v5386_v26 }
  0x1d   :  { %4606 = vmatpush3.bf16.xpose.msk.msra.mxu1 %vm5308_vm3, %v5388_v27  ;;  %4607 = vmatprep.subr.bf16.mxu0 %v5226_v0 }
  0x1e   :  { %4623 = vmatprep.subr.bf16.mxu1 %v5226_v0 }
  0x23   :  { %3984 = vmatmul.mubr.f32.vlgmr.msra.gmra.mrb[0].mxu0 %v5228_v8 }
  0x24   :  { %4003 = vmatmul.mubr.msk.f32.vlgmr.msra.gmra.mrb[0].mxu1 %vm165_vm1, %v65_v28  ;;  %4610 = vmatpush3.bf16.xpose.msk.msra.mxu0 %vm5294_vm2, %v5298_v4 }
  0x25   :  { %4626 = vmatpush3.bf16.xpose.msk.msra.mxu1 %vm5308_vm3, %v5316_v9  ;;  %4611 = vmatprep.subr.bf16.mxu0 %v5226_v0 }
  0x26   :  { %4627 = vmatprep.subr.bf16.mxu1 %v5226_v0  ;;  %4040 = vmatprep.mubr.msk.f32.mxu1 %vm5227_vm4, %v5228_v8 }
  0x27   :  { %4021 = vmatprep.mubr.msk.f32.mxu0 %vm5227_vm4, %v5228_v8 }
  0x2c   :  { %4614 = vmatpush3.bf16.xpose.msk.msra.mxu0 %vm5294_vm2, %v5338_v14 }
  0x2d   :  { %4630 = vmatpush3.bf16.xpose.msk.msra.mxu1 %vm5308_vm3, %v5340_v15  ;;  %4615 = vmatprep.subr.bf16.mxu0 %v5226_v0 }
  0x2e   :  { %4631 = vmatprep.subr.bf16.mxu1 %v5226_v0 }
  0x34   :  { %4618 = vmatpush3.bf16.xpose.msk.msra.mxu0 %vm5294_vm2, %v5362_v20 }
  0x35   :  { %4634 = vmatpush3.bf16.xpose.msk.msra.mxu1 %vm5308_vm3, %v5364_v21  ;;  %4619 = vmatprep.subr.bf16.mxu0 %v5226_v0 }
  0x36   :  { %4635 = vmatprep.subr.bf16.mxu1 %v5226_v0 }
  0x3c   :  { %4622 = vmatpush3.bf16.xpose.msk.msra.mxu0 %vm5294_vm2, %v5386_v26 }
  0x3d   :  { %4638 = vmatpush3.bf16.xpose.msk.msra.mxu1 %vm5308_vm3, %v5388_v27  ;;  %4639 = vmatprep.subr.bf16.mxu0 %v5226_v0 }
  0x3e   :  { %4655 = vmatprep.subr.bf16.mxu1 %v5226_v0 }
  0x44   :  { %4041 = vmatmul.mubr.msk.f32.vlgmr.msra.gmra.mrb[2].mxu1 %vm165_vm1, %v3352_v49 }
  0x45   :  { %4658 = vmatpush3.bf16.xpose.msk.msra.mxu1 %vm5308_vm3, %v5316_v9  ;;  %4078 = vmatprep.mubr.msk.f32.mxu1 %vm5227_vm4, %v5228_v8 }
  0x46   :  { %4659 = vmatprep.subr.bf16.mxu1 %v5226_v0 }
  0x4d   :  { %4662 = vmatpush3.bf16.xpose.msk.msra.mxu1 %vm5308_vm3, %v5340_v15 }
  0x4e   :  { %4663 = vmatprep.subr.bf16.mxu1 %v5226_v0 }
  0x55   :  { %4666 = vmatpush3.bf16.xpose.msk.msra.mxu1 %vm5308_vm3, %v5364_v21 }
  0x56   :  { %4667 = vmatprep.subr.bf16.mxu1 %v5226_v0 }
  0x5d   :  { %4670 = vmatpush3.bf16.xpose.msk.msra.mxu1 %vm5308_vm3, %v5388_v27 }
  0x5e   :  { %4687 = vmatprep.subr.bf16.mxu1 %v5226_v0 }
  0x64   :  { %4079 = vmatmul.mubr.msk.f32.vlgmr.msra.gmra.mrb[4].mxu1 %vm165_vm1, %v3374_v25 }
  0x65   :  { %4690 = vmatpush3.bf16.xpose.msk.msra.mxu1 %vm5308_vm3, %v5316_v9  ;;  %4116 = vmatprep.mubr.msk.f32.mxu1 %vm5227_vm4, %v5228_v8 }
  0x66   :  { %4691 = vmatprep.subr.bf16.mxu1 %v5226_v0 }
  0x6d   :  { %4694 = vmatpush3.bf16.xpose.msk.msra.mxu1 %vm5308_vm3, %v5340_v15 }
  0x6e   :  { %4695 = vmatprep.subr.bf16.mxu1 %v5226_v0 }
  0x75   :  { %4698 = vmatpush3.bf16.xpose.msk.msra.mxu1 %vm5308_vm3, %v5364_v21 }
  0x76   :  { %4699 = vmatprep.subr.bf16.mxu1 %v5226_v0 }
  0x7d   :  { %4702 = vmatpush3.bf16.xpose.msk.msra.mxu1 %vm5308_vm3, %v5388_v27 }
  0x7e   :  { %4719 = vmatprep.subr.bf16.mxu1 %v5226_v0 }
  0x87   :  { %v297_v51 = vpop.permute.xlu1 %296 }
  0x8b   :  { %v310_v52 = vpop.permute.xlu1 %309 }
  0x8c   :  { %v312_v55 = vmul.f32 0.0, %v310_v52 }
  0xf6   :  { %v161_v32 = vpop.f32.mrb[0].mxu0 }
  0xf7   :  { %v259_v34 = vpop.f32.mrb[0].mxu1  ;;  %v3985_v35 = vpop.f32.mrb[1].mxu0 }
  0xf8   :  { %v260_v36 = vadd.f32 %v259_v34, %v161_v32  ;;  %v4004_v37 = vpop.f32.mrb[1].mxu1 }
  0xfa   :  { %v269_v38 = vadd.f32 %v5445_v33, %v260_v36 }
  0xfc   :  { %5097 = vtanh.f32 %v269_v38  ;;  %v3351_v40 = vmul.f32 -1.442695, %v269_v38 }
  0xfe   :  { %5099 = vpow2.f32 %v3351_v40 }
 0x106   :  { %v5098_v39 = vpop.eup %5097 }
 0x107   :  { %279 = vrot.lane.b32.xlu0 %v5098_v39, %s5230_s24 }
 0x108   :  { %v5100_v41 = vpop.eup %5099 }
 0x109   :  { %v273_v42 = vadd.f32 1.0, %v5100_v41 }
 0x10b   :  { %5101 = vrcp.f32 %v273_v42 }
 0x115   :  { %v5102_v43 = vpop.eup %5101 }
 0x116   :  { %v277_v46 = vmul.f32 0.0, %v5102_v43 }
 0x117   :  { %v464_v58 = vpop.f32.mrb[2].mxu1 }
 0x118   :  { %v4042_v59 = vpop.f32.mrb[3].mxu1 }
 0x137   :  { %v664_v37 = vpop.f32.mrb[4].mxu1 }
 0x138   :  { %v4080_v38 = vpop.f32.mrb[5].mxu1 }
 0x179   :  { %v280_v44 = vpop.permute.xlu0 %279 }
 0x17a   :  { %v282_v45 = vmul.f32 %v5102_v43, %v280_v44 }
 0x17c   :  { %284 = vrot.lane.b32.xlu0 %v282_v45, %s5231_s25  ;;  %v3375_v45 = vld [vmem:[%s6388_s1 + $0x4] sm:$0x3] }
 0x17d   :  { %v705_v52 = vsub.f32 1.0, %v3375_v45 }
 0x1ee   :  { %v285_v47 = vpop.permute.xlu0 %284 }
 0x1ef   :  { %v287_v48 = vadd.f32 %v285_v47, %v277_v46 }
 0x1f1   :  { %5103 = vtanh.f32 %v287_v48  ;;  %v314_v18 = vmul.f32 %v297_v51, %v287_v48 }
 0x1f3   :  { %v315_v19 = vadd.f32 %v314_v18, %v312_v55 }
 0x1fb   :  { %v5104_v50 = vpop.eup %5103 }
 0x1fc   :  { %290 = vrot.lane.b32.xlu0 %v5104_v50, %s5232_s28 }
 0x26e   :  { %v291_v53 = vpop.permute.xlu0 %290 }
 0x26f   :  { %v293_v54 = vmul.f32 %v5102_v43, %v291_v53 }
 0x271   :  { %v5473_v56 = vmul.f32 %v297_v51, %v293_v54 }
 0x273   :  { %v313_v57 = vadd.f32 %v312_v55, %v5473_v56 }
 0x275   :  { %321 = vrot.lane.b32.xlu1 %v313_v57, %s5233_s29 }
 0x2e7   :  { %v322_v60 = vpop.permute.xlu1 %321 }
 0x2e8   :  { %4022 = vmatmul.mubr.msk.f32.vlgmr.msra.gmra.mrb[2].mxu0 %vm67_vm0, %v322_v60  ;;  %v3396_v60 = vld [vmem:[%s6387_s0 + $0x6] sm:$0x3] }
 0x2e9   :  { %4642 = vmatpush3.bf16.xpose.msk.msra.mxu0 %vm5294_vm2, %v5298_v4  ;;  %4059 = vmatprep.mubr.msk.f32.mxu0 %vm5227_vm4, %v5228_v8 }
 0x2ea   :  { %4643 = vmatprep.subr.bf16.mxu0 %v5226_v0  ;;  %4117 = vmatmul.mubr.msk.f32.vlgmr.msra.gmra.mrb[6].mxu1 %vm165_vm1, %v3396_v60 }
 0x2eb   :  { %4722 = vmatpush3.bf16.xpose.msk.msra.mxu1 %vm5308_vm3, %v5316_v9  ;;  %4154 = vmatprep.mubr.msk.f32.mxu1 %vm5227_vm4, %v5228_v8 }
 0x2ec   :  { %4723 = vmatprep.subr.bf16.mxu1 %v5226_v0 }
 0x2f1   :  { %4646 = vmatpush3.bf16.xpose.msk.msra.mxu0 %vm5294_vm2, %v5338_v14 }
 0x2f2   :  { %4647 = vmatprep.subr.bf16.mxu0 %v5226_v0 }
 0x2f3   :  { %4726 = vmatpush3.bf16.xpose.msk.msra.mxu1 %vm5308_vm3, %v5340_v15 }
 0x2f4   :  { %4727 = vmatprep.subr.bf16.mxu1 %v5226_v0 }
 0x2f9   :  { %4650 = vmatpush3.bf16.xpose.msk.msra.mxu0 %vm5294_vm2, %v5362_v20 }
 0x2fa   :  { %4651 = vmatprep.subr.bf16.mxu0 %v5226_v0 }
 0x2fb   :  { %4730 = vmatpush3.bf16.xpose.msk.msra.mxu1 %vm5308_vm3, %v5364_v21 }
 0x2fc   :  { %4731 = vmatprep.subr.bf16.mxu1 %v5226_v0 }
 0x301   :  { %4654 = vmatpush3.bf16.xpose.msk.msra.mxu0 %vm5294_vm2, %v5386_v26 }
 0x302   :  { %4671 = vmatprep.subr.bf16.mxu0 %v5226_v0 }
 0x303   :  { %4734 = vmatpush3.bf16.xpose.msk.msra.mxu1 %vm5308_vm3, %v5388_v27 }
 0x304   :  { %4751 = vmatprep.subr.bf16.mxu1 %v5226_v0 }
 0x3bb   :  { %v391_v61 = vpop.f32.mrb[2].mxu0 }
 0x3bc   :  { %v465_v62 = vadd.f32 %v464_v58, %v391_v61  ;;  %v4023_v63 = vpop.f32.mrb[3].mxu0 }
 0x3be   :  { %v468_v1 = vadd.f32 %v5445_v33, %v465_v62 }
 0x3c0   :  { %5105 = vtanh.f32 %v468_v1  ;;  %v3372_v6 = vmul.f32 -1.442695, %v468_v1 }
 0x3c2   :  { %5107 = vpow2.f32 %v3372_v6 }
 0x3ca   :  { %v5106_v2 = vpop.eup %5105 }
 0x3cb   :  { %478 = vrot.lane.b32.xlu0 %v5106_v2, %s5230_s24 }
 0x3cc   :  { %v5108_v10 = vpop.eup %5107 }
 0x3cd   :  { %v472_v11 = vadd.f32 1.0, %v5108_v10 }
 0x3cf   :  { %495 = vperm.xlu0 %5096, %v3353_v5   ;;  %5109 = vrcp.f32 %v472_v11  ;;  %v864_v11 = vpop.f32.mrb[6].mxu1 }
 0x3d9   :  { %v5110_v12 = vpop.eup %5109 }
 0x3da   :  { %v476_v22 = vmul.f32 %v5110_v12, %v315_v19 }
 0x43d   :  { %v479_v13 = vpop.permute.xlu0 %478 }
 0x43e   :  { %v481_v16 = vmul.f32 %v5110_v12, %v479_v13 }
 0x440   :  { %483 = vrot.lane.b32.xlu1 %v481_v16, %s5231_s25 }
 0x444   :  { %508 = vperm.xlu1 %5095, %v505_v17  }
 0x44e   :  { %v496_v32 = vpop.permute.xlu0 %495 }
 0x4b2   :  { %v484_v23 = vpop.permute.xlu1 %483 }
 0x4b3   :  { %v486_v24 = vadd.f32 %v484_v23, %v476_v22  ;;  %v3397_v23 = vld [vmem:[%s6388_s1 + $0x6] sm:$0x3] }
 0x4b5   :  { %5111 = vtanh.f32 %v486_v24  ;;  %v513_v54 = vmul.f32 %v496_v32, %v486_v24 }
 0x4bf   :  { %v5112_v28 = vpop.eup %5111 }
 0x4c0   :  { %489 = vrot.lane.b32.xlu1 %v5112_v28, %s5232_s28 }
 0x4c3   :  { %v509_v29 = vpop.permute.xlu1 %508 }
 0x4c4   :  { %v511_v34 = vmul.f32 %v509_v29, %v313_v57  ;;  %v514_v53 = vmul.f32 %v509_v29, %v315_v19 }
 0x4c6   :  { %v515_v55 = vadd.f32 %v514_v53, %v513_v54 }
 0x532   :  { %v490_v30 = vpop.permute.xlu1 %489 }
 0x533   :  { %v492_v31 = vmul.f32 %v5110_v12, %v490_v30  ;;  %v4118_v12 = vpop.f32.mrb[7].mxu1 }
 0x535   :  { %v5525_v35 = vmul.f32 %v496_v32, %v492_v31  ;;  %v905_v32 = vsub.f32 1.0, %v3397_v23 }
 0x537   :  { %v512_v36 = vadd.f32 %v511_v34, %v5525_v35 }
 0x539   :  { %521 = vrot.lane.b32.xlu0 %v512_v36, %s5233_s29 }
 0x5ab   :  { %v522_v39 = vpop.permute.xlu0 %521 }
 0x5ac   :  { %4060 = vmatmul.mubr.msk.f32.vlgmr.msra.gmra.mrb[4].mxu0 %vm67_vm0, %v522_v39 }
 0x5ad   :  { %4674 = vmatpush3.bf16.xpose.msk.msra.mxu0 %vm5294_vm2, %v5298_v4  ;;  %4097 = vmatprep.mubr.msk.f32.mxu0 %vm5227_vm4, %v5228_v8 }
 0x5ae   :  { %4675 = vmatprep.subr.bf16.mxu0 %v5226_v0 }
 0x5b5   :  { %4678 = vmatpush3.bf16.xpose.msk.msra.mxu0 %vm5294_vm2, %v5338_v14 }
 0x5b6   :  { %4679 = vmatprep.subr.bf16.mxu0 %v5226_v0 }
 0x5bd   :  { %4682 = vmatpush3.bf16.xpose.msk.msra.mxu0 %vm5294_vm2, %v5362_v20 }
 0x5be   :  { %4683 = vmatprep.subr.bf16.mxu0 %v5226_v0 }
 0x5c5   :  { %4686 = vmatpush3.bf16.xpose.msk.msra.mxu0 %vm5294_vm2, %v5386_v26 }
 0x5c6   :  { %4703 = vmatprep.subr.bf16.mxu0 %v5226_v0 }
 0x67f   :  { %v591_v40 = vpop.f32.mrb[4].mxu0 }
 0x680   :  { %v665_v41 = vadd.f32 %v664_v37, %v591_v40  ;;  %v4061_v42 = vpop.f32.mrb[5].mxu0 }
 0x682   :  { %v668_v43 = vadd.f32 %v5445_v33, %v665_v41  ;;  %v3418_v41 = vld [vmem:[%s6387_s0 + $0x8] sm:$0x3] }
 0x683   :  { %4155 = vmatmul.mubr.msk.f32.vlgmr.msra.gmra.mrb[8].mxu1 %vm165_vm1, %v3418_v41  ;;  %v3441_v41 = vld [vmem:[%s6388_s1 + $0xa] sm:$0x3] }
 0x684   :  { %5113 = vtanh.f32 %v668_v43  ;;  %v3394_v46 = vmul.f32 -1.442695, %v668_v43  ;;  %4754 = vmatpush3.bf16.xpose.msk.msra.mxu1 %vm5308_vm3, %v5316_v9  ;;  %4192 = vmatprep.mubr.msk.f32.mxu1 %vm5227_vm4, %v5228_v8 }
 0x685   :  { %4755 = vmatprep.subr.bf16.mxu1 %v5226_v0 }
 0x686   :  { %5115 = vpow2.f32 %v3394_v46 }
 0x68c   :  { %4758 = vmatpush3.bf16.xpose.msk.msra.mxu1 %vm5308_vm3, %v5340_v15 }
 0x68d   :  { %4759 = vmatprep.subr.bf16.mxu1 %v5226_v0 }
 0x68e   :  { %v5114_v44 = vpop.eup %5113 }
 0x68f   :  { %678 = vrot.lane.b32.xlu1 %v5114_v44, %s5230_s24 }
 0x690   :  { %v5116_v47 = vpop.eup %5115 }
 0x691   :  { %v672_v48 = vadd.f32 1.0, %v5116_v47 }
 0x693   :  { %695 = vperm.xlu1 %5095, %v3375_v45   ;;  %5117 = vrcp.f32 %v672_v48 }
 0x694   :  { %4762 = vmatpush3.bf16.xpose.msk.msra.mxu1 %vm5308_vm3, %v5364_v21 }
 0x695   :  { %4763 = vmatprep.subr.bf16.mxu1 %v5226_v0 }
 0x69c   :  { %4766 = vmatpush3.bf16.xpose.msk.msra.mxu1 %vm5308_vm3, %v5388_v27 }
 0x69d   :  { %v5118_v49 = vpop.eup %5117  ;;  %4783 = vmatprep.subr.bf16.mxu1 %v5226_v0 }
 0x69e   :  { %v676_v57 = vmul.f32 %v5118_v49, %v515_v55 }
 0x701   :  { %v679_v50 = vpop.permute.xlu1 %678 }
 0x702   :  { %v681_v51 = vmul.f32 %v5118_v49, %v679_v50 }
 0x704   :  { %683 = vrot.lane.b32.xlu0 %v681_v51, %s5231_s25 }
 0x708   :  { %708 = vperm.xlu0 %5096, %v705_v52  }
 0x712   :  { %v696_v62 = vpop.permute.xlu1 %695 }
 0x756   :  { %v1064_v50 = vpop.f32.mrb[8].mxu1 }
 0x757   :  { %v4156_v51 = vpop.f32.mrb[9].mxu1 }
 0x776   :  { %v684_v58 = vpop.permute.xlu0 %683 }
 0x777   :  { %v686_v59 = vadd.f32 %v684_v58, %v676_v57 }
 0x779   :  { %5119 = vtanh.f32 %v686_v59 }
 0x783   :  { %v5120_v61 = vpop.eup %5119 }
 0x784   :  { %689 = vrot.lane.b32.xlu1 %v5120_v61, %s5232_s28 }
 0x787   :  { %v709_v63 = vpop.permute.xlu0 %708 }
 0x788   :  { %v711_v5 = vmul.f32 %v709_v63, %v512_v36  ;;  %v714_v34 = vmul.f32 %v709_v63, %v515_v55  ;;  %v713_v36 = vmul.f32 %v696_v62, %v686_v59  ;;  %v3419_v59 = vld [vmem:[%s6388_s1 + $0x8] sm:$0x3] }
 0x78a   :  { %v715_v37 = vadd.f32 %v714_v34, %v713_v36 }
 0x7f6   :  { %v690_v1 = vpop.permute.xlu1 %689 }
 0x7f7   :  { %v692_v2 = vmul.f32 %v5118_v49, %v690_v1 }
 0x7f9   :  { %v5577_v6 = vmul.f32 %v696_v62, %v692_v2 }
 0x7fb   :  { %v712_v10 = vadd.f32 %v711_v5, %v5577_v6  ;;  %v1105_v5 = vsub.f32 1.0, %v3419_v59 }
 0x7fd   :  { %721 = vrot.lane.b32.xlu0 %v712_v10, %s5233_s29 }
 0x86f   :  { %v722_v13 = vpop.permute.xlu0 %721 }
 0x870   :  { %4098 = vmatmul.mubr.msk.f32.vlgmr.msra.gmra.mrb[6].mxu0 %vm67_vm0, %v722_v13 }
 0x871   :  { %4706 = vmatpush3.bf16.xpose.msk.msra.mxu0 %vm5294_vm2, %v5298_v4  ;;  %4135 = vmatprep.mubr.msk.f32.mxu0 %vm5227_vm4, %v5228_v8 }
 0x872   :  { %4707 = vmatprep.subr.bf16.mxu0 %v5226_v0 }
 0x879   :  { %4710 = vmatpush3.bf16.xpose.msk.msra.mxu0 %vm5294_vm2, %v5338_v14 }
 0x87a   :  { %4711 = vmatprep.subr.bf16.mxu0 %v5226_v0 }
 0x881   :  { %4714 = vmatpush3.bf16.xpose.msk.msra.mxu0 %vm5294_vm2, %v5362_v20 }
 0x882   :  { %4715 = vmatprep.subr.bf16.mxu0 %v5226_v0 }
 0x889   :  { %4718 = vmatpush3.bf16.xpose.msk.msra.mxu0 %vm5294_vm2, %v5386_v26 }
 0x88a   :  { %4735 = vmatprep.subr.bf16.mxu0 %v5226_v0 }
 0x943   :  { %v791_v16 = vpop.f32.mrb[6].mxu0 }
 0x944   :  { %v865_v17 = vadd.f32 %v864_v11, %v791_v16  ;;  %v4099_v18 = vpop.f32.mrb[7].mxu0 }
 0x945   :  { %v3440_v18 = vld [vmem:[%s6387_s0 + $0xa] sm:$0x3] }
 0x946   :  { %v868_v19 = vadd.f32 %v5445_v33, %v865_v17  ;;  %4193 = vmatmul.mubr.msk.f32.vlgmr.msra.gmra.mrb[10].mxu1 %vm165_vm1, %v3440_v18 }
 0x947   :  { %4786 = vmatpush3.bf16.xpose.msk.msra.mxu1 %vm5308_vm3, %v5316_v9  ;;  %4230 = vmatprep.mubr.msk.f32.mxu1 %vm5227_vm4, %v5228_v8 }
 0x948   :  { %5121 = vtanh.f32 %v868_v19  ;;  %v3416_v24 = vmul.f32 -1.442695, %v868_v19  ;;  %4787 = vmatprep.subr.bf16.mxu1 %v5226_v0 }
 0x94a   :  { %5123 = vpow2.f32 %v3416_v24 }
 0x94f   :  { %4790 = vmatpush3.bf16.xpose.msk.msra.mxu1 %vm5308_vm3, %v5340_v15 }
 0x950   :  { %4791 = vmatprep.subr.bf16.mxu1 %v5226_v0 }
 0x952   :  { %v5122_v22 = vpop.eup %5121 }
 0x953   :  { %878 = vrot.lane.b32.xlu1 %v5122_v22, %s5230_s24 }
 0x954   :  { %v5124_v25 = vpop.eup %5123 }
 0x955   :  { %v872_v28 = vadd.f32 1.0, %v5124_v25 }
 0x957   :  { %895 = vperm.xlu1 %5095, %v3397_v23   ;;  %5125 = vrcp.f32 %v872_v28  ;;  %4794 = vmatpush3.bf16.xpose.msk.msra.mxu1 %vm5308_vm3, %v5364_v21 }
 0x958   :  { %4795 = vmatprep.subr.bf16.mxu1 %v5226_v0 }
 0x95f   :  { %4798 = vmatpush3.bf16.xpose.msk.msra.mxu1 %vm5308_vm3, %v5388_v27 }
 0x960   :  { %4815 = vmatprep.subr.bf16.mxu1 %v5226_v0 }
 0x961   :  { %v5126_v29 = vpop.eup %5125 }
 0x962   :  { %v876_v38 = vmul.f32 %v5126_v29, %v715_v37 }
 0x9c5   :  { %v879_v30 = vpop.permute.xlu1 %878 }
 0x9c6   :  { %v881_v31 = vmul.f32 %v5126_v29, %v879_v30 }
 0x9c8   :  { %883 = vrot.lane.b32.xlu0 %v881_v31, %s5231_s25 }
 0x9cc   :  { %908 = vperm.xlu0 %5096, %v905_v32  }
 0x9d6   :  { %v896_v43 = vpop.permute.xlu1 %895 }
 0xa19   :  { %v1264_v31 = vpop.f32.mrb[10].mxu1 }
 0xa1a   :  { %v4194_v32 = vpop.f32.mrb[11].mxu1 }
 0xa3a   :  { %v884_v39 = vpop.permute.xlu0 %883 }
 0xa3b   :  { %v886_v40 = vadd.f32 %v884_v39, %v876_v38 }
 0xa3d   :  { %5127 = vtanh.f32 %v886_v40  ;;  %v913_v11 = vmul.f32 %v896_v43, %v886_v40 }
 0xa47   :  { %v5128_v42 = vpop.eup %5127 }
 0xa48   :  { %889 = vrot.lane.b32.xlu1 %v5128_v42, %s5232_s28 }
 0xa4b   :  { %v909_v44 = vpop.permute.xlu0 %908 }
 0xa4c   :  { %v911_v47 = vmul.f32 %v909_v44, %v712_v10  ;;  %v914_v10 = vmul.f32 %v909_v44, %v715_v37 }
 0xa4e   :  { %v915_v12 = vadd.f32 %v914_v10, %v913_v11 }
 0xaba   :  { %v890_v45 = vpop.permute.xlu1 %889 }
 0xabb   :  { %v892_v46 = vmul.f32 %v5126_v29, %v890_v45 }
 0xabd   :  { %v5629_v48 = vmul.f32 %v896_v43, %v892_v46 }
 0xabf   :  { %v912_v49 = vadd.f32 %v911_v47, %v5629_v48 }
 0xac1   :  { %921 = vrot.lane.b32.xlu0 %v912_v49, %s5233_s29 }
 0xb33   :  { %v922_v52 = vpop.permute.xlu0 %921 }
 0xb34   :  { %4136 = vmatmul.mubr.msk.f32.vlgmr.msra.gmra.mrb[8].mxu0 %vm67_vm0, %v922_v52 }
 0xb35   :  { %4738 = vmatpush3.bf16.xpose.msk.msra.mxu0 %vm5294_vm2, %v5298_v4  ;;  %4173 = vmatprep.mubr.msk.f32.mxu0 %vm5227_vm4, %v5228_v8 }
 0xb36   :  { %4739 = vmatprep.subr.bf16.mxu0 %v5226_v0 }
 0xb3d   :  { %4742 = vmatpush3.bf16.xpose.msk.msra.mxu0 %vm5294_vm2, %v5338_v14 }
 0xb3e   :  { %4743 = vmatprep.subr.bf16.mxu0 %v5226_v0 }
 0xb45   :  { %4746 = vmatpush3.bf16.xpose.msk.msra.mxu0 %vm5294_vm2, %v5362_v20 }
 0xb46   :  { %4747 = vmatprep.subr.bf16.mxu0 %v5226_v0 }
 0xb4d   :  { %4750 = vmatpush3.bf16.xpose.msk.msra.mxu0 %vm5294_vm2, %v5386_v26 }
 0xb4e   :  { %4767 = vmatprep.subr.bf16.mxu0 %v5226_v0 }
 0xc07   :  { %v991_v53 = vpop.f32.mrb[8].mxu0 }
 0xc08   :  { %v1065_v54 = vadd.f32 %v1064_v50, %v991_v53  ;;  %v4137_v55 = vpop.f32.mrb[9].mxu0 }
 0xc0a   :  { %v1068_v57 = vadd.f32 %v5445_v33, %v1065_v54 }
 0xc0c   :  { %5129 = vtanh.f32 %v1068_v57  ;;  %v3438_v60 = vmul.f32 -1.442695, %v1068_v57  ;;  %v3462_v57 = vld [vmem:[%s6387_s0 + $0xc] sm:$0x3] }
 0xc0d   :  { %4231 = vmatmul.mubr.msk.f32.vlgmr.msra.gmra.mrb[12].mxu1 %vm165_vm1, %v3462_v57  ;;  %v56_v57 = vld [vmem:[%s6391_s6] sm:$0xff] }
 0xc0e   :  { %5131 = vpow2.f32 %v3438_v60  ;;  %4818 = vmatpush3.bf16.xpose.msk.msra.mxu1 %vm5308_vm3, %v5316_v9  ;;  %4268 = vmatprep.mubr.msk.f32.mxu1 %vm5227_vm4, %v5228_v8 }
 0xc0f   :  { %4819 = vmatprep.subr.bf16.mxu1 %v5226_v0 }
 0xc16   :  { %v5130_v58 = vpop.eup %5129  ;;  %4822 = vmatpush3.bf16.xpose.msk.msra.mxu1 %vm5308_vm3, %v5340_v15 }
 0xc17   :  { %1078 = vrot.lane.b32.xlu1 %v5130_v58, %s5230_s24  ;;  %4823 = vmatprep.subr.bf16.mxu1 %v5226_v0 }
 0xc18   :  { %v5132_v61 = vpop.eup %5131 }
 0xc19   :  { %v1072_v62 = vadd.f32 1.0, %v5132_v61 }
 0xc1b   :  { %1095 = vperm.xlu1 %5095, %v3419_v59   ;;  %5133 = vrcp.f32 %v1072_v62 }
 0xc1e   :  { %4826 = vmatpush3.bf16.xpose.msk.msra.mxu1 %vm5308_vm3, %v5364_v21 }
 0xc1f   :  { %4827 = vmatprep.subr.bf16.mxu1 %v5226_v0 }
 0xc25   :  { %v5134_v63 = vpop.eup %5133 }
 0xc26   :  { %v1076_v13 = vmul.f32 %v5134_v63, %v915_v12  ;;  %4830 = vmatpush3.bf16.xpose.msk.msra.mxu1 %vm5308_vm3, %v5388_v27 }
 0xc27   :  { %4847 = vmatprep.subr.bf16.mxu1 %v5226_v0 }
 0xc89   :  { %v1079_v1 = vpop.permute.xlu1 %1078 }
 0xc8a   :  { %v1081_v2 = vmul.f32 %v5134_v63, %v1079_v1 }
 0xc8c   :  { %1083 = vrot.lane.b32.xlu0 %v1081_v2, %s5231_s25 }
 0xc90   :  { %1108 = vperm.xlu0 %5096, %v1105_v5  }
 0xc9a   :  { %v1096_v22 = vpop.permute.xlu1 %1095 }
 0xce0   :  { %v1464_v21 = vpop.f32.mrb[12].mxu1 }
 0xce1   :  { %v4232_v1 = vpop.f32.mrb[13].mxu1 }
 0xcfe   :  { %v1084_v16 = vpop.permute.xlu0 %1083 }
 0xcff   :  { %v1086_v17 = vadd.f32 %v1084_v16, %v1076_v13 }
 0xd01   :  { %5135 = vtanh.f32 %v1086_v17  ;;  %v1113_v51 = vmul.f32 %v1096_v22, %v1086_v17 }
 0xd0b   :  { %v5136_v19 = vpop.eup %5135 }
 0xd0c   :  { %1089 = vrot.lane.b32.xlu1 %v5136_v19, %s5232_s28 }
 0xd0f   :  { %v1109_v23 = vpop.permute.xlu0 %1108 }
 0xd10   :  { %v1111_v28 = vmul.f32 %v1109_v23, %v912_v49  ;;  %v1305_v49 = vsub.f32 1.0, %v3441_v41  ;;  %v1114_v50 = vmul.f32 %v1109_v23, %v915_v12 }
 0xd12   :  { %v1115_v52 = vadd.f32 %v1114_v50, %v1113_v51  ;;  %v54_v50 = vld [vmem:[%s6390_s5 + $0x30] sm:$0xff]  ;;  %v55_v51 = vld [vmem:[%s6390_s5 + $0x38] sm:$0xff] }
 0xd7e   :  { %v1090_v24 = vpop.permute.xlu1 %1089 }
 0xd7f   :  { %v1092_v25 = vmul.f32 %v5134_v63, %v1090_v24 }
 0xd81   :  { %v5681_v29 = vmul.f32 %v1096_v22, %v1092_v25 }
 0xd83   :  { %v1112_v30 = vadd.f32 %v1111_v28, %v5681_v29  ;;  %v3484_v28 = vld [vmem:[%s6387_s0 + $0xe] sm:$0x3] }
 0xd84   :  { %4269 = vmatmul.mubr.msk.f32.vlgmr.msra.gmra.mrb[14].mxu1 %vm165_vm1, %v3484_v28 }
 0xd85   :  { %1121 = vrot.lane.b32.xlu0 %v1112_v30, %s5233_s29  ;;  %4306 = vmatprep.mubr.msk.f32.mxu1 %vm5227_vm4, %v5228_v8 }
 0xdf7   :  { %v1122_v34 = vpop.permute.xlu0 %1121 }
 0xdf8   :  { %4174 = vmatmul.mubr.msk.f32.vlgmr.msra.gmra.mrb[10].mxu0 %vm67_vm0, %v1122_v34 }
 0xdf9   :  { %4770 = vmatpush3.bf16.xpose.msk.msra.mxu0 %vm5294_vm2, %v5298_v4  ;;  %4211 = vmatprep.mubr.msk.f32.mxu0 %vm5227_vm4, %v5228_v8 }
 0xdfa   :  { %4771 = vmatprep.subr.bf16.mxu0 %v5226_v0 }
 0xe01   :  { %4774 = vmatpush3.bf16.xpose.msk.msra.mxu0 %vm5294_vm2, %v5338_v14 }
 0xe02   :  { %4775 = vmatprep.subr.bf16.mxu0 %v5226_v0 }
 0xe09   :  { %4778 = vmatpush3.bf16.xpose.msk.msra.mxu0 %vm5294_vm2, %v5362_v20 }
 0xe0a   :  { %4779 = vmatprep.subr.bf16.mxu0 %v5226_v0 }
 0xe11   :  { %4782 = vmatpush3.bf16.xpose.msk.msra.mxu0 %vm5294_vm2, %v5386_v26 }
 0xe12   :  { %4799 = vmatprep.subr.bf16.mxu0 %v5226_v0 }
 0xecb   :  { %v1191_v36 = vpop.f32.mrb[10].mxu0 }
 0xecc   :  { %v1265_v37 = vadd.f32 %v1264_v31, %v1191_v36  ;;  %v4175_v38 = vpop.f32.mrb[11].mxu0  ;;  %v49_v31 = vld [vmem:[%s6390_s5 + $0x8] sm:$0xff] }
 0xecd   :  { %v51_v38 = vld [vmem:[%s6390_s5 + $0x18] sm:$0xff] }
 0xece   :  { %v1268_v39 = vadd.f32 %v5445_v33, %v1265_v37  ;;  %v50_v37 = vld [vmem:[%s6390_s5 + $0x10] sm:$0xff] }
 0xed0   :  { %5137 = vtanh.f32 %v1268_v39  ;;  %v3460_v42 = vmul.f32 -1.442695, %v1268_v39  ;;  %v5795_v39 = vpack.c.bf16 %v51_v38, %v50_v37 }
 0xed2   :  { %5139 = vpow2.f32 %v3460_v42 }
 0xeda   :  { %v5138_v40 = vpop.eup %5137 }
 0xedb   :  { %1278 = vrot.lane.b32.xlu1 %v5138_v40, %s5230_s24 }
 0xedc   :  { %v5140_v43 = vpop.eup %5139 }
 0xedd   :  { %v1272_v44 = vadd.f32 1.0, %v5140_v43 }
 0xedf   :  { %1295 = vperm.xlu1 %5095, %v3441_v41   ;;  %5141 = vrcp.f32 %v1272_v44 }
 0xee9   :  { %v5142_v45 = vpop.eup %5141 }
 0xeea   :  { %v1276_v53 = vmul.f32 %v5142_v45, %v1115_v52 }
 0xf4d   :  { %v1279_v46 = vpop.permute.xlu1 %1278 }
 0xf4e   :  { %v1281_v47 = vmul.f32 %v5142_v45, %v1279_v46  ;;  %v53_v46 = vld [vmem:[%s6390_s5 + $0x28] sm:$0xff] }
 0xf50   :  { %1283 = vrot.lane.b32.xlu0 %v1281_v47, %s5231_s25 }
 0xf54   :  { %1308 = vperm.xlu0 %5096, %v1305_v49  }
 0xf5e   :  { %v1296_v9 = vpop.permute.xlu1 %1295 }
 0xfc2   :  { %v1284_v54 = vpop.permute.xlu0 %1283 }
 0xfc3   :  { %v1286_v55 = vadd.f32 %v1284_v54, %v1276_v53  ;;  %v3506_v53 = vld [vmem:[%s6387_s0 + $0xe] sm:$0x3]  ;;  %v1664_v54 = vpop.f32.mrb[14].mxu1 }
 0xfc5   :  { %5143 = vtanh.f32 %v1286_v55  ;;  %v1313_v19 = vmul.f32 %v1296_v9, %v1286_v55  ;;  %v4270_v55 = vpop.f32.mrb[15].mxu1 }
 0xfcf   :  { %v5144_v58 = vpop.eup %5143 }
 0xfd0   :  { %1289 = vrot.lane.b32.xlu1 %v5144_v58, %s5232_s28  ;;  %v57_v58 = vld [vmem:[%s6391_s6 + $0x8] sm:$0xff] }
 0xfd3   :  { %v1309_v59 = vpop.permute.xlu0 %1308 }
 0xfd4   :  { %v1311_v62 = vmul.f32 %v1309_v59, %v1112_v30  ;;  %v48_v30 = vld [vmem:[%s6390_s5] sm:$0xff] }
 0xfd5   :  { %v5778_v32 = vpack.c.bf16 %v49_v31, %v48_v30 }
 0xfd7   :  { %4850 = vmatpush3.bf16.xpose.msk.msra.mxu1 %vm5308_vm3, %v5778_v32 }
 0xfd8   :  { %4851 = vmatprep.subr.bf16.mxu1 %v5226_v0 }
 0xfdf   :  { %4854 = vmatpush3.bf16.xpose.msk.msra.mxu1 %vm5308_vm3, %v5795_v39 }
 0xfe0   :  { %4855 = vmatprep.subr.bf16.mxu1 %v5226_v0 }
0x1042   :  { %v1290_v60 = vpop.permute.xlu1 %1289 }
0x1043   :  { %v1292_v61 = vmul.f32 %v5142_v45, %v1290_v60  ;;  %v52_v45 = vld [vmem:[%s6390_s5 + $0x20] sm:$0xff]  ;;  %v58_v60 = vld [vmem:[%s6391_s6 + $0x10] sm:$0xff] }
0x1044   :  { %v5814_v49 = vpack.c.bf16 %v53_v46, %v52_v45 }
0x1045   :  { %v5733_v15 = vmul.f32 %v1296_v9, %v1292_v61  ;;  %v5861_v9 = vpack.c.bf16 %v57_v58, %v56_v57  ;;  %v59_v61 = vld [vmem:[%s6391_s6 + $0x18] sm:$0xff] }
0x1046   :  { %4858 = vmatpush3.bf16.xpose.msk.msra.mxu1 %vm5308_vm3, %v5814_v49 }
0x1047   :  { %v1312_v63 = vadd.f32 %v1311_v62, %v5733_v15  ;;  %4859 = vmatprep.subr.bf16.mxu1 %v5226_v0  ;;  %v5876_v62 = vpack.c.bf16 %v59_v61, %v58_v60 }
0x1049   :  { %1321 = vrot.lane.b32.xlu0 %v1312_v63, %s5233_s29 }
0x10bb   :  { %v1322_v2 = vpop.permute.xlu0 %1321 }
0x10bc   :  { %4212 = vmatmul.mubr.msk.f32.vlgmr.msra.gmra.mrb[12].mxu0 %vm67_vm0, %v1322_v2  ;;  %v62_v2 = vld [vmem:[%s6391_s6 + $0x30] sm:$0xff] }
0x10bd   :  { %4802 = vmatpush3.bf16.xpose.msk.msra.mxu0 %vm5294_vm2, %v5298_v4  ;;  %4249 = vmatprep.mubr.msk.f32.mxu0 %vm5227_vm4, %v5228_v8 }
0x10be   :  { %4803 = vmatprep.subr.bf16.mxu0 %v5226_v0 }
0x10c5   :  { %4806 = vmatpush3.bf16.xpose.msk.msra.mxu0 %vm5294_vm2, %v5338_v14 }
0x10c6   :  { %4807 = vmatprep.subr.bf16.mxu0 %v5226_v0 }
0x10cd   :  { %4810 = vmatpush3.bf16.xpose.msk.msra.mxu0 %vm5294_vm2, %v5362_v20  ;;  %v3463_v20 = vld [vmem:[%s6388_s1 + $0xc] sm:$0x3] }
0x10ce   :  { %4811 = vmatprep.subr.bf16.mxu0 %v5226_v0  ;;  %v1505_v18 = vsub.f32 1.0, %v3463_v20 }
0x10d5   :  { %4814 = vmatpush3.bf16.xpose.msk.msra.mxu0 %vm5294_vm2, %v5386_v26 }
0x10d6   :  { %4831 = vmatprep.subr.bf16.mxu0 %v5226_v0 }
0x118f   :  { %v1391_v4 = vpop.f32.mrb[12].mxu0 }
0x1190   :  { %v1465_v27 = vadd.f32 %v1464_v21, %v1391_v4  ;;  %v4213_v5 = vpop.f32.mrb[13].mxu0  ;;  %v61_v21 = vld [vmem:[%s6391_s6 + $0x28] sm:$0xff]  ;;  %v63_v4 = vld [vmem:[%s6391_s6 + $0x38] sm:$0xff] }
0x1192   :  { %v1468_v10 = vadd.f32 %v5445_v33, %v1465_v27  ;;  %v1314_v33 = vmul.f32 %v1309_v59, %v1115_v52  ;;  %v5827_v52 = vpack.c.bf16 %v55_v51, %v54_v50  ;;  %v5900_v27 = vpack.c.bf16 %v63_v4, %v62_v2  ;;  %v3529_v2 = vld [vmem:[%s6388_s1 + $0xc] sm:$0x3] }
0x1194   :  { %5145 = vtanh.f32 %v1468_v10  ;;  %v3482_v11 = vmul.f32 -1.442695, %v1468_v10  ;;  %v5762_v22 = vadd.f32 %v1314_v33, %v1313_v19  ;;  %4862 = vmatpush3.bf16.xpose.msk.msra.mxu1 %vm5308_vm3, %v5827_v52  ;;  %v3507_v33 = vld [vmem:[%s6388_s1 + $0xe] sm:$0x3] }
0x1195   :  { %4879 = vmatprep.subr.bf16.mxu1 %v5226_v0 }
0x1196   :  { %5147 = vpow2.f32 %v3482_v11 }
0x119b   :  { %4307 = vmatmul.mubr.msk.f32.vlgmr.msra.gmra.mrb[16].mxu1 %vm165_vm1, %v3506_v53 }
0x119c   :  { %4882 = vmatpush3.bf16.xpose.msk.msra.mxu1 %vm5308_vm3, %v5778_v32  ;;  %4344 = vmatprep.mubr.msk.f32.mxu1 %vm5227_vm4, %v5228_v8 }
0x119d   :  { %4883 = vmatprep.subr.bf16.mxu1 %v5226_v0 }
0x119e   :  { %v5146_v14 = vpop.eup %5145 }
0x119f   :  { %1478 = vrot.lane.b32.xlu1 %v5146_v14, %s5230_s24 }
0x11a0   :  { %v5148_v12 = vpop.eup %5147 }
0x11a1   :  { %v1472_v26 = vadd.f32 1.0, %v5148_v12  ;;  %v5930_v12 = vld [vmem:[%s6392_s7] ss:$0 sm:$0xff] }
0x11a3   :  { %1495 = vperm.xlu1 %5095, %v3463_v20   ;;  %5149 = vrcp.f32 %v1472_v26 }
0x11a4   :  { %4886 = vmatpush3.bf16.xpose.msk.msra.mxu1 %vm5308_vm3, %v5795_v39 }
0x11a5   :  { %4887 = vmatprep.subr.bf16.mxu1 %v5226_v0 }
0x11ac   :  { %4890 = vmatpush3.bf16.xpose.msk.msra.mxu1 %vm5308_vm3, %v5814_v49 }
0x11ad   :  { %v5150_v13 = vpop.eup %5149  ;;  %4891 = vmatprep.subr.bf16.mxu1 %v5226_v0 }
0x11ae   :  { %v1476_v23 = vmul.f32 %v5150_v13, %v5762_v22 }
0x11b4   :  { %4894 = vmatpush3.bf16.xpose.msk.msra.mxu1 %vm5308_vm3, %v5827_v52 }
0x11b5   :  { %4911 = vmatprep.subr.bf16.mxu1 %v5226_v0 }
0x1211   :  { %v1479_v16 = vpop.permute.xlu1 %1478 }
0x1212   :  { %v1481_v17 = vmul.f32 %v5150_v13, %v1479_v16 }
0x1214   :  { %1483 = vrot.lane.b32.xlu0 %v1481_v17, %s5231_s25 }
0x1218   :  { %1508 = vperm.xlu0 %5096, %v1505_v18  }
0x1222   :  { %v5787_v36 = vpop.permute.xlu1 %1495 }
0x126e   :  { %v1894_v5 = vpop.f32.mrb[16].mxu1 }
0x126f   :  { %v4308_v10 = vpop.f32.mrb[17].mxu1 }
0x1286   :  { %v1484_v24 = vpop.permute.xlu0 %1483 }
0x1287   :  { %v5765_v25 = vadd.f32 %v1484_v24, %v1476_v23 }
0x1289   :  { %5151 = vtanh.f32 %v5765_v25 }
0x1293   :  { %v5152_v34 = vpop.eup %5151 }
0x1294   :  { %1489 = vrot.lane.b32.xlu1 %v5152_v34, %s5232_s28  ;;  %v1941_v34 = vsub.f32 1.0, %v3507_v33 }
0x1297   :  { %v5800_v40 = vpop.permute.xlu0 %1508 }
0x1298   :  { %v1511_v43 = vmul.f32 %v5800_v40, %v1312_v63  ;;  %v60_v63 = vld [vmem:[%s6391_s6 + $0x20] sm:$0xff] }
0x1299   :  { %v5888_v1 = vpack.c.bf16 %v61_v21, %v60_v63 }
0x1306   :  { %v1490_v41 = vpop.permute.xlu1 %1489 }
0x1307   :  { %v1492_v42 = vmul.f32 %v5150_v13, %v1490_v41 }
0x1309   :  { %v5805_v44 = vmul.f32 %v5787_v36, %v1492_v42  ;;  %v3528_v42 = vld [vmem:[%s6387_s0 + $0xc] sm:$0x3] }
0x130a   :  { %4345 = vmatmul.mubr.msk.f32.vlgmr.msra.gmra.mrb[18].mxu1 %vm165_vm1, %v3528_v42 }
0x130b   :  { %v1512_v47 = vadd.f32 %v1511_v43, %v5805_v44  ;;  %4914 = vmatpush3.bf16.xpose.msk.msra.mxu1 %vm5308_vm3, %v5778_v32  ;;  %4382 = vmatprep.mubr.msk.f32.mxu1 %vm5227_vm4, %v5228_v8 }
0x130c   :  { %4915 = vmatprep.subr.bf16.mxu1 %v5226_v0 }
0x130d   :  { %1521 = vrot.lane.b32.xlu0 %v1512_v47, %s5233_s29 }
0x1313   :  { %4918 = vmatpush3.bf16.xpose.msk.msra.mxu1 %vm5308_vm3, %v5795_v39 }
0x1314   :  { %4919 = vmatprep.subr.bf16.mxu1 %v5226_v0 }
0x131b   :  { %4922 = vmatpush3.bf16.xpose.msk.msra.mxu1 %vm5308_vm3, %v5814_v49 }
0x131c   :  { %4923 = vmatprep.subr.bf16.mxu1 %v5226_v0 }
0x1323   :  { %4926 = vmatpush3.bf16.xpose.msk.msra.mxu1 %vm5308_vm3, %v5827_v52 }
0x1324   :  { %4943 = vmatprep.subr.bf16.mxu1 %v5226_v0 }
0x137f   :  { %v1522_v59 = vpop.permute.xlu0 %1521 }
0x1380   :  { %4250 = vmatmul.mubr.msk.f32.vlgmr.msra.gmra.mrb[14].mxu0 %vm67_vm0, %v1522_v59 }
0x1381   :  { %4834 = vmatpush3.bf16.xpose.msk.msra.mxu0 %vm5294_vm2, %v5861_v9  ;;  %4287 = vmatprep.mubr.msk.f32.mxu0 %vm5227_vm4, %v5228_v8 }
0x1382   :  { %4835 = vmatprep.subr.bf16.mxu0 %v5226_v0 }
0x1389   :  { %4838 = vmatpush3.bf16.xpose.msk.msra.mxu0 %vm5294_vm2, %v5876_v62 }
0x138a   :  { %4839 = vmatprep.subr.bf16.mxu0 %v5226_v0 }
0x1391   :  { %4842 = vmatpush3.bf16.xpose.msk.msra.mxu0 %vm5294_vm2, %v5888_v1 }
0x1392   :  { %4843 = vmatprep.subr.bf16.mxu0 %v5226_v0 }
0x1399   :  { %4846 = vmatpush3.bf16.xpose.msk.msra.mxu0 %vm5294_vm2, %v5900_v27 }
0x139a   :  { %4863 = vmatprep.subr.bf16.mxu0 %v5226_v0 }
0x13a0   :  { %4288 = vmatmul.mubr.f32.vlgmr.msra.gmra.mrb[16].mxu0 %v5228_v8 }
0x13a1   :  { %4866 = vmatpush3.bf16.xpose.msk.msra.mxu0 %vm5294_vm2, %v5861_v9  ;;  %4325 = vmatprep.mubr.msk.f32.mxu0 %vm5227_vm4, %v5228_v8 }
0x13a2   :  { %4867 = vmatprep.subr.bf16.mxu0 %v5226_v0 }
0x13a9   :  { %4870 = vmatpush3.bf16.xpose.msk.msra.mxu0 %vm5294_vm2, %v5876_v62 }
0x13aa   :  { %4871 = vmatprep.subr.bf16.mxu0 %v5226_v0 }
0x13b1   :  { %4874 = vmatpush3.bf16.xpose.msk.msra.mxu0 %vm5294_vm2, %v5888_v1 }
0x13b2   :  { %4875 = vmatprep.subr.bf16.mxu0 %v5226_v0 }
0x13b9   :  { %4878 = vmatpush3.bf16.xpose.msk.msra.mxu0 %vm5294_vm2, %v5900_v27 }
0x13ba   :  { %4895 = vmatprep.subr.bf16.mxu0 %v5226_v0 }
0x13dd   :  { %v2097_v55 = vpop.f32.mrb[18].mxu1 }
0x13de   :  { %v4346_v57 = vpop.f32.mrb[19].mxu1 }
0x1453   :  { %v1591_v14 = vpop.f32.mrb[14].mxu0 }
0x1454   :  { %v5925_v20 = vadd.f32 %v1664_v54, %v1591_v14  ;;  %v4251_v11 = vpop.f32.mrb[15].mxu0 }
0x1473   :  { %v1797_v26 = vpop.f32.mrb[16].mxu0 }
0x1474   :  { %v1895_v13 = vadd.f32 %v1894_v5, %v1797_v26  ;;  %v4289_v16 = vpop.f32.mrb[17].mxu0 }
0x1476   :  { %v1904_v17 = vadd.f32 %v5930_v12, %v1895_v13  ;;  %v2138_v13 = vsub.f32 1.0, %v3529_v2 }
0x1478   :  { %5153 = vtanh.f32 %v1904_v17  ;;  %v3526_v19 = vmul.f32 -1.442695, %v1904_v17 }
0x147a   :  { %5155 = vpow2.f32 %v3526_v19 }
0x1482   :  { %v5154_v18 = vpop.eup %5153 }
0x1483   :  { %1914 = vrot.lane.b32.xlu1 %v5154_v18, %s5230_s24 }
0x1484   :  { %v5156_v23 = vpop.eup %5155 }
0x1485   :  { %v1908_v24 = vadd.f32 1.0, %v5156_v23  ;;  %v3550_v23 = vld [vmem:[%s6387_s0 + $0xa] sm:$0x3] }
0x1486   :  { %4383 = vmatmul.mubr.msk.f32.vlgmr.msra.gmra.mrb[20].mxu1 %vm165_vm1, %v3550_v23 }
0x1487   :  { %1931 = vperm.xlu1 %5095, %v3507_v33   ;;  %5157 = vrcp.f32 %v1908_v24  ;;  %4946 = vmatpush3.bf16.xpose.msk.msra.mxu1 %vm5308_vm3, %v5778_v32 }
0x1488   :  { %4420 = vmatprep.mubr.msk.f32.mxu1 %vm5227_vm4, %v5228_v8  ;;  %4947 = vmatprep.subr.bf16.mxu1 %v5226_v0 }
0x148f   :  { %4950 = vmatpush3.bf16.xpose.msk.msra.mxu1 %vm5308_vm3, %v5795_v39 }
0x1490   :  { %4951 = vmatprep.subr.bf16.mxu1 %v5226_v0 }
0x1491   :  { %v5158_v28 = vpop.eup %5157 }
0x1492   :  { %v1912_v37 = vmul.f32 0.0, %v5158_v28 }
0x1497   :  { %4954 = vmatpush3.bf16.xpose.msk.msra.mxu1 %vm5308_vm3, %v5814_v49 }
0x1498   :  { %4955 = vmatprep.subr.bf16.mxu1 %v5226_v0 }
0x149f   :  { %4958 = vmatpush3.bf16.xpose.msk.msra.mxu1 %vm5308_vm3, %v5827_v52 }
0x14a0   :  { %4975 = vmatprep.subr.bf16.mxu1 %v5226_v0 }
0x14f5   :  { %v1915_v30 = vpop.permute.xlu1 %1914 }
0x14f6   :  { %v1917_v31 = vmul.f32 %v5158_v28, %v1915_v30 }
0x14f8   :  { %1919 = vrot.lane.b32.xlu0 %v1917_v31, %s5231_s25 }
0x14fc   :  { %1944 = vperm.xlu0 %5096, %v1941_v34  }
0x1506   :  { %v1932_v45 = vpop.permute.xlu1 %1931 }
0x1559   :  { %v2295_v42 = vpop.f32.mrb[20].mxu1 }
0x156a   :  { %v1920_v38 = vpop.permute.xlu0 %1919 }
0x156b   :  { %v1922_v41 = vadd.f32 %v1920_v38, %v1912_v37 }
0x156d   :  { %5159 = vtanh.f32 %v1922_v41  ;;  %v1949_v16 = vmul.f32 %v1932_v45, %v1922_v41 }
0x1577   :  { %v5160_v43 = vpop.eup %5159 }
0x1578   :  { %1925 = vrot.lane.b32.xlu1 %v5160_v43, %s5232_s28  ;;  %v4384_v43 = vpop.f32.mrb[21].mxu1 }
0x157b   :  { %v1945_v46 = vpop.permute.xlu0 %1944 }
0x157c   :  { %v1947_v51 = vmul.f32 0.0, %v1945_v46 }
0x157e   :  { %v1950_v17 = vadd.f32 %v1949_v16, %v1947_v51 }
0x15ea   :  { %v1926_v47 = vpop.permute.xlu1 %1925 }
0x15eb   :  { %v1928_v50 = vmul.f32 %v5158_v28, %v1926_v47 }
0x15ed   :  { %v5961_v53 = vmul.f32 %v1932_v45, %v1928_v50 }
0x15ef   :  { %v1948_v54 = vadd.f32 %v1947_v51, %v5961_v53 }
0x15f1   :  { %1954 = vrot.lane.b32.xlu0 %v1948_v54, %s5233_s29 }
0x1663   :  { %v1955_v58 = vpop.permute.xlu0 %1954 }
0x1664   :  { %4326 = vmatmul.mubr.msk.f32.vlgmr.msra.gmra.mrb[18].mxu0 %vm67_vm0, %v1955_v58 }
0x1665   :  { %4898 = vmatpush3.bf16.xpose.msk.msra.mxu0 %vm5294_vm2, %v5861_v9  ;;  %4363 = vmatprep.mubr.msk.f32.mxu0 %vm5227_vm4, %v5228_v8 }
0x1666   :  { %4899 = vmatprep.subr.bf16.mxu0 %v5226_v0 }
0x166d   :  { %4902 = vmatpush3.bf16.xpose.msk.msra.mxu0 %vm5294_vm2, %v5876_v62 }
0x166e   :  { %4903 = vmatprep.subr.bf16.mxu0 %v5226_v0 }
0x1675   :  { %4906 = vmatpush3.bf16.xpose.msk.msra.mxu0 %vm5294_vm2, %v5888_v1 }
0x1676   :  { %4907 = vmatprep.subr.bf16.mxu0 %v5226_v0 }
0x167d   :  { %4910 = vmatpush3.bf16.xpose.msk.msra.mxu0 %vm5294_vm2, %v5900_v27 }
0x167e   :  { %4927 = vmatprep.subr.bf16.mxu0 %v5226_v0 }
0x1737   :  { %v2024_v59 = vpop.f32.mrb[18].mxu0 }
0x1738   :  { %v2098_v60 = vadd.f32 %v2097_v55, %v2024_v59  ;;  %v4327_v61 = vpop.f32.mrb[19].mxu0  ;;  %v3551_v55 = vld [vmem:[%s6388_s1 + $0xa] sm:$0x3] }
0x173a   :  { %v2101_v63 = vadd.f32 %v5930_v12, %v2098_v60 }
0x173c   :  { %5161 = vtanh.f32 %v2101_v63  ;;  %v3548_v4 = vmul.f32 -1.442695, %v2101_v63 }
0x173e   :  { %5163 = vpow2.f32 %v3548_v4 }
0x1746   :  { %v5162_v21 = vpop.eup %5161 }
0x1747   :  { %2111 = vrot.lane.b32.xlu1 %v5162_v21, %s5230_s24  ;;  %v2336_v21 = vsub.f32 1.0, %v3551_v55 }
0x1748   :  { %v5164_v5 = vpop.eup %5163 }
0x1749   :  { %v2105_v10 = vadd.f32 1.0, %v5164_v5 }
0x174b   :  { %2128 = vperm.xlu1 %5095, %v3529_v2   ;;  %5165 = vrcp.f32 %v2105_v10 }
0x1755   :  { %v5166_v14 = vpop.eup %5165 }
0x1756   :  { %v2109_v18 = vmul.f32 %v5166_v14, %v1950_v17 }
0x17b9   :  { %v2112_v11 = vpop.permute.xlu1 %2111 }
0x17ba   :  { %v2114_v26 = vmul.f32 %v5166_v14, %v2112_v11 }
0x17bc   :  { %2116 = vrot.lane.b32.xlu0 %v2114_v26, %s5231_s25  ;;  %v3572_v26 = vld [vmem:[%s6387_s0 + $0x8] sm:$0x3] }
0x17bd   :  { %4421 = vmatmul.mubr.msk.f32.vlgmr.msra.gmra.mrb[22].mxu1 %vm165_vm1, %v3572_v26 }
0x17be   :  { %4978 = vmatpush3.bf16.xpose.msk.msra.mxu1 %vm5308_vm3, %v5778_v32  ;;  %4458 = vmatprep.mubr.msk.f32.mxu1 %vm5227_vm4, %v5228_v8 }
0x17bf   :  { %4979 = vmatprep.subr.bf16.mxu1 %v5226_v0 }
0x17c0   :  { %2141 = vperm.xlu0 %5096, %v2138_v13  }
0x17c6   :  { %4982 = vmatpush3.bf16.xpose.msk.msra.mxu1 %vm5308_vm3, %v5795_v39 }
0x17c7   :  { %4983 = vmatprep.subr.bf16.mxu1 %v5226_v0 }
0x17ca   :  { %v2129_v28 = vpop.permute.xlu1 %2128 }
0x17ce   :  { %4986 = vmatpush3.bf16.xpose.msk.msra.mxu1 %vm5308_vm3, %v5814_v49 }
0x17cf   :  { %4987 = vmatprep.subr.bf16.mxu1 %v5226_v0 }
0x17d6   :  { %4990 = vmatpush3.bf16.xpose.msk.msra.mxu1 %vm5308_vm3, %v5827_v52 }
0x17d7   :  { %5007 = vmatprep.subr.bf16.mxu1 %v5226_v0 }
0x182e   :  { %v2117_v33 = vpop.permute.xlu0 %2116 }
0x182f   :  { %v2119_v19 = vadd.f32 %v2117_v33, %v2109_v18 }
0x1831   :  { %5167 = vtanh.f32 %v2119_v19  ;;  %v2146_v4 = vmul.f32 %v2129_v28, %v2119_v19 }
0x183b   :  { %v5168_v24 = vpop.eup %5167 }
0x183c   :  { %2122 = vrot.lane.b32.xlu1 %v5168_v24, %s5232_s28 }
0x183f   :  { %v2142_v30 = vpop.permute.xlu0 %2141 }
0x1840   :  { %v2144_v37 = vmul.f32 %v2142_v30, %v1948_v54  ;;  %v2147_v2 = vmul.f32 %v2142_v30, %v1950_v17 }
0x1842   :  { %v2148_v5 = vadd.f32 %v2147_v2, %v2146_v4  ;;  %v3594_v2 = vld [vmem:[%s6387_s0 + $0x6] sm:$0x3] }
0x1843   :  { %4459 = vmatmul.mubr.msk.f32.vlgmr.msra.gmra.mrb[24].mxu1 %vm165_vm1, %v3594_v2 }
0x1844   :  { %5010 = vmatpush3.bf16.xpose.msk.msra.mxu1 %vm5308_vm3, %v5778_v32  ;;  %4496 = vmatprep.mubr.msk.f32.mxu1 %vm5227_vm4, %v5228_v8 }
0x1845   :  { %5011 = vmatprep.subr.bf16.mxu1 %v5226_v0 }
0x184c   :  { %5014 = vmatpush3.bf16.xpose.msk.msra.mxu1 %vm5308_vm3, %v5795_v39 }
0x184d   :  { %5015 = vmatprep.subr.bf16.mxu1 %v5226_v0 }
0x1854   :  { %5018 = vmatpush3.bf16.xpose.msk.msra.mxu1 %vm5308_vm3, %v5814_v49 }
0x1855   :  { %5019 = vmatprep.subr.bf16.mxu1 %v5226_v0 }
0x185c   :  { %5022 = vmatpush3.bf16.xpose.msk.msra.mxu1 %vm5308_vm3, %v5827_v52 }
0x185d   :  { %5039 = vmatprep.subr.bf16.mxu1 %v5226_v0 }
0x18ae   :  { %v2123_v31 = vpop.permute.xlu1 %2122 }
0x18af   :  { %v2125_v34 = vmul.f32 %v5166_v14, %v2123_v31 }
0x18b1   :  { %v6013_v38 = vmul.f32 %v2129_v28, %v2125_v34  ;;  %v2493_v28 = vpop.f32.mrb[22].mxu1 }
0x18b2   :  { %v4422_v30 = vpop.f32.mrb[23].mxu1 }
0x18b3   :  { %v2145_v41 = vadd.f32 %v2144_v37, %v6013_v38 }
0x18b5   :  { %2152 = vrot.lane.b32.xlu0 %v2145_v41, %s5233_s29 }
0x1927   :  { %v2153_v45 = vpop.permute.xlu0 %2152 }
0x1928   :  { %4364 = vmatmul.mubr.msk.f32.vlgmr.msra.gmra.mrb[20].mxu0 %vm67_vm0, %v2153_v45  ;;  %v3573_v45 = vld [vmem:[%s6388_s1 + $0x8] sm:$0x3] }
0x1929   :  { %4930 = vmatpush3.bf16.xpose.msk.msra.mxu0 %vm5294_vm2, %v5861_v9  ;;  %4401 = vmatprep.mubr.msk.f32.mxu0 %vm5227_vm4, %v5228_v8 }
0x192a   :  { %4931 = vmatprep.subr.bf16.mxu0 %v5226_v0 }
0x1931   :  { %4934 = vmatpush3.bf16.xpose.msk.msra.mxu0 %vm5294_vm2, %v5876_v62 }
0x1932   :  { %4935 = vmatprep.subr.bf16.mxu0 %v5226_v0 }
0x1939   :  { %4938 = vmatpush3.bf16.xpose.msk.msra.mxu0 %vm5294_vm2, %v5888_v1 }
0x193a   :  { %4939 = vmatprep.subr.bf16.mxu0 %v5226_v0 }
0x1941   :  { %4942 = vmatpush3.bf16.xpose.msk.msra.mxu0 %vm5294_vm2, %v5900_v27 }
0x1942   :  { %4959 = vmatprep.subr.bf16.mxu0 %v5226_v0 }
0x19fb   :  { %v2222_v46 = vpop.f32.mrb[20].mxu0 }
0x19fc   :  { %v2296_v47 = vadd.f32 %v2295_v42, %v2222_v46  ;;  %v4365_v50 = vpop.f32.mrb[21].mxu0 }
0x19fe   :  { %v2299_v51 = vadd.f32 %v5930_v12, %v2296_v47 }
0x1a00   :  { %5169 = vtanh.f32 %v2299_v51  ;;  %v3570_v57 = vmul.f32 -1.442695, %v2299_v51 }
0x1a02   :  { %5171 = vpow2.f32 %v3570_v57  ;;  %v2534_v57 = vsub.f32 1.0, %v3573_v45 }
0x1a0a   :  { %v5170_v54 = vpop.eup %5169 }
0x1a0b   :  { %2309 = vrot.lane.b32.xlu1 %v5170_v54, %s5230_s24 }
0x1a0c   :  { %v5172_v58 = vpop.eup %5171 }
0x1a0d   :  { %v2303_v59 = vadd.f32 1.0, %v5172_v58 }
0x1a0f   :  { %2326 = vperm.xlu1 %5095, %v3551_v55   ;;  %5173 = vrcp.f32 %v2303_v59 }
0x1a19   :  { %v5174_v60 = vpop.eup %5173 }
0x1a1a   :  { %v2307_v10 = vmul.f32 %v5174_v60, %v2148_v5 }
0x1a7d   :  { %v2310_v61 = vpop.permute.xlu1 %2309 }
0x1a7e   :  { %v2312_v63 = vmul.f32 %v5174_v60, %v2310_v61 }
0x1a80   :  { %2314 = vrot.lane.b32.xlu0 %v2312_v63, %s5231_s25 }
0x1a84   :  { %2339 = vperm.xlu0 %5096, %v2336_v21  }
0x1a8e   :  { %v2327_v16 = vpop.permute.xlu1 %2326 }
0x1af2   :  { %v2315_v14 = vpop.permute.xlu0 %2314 }
0x1af3   :  { %v2317_v11 = vadd.f32 %v2315_v14, %v2307_v10 }
0x1af5   :  { %5175 = vtanh.f32 %v2317_v11  ;;  %v2344_v59 = vmul.f32 %v2327_v16, %v2317_v11 }
0x1aff   :  { %v5176_v13 = vpop.eup %5175 }
0x1b00   :  { %2320 = vrot.lane.b32.xlu1 %v5176_v13, %s5232_s28 }
0x1b03   :  { %v2340_v17 = vpop.permute.xlu0 %2339 }
0x1b04   :  { %v2342_v19 = vmul.f32 %v2340_v17, %v2145_v41  ;;  %v2345_v58 = vmul.f32 %v2340_v17, %v2148_v5  ;;  %v2691_v17 = vpop.f32.mrb[24].mxu1 }
0x1b72   :  { %v2321_v18 = vpop.permute.xlu1 %2320 }
0x1b73   :  { %v2323_v33 = vmul.f32 %v5174_v60, %v2321_v18  ;;  %v2346_v60 = vadd.f32 %v2345_v58, %v2344_v59  ;;  %v4460_v18 = vpop.f32.mrb[25].mxu1  ;;  %v3616_v59 = vld [vmem:[%s6387_s0 + $0x4] sm:$0x3] }
0x1b74   :  { %4497 = vmatmul.mubr.msk.f32.vlgmr.msra.gmra.mrb[26].mxu1 %vm165_vm1, %v3616_v59 }
0x1b75   :  { %v6065_v23 = vmul.f32 %v2327_v16, %v2323_v33  ;;  %5042 = vmatpush3.bf16.xpose.msk.msra.mxu1 %vm5308_vm3, %v5778_v32  ;;  %4534 = vmatprep.mubr.msk.f32.mxu1 %vm5227_vm4, %v5228_v8 }
0x1b76   :  { %5043 = vmatprep.subr.bf16.mxu1 %v5226_v0 }
0x1b77   :  { %v2343_v24 = vadd.f32 %v2342_v19, %v6065_v23 }
0x1b79   :  { %2350 = vrot.lane.b32.xlu0 %v2343_v24, %s5233_s29 }
0x1b7d   :  { %5046 = vmatpush3.bf16.xpose.msk.msra.mxu1 %vm5308_vm3, %v5795_v39 }
0x1b7e   :  { %5047 = vmatprep.subr.bf16.mxu1 %v5226_v0 }
0x1b85   :  { %5050 = vmatpush3.bf16.xpose.msk.msra.mxu1 %vm5308_vm3, %v5814_v49 }
0x1b86   :  { %5051 = vmatprep.subr.bf16.mxu1 %v5226_v0 }
0x1b8d   :  { %5054 = vmatpush3.bf16.xpose.msk.msra.mxu1 %vm5308_vm3, %v5827_v52 }
0x1b8e   :  { %5071 = vmatprep.subr.bf16.mxu1 %v5226_v0 }
0x1beb   :  { %v2351_v31 = vpop.permute.xlu0 %2350 }
0x1bec   :  { %4402 = vmatmul.mubr.msk.f32.vlgmr.msra.gmra.mrb[22].mxu0 %vm67_vm0, %v2351_v31 }
0x1bed   :  { %4962 = vmatpush3.bf16.xpose.msk.msra.mxu0 %vm5294_vm2, %v5861_v9  ;;  %4439 = vmatprep.mubr.msk.f32.mxu0 %vm5227_vm4, %v5228_v8 }
0x1bee   :  { %4963 = vmatprep.subr.bf16.mxu0 %v5226_v0 }
0x1bf5   :  { %4966 = vmatpush3.bf16.xpose.msk.msra.mxu0 %vm5294_vm2, %v5876_v62 }
0x1bf6   :  { %4967 = vmatprep.subr.bf16.mxu0 %v5226_v0 }
0x1bfd   :  { %4970 = vmatpush3.bf16.xpose.msk.msra.mxu0 %vm5294_vm2, %v5888_v1 }
0x1bfe   :  { %4971 = vmatprep.subr.bf16.mxu0 %v5226_v0 }
0x1c05   :  { %4974 = vmatpush3.bf16.xpose.msk.msra.mxu0 %vm5294_vm2, %v5900_v27 }
0x1c06   :  { %4991 = vmatprep.subr.bf16.mxu0 %v5226_v0 }
0x1cbf   :  { %v2420_v34 = vpop.f32.mrb[22].mxu0 }
0x1cc0   :  { %v2494_v37 = vadd.f32 %v2493_v28, %v2420_v34  ;;  %v4403_v41 = vpop.f32.mrb[23].mxu0  ;;  %v3595_v34 = vld [vmem:[%s6388_s1 + $0x6] sm:$0x3] }
0x1cc2   :  { %v2497_v42 = vadd.f32 %v5930_v12, %v2494_v37 }
0x1cc4   :  { %5177 = vtanh.f32 %v2497_v42  ;;  %v3592_v46 = vmul.f32 -1.442695, %v2497_v42 }
0x1cc6   :  { %5179 = vpow2.f32 %v3592_v46 }
0x1cce   :  { %v5178_v43 = vpop.eup %5177 }
0x1ccf   :  { %2507 = vrot.lane.b32.xlu1 %v5178_v43, %s5230_s24 }
0x1cd0   :  { %v5180_v47 = vpop.eup %5179 }
0x1cd1   :  { %v2501_v50 = vadd.f32 1.0, %v5180_v47  ;;  %v2732_v47 = vsub.f32 1.0, %v3595_v34 }
0x1cd3   :  { %2524 = vperm.xlu1 %5095, %v3573_v45   ;;  %5181 = vrcp.f32 %v2501_v50 }
0x1cdd   :  { %v5182_v51 = vpop.eup %5181 }
0x1cde   :  { %v2505_v61 = vmul.f32 %v5182_v51, %v2346_v60 }
0x1d41   :  { %v2508_v54 = vpop.permute.xlu1 %2507 }
0x1d42   :  { %v2510_v55 = vmul.f32 %v5182_v51, %v2508_v54 }
0x1d44   :  { %2512 = vrot.lane.b32.xlu0 %v2510_v55, %s5231_s25 }
0x1d48   :  { %2537 = vperm.xlu0 %5096, %v2534_v57  }
0x1d52   :  { %v2525_v5 = vpop.permute.xlu1 %2524 }
0x1db6   :  { %v2513_v63 = vpop.permute.xlu0 %2512 }
0x1db7   :  { %v2515_v21 = vadd.f32 %v2513_v63, %v2505_v61 }
0x1db9   :  { %5183 = vtanh.f32 %v2515_v21 }
0x1dc3   :  { %v5184_v4 = vpop.eup %5183 }
0x1dc4   :  { %2518 = vrot.lane.b32.xlu1 %v5184_v4, %s5232_s28 }
0x1dc7   :  { %v2538_v10 = vpop.permute.xlu0 %2537 }
0x1dc8   :  { %v2540_v26 = vmul.f32 %v2538_v10, %v2343_v24  ;;  %v2543_v50 = vmul.f32 %v2538_v10, %v2346_v60 }
0x1e36   :  { %v2519_v14 = vpop.permute.xlu1 %2518 }
0x1e37   :  { %v2521_v11 = vmul.f32 %v5182_v51, %v2519_v14  ;;  %v2542_v51 = vmul.f32 %v2525_v5, %v2515_v21  ;;  %v2889_v14 = vpop.f32.mrb[26].mxu1 }
0x1e39   :  { %v6117_v13 = vmul.f32 %v2525_v5, %v2521_v11  ;;  %v2544_v54 = vadd.f32 %v2543_v50, %v2542_v51  ;;  %v4498_v11 = vpop.f32.mrb[27].mxu1 }
0x1e3b   :  { %v2541_v16 = vadd.f32 %v2540_v26, %v6117_v13 }
0x1e3d   :  { %2548 = vrot.lane.b32.xlu0 %v2541_v16, %s5233_s29 }
0x1eaf   :  { %v2549_v33 = vpop.permute.xlu0 %2548 }
0x1eb0   :  { %4440 = vmatmul.mubr.msk.f32.vlgmr.msra.gmra.mrb[24].mxu0 %vm67_vm0, %v2549_v33 }
0x1eb1   :  { %4994 = vmatpush3.bf16.xpose.msk.msra.mxu0 %vm5294_vm2, %v5861_v9  ;;  %4477 = vmatprep.mubr.msk.f32.mxu0 %vm5227_vm4, %v5228_v8 }
0x1eb2   :  { %4995 = vmatprep.subr.bf16.mxu0 %v5226_v0 }
0x1eb9   :  { %4998 = vmatpush3.bf16.xpose.msk.msra.mxu0 %vm5294_vm2, %v5876_v62 }
0x1eba   :  { %4999 = vmatprep.subr.bf16.mxu0 %v5226_v0 }
0x1ec1   :  { %5002 = vmatpush3.bf16.xpose.msk.msra.mxu0 %vm5294_vm2, %v5888_v1 }
0x1ec2   :  { %5003 = vmatprep.subr.bf16.mxu0 %v5226_v0 }
0x1ec9   :  { %5006 = vmatpush3.bf16.xpose.msk.msra.mxu0 %vm5294_vm2, %v5900_v27 }
0x1eca   :  { %5023 = vmatprep.subr.bf16.mxu0 %v5226_v0 }
0x1f83   :  { %v2618_v19 = vpop.f32.mrb[24].mxu0 }
0x1f84   :  { %v2692_v24 = vadd.f32 %v2691_v17, %v2618_v19  ;;  %v4441_v28 = vpop.f32.mrb[25].mxu0 }
0x1f86   :  { %v2695_v30 = vadd.f32 %v5930_v12, %v2692_v24  ;;  %v3617_v24 = vld [vmem:[%s6388_s1 + $0x4] sm:$0x3] }
0x1f88   :  { %5185 = vtanh.f32 %v2695_v30  ;;  %v3614_v37 = vmul.f32 -1.442695, %v2695_v30 }
0x1f8a   :  { %5187 = vpow2.f32 %v3614_v37 }
0x1f92   :  { %v5186_v31 = vpop.eup %5185 }
0x1f93   :  { %2705 = vrot.lane.b32.xlu1 %v5186_v31, %s5230_s24 }
0x1f94   :  { %v5188_v41 = vpop.eup %5187 }
0x1f95   :  { %v2699_v42 = vadd.f32 1.0, %v5188_v41 }
0x1f97   :  { %2722 = vperm.xlu1 %5095, %v3595_v34   ;;  %5189 = vrcp.f32 %v2699_v42  ;;  %v2930_v42 = vsub.f32 1.0, %v3617_v24 }
0x1fa1   :  { %v5190_v43 = vpop.eup %5189 }
0x1fa2   :  { %v2703_v55 = vmul.f32 %v5190_v43, %v2544_v54 }
0x2005   :  { %v2706_v45 = vpop.permute.xlu1 %2705 }
0x2006   :  { %v2708_v46 = vmul.f32 %v5190_v43, %v2706_v45 }
0x2008   :  { %2710 = vrot.lane.b32.xlu0 %v2708_v46, %s5231_s25 }
0x200c   :  { %2735 = vperm.xlu0 %5096, %v2732_v47  }
0x2016   :  { %v2723_v61 = vpop.permute.xlu1 %2722 }
0x207a   :  { %v2711_v57 = vpop.permute.xlu0 %2710 }
0x207b   :  { %v2713_v58 = vadd.f32 %v2711_v57, %v2703_v55  ;;  %v3638_v55 = vld [vmem:[%s6387_s0 + $0x2] sm:$0x3] }
0x207c   :  { %4535 = vmatmul.mubr.msk.f32.vlgmr.msra.gmra.mrb[28].mxu1 %vm165_vm1, %v3638_v55 }
0x207d   :  { %5191 = vtanh.f32 %v2713_v58  ;;  %v2740_v45 = vmul.f32 %v2723_v61, %v2713_v58  ;;  %5074 = vmatpush3.bf16.xpose.msk.msra.mxu1 %vm5308_vm3, %v5778_v32  ;;  %4572 = vmatprep.mubr.msk.f32.mxu1 %vm5227_vm4, %v5228_v8 }
0x207e   :  { %5075 = vmatprep.subr.bf16.mxu1 %v5226_v0 }
0x2085   :  { %5078 = vmatpush3.bf16.xpose.msk.msra.mxu1 %vm5308_vm3, %v5795_v39 }
0x2086   :  { %5079 = vmatprep.subr.bf16.mxu1 %v5226_v0 }
0x2087   :  { %v5192_v60 = vpop.eup %5191 }
0x2088   :  { %2716 = vrot.lane.b32.xlu1 %v5192_v60, %s5232_s28 }
0x208b   :  { %v2736_v63 = vpop.permute.xlu0 %2735 }
0x208c   :  { %v2738_v4 = vmul.f32 %v2736_v63, %v2541_v16 }
0x208d   :  { %5082 = vmatpush3.bf16.xpose.msk.msra.mxu1 %vm5308_vm3, %v5814_v49 }
0x208e   :  { %5083 = vmatprep.subr.bf16.mxu1 %v5226_v0 }
0x2095   :  { %5086 = vmatpush3.bf16.xpose.msk.msra.mxu1 %vm5308_vm3, %v5827_v52 }
0x20fa   :  { %v2717_v21 = vpop.permute.xlu1 %2716 }
0x20fb   :  { %v2719_v2 = vmul.f32 %v5190_v43, %v2717_v21  ;;  %v2741_v43 = vmul.f32 %v2736_v63, %v2544_v54 }
0x20fd   :  { %v6169_v5 = vmul.f32 %v2723_v61, %v2719_v2  ;;  %v2742_v46 = vadd.f32 %v2741_v43, %v2740_v45 }
0x20ff   :  { %v2739_v10 = vadd.f32 %v2738_v4, %v6169_v5 }
0x2101   :  { %2746 = vrot.lane.b32.xlu0 %v2739_v10, %s5233_s29 }
0x214f   :  { %v3087_v63 = vpop.f32.mrb[28].mxu1 }
0x2150   :  { %v4536_v21 = vpop.f32.mrb[29].mxu1 }
0x2173   :  { %v2747_v26 = vpop.permute.xlu0 %2746 }
0x2174   :  { %4478 = vmatmul.mubr.msk.f32.vlgmr.msra.gmra.mrb[26].mxu0 %vm67_vm0, %v2747_v26 }
0x2175   :  { %5026 = vmatpush3.bf16.xpose.msk.msra.mxu0 %vm5294_vm2, %v5861_v9  ;;  %4515 = vmatprep.mubr.msk.f32.mxu0 %vm5227_vm4, %v5228_v8 }
0x2176   :  { %5027 = vmatprep.subr.bf16.mxu0 %v5226_v0 }
0x217d   :  { %5030 = vmatpush3.bf16.xpose.msk.msra.mxu0 %vm5294_vm2, %v5876_v62 }
0x217e   :  { %5031 = vmatprep.subr.bf16.mxu0 %v5226_v0 }
0x2185   :  { %5034 = vmatpush3.bf16.xpose.msk.msra.mxu0 %vm5294_vm2, %v5888_v1 }
0x2186   :  { %5035 = vmatprep.subr.bf16.mxu0 %v5226_v0 }
0x218d   :  { %5038 = vmatpush3.bf16.xpose.msk.msra.mxu0 %vm5294_vm2, %v5900_v27 }
0x218e   :  { %5055 = vmatprep.subr.bf16.mxu0 %v5226_v0 }
0x2247   :  { %v2816_v16 = vpop.f32.mrb[26].mxu0 }
0x2248   :  { %v2890_v17 = vadd.f32 %v2889_v14, %v2816_v16  ;;  %v4479_v18 = vpop.f32.mrb[27].mxu0 }
0x224a   :  { %v2893_v33 = vadd.f32 %v5930_v12, %v2890_v17 }
0x224c   :  { %5193 = vtanh.f32 %v2893_v33  ;;  %v3636_v28 = vmul.f32 -1.442695, %v2893_v33 }
0x224e   :  { %5195 = vpow2.f32 %v3636_v28  ;;  %v3139_v28 = vld [vmem:[%s6387_s0] sm:$0x3] }
0x224f   :  { %4573 = vmatmul.mubr.msk.f32.vlgmr.msra.gmra.mrb[30].mxu1 %vm165_vm1, %v3139_v28 }
0x2256   :  { %v5194_v19 = vpop.eup %5193 }
0x2257   :  { %2903 = vrot.lane.b32.xlu1 %v5194_v19, %s5230_s24  ;;  %v5225_v19 = vld [vmem:[%s6389_s4] ss:$0 sm:$0xff] }
0x2258   :  { %v5196_v30 = vpop.eup %5195 }
0x2259   :  { %v2897_v31 = vadd.f32 1.0, %v5196_v30 }
0x225b   :  { %2920 = vperm.xlu1 %5095, %v3617_v24   ;;  %5197 = vrcp.f32 %v2897_v31  ;;  %v1668_v24 = vadd.f32 %v5225_v19, %v5925_v20 }
0x2265   :  { %v5198_v34 = vpop.eup %5197 }
0x2266   :  { %v2901_v47 = vmul.f32 %v5198_v34, %v2742_v46 }
0x22c9   :  { %v2904_v37 = vpop.permute.xlu1 %2903 }
0x22ca   :  { %v2906_v41 = vmul.f32 %v5198_v34, %v2904_v37 }
0x22cc   :  { %2908 = vrot.lane.b32.xlu0 %v2906_v41, %s5231_s25 }
0x22d0   :  { %2933 = vperm.xlu0 %5096, %v2930_v42  }
0x22da   :  { %v2921_v32 = vpop.permute.xlu1 %2920 }
0x233e   :  { %v2909_v50 = vpop.permute.xlu0 %2908 }
0x233f   :  { %v2911_v51 = vadd.f32 %v2909_v50, %v2901_v47 }
0x2341   :  { %5199 = vtanh.f32 %v2911_v51  ;;  %v2938_v26 = vmul.f32 %v2921_v32, %v2911_v51 }
0x234b   :  { %v5200_v54 = vpop.eup %5199 }
0x234c   :  { %2914 = vrot.lane.b32.xlu1 %v5200_v54, %s5232_s28 }
0x234f   :  { %v2934_v57 = vpop.permute.xlu0 %2933 }
0x2350   :  { %v2936_v60 = vmul.f32 %v2934_v57, %v2739_v10  ;;  %v2939_v11 = vmul.f32 %v2934_v57, %v2742_v46  ;;  %v1514_v57 = vmul.f32 %v5800_v40, %v5762_v22  ;;  %v3285_v22 = vpop.f32.mrb[30].mxu1 }
0x2352   :  { %v6248_v16 = vadd.f32 %v2939_v11, %v2938_v26  ;;  %v3140_v26 = vld [vmem:[%s6388_s1] sm:$0x3] }
0x23be   :  { %v2915_v58 = vpop.permute.xlu1 %2914 }
0x23bf   :  { %v2917_v59 = vmul.f32 %v5198_v34, %v2915_v58  ;;  %v3504_v34 = vmul.f32 -1.442695, %v1668_v24  ;;  %v1513_v58 = vmul.f32 %v5787_v36, %v5765_v25  ;;  %v4574_v25 = vpop.f32.mrb[31].mxu1 }
0x23c1   :  { %v6220_v61 = vmul.f32 %v2921_v32, %v2917_v59  ;;  %v3485_v32 = vld [vmem:[%s6388_s1 + $0xe] sm:$0x3]  ;;  %v1515_v59 = vadd.f32 %v1514_v57, %v1513_v58 }
0x23c3   :  { %v2937_v39 = vadd.f32 %v2936_v60, %v6220_v61 }
0x23c5   :  { %2944 = vrot.lane.b32.xlu0 %v2937_v39, %s5233_s29 }
0x2437   :  { %v2945_v49 = vpop.permute.xlu0 %2944 }
0x2438   :  { %4516 = vmatmul.mubr.msk.f32.vlgmr.msra.gmra.mrb[28].mxu0 %vm67_vm0, %v2945_v49 }
0x2439   :  { %5058 = vmatpush3.bf16.xpose.msk.msra.mxu0 %vm5294_vm2, %v5861_v9  ;;  %4553 = vmatprep.mubr.msk.f32.mxu0 %vm5227_vm4, %v5228_v8 }
0x243a   :  { %5059 = vmatprep.subr.bf16.mxu0 %v5226_v0 }
0x2441   :  { %5062 = vmatpush3.bf16.xpose.msk.msra.mxu0 %vm5294_vm2, %v5876_v62  ;;  %v3639_v62 = vld [vmem:[%s6388_s1 + $0x2] sm:$0x3] }
0x2442   :  { %5063 = vmatprep.subr.bf16.mxu0 %v5226_v0  ;;  %v3128_v14 = vsub.f32 1.0, %v3639_v62 }
0x2449   :  { %5066 = vmatpush3.bf16.xpose.msk.msra.mxu0 %vm5294_vm2, %v5888_v1 }
0x244a   :  { %5067 = vmatprep.subr.bf16.mxu0 %v5226_v0 }
0x2451   :  { %5070 = vmatpush3.bf16.xpose.msk.msra.mxu0 %vm5294_vm2, %v5900_v27 }
0x250b   :  { %v3014_v7 = vpop.f32.mrb[28].mxu0 }
0x250c   :  { %v3088_v8 = vadd.f32 %v3087_v63, %v3014_v7  ;;  %v4517_v52 = vpop.f32.mrb[29].mxu0 }
0x250e   :  { %v3091_v9 = vadd.f32 %v5930_v12, %v3088_v8 }
0x2510   :  { %5201 = vtanh.f32 %v3091_v9  ;;  %v3658_v1 = vmul.f32 -1.442695, %v3091_v9 }
0x2512   :  { %5203 = vpow2.f32 %v3658_v1 }
0x251a   :  { %v5202_v2 = vpop.eup %5201 }
0x251b   :  { %3101 = vrot.lane.b32.xlu1 %v5202_v2, %s5230_s24 }
0x251c   :  { %v5204_v0 = vpop.eup %5203 }
0x251d   :  { %v3095_v4 = vadd.f32 1.0, %v5204_v0 }
0x251f   :  { %3118 = vperm.xlu1 %5095, %v3639_v62   ;;  %5205 = vrcp.f32 %v3095_v4 }
0x2529   :  { %v5206_v3 = vpop.eup %5205 }
0x252a   :  { %v3099_v17 = vmul.f32 %v5206_v3, %v6248_v16 }
0x258d   :  { %v3102_v27 = vpop.permute.xlu1 %3101 }
0x258e   :  { %v3104_v10 = vmul.f32 %v5206_v3, %v3102_v27 }
0x2590   :  { %3106 = vrot.lane.b32.xlu0 %v3104_v10, %s5231_s25 }
0x2594   :  { %3131 = vperm.xlu0 %5096, %v3128_v14  }
0x259e   :  { %v6264_v20 = vpop.permute.xlu1 %3118 }
0x2602   :  { %v3107_v18 = vpop.permute.xlu0 %3106 }
0x2603   :  { %v6251_v33 = vadd.f32 %v3107_v18, %v3099_v17 }
0x2605   :  { %5207 = vtanh.f32 %v6251_v33  ;;  %v3136_v17 = vmul.f32 %v6264_v20, %v6251_v33 }
0x2606   :  { %5209 = vtanh.f32 %v1668_v24 }
0x2607   :  { %5211 = vpow2.f32 %v3504_v34 }
0x260f   :  { %v5208_v30 = vpop.eup %5207 }
0x2610   :  { %3112 = vrot.lane.b32.xlu1 %v5208_v30, %s5232_s28  ;;  %v5210_v31 = vpop.eup %5209 }
0x2611   :  { %v5212_v37 = vpop.eup %5211 }
0x2612   :  { %v1672_v41 = vadd.f32 1.0, %v5212_v37 }
0x2613   :  { %v6266_v42 = vpop.permute.xlu0 %3131 }
0x2614   :  { %1678 = vrot.lane.b32.xlu1 %v5210_v31, %s5230_s24  ;;  %5213 = vrcp.f32 %v1672_v41  ;;  %v3134_v46 = vmul.f32 %v6266_v42, %v2937_v39 }
0x261e   :  { %v5214_v50 = vpop.eup %5213 }
0x261f   :  { %v1676_v60 = vmul.f32 %v5214_v50, %v1515_v59 }
0x2682   :  { %v3113_v43 = vpop.permute.xlu1 %3112 }
0x2683   :  { %v3115_v45 = vmul.f32 %v5206_v3, %v3113_v43 }
0x2685   :  { %v3121_v47 = vmul.f32 %v6264_v20, %v3115_v45 }
0x2686   :  { %v1679_v51 = vpop.permute.xlu1 %1678 }
0x2687   :  { %v1681_v55 = vmul.f32 %v5214_v50, %v1679_v51  ;;  %v3135_v54 = vadd.f32 %v3134_v46, %v3121_v47 }
0x2689   :  { %3142 = vrot.lane.b32.xlu0 %v3135_v54, %s5233_s29  ;;  %1683 = vrot.lane.b32.xlu1 %v1681_v55, %s5231_s25 }
0x268d   :  { %1695 = vperm.xlu1 %5095, %v3485_v32  }
0x26fb   :  { %v3143_v39 = vpop.permute.xlu0 %3142  ;;  %v1684_v63 = vpop.permute.xlu1 %1683 }
0x26fc   :  { %v1686_v21 = vadd.f32 %v1684_v63, %v1676_v60  ;;  %4554 = vmatmul.mubr.msk.f32.vlgmr.msra.gmra.mrb[30].mxu0 %vm67_vm0, %v3143_v39 }
0x26fe   :  { %5215 = vtanh.f32 %v1686_v21 }
0x2708   :  { %v5216_v49 = vpop.eup %5215 }
0x2709   :  { %1689 = vrot.lane.b32.xlu1 %v5216_v49, %s5232_s28 }
0x270d   :  { %301 = vrot.lane.b32.xlu1 %v5473_v56, %s5233_s29  ;;  %v1696_v56 = vpop.permute.xlu1 %1695 }
0x2711   :  { %700 = vrot.lane.b32.xlu1 %v5577_v6, %s5233_s29 }
0x2715   :  { %1100 = vrot.lane.b32.xlu1 %v5681_v29, %s5233_s29 }
0x2719   :  { %1500 = vrot.lane.b32.xlu1 %v5805_v44, %s5233_s29 }
0x271d   :  { %1936 = vrot.lane.b32.xlu1 %v5961_v53, %s5233_s29 }
0x2721   :  { %2331 = vrot.lane.b32.xlu1 %v6065_v23, %s5233_s29 }
0x2725   :  { %2727 = vrot.lane.b32.xlu1 %v6169_v5, %s5233_s29 }
0x2729   :  { %3123 = vrot.lane.b32.xlu1 %v3121_v47, %s5233_s29 }
0x277b   :  { %v1690_v6 = vpop.permute.xlu1 %1689 }
0x277c   :  { %v1692_v36 = vmul.f32 %v5214_v50, %v1690_v6 }
0x277e   :  { %v1698_v29 = vmul.f32 %v1696_v56, %v1692_v36 }
0x277f   :  { %v302_v40 = vpop.permute.xlu1 %301 }
0x2780   :  { %305 = vst.msk [vmem:[%s6393_s8] sm:$0x3] %vm304_vm5, %v302_v40 }
0x2783   :  { %v701_v44 = vpop.permute.xlu1 %700 }
0x2784   :  { %3395 = vst.msk [vmem:[%s6393_s8 + $0x4] sm:$0x3] %vm304_vm5, %v701_v44 }
0x2787   :  { %v1101_v53 = vpop.permute.xlu1 %1100 }
0x2788   :  { %3439 = vst.msk [vmem:[%s6393_s8 + $0x8] sm:$0x3] %vm304_vm5, %v1101_v53 }
0x278b   :  { %v1501_v23 = vpop.permute.xlu1 %1500 }
0x278c   :  { %3483 = vst.msk [vmem:[%s6393_s8 + $0xc] sm:$0x3] %vm304_vm5, %v1501_v23 }
0x278f   :  { %v1937_v5 = vpop.permute.xlu1 %1936 }
0x2790   :  { %3527 = vst.msk [vmem:[%s6394_s9 + $0xe] sm:$0x3] %vm304_vm5, %v1937_v5 }
0x2793   :  { %v2332_v7 = vpop.permute.xlu1 %2331 }
0x2794   :  { %3571 = vst.msk [vmem:[%s6394_s9 + $0xa] sm:$0x3] %vm304_vm5, %v2332_v7 }
0x2797   :  { %v2728_v8 = vpop.permute.xlu1 %2727 }
0x2798   :  { %3615 = vst.msk [vmem:[%s6394_s9 + $0x6] sm:$0x3] %vm304_vm5, %v2728_v8 }
0x279b   :  { %v3124_v52 = vpop.permute.xlu1 %3123 }
0x279c   :  { %3659 = vst.msk [vmem:[%s6394_s9 + $0x2] sm:$0x3] %vm304_vm5, %v3124_v52 }
0x27cf   :  { %v3212_v9 = vpop.f32.mrb[30].mxu0 }
0x27d0   :  { %v3286_v2 = vadd.f32 %v3285_v22, %v3212_v9  ;;  %v4555_v62 = vpop.f32.mrb[31].mxu0 }
0x27d2   :  { %v3289_v1 = vadd.f32 %v5930_v12, %v3286_v2  ;;  %v3137_v12 = vmul.f32 %v6266_v42, %v6248_v16 }
0x27d4   :  { %5217 = vtanh.f32 %v3289_v1  ;;  %v3678_v4 = vmul.f32 -1.442695, %v3289_v1  ;;  %v3138_v18 = vadd.f32 %v3137_v12, %v3136_v17 }
0x27d6   :  { %5219 = vpow2.f32 %v3678_v4 }
0x27de   :  { %v5218_v0 = vpop.eup %5217 }
0x27df   :  { %3299 = vrot.lane.b32.xlu0 %v5218_v0, %s5230_s24 }
0x27e0   :  { %v5220_v3 = vpop.eup %5219 }
0x27e1   :  { %v3293_v27 = vadd.f32 1.0, %v5220_v3 }
0x27e3   :  { %5221 = vrcp.f32 %v3293_v27 }
0x27ed   :  { %v5222_v10 = vpop.eup %5221 }
0x27ee   :  { %v3297_v19 = vmul.f32 %v5222_v10, %v3138_v18 }
0x2851   :  { %v3300_v14 = vpop.permute.xlu0 %3299 }
0x2852   :  { %v3302_v11 = vmul.f32 %v5222_v10, %v3300_v14 }
0x2854   :  { %3304 = vrot.lane.b32.xlu0 %v3302_v11, %s5231_s25 }
0x2858   :  { %3316 = vperm.xlu0 %5096, %v3140_v26  }
0x28c6   :  { %v3305_v24 = vpop.permute.xlu0 %3304 }
0x28c7   :  { %v3307_v28 = vadd.f32 %v3305_v24, %v3297_v19 }
0x28c9   :  { %5223 = vtanh.f32 %v3307_v28 }
0x28d3   :  { %v5224_v30 = vpop.eup %5223 }
0x28d4   :  { %3310 = vrot.lane.b32.xlu0 %v5224_v30, %s5232_s28 }
0x28d7   :  { %v3317_v16 = vpop.permute.xlu0 %3316 }
0x28d8   :  { %500 = vrot.lane.b32.xlu0 %v5525_v35, %s5233_s29 }
0x28dc   :  { %900 = vrot.lane.b32.xlu0 %v5629_v48, %s5233_s29 }
0x28e0   :  { %1300 = vrot.lane.b32.xlu0 %v5733_v15, %s5233_s29 }
0x28e4   :  { %1700 = vrot.lane.b32.xlu0 %v1698_v29, %s5233_s29 }
0x28e8   :  { %2133 = vrot.lane.b32.xlu0 %v6013_v38, %s5233_s29 }
0x28ec   :  { %2529 = vrot.lane.b32.xlu0 %v6117_v13, %s5233_s29 }
0x28f0   :  { %2925 = vrot.lane.b32.xlu0 %v6220_v61, %s5233_s29 }
0x2946   :  { %v3311_v33 = vpop.permute.xlu0 %3310 }
0x2947   :  { %v3313_v35 = vmul.f32 %v5222_v10, %v3311_v33 }
0x2949   :  { %v3319_v31 = vmul.f32 %v3317_v16, %v3313_v35 }
0x294a   :  { %v501_v34 = vpop.permute.xlu0 %500 }
0x294b   :  { %3373 = vst.msk [vmem:[%s6393_s8 + $0x2] sm:$0x3] %vm304_vm5, %v501_v34  ;;  %3321 = vrot.lane.b32.xlu0 %v3319_v31, %s5233_s29 }
0x294e   :  { %v901_v48 = vpop.permute.xlu0 %900 }
0x294f   :  { %3417 = vst.msk [vmem:[%s6393_s8 + $0x6] sm:$0x3] %vm304_vm5, %v901_v48 }
0x2952   :  { %v1301_v15 = vpop.permute.xlu0 %1300 }
0x2953   :  { %3461 = vst.msk [vmem:[%s6393_s8 + $0xa] sm:$0x3] %vm304_vm5, %v1301_v15 }
0x2956   :  { %v1701_v38 = vpop.permute.xlu0 %1700 }
0x2957   :  { %3505 = vst.msk [vmem:[%s6393_s8 + $0xe] sm:$0x3] %vm304_vm5, %v1701_v38 }
0x295a   :  { %v2134_v13 = vpop.permute.xlu0 %2133 }
0x295b   :  { %3549 = vst.msk [vmem:[%s6394_s9 + $0xc] sm:$0x3] %vm304_vm5, %v2134_v13 }
0x295e   :  { %v2530_v61 = vpop.permute.xlu0 %2529 }
0x295f   :  { %3593 = vst.msk [vmem:[%s6394_s9 + $0x8] sm:$0x3] %vm304_vm5, %v2530_v61 }
0x2962   :  { %v2926_v37 = vpop.permute.xlu0 %2925 }
0x2963   :  { %3637 = vst.msk [vmem:[%s6394_s9 + $0x4] sm:$0x3] %vm304_vm5, %v2926_v37 }
0x29bd   :  { %v3322_v41 = vpop.permute.xlu0 %3321 }
0x29be   :  { %3324 = vst.msk [vmem:[%s6394_s9] sm:$0x3] %vm304_vm5, %v3322_v41 }

// kernel: tacotron2_forward.8
= control target key start
LH: loop header
LB: loop body
LE: loop exit
PB: predicated region body
PF: predicated region fallthrough
CT: control target
= control target key end

     0   :  { %s3618_s18 = smov 0   ;;  %s4148_s0 = inlined_call_operand.vmem [shape: f32[8,2,16], index: 0, kind: input, shape index: {}]   ;;  %s4149_s1 = inlined_call_operand.vmem [shape: f32[2,8,32], index: 1, kind: input, shape index: {}]   ;;  %s4150_s2 = inlined_call_operand.vmem [shape: f32[2,8], index: 2, kind: input, shape index: {}]   ;;  %s4151_s3 = inlined_call_operand.vmem [shape: f32[16,32], index: 3, kind: input, shape index: {}]   ;;  %s4152_s4 = inlined_call_operand.vmem [shape: f32[7,16,2], index: 4, kind: input, shape index: {}]   ;;  %s4153_s5 = inlined_call_operand.vmem [shape: f32[1,16], index: 5, kind: input, shape index: {}]   ;;  %s4154_s6 = inlined_call_operand.vmem [shape: f32[16,32], index: 6, kind: input, shape index: {}]   ;;  %s4155_s7 = inlined_call_operand.vmem [shape: f32[128,80], index: 7, kind: input, shape index: {}]   ;;  %s4156_s8 = inlined_call_operand.vmem [shape: f32[1,128], index: 8, kind: input, shape index: {}]   ;;  %s4157_s9 = inlined_call_operand.vmem [shape: f32[128,96], index: 9, kind: input, shape index: {}]   ;;  %s4158_s10 = inlined_call_operand.vmem [shape: f32[1,128], index: 10, kind: input, shape index: {}]   ;;  %s4159_s11 = inlined_call_operand.vmem [shape: f32[9,64], index: 11, kind: input, shape index: {}]   ;;  %s4160_s12 = inlined_call_operand.vmem [shape: f32[1,9], index: 12, kind: input, shape index: {}]   ;;  %s4161_s13 = inlined_call_operand.vmem [shape: f32[8,2,8], index: 13, kind: output, shape index: {0}]   ;;  %s4162_s14 = inlined_call_operand.vmem [shape: f32[8,2,1], index: 14, kind: output, shape index: {1}]   ;;  %s4163_s15 = inlined_call_operand.vmem [shape: f32[8,2,8], index: 15, kind: output, shape index: {2}]  }
   0x1 LB: > { %s3624_s19 = sadd.s32 4294967295, %s3517_s18   ;;  %p2937_p0 = scmp.ge.s32.totalorder %s3517_s18, 1  ;;  %s3517_s18 = sphi %s3618_s18, %s26_s18  }
   0x2   : > { %p426_p1 = scmp.lt.s32.totalorder %s3517_s18, 9 }
   0x4   : > { %p427_p2 = pnand %p2937_p0, %p426_p1 }
   0x5   : > { %p468_p3 = scmp.lt.s32.totalorder (!%p427_p2), %s3624_s19, 7  ;;  %p2939_p4 = scmp.ne.s32.totalorder (!%p427_p2), %s3624_s19, 0 }
   0x6   : > { %430 = sbr.rel (%p427_p2) target bundleno = 4138 (0x102a), region = 72 }
   0xd   : > { %s469_s20 = scalar_select %p468_p3, %s3624_s19, 7 }
   0xe   : > { %475 = sbr.rel (%p2939_p4) target bundleno = 233 (0xe9), region = 76  ;;  %vm476_vm0 = vcmask (!%p2939_p4), 254976   ;;  %vm482_vm1 = vcmask (!%p2939_p4), 107520   ;;  %v487_v0 = vld [vmem:[%s4149_s1] sm:$0xff] (!%p2939_p4)  ;;  %vm488_vm2 = vcmask (!%p2939_p4), 261120   ;;  %v2943_v1 = vld [vmem:[%s4149_s1 + $0x8] sm:$0xff] (!%p2939_p4) }
   0xf   : > { %s2938_s21 = sshll.u32 %s469_s20, 1  ;;  %v3519_v2 = vmov (!%p2939_p4), 0.0   ;;  %3164 = vmatprep.subr.msk.mxu0 (!%p2939_p4), %vm488_vm2, %v487_v0  ;;  %3169 = vmatprep.subr.msk.mxu1 (!%p2939_p4), %vm488_vm2, %v2943_v1  ;;  %v485_v3 = vld [vmem:[%s4154_s6] sm:$0xff] (!%p2939_p4)  ;;  %v486_v4 = vld [vmem:[%s4154_s6 + $0x8] sm:$0xff] (!%p2939_p4)  ;;  %vm573_vm3 = vcmask (!%p2939_p4), 64512  }
  0x10   : > { %s3633_s24 = scalar_lea.vmem %s4148_s0, %s2938_s21  ;;  %477 = vst.msk [vmem:[#allocation2] sm:$0x3] (!%p2939_p4), %vm476_vm0, %v3519_v2  ;;  %478 = vst.msk [vmem:[#allocation3] sm:$0x3] (!%p2939_p4), %vm476_vm0, %v3519_v2  ;;  %3165 = vmatpush3.xpose.msk.msra.mxu0 (!%p2939_p4), %vm488_vm2, %v487_v0  ;;  %3170 = vmatpush3.xpose.msk.msra.mxu1 (!%p2939_p4), %vm488_vm2, %v2943_v1 }
  0x11   : > { %479 = vst.msk [vmem:[#allocation4] sm:$0x3] (!%p2939_p4), %vm476_vm0, %v3519_v2  ;;  %480 = vst.msk [vmem:[#allocation5] sm:$0x3] (!%p2939_p4), %vm476_vm0, %v3519_v2  ;;  %3166 = vmatprep.mubr.msk.f32.mxu0 (!%p2939_p4), %vm488_vm2, %v485_v3  ;;  %3171 = vmatprep.mubr.msk.f32.mxu1 (!%p2939_p4), %vm488_vm2, %v485_v3 }
  0x12   : > { %481 = vst.msk [vmem:[#allocation6] sm:$0x3] (!%p2939_p4), %vm476_vm0, %v3519_v2 }
  0x13   : > { %483 = vst.msk [vmem:[#allocation7] sm:$0x3] (!%p2939_p4), %vm482_vm1, %v3519_v2  ;;  %484 = vst.msk [vmem:[#allocation7 + $0x2] sm:$0x3] (!%p2939_p4), %vm482_vm1, %v3519_v2  ;;  %3167 = vmatmul.mubr.msk.f32.vlgmr.msra.gmra.mrb[0].mxu0 (!%p2939_p4), %vm488_vm2, %v486_v4  ;;  %3172 = vmatmul.mubr.msk.f32.vlgmr.msra.gmra.mrb[0].mxu1 (!%p2939_p4), %vm488_vm2, %v486_v4 }
  0xe6   : > { %v3168_v5 = vpop.f32.mrb[0].mxu0  ;;  %v3173_v6 = vpop.f32.mrb[0].mxu1 }
  0xe7   : > { %575 = vst.msk [vmem:[#allocation8 + $0x8] sm:$0xff] %vm573_vm3, %v3168_v5  ;;  %666 = vst.msk [vmem:[#allocation8 + $0x18] sm:$0xff] %vm573_vm3, %v3173_v6  ;;  %v564_v7 = vpop.f32.mrb[1].mxu0  ;;  %v655_v8 = vpop.f32.mrb[1].mxu1 }
  0xe8   : > { %574 = vst.msk [vmem:[#allocation8] sm:$0xff] %vm573_vm3, %v564_v7  ;;  %665 = vst.msk [vmem:[#allocation8 + $0x10] sm:$0xff] %vm573_vm3, %v655_v8 }
  0xe9 PF: > { %s3520_s20 = smov 16   ;;  %v683_v10 = vld [vmem:[%s4155_s7] sm:$0xff]  ;;  %v684_v11 = vld [vmem:[%s4155_s7 + $0x8] sm:$0xff]  ;;  %vm706_vm4 = vcmask 654336   ;;  %v3521_v13 = vmov 0.0|0.0   ;;  %vm3522_vm6 = vmmov 0  }
  0xea   : > { %3350 = vmatprep.subr.bf16.mxu0 %v3521_v13  ;;  %v3351_v14 = vpack.c.bf16 %v684_v11, %v683_v10  ;;  %vm3665_vm5 = vmpackc.low %vm706_vm4, %vm706_vm4  ;;  %v3523_v16 = vmov 0.0   ;;  %s3524_s26 = smov 48   ;;  %v685_v17 = vld [vmem:[%s4155_s7 + $0x10] sm:$0xff]  ;;  %v686_v18 = vld [vmem:[%s4155_s7 + $0x18] sm:$0xff]  ;;  %vm679_vm7 = vcmask 130048   ;;  %vm681_vm8 = vcmask 392192  }
  0xeb   : > { %v669_v12 = vld [vmem:[#allocation2] sm:$0x3]  ;;  %3206 = vmatprep.mubr.msk.f32.mxu0 %vm3522_vm6, %v3523_v16  ;;  %v3355_v19 = vpack.c.bf16 %v686_v18, %v685_v17  ;;  %v688_v21 = vld [vmem:[%s4155_s7 + $0x28] sm:$0xff]  ;;  %v689_v23 = vld [vmem:[%s4155_s7 + $0x30] sm:$0xff]  ;;  %s3527_s21 = smov 127   ;;  %s3528_s22 = smov 125  }
  0xec   : > { %3353 = vmatpush3.bf16.xpose.msk.msra.mxu0 %vm3665_vm5, %v3351_v14  ;;  %v687_v20 = vld [vmem:[%s4155_s7 + $0x20] sm:$0xff]  ;;  %v690_v24 = vld [vmem:[%s4155_s7 + $0x38] sm:$0xff]  ;;  %v692_v27 = vld [vmem:[%s4155_s7 + $0x48] sm:$0xff]  ;;  %s3529_s23 = smov 124   ;;  %vm869_vm9 = vcmask 261120   ;;  %s3530_s27 = smov 126  }
  0xed   : > { %v668_v9 = vld [vmem:[#allocation6] sm:$0x3]  ;;  %3354 = vmatprep.subr.bf16.mxu0 %v3521_v13  ;;  %v3359_v22 = vpack.c.bf16 %v688_v21, %v687_v20  ;;  %v3363_v25 = vpack.c.bf16 %v690_v24, %v689_v23  ;;  %v691_v26 = vld [vmem:[%s4155_s7 + $0x40] sm:$0xff]  ;;  %v693_v29 = vld [vmem:[%s4155_s7 + $0x50] sm:$0xff]  ;;  %s3531_s28 = smov 123   ;;  %s3532_s29 = smov 122  }
  0xee   : > { %672 = vrot.lane.b32.xlu0 %v668_v9, %s3520_s20  ;;  %v3367_v28 = vpack.c.bf16 %v692_v27, %v691_v26  ;;  %v694_v30 = vld [vmem:[%s4155_s7 + $0x58] sm:$0xff]  ;;  %v695_v32 = vld [vmem:[%s4155_s7 + $0x60] sm:$0xff]  ;;  %v696_v33 = vld [vmem:[%s4155_s7 + $0x68] sm:$0xff]  ;;  %s3525_s20 = smov 64   ;;  %vm963_vm10 = vcmask 15360   ;;  %v3533_v1 = vmov 0  }
  0xef   : > { %v3371_v31 = vpack.c.bf16 %v694_v30, %v693_v29  ;;  %v3375_v34 = vpack.c.bf16 %v696_v33, %v695_v32  ;;  %v697_v35 = vld [vmem:[%s4155_s7 + $0x70] sm:$0xff]  ;;  %v698_v36 = vld [vmem:[%s4155_s7 + $0x78] sm:$0xff]  ;;  %v667_v39 = vld [vmem:[%s3633_s24] sm:$0x3]  ;;  %s4164_s24 = smov 32   ;;  %3476 = vset.pattern.permute.xlu0 %v3533_v1  ;;  %3475 = vset.pattern.permute.xlu1 %v3533_v1  ;;  %vm860_vm11 = vcmask 254976  }
  0xf0   : > { %v3379_v37 = vpack.c.bf16 %v698_v36, %v697_v35  ;;  %v2947_v43 = vld [vmem:[%s4156_s8] ss:$0 sm:$0xff]  ;;  %v670_v48 = vld [vmem:[#allocation3] sm:$0x3]  ;;  %v3749_v60 = vld [vmem:[#allocation7] sm:$0x3] }
  0xf1   : > { %v867_v61 = vld [vmem:[%s4151_s3] sm:$0xff]  ;;  %v3771_v0 = vld [vmem:[%s4152_s4 + $0x50] sm:$0xff]  ;;  %vm970_vm12 = vcmask 1041408   ;;  %v868_v4 = vld [vmem:[%s4151_s3 + $0x8] sm:$0xff]  ;;  %vm1675_vm14 = vcmask 57344   ;;  %vm1688_vm15 = vcmask 64512  }
  0xf2   : > { %676 = vrot.lane.b32.xlu0 %v669_v12, %s3524_s26  ;;  %3241 = vmatprep.mubr.msk.f32.mxu1 %vm963_vm10, %v3771_v0  ;;  %v3790_v5 = vld [vmem:[%s4152_s4 + $0x10] sm:$0xff]  ;;  %v3799_v7 = vld [vmem:[%s4152_s4 + $0x18] sm:$0xff]  ;;  %v3806_v8 = vld [vmem:[%s4152_s4] sm:$0xff]  ;;  %vm1762_vm0 = vcmask 253952   ;;  %vm2492_vm1 = vcmask 58369   ;;  %s4010_s26 = sshll.u32 %s3624_s19, 1 }
  0xf3   : > { %v3814_v10 = vld [vmem:[%s4152_s4 + $0x58] sm:$0xff]  ;;  %v3823_v11 = vld [vmem:[%s4152_s4 + $0x60] sm:$0xff]  ;;  %v3835_v14 = vld [vmem:[%s4152_s4 + $0x8] sm:$0xff]  ;;  %s2590_s16 = scalar_lea.vmem %s4163_s15, %s4010_s26  ;;  %vm2591_vm2 = vcmask 58368   ;;  %vm2630_vm3 = vcmask 785408   ;;  %s3535_s19 = smov 3  }
  0xf4   : > { %3357 = vmatpush3.bf16.xpose.msk.msra.mxu0 %vm3665_vm5, %v3355_v19  ;;  %v3841_v15 = vld [vmem:[%s4152_s4 + $0x20] sm:$0xff]  ;;  %v3849_v18 = vld [vmem:[%s4152_s4 + $0x68] sm:$0xff]  ;;  %v3867_v20 = vld [vmem:[%s4152_s4 + $0x30] sm:$0xff]  ;;  %s3537_s30 = smov 120   ;;  %s2885_s17 = scalar_lea.vmem %s4162_s14, %s4010_s26 }
  0xf5   : > { %3358 = vmatprep.subr.bf16.mxu0 %v3521_v13  ;;  %v3862_v19 = vld [vmem:[%s4152_s4 + $0x28] sm:$0xff]  ;;  %v3883_v23 = vld [vmem:[%s4152_s4 + $0x40] sm:$0xff]  ;;  %v1594_v33 = vld [vmem:[#allocation8 + $0x8] sm:$0xff] }
  0xf6   : > { %v3894_v24 = vld [vmem:[%s4152_s4 + $0x48] sm:$0xff] }
  0xf7   : > { %v1593_v36 = vld [vmem:[#allocation8] sm:$0xff] }
  0xfc   : > { %3361 = vmatpush3.bf16.xpose.msk.msra.mxu0 %vm3665_vm5, %v3359_v22  ;;  %v3878_v22 = vld [vmem:[%s4152_s4 + $0x38] sm:$0xff] }
  0xfd   : > { %3362 = vmatprep.subr.bf16.mxu0 %v3521_v13 }
 0x104   : > { %3365 = vmatpush3.bf16.xpose.msk.msra.mxu0 %vm3665_vm5, %v3363_v25 }
 0x105   : > { %3366 = vmatprep.subr.bf16.mxu0 %v3521_v13 }
 0x10c   : > { %3369 = vmatpush3.bf16.xpose.msk.msra.mxu0 %vm3665_vm5, %v3367_v28 }
 0x10d   : > { %3370 = vmatprep.subr.bf16.mxu0 %v3521_v13 }
 0x114   : > { %3373 = vmatpush3.bf16.xpose.msk.msra.mxu0 %vm3665_vm5, %v3371_v31 }
 0x115   : > { %3374 = vmatprep.subr.bf16.mxu0 %v3521_v13 }
 0x11c   : > { %3377 = vmatpush3.bf16.xpose.msk.msra.mxu0 %vm3665_vm5, %v3375_v34 }
 0x11d   : > { %3378 = vmatprep.subr.bf16.mxu0 %v3521_v13 }
 0x124   : > { %3381 = vmatpush3.bf16.xpose.msk.msra.mxu0 %vm3665_vm5, %v3379_v37  ;;  %vm2605_vm5 = vcmask 523264  }
 0x160   : > { %v673_v38 = vpop.permute.xlu0 %672 }
 0x161   : > { %v680_v40 = vsel %vm679_vm7, %v667_v39, %v673_v38 }
 0x164   : > { %v677_v41 = vpop.permute.xlu0 %676 }
 0x165   : > { %v682_v42 = vsel %vm681_vm8, %v680_v40, %v677_v41  ;;  %vm1768_vm8 = vcmask 81944  }
 0x166   : > { %3207 = vmatmul.mubr.msk.f32.vlgmr.msra.gmra.mrb[0].mxu0 %vm706_vm4, %v682_v42  ;;  %vm4028_vm4 = vmpackc.low %vm2630_vm3, %vm2630_vm3 }
 0x167   : > { %3211 = vmatprep.mubr.msk.f32.mxu0 %vm869_vm9, %v867_v61 }
 0x239   : > { %v824_v44 = vpop.f32.mrb[0].mxu0 }
 0x23a   : > { %v825_v45 = vadd.f32 %v2947_v43, %v824_v44  ;;  %v3208_v46 = vpop.f32.mrb[1].mxu0  ;;  %v1599_v44 = vld [vmem:[%s4153_s5] sm:$0x1] }
 0x23b   : > { %v3910_v46 = vld [vmem:[%s4150_s2] sm:$0x3] }
 0x23c   : > { %3479 = vtanh.f32 %v825_v45  ;;  %v2965_v49 = vmul.f32 -1.442695, %v825_v45  ;;  %v3534_v45 = vmov 1   ;;  %vm1673_vm13 = vcmp.gt.f32.partialorder %v3910_v46, 0.5 }
 0x23e   : > { %3481 = vpow2.f32 %v2965_v49 }
 0x246   : > { %v3480_v47 = vpop.eup %3479 }
 0x247   : > { %841 = vrot.lane.b32.xlu1 %v3480_v47, %s3525_s20 }
 0x248   : > { %v3482_v50 = vpop.eup %3481 }
 0x249   : > { %v831_v51 = vadd.f32 1.0, %v3482_v50 }
 0x24b   : > { %836 = vrot.lane.b32.xlu1 %v670_v48, %s4164_s24  ;;  %3483 = vrcp.f32 %v831_v51  ;;  %v3916_v51 = vld [vmem:[#allocation7 + $0x2] sm:$0x3] }
 0x255   : > { %v3484_v52 = vpop.eup %3483 }
 0x2b9   : > { %v842_v53 = vpop.permute.xlu1 %841 }
 0x2ba   : > { %v844_v54 = vmul.f32 %v3484_v52, %v842_v53 }
 0x2bc   : > { %846 = vrot.lane.b32.xlu0 %v844_v54, %s4164_s24 }
 0x2bd   : > { %v837_v55 = vpop.permute.xlu1 %836 }
 0x2be   : > { %v839_v56 = vmul.f32 %v3484_v52, %v837_v55 }
 0x32e   : > { %v847_v57 = vpop.permute.xlu0 %846 }
 0x32f   : > { %v3745_v58 = vadd.f32 %v847_v57, %v839_v56  ;;  %v1687_v57 = vld [vmem:[%s4149_s1] sm:$0xff] }
 0x331   : > { %3485 = vtanh.f32 %v3745_v58 }
 0x33b   : > { %v3486_v59 = vpop.eup %3485 }
 0x33c   : > { %852 = vrot.lane.b32.xlu1 %v3486_v59, %s3525_s20 }
 0x340   : > { %961 = vrot.lane.b32.xlu1 %v3749_v60, %s3527_s21 }
 0x344   : > { %1224 = vrot.lane.b32.xlu1 %v3749_v60, %s3528_s22 }
 0x348   : > { %1314 = vrot.lane.b32.xlu1 %v3749_v60, %s3529_s23 }
 0x3ae   : > { %v853_v62 = vpop.permute.xlu1 %852 }
 0x3af   : > { %v855_v63 = vmul.f32 %v3484_v52, %v853_v62 }
 0x3b1   : > { %857 = vrot.lane.b32.xlu0 %v855_v63, %s4164_s24 }
 0x3b2   : > { %v962_v3 = vpop.permute.xlu1 %961 }
 0x3b5   : > { %1134 = vrot.lane.b32.xlu0 %v3749_v60, %s3530_s27 }
 0x3b6   : > { %v1225_v17 = vpop.permute.xlu1 %1224 }
 0x3b9   : > { %1404 = vrot.lane.b32.xlu0 %v3749_v60, %s3531_s28 }
 0x3ba   : > { %v1315_v21 = vpop.permute.xlu1 %1314 }
 0x3bd   : > { %1494 = vrot.lane.b32.xlu0 %v3749_v60, %s3532_s29 }
 0x423   : > { %v3775_v2 = vpop.permute.xlu0 %857 }
 0x424   : > { %861 = vst.msk [vmem:[#allocation2] sm:$0x3] %vm860_vm11, %v3775_v2  ;;  %3209 = vmatprep.subr.msk.mxu0 %vm869_vm9, %v3775_v2 }
 0x425   : > { %3210 = vmatpush3.xpose.msk.msra.mxu0 %vm869_vm9, %v3775_v2 }
 0x426   : > { %3214 = vmatprep.subr.msk.mxu0 %vm970_vm12, %v962_v3 }
 0x427   : > { %v1135_v6 = vpop.permute.xlu0 %1134 }
 0x428   : > { %3212 = vmatmul.mubr.msk.f32.vlgmr.msra.gmra.mrb[2].mxu0 %vm869_vm9, %v868_v4 }
 0x429   : > { %3215 = vmatpush3.msk.msra.mxu0 %vm970_vm12, %v962_v3  ;;  %3216 = vmatprep.mubr.msk.f32.mxu0 %vm963_vm10, %v3790_v5 }
 0x42a   : > { %3219 = vmatprep.subr.msk.mxu0 %vm970_vm12, %v3749_v60 }
 0x42b   : > { %v1405_v9 = vpop.permute.xlu0 %1404 }
 0x42c   : > { %3217 = vmatmul.mubr.msk.f32.vlgmr.msra.gmra.mrb[4].mxu0 %vm963_vm10, %v3799_v7  ;;  %3239 = vmatprep.subr.msk.mxu1 %vm970_vm12, %v1405_v9 }
 0x42d   : > { %3220 = vmatpush3.msk.msra.mxu0 %vm970_vm12, %v3749_v60  ;;  %3221 = vmatprep.mubr.msk.f32.mxu0 %vm963_vm10, %v3806_v8 }
 0x42e   : > { %3224 = vmatprep.subr.msk.mxu0 %vm970_vm12, %v1135_v6  ;;  %3240 = vmatpush3.msk.msra.mxu1 %vm970_vm12, %v1405_v9 }
 0x42f   : > { %3242 = vmatmul.mubr.msk.f32.vlgmr.msra.gmra.mrb[0].mxu1 %vm963_vm10, %v3814_v10  ;;  %v1495_v12 = vpop.permute.xlu0 %1494 }
 0x430   : > { %3244 = vmatprep.subr.msk.mxu1 %vm970_vm12, %v1495_v12  ;;  %3246 = vmatprep.mubr.msk.f32.mxu1 %vm963_vm10, %v3823_v11 }
 0x431   : > { %3245 = vmatpush3.msk.msra.mxu1 %vm970_vm12, %v1495_v12 }
 0x432   : > { %3382 = vmatprep.subr.bf16.mxu1 %v3521_v13 }
 0x434   : > { %3222 = vmatmul.mubr.msk.f32.vlgmr.msra.gmra.mrb[4].mxu0 %vm963_vm10, %v3835_v14 }
 0x435   : > { %3225 = vmatpush3.msk.msra.mxu0 %vm970_vm12, %v1135_v6  ;;  %3226 = vmatprep.mubr.msk.f32.mxu0 %vm963_vm10, %v3841_v15 }
 0x436   : > { %3229 = vmatprep.subr.msk.mxu0 %vm970_vm12, %v1225_v17 }
 0x437   : > { %3247 = vmatmul.mubr.msk.f32.vlgmr.msra.gmra.mrb[0].mxu1 %vm963_vm10, %v3849_v18 }
 0x438   : > { %3253 = vmatprep.mubr.msk.f32.mxu1 %vm3522_vm6, %v3523_v16 }
 0x43c   : > { %3227 = vmatmul.mubr.msk.f32.vlgmr.msra.gmra.mrb[4].mxu0 %vm963_vm10, %v3862_v19 }
 0x43d   : > { %3230 = vmatpush3.msk.msra.mxu0 %vm970_vm12, %v1225_v17  ;;  %3231 = vmatprep.mubr.msk.f32.mxu0 %vm963_vm10, %v3867_v20 }
 0x43e   : > { %3234 = vmatprep.subr.msk.mxu0 %vm970_vm12, %v1315_v21 }
 0x444   : > { %3232 = vmatmul.mubr.msk.f32.vlgmr.msra.gmra.mrb[4].mxu0 %vm963_vm10, %v3878_v22 }
 0x445   : > { %3235 = vmatpush3.msk.msra.mxu0 %vm970_vm12, %v1315_v21  ;;  %3236 = vmatprep.mubr.msk.f32.mxu0 %vm963_vm10, %v3883_v23 }
 0x446   : > { %3385 = vmatprep.subr.bf16.mxu0 %v3521_v13 }
 0x44c   : > { %3237 = vmatmul.mubr.msk.f32.vlgmr.msra.gmra.mrb[4].mxu0 %vm963_vm10, %v3894_v24 }
 0x44d   : > { %3300 = vmatprep.mubr.msk.f32.mxu0 %vm3522_vm6, %v3523_v16 }
 0x4fb   : > { %v3213_v25 = vpop.f32.mrb[2].mxu0 }
 0x4fc   : > { %1588 = vperm.xlu0 %3476, %v3213_v25   ;;  %v944_v26 = vpop.f32.mrb[3].mxu0 }
 0x4fd   : > { %1583 = vperm.xlu1 %3475, %v944_v26  }
 0x500   : > { %3477 = vset.pattern.permute.xlu0 %v3534_v45 }
 0x501   : > { %3478 = vset.pattern.permute.xlu1 %v3534_v45  ;;  %v2610_v45 = vld [vmem:[%s4157_s9 + $0x18] sm:$0xff] }
 0x50a   : > { %v3248_v27 = vpop.f32.mrb[0].mxu1 }
 0x50b   : > { %v1570_v28 = vpop.f32.mrb[1].mxu1 }
 0x51f   : > { %v3238_v29 = vpop.f32.mrb[4].mxu0 }
 0x520   : > { %v3424_v30 = vadd.f32 %v3248_v27, %v3238_v29  ;;  %v1390_v31 = vpop.f32.mrb[5].mxu0 }
 0x521   : > { %v3425_v32 = vadd.f32 %v1570_v28, %v1390_v31 }
 0x57b   : > { %v1589_v34 = vpop.permute.xlu0 %1588 }
 0x57c   : > { %v1592_v35 = vadd.f32 %v3424_v30, %v1589_v34  ;;  %v1584_v37 = vpop.permute.xlu1 %1583  ;;  %v3038_v34 = vld [vmem:[%s4149_s1 + $0x8] sm:$0xff] }
 0x57d   : > { %v1591_v38 = vadd.f32 %v3425_v32, %v1584_v37 }
 0x57e   : > { %v1596_v39 = vadd.f32 %v1594_v33, %v1592_v35 }
 0x57f   : > { %v1595_v40 = vadd.f32 %v1593_v36, %v1591_v38 }
 0x580   : > { %3487 = vtanh.f32 %v1596_v39 }
 0x581   : > { %3489 = vtanh.f32 %v1595_v40  ;;  %v2594_v40 = vld [vmem:[#allocation4] sm:$0x3] }
 0x58a   : > { %v3488_v41 = vpop.eup %3487 }
 0x58b   : > { %v3490_v42 = vpop.eup %3489 }
 0x58c   : > { %v3383_v43 = vpack.c.bf16 %v3488_v41, %v3490_v42  ;;  %v2607_v41 = vld [vmem:[%s4157_s9] sm:$0xff]  ;;  %v2608_v42 = vld [vmem:[%s4157_s9 + $0x8] sm:$0xff] }
 0x58e   : > { %3384 = vmatpush3.bf16.msra.mxu1 %v3383_v43 }
 0x58f   : > { %3256 = vmatprep.subr.mxu1 %v3523_v16 }
 0x591   : > { %3254 = vmatmul.mubr.msk.f32.vlgmr.msra.gmra.mrb[2].mxu1 %vm679_vm7, %v1599_v44  ;;  %v2609_v44 = vld [vmem:[%s4157_s9 + $0x10] sm:$0xff] }
 0x592   : > { %3258 = vmatprep.mubr.msk.f32.mxu1 %vm3522_vm6, %v3523_v16  ;;  %3257 = vmatpush3.msra.mxu1 %v1687_v57  ;;  %v3393_v46 = vpack.c.bf16 %v2610_v45, %v2609_v44  ;;  %v2617_v57 = vld [vmem:[%s4157_s9 + $0x50] sm:$0xff] }
 0x664   : > { %v1669_v47 = vpop.f32.mrb[2].mxu1 }
 0x665   : > { %v1674_v48 = vsel %vm1673_vm13, -1e+30, %v1669_v47  ;;  %v3255_v49 = vpop.f32.mrb[3].mxu1  ;;  %v2611_v47 = vld [vmem:[%s4157_s9 + $0x20] sm:$0xff] }
 0x666   : > { %v1676_v50 = vsel %vm1675_vm14, %v1674_v48, -inf }
 0x667   : > { %1677 = vmax.xlane.f32.xlu1 %v1676_v50  ;;  %v2613_v50 = vld [vmem:[%s4157_s9 + $0x30] sm:$0xff] }
 0x678   : > { %1784 = vrot.lane.b32.xlu1 %v3916_v51, %s3527_s21 }
 0x67c   : > { %2043 = vrot.lane.b32.xlu1 %v3916_v51, %s3528_s22  ;;  %s3536_s22 = smov 96  }
 0x680   : > { %2132 = vrot.lane.b32.xlu1 %v3916_v51, %s3529_s23 }
 0x684   : > { %2310 = vrot.lane.b32.xlu1 %v3916_v51, %s3532_s29  ;;  %s4170_s29 = smov 32  }
 0x688   : > { %2402 = vperm.xlu1 %3478, %v3213_v25  }
 0x6f4   : > { %v1678_v52 = vpop.xlane.xlu1 %1677 }
 0x6f5   : > { %v1679_v53 = vsub.f32 %v1674_v48, %v1678_v52  ;;  %v2612_v48 = vld [vmem:[%s4157_s9 + $0x28] sm:$0xff]  ;;  %v2614_v52 = vld [vmem:[%s4157_s9 + $0x38] sm:$0xff] }
 0x6f6   : > { %v3397_v49 = vpack.c.bf16 %v2612_v48, %v2611_v47 }
 0x6f7   : > { %v1680_v54 = vmul.f32 1.442695, %v1679_v53  ;;  %v3401_v53 = vpack.c.bf16 %v2614_v52, %v2613_v50 }
 0x6f8   : > { %v1785_v59 = vpop.permute.xlu1 %1784 }
 0x6f9   : > { %3491 = vpow2.f32 %v1680_v54  ;;  %3261 = vmatprep.subr.msk.mxu1 %vm970_vm12, %v1785_v59  ;;  %v2615_v54 = vld [vmem:[%s4157_s9 + $0x40] sm:$0xff] }
 0x6fc   : > { %v2044_v3 = vpop.permute.xlu1 %2043 }
 0x700   : > { %v2133_v4 = vpop.permute.xlu1 %2132 }
 0x703   : > { %v3492_v55 = vpop.eup %3491 }
 0x704   : > { %v1682_v56 = vsel %vm1675_vm14, %v3492_v55, 0.0  ;;  %v2311_v6 = vpop.permute.xlu1 %2310 }
 0x705   : > { %1683 = vadd.xlane.f32.xlu0 %v1682_v56 }
 0x71b   : > { %1954 = vrot.lane.b32.xlu0 %v3916_v51, %s3530_s27 }
 0x71f   : > { %2221 = vrot.lane.b32.xlu0 %v3916_v51, %s3531_s28 }
 0x723   : > { %2398 = vperm.xlu0 %3477, %v944_v26  }
 0x792   : > { %v1684_v61 = vpop.xlane.xlu0 %1683 }
 0x793   : > { %3493 = vrcp.f32 %v1684_v61 }
 0x796   : > { %v1955_v1 = vpop.permute.xlu0 %1954 }
 0x79d   : > { %v3494_v62 = vpop.eup %3493 }
 0x79e   : > { %v3935_v63 = vmul.f32 %v3494_v62, %v3492_v55  ;;  %v2616_v55 = vld [vmem:[%s4157_s9 + $0x48] sm:$0xff]  ;;  %v2619_v62 = vld [vmem:[%s4157_s9 + $0x60] sm:$0xff] }
 0x79f   : > { %v3405_v56 = vpack.c.bf16 %v2616_v55, %v2615_v54 }
 0x7a0   : > { %1764 = vst.msk [vmem:[#allocation9] sm:$0x1] %vm1675_vm14, %v3935_v63  ;;  %3259 = vmatmul.mubr.msk.f32.vlgmr.msra.gmra.mrb[4].mxu1 %vm1688_vm15, %v3935_v63 }
 0x7a1   : > { %3262 = vmatpush3.msk.msra.mxu1 %vm970_vm12, %v1785_v59  ;;  %3263 = vmatprep.mubr.msk.f32.mxu1 %vm963_vm10, %v3790_v5  ;;  %v2222_v5 = vpop.permute.xlu0 %2221  ;;  %v2618_v59 = vld [vmem:[%s4157_s9 + $0x58] sm:$0xff] }
 0x7a2   : > { %3266 = vmatprep.subr.msk.mxu1 %vm970_vm12, %v3916_v51  ;;  %v3409_v61 = vpack.c.bf16 %v2618_v59, %v2617_v57 }
 0x7a4   : > { %3264 = vmatmul.mubr.msk.f32.vlgmr.msra.gmra.mrb[6].mxu1 %vm963_vm10, %v3799_v7 }
 0x7a5   : > { %3267 = vmatpush3.msk.msra.mxu1 %vm970_vm12, %v3916_v51  ;;  %3268 = vmatprep.mubr.msk.f32.mxu1 %vm963_vm10, %v3806_v8  ;;  %v2403_v8 = vpop.permute.xlu1 %2402  ;;  %v2399_v12 = vpop.permute.xlu0 %2398 }
 0x7a6   : > { %3271 = vmatprep.subr.msk.mxu1 %vm970_vm12, %v1955_v1 }
 0x7ac   : > { %3269 = vmatmul.mubr.msk.f32.vlgmr.msra.gmra.mrb[6].mxu1 %vm963_vm10, %v3835_v14 }
 0x7ad   : > { %3272 = vmatpush3.msk.msra.mxu1 %vm970_vm12, %v1955_v1  ;;  %3273 = vmatprep.mubr.msk.f32.mxu1 %vm963_vm10, %v3841_v15  ;;  %v2620_v1 = vld [vmem:[%s4157_s9 + $0x68] sm:$0xff] }
 0x7ae   : > { %3276 = vmatprep.subr.msk.mxu1 %vm970_vm12, %v2044_v3 }
 0x7b4   : > { %3274 = vmatmul.mubr.msk.f32.vlgmr.msra.gmra.mrb[6].mxu1 %vm963_vm10, %v3862_v19 }
 0x7b5   : > { %3277 = vmatpush3.msk.msra.mxu1 %vm970_vm12, %v2044_v3  ;;  %3278 = vmatprep.mubr.msk.f32.mxu1 %vm963_vm10, %v3867_v20  ;;  %v3413_v3 = vpack.c.bf16 %v2620_v1, %v2619_v62 }
 0x7b6   : > { %3281 = vmatprep.subr.msk.mxu1 %vm970_vm12, %v2133_v4 }
 0x7bc   : > { %3279 = vmatmul.mubr.msk.f32.vlgmr.msra.gmra.mrb[6].mxu1 %vm963_vm10, %v3878_v22 }
 0x7bd   : > { %3282 = vmatpush3.msk.msra.mxu1 %vm970_vm12, %v2133_v4  ;;  %3283 = vmatprep.mubr.msk.f32.mxu1 %vm963_vm10, %v3883_v23  ;;  %v2414_v23 = vld [vmem:[%s4153_s5] sm:$0x1]  ;;  %v2621_v4 = vld [vmem:[%s4157_s9 + $0x70] sm:$0xff] }
 0x7be   : > { %3286 = vmatprep.subr.msk.mxu1 %vm970_vm12, %v2222_v5 }
 0x7c4   : > { %3284 = vmatmul.mubr.msk.f32.vlgmr.msra.gmra.mrb[6].mxu1 %vm963_vm10, %v3894_v24 }
 0x7c5   : > { %3287 = vmatpush3.msk.msra.mxu1 %vm970_vm12, %v2222_v5  ;;  %3288 = vmatprep.mubr.msk.f32.mxu1 %vm963_vm10, %v3771_v0  ;;  %v2622_v5 = vld [vmem:[%s4157_s9 + $0x78] sm:$0xff] }
 0x7c6   : > { %3291 = vmatprep.subr.msk.mxu1 %vm970_vm12, %v2311_v6 }
 0x7cc   : > { %3289 = vmatmul.mubr.msk.f32.vlgmr.msra.gmra.mrb[6].mxu1 %vm963_vm10, %v3814_v10  ;;  %v2409_v10 = vld [vmem:[#allocation8 + $0x18] sm:$0xff] }
 0x7cd   : > { %3292 = vmatpush3.msk.msra.mxu1 %vm970_vm12, %v2311_v6  ;;  %3293 = vmatprep.mubr.msk.f32.mxu1 %vm963_vm10, %v3823_v11  ;;  %v2408_v11 = vld [vmem:[#allocation8 + $0x10] sm:$0xff]  ;;  %v3417_v6 = vpack.c.bf16 %v2622_v5, %v2621_v4 }
 0x7ce   : > { %3388 = vmatprep.subr.bf16.mxu1 %v3521_v13 }
 0x7d4   : > { %3294 = vmatmul.mubr.msk.f32.vlgmr.msra.gmra.mrb[6].mxu1 %vm963_vm10, %v3849_v18 }
 0x7d5   : > { %3340 = vmatprep.mubr.msk.f32.mxu1 %vm3522_vm6, %v3523_v16 }
 0x873   : > { %v1758_v0 = vpop.f32.mrb[4].mxu1 }
 0x874   : > { %1763 = vst.msk [vmem:[#allocation6] sm:$0x1] %vm1762_vm0, %v1758_v0  ;;  %v3260_v7 = vpop.f32.mrb[5].mxu1 }
 0x8a7   : > { %v3295_v9 = vpop.f32.mrb[6].mxu1 }
 0x8a8   : > { %v2406_v14 = vadd.f32 %v3295_v9, %v2403_v8  ;;  %v2386_v15 = vpop.f32.mrb[7].mxu1 }
 0x8a9   : > { %v2405_v17 = vadd.f32 %v2399_v12, %v2386_v15  ;;  %v3041_v15 = vld [vmem:[%s4158_s10] ss:$0 sm:$0xff] }
 0x8aa   : > { %v2411_v19 = vadd.f32 %v2409_v10, %v2406_v14 }
 0x8ab   : > { %v2410_v20 = vadd.f32 %v2408_v11, %v2405_v17 }
 0x8ac   : > { %3495 = vtanh.f32 %v2411_v19 }
 0x8ad   : > { %3497 = vtanh.f32 %v2410_v20 }
 0x8b6   : > { %v3496_v18 = vpop.eup %3495 }
 0x8b7   : > { %v3498_v21 = vpop.eup %3497 }
 0x8b8   : > { %v3386_v22 = vpack.c.bf16 %v3496_v18, %v3498_v21 }
 0x8ba   : > { %3387 = vmatpush3.bf16.msra.mxu0 %v3386_v22 }
 0x8bb   : > { %3303 = vmatprep.subr.mxu0 %v3523_v16 }
 0x8bd   : > { %3301 = vmatmul.mubr.msk.f32.vlgmr.msra.gmra.mrb[6].mxu0 %vm679_vm7, %v2414_v23  ;;  %vm1775_vm7 = vcmask 82969  }
 0x8be   : > { %3305 = vmatprep.mubr.msk.f32.mxu0 %vm3522_vm6, %v3523_v16  ;;  %3304 = vmatpush3.msra.mxu0 %v3038_v34 }
 0x8bf   : > { %3420 = vmatprep.subr.bf16.mxu0 %v3521_v13 }
 0x990   : > { %v2484_v24 = vpop.f32.mrb[6].mxu0 }
 0x991   : > { %v2489_v25 = vrot.slane %v2484_v24, 7  ;;  %v3302_v26 = vpop.f32.mrb[7].mxu0 }
 0x993   : > { %v2491_v27 = vsel %vm1673_vm13, -1e+30, %v2489_v25 }
 0x994   : > { %v2493_v28 = vsel %vm2492_vm1, %v2491_v27, -inf }
 0x995   : > { %2494 = vmax.xlane.f32.xlu1 %v2493_v28 }
 0x9a6   : > { %2601 = vrot.lane.b32.xlu1 %v2594_v40, %s3525_s20 }
 0xa22   : > { %v2495_v29 = vpop.xlane.xlu1 %2494 }
 0xa23   : > { %v2496_v30 = vsub.f32 %v2491_v27, %v2495_v29 }
 0xa25   : > { %v2497_v31 = vmul.f32 1.442695, %v2496_v30  ;;  %v2791_v30 = vld [vmem:[%s4159_s11] sm:$0xff] }
 0xa26   : > { %v2602_v9 = vpop.permute.xlu1 %2601 }
 0xa27   : > { %3499 = vpow2.f32 %v2497_v31  ;;  %v2792_v31 = vld [vmem:[%s4159_s11 + $0x8] sm:$0x1] }
 0xa31   : > { %v3500_v32 = vpop.eup %3499 }
 0xa32   : > { %v2499_v33 = vsel %vm2492_vm1, %v3500_v32, 0.0 }
 0xa33   : > { %2500 = vadd.xlane.f32.xlu0 %v2499_v33  ;;  %v1770_v33 = vrot.slane %v3935_v63, 7 }
 0xac0   : > { %v2501_v35 = vpop.xlane.xlu0 %2500 }
 0xac1   : > { %3501 = vrcp.f32 %v2501_v35 }
 0xacb   : > { %v3502_v36 = vpop.eup %3501 }
 0xacc   : > { %v4003_v37 = vmul.f32 %v3502_v36, %v3500_v32  ;;  %v3421_v32 = vpack.c.bf16 %v2792_v31, %v2791_v30 }
 0xace   : > { %2581 = vst.msk [vmem:[#allocation9] sm:$0x2] %vm2492_vm1, %v4003_v37  ;;  %v2507_v38 = vrot.slane %v4003_v37, 1 }
 0xad0   : > { %3306 = vmatmul.mubr.msk.f32.vlgmr.msra.gmra.mrb[8].mxu0 %vm1688_vm15, %v2507_v38 }
 0xad1   : > { %3347 = vmatprep.mubr.msk.f32.mxu0 %vm3522_vm6, %v3523_v16  ;;  %v3389_v16 = vpack.c.bf16 %v2608_v42, %v2607_v41  ;;  %vm3422_vm6 = vmpackc.low %vm2605_vm5, %vm2605_vm5  ;;  %v3060_v42 = vld [vmem:[%s4160_s12] ss:$0 sm:$0xff] }
 0xad2   : > { %3423 = vmatpush3.bf16.xpose.msk.msra.mxu0 %vm3422_vm6, %v3421_v32 }
 0xad3   : > { %3391 = vmatpush3.bf16.xpose.msk.msra.mxu1 %vm4028_vm4, %v3389_v16 }
 0xad4   : > { %3392 = vmatprep.subr.bf16.mxu1 %v3521_v13 }
 0xad5   : > { %v2588_v39 = vld [vmem:[#allocation9] sm:$0x3] }
 0xad6   : > { %2592 = vst.msk [vmem:[%s2590_s16] sm:$0x3] %vm2591_vm2, %v2588_v39 }
 0xadb   : > { %3395 = vmatpush3.bf16.xpose.msk.msra.mxu1 %vm4028_vm4, %v3393_v46 }
 0xadc   : > { %3396 = vmatprep.subr.bf16.mxu1 %v3521_v13 }
 0xae3   : > { %3399 = vmatpush3.bf16.xpose.msk.msra.mxu1 %vm4028_vm4, %v3397_v49 }
 0xae4   : > { %3400 = vmatprep.subr.bf16.mxu1 %v3521_v13 }
 0xaeb   : > { %3403 = vmatpush3.bf16.xpose.msk.msra.mxu1 %vm4028_vm4, %v3401_v53 }
 0xaec   : > { %3404 = vmatprep.subr.bf16.mxu1 %v3521_v13 }
 0xaf3   : > { %3407 = vmatpush3.bf16.xpose.msk.msra.mxu1 %vm4028_vm4, %v3405_v56 }
 0xaf4   : > { %3408 = vmatprep.subr.bf16.mxu1 %v3521_v13 }
 0xafb   : > { %3411 = vmatpush3.bf16.xpose.msk.msra.mxu1 %vm4028_vm4, %v3409_v61 }
 0xafc   : > { %3412 = vmatprep.subr.bf16.mxu1 %v3521_v13 }
 0xb03   : > { %3415 = vmatpush3.bf16.xpose.msk.msra.mxu1 %vm4028_vm4, %v3413_v3 }
 0xb04   : > { %3416 = vmatprep.subr.bf16.mxu1 %v3521_v13  ;;  %v2595_v13 = vld [vmem:[#allocation5] sm:$0x3] }
 0xb0b   : > { %3419 = vmatpush3.bf16.xpose.msk.msra.mxu1 %vm4028_vm4, %v3417_v6 }
 0xba3   : > { %v2576_v0 = vpop.f32.mrb[8].mxu0 }
 0xba4   : > { %2580 = vst.msk [vmem:[#allocation6 + $0x1] sm:$0x1] %vm1762_vm0, %v2576_v0  ;;  %v3307_v7 = vpop.f32.mrb[9].mxu0 }
 0xbab   : > { %v2593_v8 = vld [vmem:[#allocation6] sm:$0x3] }
 0xbac   : > { %2597 = vrot.lane.b32.xlu0 %v2593_v8, %s4170_s29 }
 0xbb0   : > { %2760 = vrot.lane.b32.xlu0 %v2595_v13, %s4170_s29 }
 0xc1e   : > { %v2598_v10 = vpop.permute.xlu0 %2597 }
 0xc1f   : > { %v2604_v12 = vsel %vm869_vm9, %v3775_v2, %v2598_v10 }
 0xc20   : > { %v2606_v14 = vsel %vm2605_vm5, %v2604_v12, %v2602_v9 }
 0xc21   : > { %3341 = vmatmul.mubr.msk.f32.vlgmr.msra.gmra.mrb[8].mxu1 %vm2630_vm3, %v2606_v14 }
 0xc22   : > { %v2761_v25 = vpop.permute.xlu0 %2760 }
 0xcf4   : > { %v2748_v11 = vpop.f32.mrb[8].mxu1 }
 0xcf5   : > { %v2749_v17 = vadd.f32 %v3041_v15, %v2748_v11  ;;  %v3342_v19 = vpop.f32.mrb[9].mxu1 }
 0xcf7   : > { %3503 = vtanh.f32 %v2749_v17  ;;  %v3059_v18 = vmul.f32 -1.442695, %v2749_v17 }
 0xcf9   : > { %3505 = vpow2.f32 %v3059_v18 }
 0xd01   : > { %v3504_v20 = vpop.eup %3503 }
 0xd02   : > { %2765 = vrot.lane.b32.xlu1 %v3504_v20, %s3525_s20 }
 0xd03   : > { %v3506_v21 = vpop.eup %3505 }
 0xd04   : > { %v2755_v22 = vadd.f32 1.0, %v3506_v21 }
 0xd06   : > { %3507 = vrcp.f32 %v2755_v22 }
 0xd10   : > { %v3508_v2 = vpop.eup %3507 }
 0xd11   : > { %v2763_v26 = vmul.f32 %v3508_v2, %v2761_v25 }
 0xd74   : > { %v2766_v23 = vpop.permute.xlu1 %2765 }
 0xd75   : > { %v2768_v24 = vmul.f32 %v3508_v2, %v2766_v23 }
 0xd77   : > { %2770 = vrot.lane.b32.xlu1 %v2768_v24, %s4170_s29 }
 0xde9   : > { %v2771_v27 = vpop.permute.xlu1 %2770 }
 0xdea   : > { %v2773_v28 = vadd.f32 %v2771_v27, %v2763_v26 }
 0xdec   : > { %3509 = vtanh.f32 %v2773_v28 }
 0xdf6   : > { %v3510_v29 = vpop.eup %3509 }
 0xdf7   : > { %2776 = vrot.lane.b32.xlu0 %v3510_v29, %s3525_s20 }
 0xdfb   : > { %1771 = vrot.lane.b32.xlu0 %v1770_v33, %s3535_s19 }
 0xdff   : > { %863 = vrot.lane.b32.xlu0 %v3745_v58, %s3536_s22 }
 0xe03   : > { %2786 = vrot.lane.b32.xlu0 %v2773_v28, %s3536_s22 }
 0xe69   : > { %v2777_v34 = vpop.permute.xlu0 %2776 }
 0xe6a   : > { %v2779_v35 = vmul.f32 %v3508_v2, %v2777_v34 }
 0xe6c   : > { %2781 = vrot.lane.b32.xlu1 %v2779_v35, %s4170_s29  ;;  %s2879_s29 = scalar_lea.vmem %s4161_s13, %s4010_s26 }
 0xe6d   : > { %v1772_v36 = vpop.permute.xlu0 %1771 }
 0xe6e   : > { %v1774_v38 = vadd.f32 %v1772_v36, %v3749_v60 }
 0xe70   : > { %2582 = vrot.lane.b32.xlu1 %v4003_v37, %s3535_s19  ;;  %1776 = vst.msk [vmem:[#allocation7] sm:$0x2] %vm1775_vm7, %v1774_v38 }
 0xe71   : > { %v864_v39 = vpop.permute.xlu0 %863 }
 0xe72   : > { %866 = vst.msk [vmem:[#allocation3] sm:$0x3] %vm860_vm11, %v864_v39 }
 0xe74   : > { %1765 = vrot.lane.b32.xlu1 %v3935_v63, %s3535_s19 }
 0xe75   : > { %v2787_v58 = vpop.permute.xlu0 %2786 }
 0xe76   : > { %2789 = vst.msk [vmem:[#allocation5] sm:$0x3] %vm860_vm11, %v2787_v58 }
 0xede   : > { %v2782_v40 = vpop.permute.xlu1 %2781 }
 0xedf   : > { %2784 = vst.msk [vmem:[#allocation4] sm:$0x3] %vm860_vm11, %v2782_v40  ;;  %v2790_v41 = vsel %vm869_vm9, %v2782_v40, %v2598_v10  ;;  %vm2886_vm9 = vcmask 1024  }
 0xee0   : > { %3348 = vmatmul.mubr.msk.f32.vlgmr.msra.gmra.mrb[10].mxu0 %vm2605_vm5, %v2790_v41 }
 0xee2   : > { %v2583_v60 = vpop.permute.xlu1 %2582 }
 0xee3   : > { %2585 = vst.msk [vmem:[#allocation7 + $0x1] sm:$0x2] %vm1775_vm7, %v2583_v60  ;;  %v2586_v37 = vadd.f32 %v2583_v60, %v3916_v51 }
 0xee5   : > { %2587 = vst.msk [vmem:[#allocation7 + $0x2] sm:$0x2] %vm1775_vm7, %v2586_v37 }
 0xee6   : > { %v1766_v63 = vpop.permute.xlu1 %1765 }
 0xee7   : > { %1769 = vst.msk [vmem:[#allocation7] sm:$0x1] %vm1768_vm8, %v1766_v63 }
 0xfb3   : > { %v2875_v16 = vpop.f32.mrb[10].mxu0 }
 0xfb4   : > { %v2876_v43 = vadd.f32 %v3060_v42, %v2875_v16  ;;  %v3349_v44 = vpop.f32.mrb[11].mxu0 }
 0xfb6   : > { %2880 = vst.msk [vmem:[%s2879_s29] sm:$0x3] %vm2591_vm2, %v2876_v43  ;;  %2882 = vrot.lane.b32.xlu1 %v2876_v43, %s3537_s30 }
0x1028   : > { %v2883_v51 = vpop.permute.xlu1 %2882 }
0x1029   : > { %2887 = vst.msk [vmem:[%s2885_s17] sm:$0x3] %vm2886_vm9, %v2883_v51 }
0x102a PF: > { %s26_s18 = sadd.s32 1, %s3517_s18  }
0x102b   : > { %p23_p5 = scmp.ge.s32.totalorder %s26_s18, 10  }
0x102d   :  { %25 = sbr.rel (!%p23_p5) target bundleno = 1 (0x1), region = 132 }

</bundles_post_ra>
